<compile_context>
chip_gen: v5e
topology: v5e:2x2
jax: 0.10.0
libtpu: 0.0.40
codegen_flags: <defaults>
</compile_context>

<pallas_src>
import jax
import jax.numpy as jnp
from jax import lax
from jax.experimental import pallas as pl
from jax.experimental.pallas import tpu as pltpu


_K = 5                      # conv kernel size (both convs)
_TB1 = 32                   # images / grid step, conv1 kernel  (TB1 % 8 == 0 -> TB1*144 % 128 == 0)
_TB2 = 32                   # images / grid step, fused conv2+MLP kernel (multiple of 16 for bf16 tiling)
_VMEM_LIMIT = 32 * 1024 * 1024


# ----------------------------------------------------------------------------
# Pallas kernels
# ----------------------------------------------------------------------------
def conv1_pool_kernel(p_ref, w_ref, b_ref, o_ref):
    """conv1 -> maxpool2d(2) -> relu, transposed-GEMM form.

    p_ref: (4, K1, TB1*144) bf16   (pool_pos, (ci,ky,kx), image-major lanes)
    w_ref: (10, K1)         bf16   b_ref: (10, 1) f32
    o_ref: (10, TB1*144)    bf16   channel-major, lane-dense output
    """
    w = w_ref[...]
    # One MXU push per pool position; all four results share the same layout,
    # so the pooling max is pure VPU work (no relayout / no reshape).
    y0 = jnp.dot(w, p_ref[0], preferred_element_type=jnp.float32)
    y1 = jnp.dot(w, p_ref[1], preferred_element_type=jnp.float32)
    y2 = jnp.dot(w, p_ref[2], preferred_element_type=jnp.float32)
    y3 = jnp.dot(w, p_ref[3], preferred_element_type=jnp.float32)
    m = jnp.maximum(jnp.maximum(y0, y1), jnp.maximum(y2, y3))
    # bias is constant per channel, so max commutes with +b; relu afterwards.
    o_ref[...] = jnp.maximum(m + b_ref[...], 0.0).astype(o_ref.dtype)


def conv2_mlp_kernel(p_ref, w2_ref, b2_ref, wf1_ref, bf1_ref, wf2_ref, bf2_ref,
                     o_ref):
    """conv2 (one GEMM) -> maxpool2d(2) -> relu -> flatten -> fc1 -> relu ->
    dropout(eval identity) -> fc2.

    p_ref:   (16, 4, TB2, 250) bf16   (pooled site, pool_pos, image, (ci,ky,kx))
    w2_ref:  (250, 20) bf16           b2_ref:  (1, 1, 20) f32
    wf1_ref: (16, 20, 50) bf16        bf1_ref: (1, 50) f32
    wf2_ref: (50, C) bf16             bf2_ref: (1, C) f32
    o_ref:   (TB2, C) f32
    """
    s16, npool, tb, k2 = p_ref.shape
    cout2 = w2_ref.shape[1]
    hid = bf1_ref.shape[-1]

    # Single conv2 GEMM over all sites/pool positions/images in the tile.
    # The reshapes only merge/split leading dims (second-minor stays a
    # multiple of the sublane tiling), so they are layout-preserving.
    p = p_ref[...].reshape(s16 * npool * tb, k2)
    y = jnp.dot(p, w2_ref[...], preferred_element_type=jnp.float32)
    y = y.reshape(s16, npool, tb, cout2)

    # maxpool2d(2) over the pool-position axis, then bias + relu.
    h = jnp.maximum(jnp.maximum(y[:, 0], y[:, 1]), jnp.maximum(y[:, 2], y[:, 3]))
    h = jnp.maximum(h + b2_ref[...], 0.0)                  # (16, tb, 20)
    hb = h.astype(jnp.bfloat16)

    # fc1: contraction over (site, channel) done as 16 accumulated K=20 dots
    # (site is a leading axis -> no relayout; no XLU reduction).
    acc = jnp.zeros((tb, hid), jnp.float32)
    for s in range(s16):
        acc = acc + jnp.dot(hb[s], wf1_ref[s], preferred_element_type=jnp.float32)
    h3 = jnp.maximum(acc + bf1_ref[...], 0.0)               # (tb, 50)

    # TODO(synk): F.dropout / Dropout2d training-mode RNG masks not implemented
    #             (eval-mode identity semantics only).
    o_ref[...] = (jnp.dot(h3.astype(jnp.bfloat16), wf2_ref[...],
                          preferred_element_type=jnp.float32) + bf2_ref[...])


# ----------------------------------------------------------------------------
# Host-side (XLA) im2col, grouped by 2x2 pooling offset.  All slabs are bf16.
# ----------------------------------------------------------------------------
def _conv1_pool_patches(xb):
    """NCHW bf16 x (B, C, 28, 28) -> (4, C*25, B*144).

    dim0: pool position (dy,dx); dim1: (ci,ky,kx); lanes: b*144 + site."""
    B, C, H, W = xb.shape
    Ho = H - _K + 1                                           # 24
    Po = Ho // 2                                              # 12
    xc = xb.transpose(1, 0, 2, 3)                             # (C, B, 28, 28) small copy
    slabs = []
    for dy in (0, 1):
        for dx in (0, 1):
            taps = jnp.stack(
                [xc[:, :, dy + ky: dy + ky + Ho: 2, dx + kx: dx + kx + Ho: 2]
                 for ky in range(_K) for kx in range(_K)], axis=1)  # (C, 25, B, 12, 12)
            slabs.append(taps.reshape(C * _K * _K, B * Po * Po))
    return jnp.stack(slabs, axis=0)                           # (4, K1, B*144)


def _conv2_pool_patches(h1c):
    """channel-major bf16 h1 (10, B, 12, 12) -> (16, 4, B, 250).

    dims: (pooled site, pool position, image, (ci,ky,kx))."""
    C, B, H, W = h1c.shape
    Ho = H - _K + 1                                           # 8
    Po = Ho // 2                                              # 4
    slabs = []
    for dy in (0, 1):
        for dx in (0, 1):
            taps = jnp.stack(
                [h1c[:, :, dy + ky: dy + ky + Ho: 2, dx + kx: dx + kx + Ho: 2]
                 for ky in range(_K) for kx in range(_K)], axis=1)  # (C, 25, B, 4, 4)
            t = taps.transpose(3, 4, 2, 0, 1)                 # (i2, j2, B, C, 25)
            slabs.append(t.reshape(Po * Po, B, C * _K * _K))
    return jnp.stack(slabs, axis=1)                           # (16, 4, B, 250)


# ----------------------------------------------------------------------------
# One-time weight re-layout (hoisted OUT of the jitted forward)
# ----------------------------------------------------------------------------
def prep_params(params):
    w1, b1, w2, b2, wf1, bf1, wf2, bf2 = params
    cout1, cin = w1.shape[0], w1.shape[1]
    cout2 = w2.shape[0]
    hid, classes = wf1.shape[0], wf2.shape[0]
    w1k = w1.reshape(cout1, cin * _K * _K).astype(jnp.bfloat16)       # (10, K1)
    w2k = w2.reshape(cout2, cout1 * _K * _K).T.astype(jnp.bfloat16)   # (250, 20), rows (ci,ky,kx)
    # fc1 columns reordered from NCHW flatten (c, h, w) to (site=(h,w), c):
    wf1s = (wf1.reshape(hid, cout2, 4, 4)
               .transpose(2, 3, 1, 0)
               .reshape(16, cout2, hid).astype(jnp.bfloat16))          # (16, 20, 50)
    return (w1k, b1.reshape(cout1, 1).astype(jnp.float32),
            w2k, b2.reshape(1, 1, cout2).astype(jnp.float32),
            wf1s, bf1.reshape(1, hid).astype(jnp.float32),
            wf2.T.astype(jnp.bfloat16), bf2.reshape(1, classes).astype(jnp.float32))


# ----------------------------------------------------------------------------
# CNNMnist forward
# ----------------------------------------------------------------------------
def cnn_mnist_forward(x, prepped):
    """x: (B, num_channels, 28, 28) NCHW float32 -> (B, num_classes) float32."""
    w1k, b1r, w2k, b2r, wf1s, bf1r, wf2t, bf2r = prepped
    B = x.shape[0]
    # fc1 has 320 = 20*4*4 inputs, which pins the spatial size to 28x28 (MNIST).
    assert x.shape[2] == 28 and x.shape[3] == 28, x.shape
    cout1, k1 = w1k.shape
    k2, cout2 = w2k.shape
    hid = wf2t.shape[0]
    num_classes = wf2t.shape[1]

    # Pad batch to a multiple of both tile sizes (TB1 == TB2 == 32 here).
    tile = max(_TB1, _TB2)
    Bp = ((B + tile - 1) // tile) * tile
    if Bp != B:
        x = jnp.concatenate(
            [x, jnp.zeros((Bp - B,) + x.shape[1:], x.dtype)], axis=0)
    xb = x.astype(jnp.bfloat16)

    # ---- kernel A: conv1 -> maxpool(2) -> relu ----------------------------
    p1 = _conv1_pool_patches(xb)                              # (4, K1, Bp*144) bf16
    h1 = pl.pallas_call(
        conv1_pool_kernel,
        out_shape=jax.ShapeDtypeStruct((cout1, Bp * 144), jnp.bfloat16),
        grid=(Bp // _TB1,),
        in_specs=[
            pl.BlockSpec((4, k1, _TB1 * 144), lambda i: (0, 0, i)),
            pl.BlockSpec((cout1, k1), lambda i: (0, 0)),        # resident weight
            pl.BlockSpec((cout1, 1), lambda i: (0, 0)),         # resident bias
        ],
        out_specs=pl.BlockSpec((cout1, _TB1 * 144), lambda i: (0, i)),
        compiler_params=pltpu.CompilerParams(
            dimension_semantics=("parallel",),
            vmem_limit_bytes=_VMEM_LIMIT),
    )(p1, w1k, b1r)
    h1c = h1.reshape(cout1, Bp, 12, 12)                       # channel-major, no big transpose

    # ---- kernel B: conv2 -> Dropout2d(eval) -> maxpool(2) -> relu
    #                -> flatten -> fc1 -> relu -> dropout(eval) -> fc2 ------
    p2 = _conv2_pool_patches(h1c)                             # (16, 4, Bp, 250) bf16
    out = pl.pallas_call(
        conv2_mlp_kernel,
        out_shape=jax.ShapeDtypeStruct((Bp, num_classes), jnp.float32),
        grid=(Bp // _TB2,),
        in_specs=[
            pl.BlockSpec((16, 4, _TB2, k2), lambda i: (0, 0, i, 0)),
            pl.BlockSpec((k2, cout2), lambda i: (0, 0)),
            pl.BlockSpec((1, 1, cout2), lambda i: (0, 0, 0)),
            pl.BlockSpec((16, cout2, hid), lambda i: (0, 0, 0)),
            pl.BlockSpec((1, hid), lambda i: (0, 0)),
            pl.BlockSpec((hid, num_classes), lambda i: (0, 0)),
            pl.BlockSpec((1, num_classes), lambda i: (0, 0)),
        ],
        out_specs=pl.BlockSpec((_TB2, num_classes), lambda i: (i, 0)),
        compiler_params=pltpu.CompilerParams(
            dimension_semantics=("parallel",),
            vmem_limit_bytes=_VMEM_LIMIT),
    )(p2, w2k, b2r, wf1s, bf1r, wf2t, bf2r)

    return out[:B]


# ----------------------------------------------------------------------------
# Deterministic parameter init (PyTorch shapes from __init__)
# ----------------------------------------------------------------------------
def init_params(key, num_classes=10, num_channels=1):
    ks = jax.random.split(key, 8)
    w1 = 0.1 * jax.random.normal(ks[0], (10, num_channels, 5, 5), jnp.float32)
    b1 = 0.1 * jax.random.normal(ks[1], (10,), jnp.float32)
    w2 = 0.05 * jax.random.normal(ks[2], (20, 10, 5, 5), jnp.float32)
    b2 = 0.05 * jax.random.normal(ks[3], (20,), jnp.float32)
    wf1 = 0.05 * jax.random.normal(ks[4], (50, 320), jnp.float32)
    bf1 = 0.05 * jax.random.normal(ks[5], (50,), jnp.float32)
    wf2 = 0.1 * jax.random.normal(ks[6], (num_classes, 50), jnp.float32)
    bf2 = 0.1 * jax.random.normal(ks[7], (num_classes,), jnp.float32)
    return (w1, b1, w2, b2, wf1, bf1, wf2, bf2)


# ----------------------------------------------------------------------------
# Pure-JAX reference (eval-mode PyTorch semantics, full f32)
# ----------------------------------------------------------------------------
def reference_forward(x, params):
    (w1, b1, w2, b2, wf1, bf1, wf2, bf2) = params

    def conv(z, w, b):
        y = lax.conv_general_dilated(z, w, (1, 1), 'VALID',
                                     dimension_numbers=('NCHW', 'OIHW', 'NCHW'))
        return y + b[None, :, None, None]

    def maxpool2(z):
        B, C, H, W = z.shape
        return z.reshape(B, C, H // 2, 2, W // 2, 2).max(axis=(3, 5))

    y = jnp.maximum(maxpool2(conv(x, w1, b1)), 0.0)
    y = jnp.maximum(maxpool2(conv(y, w2, b2)), 0.0)
    y = y.reshape(x.shape[0], -1)
    y = jnp.maximum(y @ wf1.T + bf1, 0.0)
    return y @ wf2.T + bf2


if __name__ == "__main__":
    key = jax.random.PRNGKey(0)
    kx, kp = jax.random.split(key)
    num_classes, num_channels, batch = 10, 1, 48     # batch not a tile multiple: exercises padding
    x = jax.random.normal(kx, (batch, num_channels, 28, 28), jnp.float32)
    params = init_params(kp, num_classes, num_channels)
    prepped = prep_params(params)                    # weight re-layout hoisted out of the forward

    fwd = jax.jit(cnn_mnist_forward)
    out = jax.block_until_ready(fwd(x, prepped))
    assert out.shape == (batch, num_classes), out.shape

    ref = reference_forward(x, params)
    max_diff = float(jnp.max(jnp.abs(out - ref)))
    # bf16 activations/weights with f32 accumulation -> allow a few e-2.
    assert jnp.allclose(out, ref, rtol=5e-2, atol=5e-2), f"max abs diff {max_diff}"
    print("KERNEL_OK")
</pallas_src>

<mosaic_0001>
module attributes {stable_mosaic.version = 11 : i64} {
  func.func @conv1_pool_kernel(%arg0: i32, %arg1: memref<4x25x4608xbf16, #tpu.memory_space<vmem>>, %arg2: memref<10x25xbf16, #tpu.memory_space<vmem>>, %arg3: memref<10x1xf32, #tpu.memory_space<vmem>>, %arg4: memref<10x4608xbf16, #tpu.memory_space<vmem>>) attributes {dimension_semantics = [#tpu.dimension_semantics<parallel>], iteration_bounds = array<i64: 2>, scalar_prefetch = 0 : i64, scratch_operands = 0 : i64, tpu.core_type = #tpu.core_type<tc>, window_params = [{transform_indices = @transform_0, window_bounds = array<i64: 4, 25, 4608>}, {pipeline_mode = #tpu.pipeline_mode<synchronous>, transform_indices = @transform_1, window_bounds = array<i64: 10, 25>}, {pipeline_mode = #tpu.pipeline_mode<synchronous>, transform_indices = @transform_2, window_bounds = array<i64: 10, 1>}, {transform_indices = @transform_3, window_bounds = array<i64: 10, 4608>}]} {
    %c0 = arith.constant 0 : index
    %c0_0 = arith.constant 0 : index
    %0 = vector.load %arg2[%c0, %c0_0] : memref<10x25xbf16, #tpu.memory_space<vmem>>, vector<10x25xbf16>
    %c0_1 = arith.constant 0 : index
    %c0_2 = arith.constant 0 : index
    %c0_3 = arith.constant 0 : index
    %1 = vector.load %arg1[%c0_1, %c0_2, %c0_3] : memref<4x25x4608xbf16, #tpu.memory_space<vmem>>, vector<1x25x4608xbf16>
    %2 = vector.shape_cast %1 : vector<1x25x4608xbf16> to vector<25x4608xbf16>
    %cst = arith.constant dense<0.000000e+00> : vector<10x4608xf32>
    %3 = tpu.matmul %0, %2, %cst {dimension_numbers = #tpu.dot_dimension_numbers<[1], [0], [0], [1], [0, 0, 1, 1], [], []>} : vector<10x25xbf16>, vector<25x4608xbf16>, vector<10x4608xf32> -> vector<10x4608xf32>
    %c1 = arith.constant 1 : index
    %c0_4 = arith.constant 0 : index
    %c0_5 = arith.constant 0 : index
    %4 = vector.load %arg1[%c1, %c0_4, %c0_5] : memref<4x25x4608xbf16, #tpu.memory_space<vmem>>, vector<1x25x4608xbf16>
    %5 = vector.shape_cast %4 : vector<1x25x4608xbf16> to vector<25x4608xbf16>
    %cst_6 = arith.constant dense<0.000000e+00> : vector<10x4608xf32>
    %6 = tpu.matmul %0, %5, %cst_6 {dimension_numbers = #tpu.dot_dimension_numbers<[1], [0], [0], [1], [0, 0, 1, 1], [], []>} : vector<10x25xbf16>, vector<25x4608xbf16>, vector<10x4608xf32> -> vector<10x4608xf32>
    %c2 = arith.constant 2 : index
    %c0_7 = arith.constant 0 : index
    %c0_8 = arith.constant 0 : index
    %7 = vector.load %arg1[%c2, %c0_7, %c0_8] : memref<4x25x4608xbf16, #tpu.memory_space<vmem>>, vector<1x25x4608xbf16>
    %8 = vector.shape_cast %7 : vector<1x25x4608xbf16> to vector<25x4608xbf16>
    %cst_9 = arith.constant dense<0.000000e+00> : vector<10x4608xf32>
    %9 = tpu.matmul %0, %8, %cst_9 {dimension_numbers = #tpu.dot_dimension_numbers<[1], [0], [0], [1], [0, 0, 1, 1], [], []>} : vector<10x25xbf16>, vector<25x4608xbf16>, vector<10x4608xf32> -> vector<10x4608xf32>
    %c3 = arith.constant 3 : index
    %c0_10 = arith.constant 0 : index
    %c0_11 = arith.constant 0 : index
    %10 = vector.load %arg1[%c3, %c0_10, %c0_11] : memref<4x25x4608xbf16, #tpu.memory_space<vmem>>, vector<1x25x4608xbf16>
    %11 = vector.shape_cast %10 : vector<1x25x4608xbf16> to vector<25x4608xbf16>
    %cst_12 = arith.constant dense<0.000000e+00> : vector<10x4608xf32>
    %12 = tpu.matmul %0, %11, %cst_12 {dimension_numbers = #tpu.dot_dimension_numbers<[1], [0], [0], [1], [0, 0, 1, 1], [], []>} : vector<10x25xbf16>, vector<25x4608xbf16>, vector<10x4608xf32> -> vector<10x4608xf32>
    %13 = arith.maximumf %3, %6 : vector<10x4608xf32>
    %14 = arith.maximumf %9, %12 : vector<10x4608xf32>
    %15 = arith.maximumf %13, %14 : vector<10x4608xf32>
    %c0_13 = arith.constant 0 : index
    %c0_14 = arith.constant 0 : index
    %16 = vector.load %arg3[%c0_13, %c0_14] : memref<10x1xf32, #tpu.memory_space<vmem>>, vector<10x1xf32>
    %17 = vector.broadcast %16 : vector<10x1xf32> to vector<10x4608xf32>
    %18 = arith.addf %15, %17 : vector<10x4608xf32>
    %cst_15 = arith.constant 0.000000e+00 : f32
    %19 = vector.broadcast %cst_15 : f32 to vector<10x4608xf32>
    %20 = arith.maximumf %18, %19 : vector<10x4608xf32>
    %21 = arith.truncf %20 : vector<10x4608xf32> to vector<10x4608xbf16>
    %c0_16 = arith.constant 0 : index
    %c0_17 = arith.constant 0 : index
    %22 = vector.load %arg4[%c0_16, %c0_17] : memref<10x4608xbf16, #tpu.memory_space<vmem>>, vector<10x4608xbf16>
    tpu.vector_store %arg4[%c0_16, %c0_17], %21 {strides = array<i32>} : memref<10x4608xbf16, #tpu.memory_space<vmem>>, vector<10x4608xbf16>,
    return
  }
  func.func @transform_0(%arg0: i32) -> (i32, i32, i32) {
    %c0_i32 = arith.constant 0 : i32
    %c0_i32_0 = arith.constant 0 : i32
    %c0_i32_1 = arith.constant 0 : i32
    return %c0_i32, %c0_i32_0, %arg0 : i32, i32, i32
  }
  func.func @transform_1(%arg0: i32) -> (i32, i32) {
    %c0_i32 = arith.constant 0 : i32
    %c0_i32_0 = arith.constant 0 : i32
    %c0_i32_1 = arith.constant 0 : i32
    return %c0_i32, %c0_i32_0 : i32, i32
  }
  func.func @transform_2(%arg0: i32) -> (i32, i32) {
    %c0_i32 = arith.constant 0 : i32
    %c0_i32_0 = arith.constant 0 : i32
    %c0_i32_1 = arith.constant 0 : i32
    return %c0_i32, %c0_i32_0 : i32, i32
  }
  func.func @transform_3(%arg0: i32) -> (i32, i32) {
    %c0_i32 = arith.constant 0 : i32
    %c0_i32_0 = arith.constant 0 : i32
    return %c0_i32, %arg0 : i32, i32
  }
}

module attributes {stable_mosaic.version = 11 : i64} {
  func.func @conv2_mlp_kernel(%arg0: i32, %arg1: memref<16x4x32x250xbf16, #tpu.memory_space<vmem>>, %arg2: memref<250x20xbf16, #tpu.memory_space<vmem>>, %arg3: memref<1x1x20xf32, #tpu.memory_space<vmem>>, %arg4: memref<16x20x50xbf16, #tpu.memory_space<vmem>>, %arg5: memref<1x50xf32, #tpu.memory_space<vmem>>, %arg6: memref<50x10xbf16, #tpu.memory_space<vmem>>, %arg7: memref<1x10xf32, #tpu.memory_space<vmem>>, %arg8: memref<32x10xf32, #tpu.memory_space<vmem>>) attributes {dimension_semantics = [#tpu.dimension_semantics<parallel>], iteration_bounds = array<i64: 2>, scalar_prefetch = 0 : i64, scratch_operands = 0 : i64, tpu.core_type = #tpu.core_type<tc>, window_params = [{transform_indices = @transform_0, window_bounds = array<i64: 16, 4, 32, 250>}, {pipeline_mode = #tpu.pipeline_mode<synchronous>, transform_indices = @transform_1, window_bounds = array<i64: 250, 20>}, {pipeline_mode = #tpu.pipeline_mode<synchronous>, transform_indices = @transform_2, window_bounds = array<i64: 1, 1, 20>}, {pipeline_mode = #tpu.pipeline_mode<synchronous>, transform_indices = @transform_3, window_bounds = array<i64: 16, 20, 50>}, {pipeline_mode = #tpu.pipeline_mode<synchronous>, transform_indices = @transform_4, window_bounds = array<i64: 1, 50>}, {pipeline_mode = #tpu.pipeline_mode<synchronous>, transform_indices = @transform_5, window_bounds = array<i64: 50, 10>}, {pipeline_mode = #tpu.pipeline_mode<synchronous>, transform_indices = @transform_6, window_bounds = array<i64: 1, 10>}, {transform_indices = @transform_7, window_bounds = array<i64: 32, 10>}]} {
    %c0 = arith.constant 0 : index
    %c0_0 = arith.constant 0 : index
    %c0_1 = arith.constant 0 : index
    %c0_2 = arith.constant 0 : index
    %0 = vector.load %arg1[%c0, %c0_0, %c0_1, %c0_2] : memref<16x4x32x250xbf16, #tpu.memory_space<vmem>>, vector<16x4x32x250xbf16>
    %1 = vector.shape_cast %0 : vector<16x4x32x250xbf16> to vector<2048x250xbf16>
    %c0_3 = arith.constant 0 : index
    %c0_4 = arith.constant 0 : index
    %2 = vector.load %arg2[%c0_3, %c0_4] : memref<250x20xbf16, #tpu.memory_space<vmem>>, vector<250x20xbf16>
    %cst = arith.constant dense<0.000000e+00> : vector<2048x20xf32>
    %3 = tpu.matmul %1, %2, %cst {dimension_numbers = #tpu.dot_dimension_numbers<[1], [0], [0], [1], [0, 0, 1, 1], [], []>} : vector<2048x250xbf16>, vector<250x20xbf16>, vector<2048x20xf32> -> vector<2048x20xf32>
    %4 = vector.shape_cast %3 : vector<2048x20xf32> to vector<16x4x32x20xf32>
    %5 = vector.extract_strided_slice %4 {offsets = [0, 0, 0, 0], sizes = [16, 1, 32, 20], strides = [1, 1, 1, 1]} : vector<16x4x32x20xf32> to vector<16x1x32x20xf32>
    %6 = vector.shape_cast %5 : vector<16x1x32x20xf32> to vector<16x32x20xf32>
    %7 = vector.extract_strided_slice %4 {offsets = [0, 1, 0, 0], sizes = [16, 1, 32, 20], strides = [1, 1, 1, 1]} : vector<16x4x32x20xf32> to vector<16x1x32x20xf32>
    %8 = vector.shape_cast %7 : vector<16x1x32x20xf32> to vector<16x32x20xf32>
    %9 = arith.maximumf %6, %8 : vector<16x32x20xf32>
    %10 = vector.extract_strided_slice %4 {offsets = [0, 2, 0, 0], sizes = [16, 1, 32, 20], strides = [1, 1, 1, 1]} : vector<16x4x32x20xf32> to vector<16x1x32x20xf32>
    %11 = vector.shape_cast %10 : vector<16x1x32x20xf32> to vector<16x32x20xf32>
    %12 = vector.extract_strided_slice %4 {offsets = [0, 3, 0, 0], sizes = [16, 1, 32, 20], strides = [1, 1, 1, 1]} : vector<16x4x32x20xf32> to vector<16x1x32x20xf32>
    %13 = vector.shape_cast %12 : vector<16x1x32x20xf32> to vector<16x32x20xf32>
    %14 = arith.maximumf %11, %13 : vector<16x32x20xf32>
    %15 = arith.maximumf %9, %14 : vector<16x32x20xf32>
    %c0_5 = arith.constant 0 : index
    %c0_6 = arith.constant 0 : index
    %c0_7 = arith.constant 0 : index
    %16 = vector.load %arg3[%c0_5, %c0_6, %c0_7] : memref<1x1x20xf32, #tpu.memory_space<vmem>>, vector<1x1x20xf32>
    %17 = vector.broadcast %16 : vector<1x1x20xf32> to vector<16x32x20xf32>
    %18 = arith.addf %15, %17 : vector<16x32x20xf32>
    %cst_8 = arith.constant 0.000000e+00 : f32
    %19 = vector.broadcast %cst_8 : f32 to vector<16x32x20xf32>
    %20 = arith.maximumf %18, %19 : vector<16x32x20xf32>
    %21 = arith.truncf %20 : vector<16x32x20xf32> to vector<16x32x20xbf16>
    %cst_9 = arith.constant 0.000000e+00 : f32
    %22 = vector.broadcast %cst_9 : f32 to vector<32x50xf32>
    %23 = vector.extract_strided_slice %21 {offsets = [0, 0, 0], sizes = [1, 32, 20], strides = [1, 1, 1]} : vector<16x32x20xbf16> to vector<1x32x20xbf16>
    %24 = vector.shape_cast %23 : vector<1x32x20xbf16> to vector<32x20xbf16>
    %c0_10 = arith.constant 0 : index
    %c0_11 = arith.constant 0 : index
    %c0_12 = arith.constant 0 : index
    %25 = vector.load %arg4[%c0_10, %c0_11, %c0_12] : memref<16x20x50xbf16, #tpu.memory_space<vmem>>, vector<1x20x50xbf16>
    %26 = vector.shape_cast %25 : vector<1x20x50xbf16> to vector<20x50xbf16>
    %cst_13 = arith.constant dense<0.000000e+00> : vector<32x50xf32>
    %27 = tpu.matmul %24, %26, %cst_13 {dimension_numbers = #tpu.dot_dimension_numbers<[1], [0], [0], [1], [0, 0, 1, 1], [], []>} : vector<32x20xbf16>, vector<20x50xbf16>, vector<32x50xf32> -> vector<32x50xf32>
    %28 = arith.addf %22, %27 : vector<32x50xf32>
    %29 = vector.extract_strided_slice %21 {offsets = [1, 0, 0], sizes = [1, 32, 20], strides = [1, 1, 1]} : vector<16x32x20xbf16> to vector<1x32x20xbf16>
    %30 = vector.shape_cast %29 : vector<1x32x20xbf16> to vector<32x20xbf16>
    %c1 = arith.constant 1 : index
    %c0_14 = arith.constant 0 : index
    %c0_15 = arith.constant 0 : index
    %31 = vector.load %arg4[%c1, %c0_14, %c0_15] : memref<16x20x50xbf16, #tpu.memory_space<vmem>>, vector<1x20x50xbf16>
    %32 = vector.shape_cast %31 : vector<1x20x50xbf16> to vector<20x50xbf16>
    %cst_16 = arith.constant dense<0.000000e+00> : vector<32x50xf32>
    %33 = tpu.matmul %30, %32, %cst_16 {dimension_numbers = #tpu.dot_dimension_numbers<[1], [0], [0], [1], [0, 0, 1, 1], [], []>} : vector<32x20xbf16>, vector<20x50xbf16>, vector<32x50xf32> -> vector<32x50xf32>
    %34 = arith.addf %28, %33 : vector<32x50xf32>
    %35 = vector.extract_strided_slice %21 {offsets = [2, 0, 0], sizes = [1, 32, 20], strides = [1, 1, 1]} : vector<16x32x20xbf16> to vector<1x32x20xbf16>
    %36 = vector.shape_cast %35 : vector<1x32x20xbf16> to vector<32x20xbf16>
    %c2 = arith.constant 2 : index
    %c0_17 = arith.constant 0 : index
    %c0_18 = arith.constant 0 : index
    %37 = vector.load %arg4[%c2, %c0_17, %c0_18] : memref<16x20x50xbf16, #tpu.memory_space<vmem>>, vector<1x20x50xbf16>
    %38 = vector.shape_cast %37 : vector<1x20x50xbf16> to vector<20x50xbf16>
    %cst_19 = arith.constant dense<0.000000e+00> : vector<32x50xf32>
    %39 = tpu.matmul %36, %38, %cst_19 {dimension_numbers = #tpu.dot_dimension_numbers<[1], [0], [0], [1], [0, 0, 1, 1], [], []>} : vector<32x20xbf16>, vector<20x50xbf16>, vector<32x50xf32> -> vector<32x50xf32>
    %40 = arith.addf %34, %39 : vector<32x50xf32>
    %41 = vector.extract_strided_slice %21 {offsets = [3, 0, 0], sizes = [1, 32, 20], strides = [1, 1, 1]} : vector<16x32x20xbf16> to vector<1x32x20xbf16>
    %42 = vector.shape_cast %41 : vector<1x32x20xbf16> to vector<32x20xbf16>
    %c3 = arith.constant 3 : index
    %c0_20 = arith.constant 0 : index
    %c0_21 = arith.constant 0 : index
    %43 = vector.load %arg4[%c3, %c0_20, %c0_21] : memref<16x20x50xbf16, #tpu.memory_space<vmem>>, vector<1x20x50xbf16>
    %44 = vector.shape_cast %43 : vector<1x20x50xbf16> to vector<20x50xbf16>
    %cst_22 = arith.constant dense<0.000000e+00> : vector<32x50xf32>
    %45 = tpu.matmul %42, %44, %cst_22 {dimension_numbers = #tpu.dot_dimension_numbers<[1], [0], [0], [1], [0, 0, 1, 1], [], []>} : vector<32x20xbf16>, vector<20x50xbf16>, vector<32x50xf32> -> vector<32x50xf32>
    %46 = arith.addf %40, %45 : vector<32x50xf32>
    %47 = vector.extract_strided_slice %21 {offsets = [4, 0, 0], sizes = [1, 32, 20], strides = [1, 1, 1]} : vector<16x32x20xbf16> to vector<1x32x20xbf16>
    %48 = vector.shape_cast %47 : vector<1x32x20xbf16> to vector<32x20xbf16>
    %c4 = arith.constant 4 : index
    %c0_23 = arith.constant 0 : index
    %c0_24 = arith.constant 0 : index
    %49 = vector.load %arg4[%c4, %c0_23, %c0_24] : memref<16x20x50xbf16, #tpu.memory_space<vmem>>, vector<1x20x50xbf16>
    %50 = vector.shape_cast %49 : vector<1x20x50xbf16> to vector<20x50xbf16>
    %cst_25 = arith.constant dense<0.000000e+00> : vector<32x50xf32>
    %51 = tpu.matmul %48, %50, %cst_25 {dimension_numbers = #tpu.dot_dimension_numbers<[1], [0], [0], [1], [0, 0, 1, 1], [], []>} : vector<32x20xbf16>, vector<20x50xbf16>, vector<32x50xf32> -> vector<32x50xf32>
    %52 = arith.addf %46, %51 : vector<32x50xf32>
    %53 = vector.extract_strided_slice %21 {offsets = [5, 0, 0], sizes = [1, 32, 20], strides = [1, 1, 1]} : vector<16x32x20xbf16> to vector<1x32x20xbf16>
    %54 = vector.shape_cast %53 : vector<1x32x20xbf16> to vector<32x20xbf16>
    %c5 = arith.constant 5 : index
    %c0_26 = arith.constant 0 : index
    %c0_27 = arith.constant 0 : index
    %55 = vector.load %arg4[%c5, %c0_26, %c0_27] : memref<16x20x50xbf16, #tpu.memory_space<vmem>>, vector<1x20x50xbf16>
    %56 = vector.shape_cast %55 : vector<1x20x50xbf16> to vector<20x50xbf16>
    %cst_28 = arith.constant dense<0.000000e+00> : vector<32x50xf32>
    %57 = tpu.matmul %54, %56, %cst_28 {dimension_numbers = #tpu.dot_dimension_numbers<[1], [0], [0], [1], [0, 0, 1, 1], [], []>} : vector<32x20xbf16>, vector<20x50xbf16>, vector<32x50xf32> -> vector<32x50xf32>
    %58 = arith.addf %52, %57 : vector<32x50xf32>
    %59 = vector.extract_strided_slice %21 {offsets = [6, 0, 0], sizes = [1, 32, 20], strides = [1, 1, 1]} : vector<16x32x20xbf16> to vector<1x32x20xbf16>
    %60 = vector.shape_cast %59 : vector<1x32x20xbf16> to vector<32x20xbf16>
    %c6 = arith.constant 6 : index
    %c0_29 = arith.constant 0 : index
    %c0_30 = arith.constant 0 : index
    %61 = vector.load %arg4[%c6, %c0_29, %c0_30] : memref<16x20x50xbf16, #tpu.memory_space<vmem>>, vector<1x20x50xbf16>
    %62 = vector.shape_cast %61 : vector<1x20x50xbf16> to vector<20x50xbf16>
    %cst_31 = arith.constant dense<0.000000e+00> : vector<32x50xf32>
    %63 = tpu.matmul %60, %62, %cst_31 {dimension_numbers = #tpu.dot_dimension_numbers<[1], [0], [0], [1], [0, 0, 1, 1], [], []>} : vector<32x20xbf16>, vector<20x50xbf16>, vector<32x50xf32> -> vector<32x50xf32>
    %64 = arith.addf %58, %63 : vector<32x50xf32>
    %65 = vector.extract_strided_slice %21 {offsets = [7, 0, 0], sizes = [1, 32, 20], strides = [1, 1, 1]} : vector<16x32x20xbf16> to vector<1x32x20xbf16>
    %66 = vector.shape_cast %65 : vector<1x32x20xbf16> to vector<32x20xbf16>
    %c7 = arith.constant 7 : index
    %c0_32 = arith.constant 0 : index
    %c0_33 = arith.constant 0 : index
    %67 = vector.load %arg4[%c7, %c0_32, %c0_33] : memref<16x20x50xbf16, #tpu.memory_space<vmem>>, vector<1x20x50xbf16>
    %68 = vector.shape_cast %67 : vector<1x20x50xbf16> to vector<20x50xbf16>
    %cst_34 = arith.constant dense<0.000000e+00> : vector<32x50xf32>
    %69 = tpu.matmul %66, %68, %cst_34 {dimension_numbers = #tpu.dot_dimension_numbers<[1], [0], [0], [1], [0, 0, 1, 1], [], []>} : vector<32x20xbf16>, vector<20x50xbf16>, vector<32x50xf32> -> vector<32x50xf32>
    %70 = arith.addf %64, %69 : vector<32x50xf32>
    %71 = vector.extract_strided_slice %21 {offsets = [8, 0, 0], sizes = [1, 32, 20], strides = [1, 1, 1]} : vector<16x32x20xbf16> to vector<1x32x20xbf16>
    %72 = vector.shape_cast %71 : vector<1x32x20xbf16> to vector<32x20xbf16>
    %c8 = arith.constant 8 : index
    %c0_35 = arith.constant 0 : index
    %c0_36 = arith.constant 0 : index
    %73 = vector.load %arg4[%c8, %c0_35, %c0_36] : memref<16x20x50xbf16, #tpu.memory_space<vmem>>, vector<1x20x50xbf16>
    %74 = vector.shape_cast %73 : vector<1x20x50xbf16> to vector<20x50xbf16>
    %cst_37 = arith.constant dense<0.000000e+00> : vector<32x50xf32>
    %75 = tpu.matmul %72, %74, %cst_37 {dimension_numbers = #tpu.dot_dimension_numbers<[1], [0], [0], [1], [0, 0, 1, 1], [], []>} : vector<32x20xbf16>, vector<20x50xbf16>, vector<32x50xf32> -> vector<32x50xf32>
    %76 = arith.addf %70, %75 : vector<32x50xf32>
    %77 = vector.extract_strided_slice %21 {offsets = [9, 0, 0], sizes = [1, 32, 20], strides = [1, 1, 1]} : vector<16x32x20xbf16> to vector<1x32x20xbf16>
    %78 = vector.shape_cast %77 : vector<1x32x20xbf16> to vector<32x20xbf16>
    %c9 = arith.constant 9 : index
    %c0_38 = arith.constant 0 : index
    %c0_39 = arith.constant 0 : index
    %79 = vector.load %arg4[%c9, %c0_38, %c0_39] : memref<16x20x50xbf16, #tpu.memory_space<vmem>>, vector<1x20x50xbf16>
    %80 = vector.shape_cast %79 : vector<1x20x50xbf16> to vector<20x50xbf16>
    %cst_40 = arith.constant dense<0.000000e+00> : vector<32x50xf32>
    %81 = tpu.matmul %78, %80, %cst_40 {dimension_numbers = #tpu.dot_dimension_numbers<[1], [0], [0], [1], [0, 0, 1, 1], [], []>} : vector<32x20xbf16>, vector<20x50xbf16>, vector<32x50xf32> -> vector<32x50xf32>
    %82 = arith.addf %76, %81 : vector<32x50xf32>
    %83 = vector.extract_strided_slice %21 {offsets = [10, 0, 0], sizes = [1, 32, 20], strides = [1, 1, 1]} : vector<16x32x20xbf16> to vector<1x32x20xbf16>
    %84 = vector.shape_cast %83 : vector<1x32x20xbf16> to vector<32x20xbf16>
    %c10 = arith.constant 10 : index
    %c0_41 = arith.constant 0 : index
    %c0_42 = arith.constant 0 : index
    %85 = vector.load %arg4[%c10, %c0_41, %c0_42] : memref<16x20x50xbf16, #tpu.memory_space<vmem>>, vector<1x20x50xbf16>
    %86 = vector.shape_cast %85 : vector<1x20x50xbf16> to vector<20x50xbf16>
    %cst_43 = arith.constant dense<0.000000e+00> : vector<32x50xf32>
    %87 = tpu.matmul %84, %86, %cst_43 {dimension_numbers = #tpu.dot_dimension_numbers<[1], [0], [0], [1], [0, 0, 1, 1], [], []>} : vector<32x20xbf16>, vector<20x50xbf16>, vector<32x50xf32> -> vector<32x50xf32>
    %88 = arith.addf %82, %87 : vector<32x50xf32>
    %89 = vector.extract_strided_slice %21 {offsets = [11, 0, 0], sizes = [1, 32, 20], strides = [1, 1, 1]} : vector<16x32x20xbf16> to vector<1x32x20xbf16>
    %90 = vector.shape_cast %89 : vector<1x32x20xbf16> to vector<32x20xbf16>
    %c11 = arith.constant 11 : index
    %c0_44 = arith.constant 0 : index
    %c0_45 = arith.constant 0 : index
    %91 = vector.load %arg4[%c11, %c0_44, %c0_45] : memref<16x20x50xbf16, #tpu.memory_space<vmem>>, vector<1x20x50xbf16>
    %92 = vector.shape_cast %91 : vector<1x20x50xbf16> to vector<20x50xbf16>
    %cst_46 = arith.constant dense<0.000000e+00> : vector<32x50xf32>
    %93 = tpu.matmul %90, %92, %cst_46 {dimension_numbers = #tpu.dot_dimension_numbers<[1], [0], [0], [1], [0, 0, 1, 1], [], []>} : vector<32x20xbf16>, vector<20x50xbf16>, vector<32x50xf32> -> vector<32x50xf32>
    %94 = arith.addf %88, %93 : vector<32x50xf32>
    %95 = vector.extract_strided_slice %21 {offsets = [12, 0, 0], sizes = [1, 32, 20], strides = [1, 1, 1]} : vector<16x32x20xbf16> to vector<1x32x20xbf16>
    %96 = vector.shape_cast %95 : vector<1x32x20xbf16> to vector<32x20xbf16>
    %c12 = arith.constant 12 : index
    %c0_47 = arith.constant 0 : index
    %c0_48 = arith.constant 0 : index
    %97 = vector.load %arg4[%c12, %c0_47, %c0_48] : memref<16x20x50xbf16, #tpu.memory_space<vmem>>, vector<1x20x50xbf16>
    %98 = vector.shape_cast %97 : vector<1x20x50xbf16> to vector<20x50xbf16>
    %cst_49 = arith.constant dense<0.000000e+00> : vector<32x50xf32>
    %99 = tpu.matmul %96, %98, %cst_49 {dimension_numbers = #tpu.dot_dimension_numbers<[1], [0], [0], [1], [0, 0, 1, 1], [], []>} : vector<32x20xbf16>, vector<20x50xbf16>, vector<32x50xf32> -> vector<32x50xf32>
    %100 = arith.addf %94, %99 : vector<32x50xf32>
    %101 = vector.extract_strided_slice %21 {offsets = [13, 0, 0], sizes = [1, 32, 20], strides = [1, 1, 1]} : vector<16x32x20xbf16> to vector<1x32x20xbf16>
    %102 = vector.shape_cast %101 : vector<1x32x20xbf16> to vector<32x20xbf16>
    %c13 = arith.constant 13 : index
    %c0_50 = arith.constant 0 : index
    %c0_51 = arith.constant 0 : index
    %103 = vector.load %arg4[%c13, %c0_50, %c0_51] : memref<16x20x50xbf16, #tpu.memory_space<vmem>>, vector<1x20x50xbf16>
    %104 = vector.shape_cast %103 : vector<1x20x50xbf16> to vector<20x50xbf16>
    %cst_52 = arith.constant dense<0.000000e+00> : vector<32x50xf32>
    %105 = tpu.matmul %102, %104, %cst_52 {dimension_numbers = #tpu.dot_dimension_numbers<[1], [0], [0], [1], [0, 0, 1, 1], [], []>} : vector<32x20xbf16>, vector<20x50xbf16>, vector<32x50xf32> -> vector<32x50xf32>
    %106 = arith.addf %100, %105 : vector<32x50xf32>
    %107 = vector.extract_strided_slice %21 {offsets = [14, 0, 0], sizes = [1, 32, 20], strides = [1, 1, 1]} : vector<16x32x20xbf16> to vector<1x32x20xbf16>
    %108 = vector.shape_cast %107 : vector<1x32x20xbf16> to vector<32x20xbf16>
    %c14 = arith.constant 14 : index
    %c0_53 = arith.constant 0 : index
    %c0_54 = arith.constant 0 : index
    %109 = vector.load %arg4[%c14, %c0_53, %c0_54] : memref<16x20x50xbf16, #tpu.memory_space<vmem>>, vector<1x20x50xbf16>
    %110 = vector.shape_cast %109 : vector<1x20x50xbf16> to vector<20x50xbf16>
    %cst_55 = arith.constant dense<0.000000e+00> : vector<32x50xf32>
    %111 = tpu.matmul %108, %110, %cst_55 {dimension_numbers = #tpu.dot_dimension_numbers<[1], [0], [0], [1], [0, 0, 1, 1], [], []>} : vector<32x20xbf16>, vector<20x50xbf16>, vector<32x50xf32> -> vector<32x50xf32>
    %112 = arith.addf %106, %111 : vector<32x50xf32>
    %113 = vector.extract_strided_slice %21 {offsets = [15, 0, 0], sizes = [1, 32, 20], strides = [1, 1, 1]} : vector<16x32x20xbf16> to vector<1x32x20xbf16>
    %114 = vector.shape_cast %113 : vector<1x32x20xbf16> to vector<32x20xbf16>
    %c15 = arith.constant 15 : index
    %c0_56 = arith.constant 0 : index
    %c0_57 = arith.constant 0 : index
    %115 = vector.load %arg4[%c15, %c0_56, %c0_57] : memref<16x20x50xbf16, #tpu.memory_space<vmem>>, vector<1x20x50xbf16>
    %116 = vector.shape_cast %115 : vector<1x20x50xbf16> to vector<20x50xbf16>
    %cst_58 = arith.constant dense<0.000000e+00> : vector<32x50xf32>
    %117 = tpu.matmul %114, %116, %cst_58 {dimension_numbers = #tpu.dot_dimension_numbers<[1], [0], [0], [1], [0, 0, 1, 1], [], []>} : vector<32x20xbf16>, vector<20x50xbf16>, vector<32x50xf32> -> vector<32x50xf32>
    %118 = arith.addf %112, %117 : vector<32x50xf32>
    %c0_59 = arith.constant 0 : index
    %c0_60 = arith.constant 0 : index
    %119 = vector.load %arg5[%c0_59, %c0_60] : memref<1x50xf32, #tpu.memory_space<vmem>>, vector<1x50xf32>
    %120 = vector.broadcast %119 : vector<1x50xf32> to vector<32x50xf32>
    %121 = arith.addf %118, %120 : vector<32x50xf32>
    %cst_61 = arith.constant 0.000000e+00 : f32
    %122 = vector.broadcast %cst_61 : f32 to vector<32x50xf32>
    %123 = arith.maximumf %121, %122 : vector<32x50xf32>
    %124 = arith.truncf %123 : vector<32x50xf32> to vector<32x50xbf16>
    %c0_62 = arith.constant 0 : index
    %c0_63 = arith.constant 0 : index
    %125 = vector.load %arg6[%c0_62, %c0_63] : memref<50x10xbf16, #tpu.memory_space<vmem>>, vector<50x10xbf16>
    %cst_64 = arith.constant dense<0.000000e+00> : vector<32x10xf32>
    %126 = tpu.matmul %124, %125, %cst_64 {dimension_numbers = #tpu.dot_dimension_numbers<[1], [0], [0], [1], [0, 0, 1, 1], [], []>} : vector<32x50xbf16>, vector<50x10xbf16>, vector<32x10xf32> -> vector<32x10xf32>
    %c0_65 = arith.constant 0 : index
    %c0_66 = arith.constant 0 : index
    %127 = vector.load %arg7[%c0_65, %c0_66] : memref<1x10xf32, #tpu.memory_space<vmem>>, vector<1x10xf32>
    %128 = vector.broadcast %127 : vector<1x10xf32> to vector<32x10xf32>
    %129 = arith.addf %126, %128 : vector<32x10xf32>
    %c0_67 = arith.constant 0 : index
    %c0_68 = arith.constant 0 : index
    %130 = vector.load %arg8[%c0_67, %c0_68] : memref<32x10xf32, #tpu.memory_space<vmem>>, vector<32x10xf32>
    tpu.vector_store %arg8[%c0_67, %c0_68], %129 {strides = array<i32>} : memref<32x10xf32, #tpu.memory_space<vmem>>, vector<32x10xf32>,
    return
  }
  func.func @transform_0(%arg0: i32) -> (i32, i32, i32, i32) {
    %c0_i32 = arith.constant 0 : i32
    %c0_i32_0 = arith.constant 0 : i32
    %c0_i32_1 = arith.constant 0 : i32
    %c0_i32_2 = arith.constant 0 : i32
    return %c0_i32, %c0_i32_0, %arg0, %c0_i32_1 : i32, i32, i32, i32
  }
  func.func @transform_1(%arg0: i32) -> (i32, i32) {
    %c0_i32 = arith.constant 0 : i32
    %c0_i32_0 = arith.constant 0 : i32
    %c0_i32_1 = arith.constant 0 : i32
    return %c0_i32, %c0_i32_0 : i32, i32
  }
  func.func @transform_2(%arg0: i32) -> (i32, i32, i32) {
    %c0_i32 = arith.constant 0 : i32
    %c0_i32_0 = arith.constant 0 : i32
    %c0_i32_1 = arith.constant 0 : i32
    %c0_i32_2 = arith.constant 0 : i32
    return %c0_i32, %c0_i32_0, %c0_i32_1 : i32, i32, i32
  }
  func.func @transform_3(%arg0: i32) -> (i32, i32, i32) {
    %c0_i32 = arith.constant 0 : i32
    %c0_i32_0 = arith.constant 0 : i32
    %c0_i32_1 = arith.constant 0 : i32
    %c0_i32_2 = arith.constant 0 : i32
    return %c0_i32, %c0_i32_0, %c0_i32_1 : i32, i32, i32
  }
  func.func @transform_4(%arg0: i32) -> (i32, i32) {
    %c0_i32 = arith.constant 0 : i32
    %c0_i32_0 = arith.constant 0 : i32
    %c0_i32_1 = arith.constant 0 : i32
    return %c0_i32, %c0_i32_0 : i32, i32
  }
  func.func @transform_5(%arg0: i32) -> (i32, i32) {
    %c0_i32 = arith.constant 0 : i32
    %c0_i32_0 = arith.constant 0 : i32
    %c0_i32_1 = arith.constant 0 : i32
    return %c0_i32, %c0_i32_0 : i32, i32
  }
  func.func @transform_6(%arg0: i32) -> (i32, i32) {
    %c0_i32 = arith.constant 0 : i32
    %c0_i32_0 = arith.constant 0 : i32
    %c0_i32_1 = arith.constant 0 : i32
    return %c0_i32, %c0_i32_0 : i32, i32
  }
  func.func @transform_7(%arg0: i32) -> (i32, i32) {
    %c0_i32 = arith.constant 0 : i32
    %c0_i32_0 = arith.constant 0 : i32
    return %arg0, %c0_i32 : i32, i32
  }
}

</mosaic_0001>

<bundles_post_ra>
// kernel: cnn_mnist_forward.2
= control target key start
LH: loop header
LB: loop body
LE: loop exit
PB: predicated region body
PF: predicated region fallthrough
CT: control target
= control target key end

     0   :  { %s7301_s12 = smov 0   ;;  %s7303_s13 = smov 0   ;;  %s9807_s0 = inlined_call_operand.vmem [shape: bf16[4,25,9216], index: 0, kind: input, shape index: {}]   ;;  %s9808_s1 = inlined_call_operand.vmem [shape: bf16[10,25], index: 1, kind: input, shape index: {}]   ;;  %s9809_s2 = inlined_call_operand.vmem [shape: f32[10,1], index: 2, kind: input, shape index: {}]   ;;  %s9810_s3 = inlined_call_operand.vmem [shape: bf16[10,9216], index: 3, kind: output, shape index: {}]  }
   0x1   :  { %s7305_s14 = smov 0  }
   0x2 LB: > { %s5409_s15 = sadd.s32 4294967295, %s7277_s14   ;;  %s7318_s16 = sadd.s32 1, %s7277_s14   ;;  %s7277_s14 = sphi %s7305_s14, %s10138_s14   ;;  %s7273_s13 = sphi %s7303_s13, %s10137_s13   ;;  %s7269_s12 = sphi %s7301_s12, %s10136_s12  }
   0x3   : > { %s17_s17 = ssub.s32 %s7277_s14, %s7318_s16  ;;  %s20_s18 = sadd.s32 1, %s7273_s13 }
   0x4   : > { %p18_p0 = scmp.eq.s32.totalorder %s17_s17, 0  ;;  %p27_p1 = scmp.ne.s32.totalorder %s7273_s13, %s7269_s12 }
   0x5   : > { %p28_p2 = scmp.eq.s32.totalorder %s7277_s14, 0  ;;  %p99_p3 = scmp.eq.s32.totalorder %s5409_s15, 1 }
   0x6   : > { %s7329_s19 = scalar_select %p18_p0, %s7273_s13, %s20_s18  }
   0x7   : > { %p29_p4 = por %p28_p2, %p27_p1  ;;  %p7331_p5 = por %p99_p3, %p27_p1 }
   0x8   : > { %p5412_p6 = scmp.ge.s32.totalorder %s7277_s14, 2 }
   0xa   : > { %127 = sbr.rel (%p5412_p6) target bundleno = 308 (0x134), region = 24 }
   0xf   : > { %130 = sbr.rel (!%p29_p4) target bundleno = 308 (0x134), region = 28  ;;  %s132_s21 = sand.u32 (%p29_p4), 1, %s7273_s13  }
  0x10   : > { %s6934_s22 = smul.u32 (%p29_p4), 144, %s7277_s14 }
  0x11   : > { %s7225_s23 = smul.u32 (%p29_p4), 2304, %s132_s21 }
  0x12   : > { %s7341_s26 = scalar_lea.vmem (%p29_p4), %s9807_s0, %s6934_s22 }
  0x13   : > { %v150_v0 = vld [vmem:[%s7341_s26] sm:$0xff] (%p29_p4)  ;;  %v152_v1 = vld [vmem:[%s7341_s26 + $0x8] sm:$0xff] (%p29_p4)  ;;  %v154_v2 = vld [vmem:[%s7341_s26 + $0x10] sm:$0xff] (%p29_p4)  ;;  %s7346_s27 = scalar_lea.vmem (%p29_p4), [#allocation2], %s7225_s23 }
  0x14   : > { %151 = vst [vmem:[%s7346_s27] sm:$0xff] %v150_v0  ;;  %v156_v3 = vld [vmem:[%s7341_s26 + $0x18] sm:$0xff]  ;;  %v158_v4 = vld [vmem:[%s7341_s26 + $0x20] sm:$0xff]  ;;  %v160_v5 = vld [vmem:[%s7341_s26 + $0x28] sm:$0xff] }
  0x15   : > { %153 = vst [vmem:[%s7346_s27 + $0x8] sm:$0xff] %v152_v1  ;;  %v162_v6 = vld [vmem:[%s7341_s26 + $0x30] sm:$0xff]  ;;  %v164_v7 = vld [vmem:[%s7341_s26 + $0x38] sm:$0xff]  ;;  %v166_v8 = vld [vmem:[%s7341_s26 + $0x40] sm:$0xff] }
  0x16   : > { %155 = vst [vmem:[%s7346_s27 + $0x10] sm:$0xff] %v154_v2  ;;  %v168_v9 = vld [vmem:[%s7341_s26 + $0x48] sm:$0xff]  ;;  %v170_v10 = vld [vmem:[%s7341_s26 + $0x50] sm:$0xff]  ;;  %v172_v11 = vld [vmem:[%s7341_s26 + $0x58] sm:$0xff] }
  0x17   : > { %157 = vst [vmem:[%s7346_s27 + $0x18] sm:$0xff] %v156_v3  ;;  %v174_v12 = vld [vmem:[%s7341_s26 + $0x60] sm:$0xff]  ;;  %v176_v13 = vld [vmem:[%s7341_s26 + $0x68] sm:$0xff]  ;;  %v178_v14 = vld [vmem:[%s7341_s26 + $0x70] sm:$0xff] }
  0x18   : > { %159 = vst [vmem:[%s7346_s27 + $0x20] sm:$0xff] %v158_v4  ;;  %v180_v15 = vld [vmem:[%s7341_s26 + $0x78] sm:$0xff]  ;;  %v182_v16 = vld [vmem:[%s7341_s26 + $0x80] sm:$0xff]  ;;  %v184_v17 = vld [vmem:[%s7341_s26 + $0x88] sm:$0xff] }
  0x19   : > { %161 = vst [vmem:[%s7346_s27 + $0x28] sm:$0xff] %v160_v5  ;;  %v186_v18 = vld [vmem:[%s7341_s26 + $0x120] sm:$0xff]  ;;  %v188_v19 = vld [vmem:[%s7341_s26 + $0x128] sm:$0xff]  ;;  %v190_v20 = vld [vmem:[%s7341_s26 + $0x130] sm:$0xff] }
  0x1a   : > { %163 = vst [vmem:[%s7346_s27 + $0x30] sm:$0xff] %v162_v6  ;;  %v192_v21 = vld [vmem:[%s7341_s26 + $0x138] sm:$0xff]  ;;  %v194_v22 = vld [vmem:[%s7341_s26 + $0x140] sm:$0xff]  ;;  %v196_v23 = vld [vmem:[%s7341_s26 + $0x148] sm:$0xff] }
  0x1b   : > { %165 = vst [vmem:[%s7346_s27 + $0x38] sm:$0xff] %v164_v7  ;;  %v198_v24 = vld [vmem:[%s7341_s26 + $0x150] sm:$0xff]  ;;  %v200_v25 = vld [vmem:[%s7341_s26 + $0x158] sm:$0xff]  ;;  %v202_v26 = vld [vmem:[%s7341_s26 + $0x160] sm:$0xff] }
  0x1c   : > { %167 = vst [vmem:[%s7346_s27 + $0x40] sm:$0xff] %v166_v8  ;;  %v204_v27 = vld [vmem:[%s7341_s26 + $0x168] sm:$0xff]  ;;  %v206_v28 = vld [vmem:[%s7341_s26 + $0x170] sm:$0xff]  ;;  %v208_v29 = vld [vmem:[%s7341_s26 + $0x178] sm:$0xff] }
  0x1d   : > { %169 = vst [vmem:[%s7346_s27 + $0x48] sm:$0xff] %v168_v9  ;;  %v210_v30 = vld [vmem:[%s7341_s26 + $0x180] sm:$0xff]  ;;  %v212_v31 = vld [vmem:[%s7341_s26 + $0x188] sm:$0xff]  ;;  %v214_v32 = vld [vmem:[%s7341_s26 + $0x190] sm:$0xff] }
  0x1e   : > { %171 = vst [vmem:[%s7346_s27 + $0x50] sm:$0xff] %v170_v10  ;;  %v216_v33 = vld [vmem:[%s7341_s26 + $0x198] sm:$0xff]  ;;  %v218_v34 = vld [vmem:[%s7341_s26 + $0x1a0] sm:$0xff]  ;;  %v220_v35 = vld [vmem:[%s7341_s26 + $0x1a8] sm:$0xff] }
  0x1f   : > { %173 = vst [vmem:[%s7346_s27 + $0x58] sm:$0xff] %v172_v11  ;;  %v222_v36 = vld [vmem:[%s7341_s26 + $0x240] sm:$0xff]  ;;  %v224_v37 = vld [vmem:[%s7341_s26 + $0x248] sm:$0xff]  ;;  %v226_v38 = vld [vmem:[%s7341_s26 + $0x250] sm:$0xff] }
  0x20   : > { %175 = vst [vmem:[%s7346_s27 + $0x60] sm:$0xff] %v174_v12  ;;  %v228_v39 = vld [vmem:[%s7341_s26 + $0x258] sm:$0xff]  ;;  %v230_v40 = vld [vmem:[%s7341_s26 + $0x260] sm:$0xff]  ;;  %v232_v41 = vld [vmem:[%s7341_s26 + $0x268] sm:$0xff] }
  0x21   : > { %177 = vst [vmem:[%s7346_s27 + $0x68] sm:$0xff] %v176_v13  ;;  %v234_v42 = vld [vmem:[%s7341_s26 + $0x270] sm:$0xff]  ;;  %v236_v43 = vld [vmem:[%s7341_s26 + $0x278] sm:$0xff]  ;;  %v238_v44 = vld [vmem:[%s7341_s26 + $0x280] sm:$0xff] }
  0x22   : > { %179 = vst [vmem:[%s7346_s27 + $0x70] sm:$0xff] %v178_v14  ;;  %v240_v45 = vld [vmem:[%s7341_s26 + $0x288] sm:$0xff]  ;;  %v242_v46 = vld [vmem:[%s7341_s26 + $0x290] sm:$0xff]  ;;  %v244_v47 = vld [vmem:[%s7341_s26 + $0x298] sm:$0xff] }
  0x23   : > { %181 = vst [vmem:[%s7346_s27 + $0x78] sm:$0xff] %v180_v15  ;;  %v246_v48 = vld [vmem:[%s7341_s26 + $0x2a0] sm:$0xff]  ;;  %v248_v49 = vld [vmem:[%s7341_s26 + $0x2a8] sm:$0xff]  ;;  %v250_v50 = vld [vmem:[%s7341_s26 + $0x2b0] sm:$0xff] }
  0x24   : > { %183 = vst [vmem:[%s7346_s27 + $0x80] sm:$0xff] %v182_v16  ;;  %v252_v51 = vld [vmem:[%s7341_s26 + $0x2b8] sm:$0xff]  ;;  %v254_v52 = vld [vmem:[%s7341_s26 + $0x2c0] sm:$0xff]  ;;  %v256_v53 = vld [vmem:[%s7341_s26 + $0x2c8] sm:$0xff] }
  0x25   : > { %185 = vst [vmem:[%s7346_s27 + $0x88] sm:$0xff] %v184_v17  ;;  %v258_v54 = vld [vmem:[%s7341_s26 + $0x360] sm:$0xff]  ;;  %v260_v55 = vld [vmem:[%s7341_s26 + $0x368] sm:$0xff]  ;;  %v262_v56 = vld [vmem:[%s7341_s26 + $0x370] sm:$0xff] }
  0x26   : > { %187 = vst [vmem:[%s7346_s27 + $0x90] sm:$0xff] %v186_v18  ;;  %v264_v57 = vld [vmem:[%s7341_s26 + $0x378] sm:$0xff]  ;;  %v266_v58 = vld [vmem:[%s7341_s26 + $0x380] sm:$0xff]  ;;  %v268_v59 = vld [vmem:[%s7341_s26 + $0x388] sm:$0xff] }
  0x27   : > { %189 = vst [vmem:[%s7346_s27 + $0x98] sm:$0xff] %v188_v19  ;;  %v270_v60 = vld [vmem:[%s7341_s26 + $0x390] sm:$0xff]  ;;  %v272_v61 = vld [vmem:[%s7341_s26 + $0x398] sm:$0xff]  ;;  %v274_v62 = vld [vmem:[%s7341_s26 + $0x3a0] sm:$0xff] }
  0x28   : > { %191 = vst [vmem:[%s7346_s27 + $0xa0] sm:$0xff] %v190_v20  ;;  %v276_v63 = vld [vmem:[%s7341_s26 + $0x3a8] sm:$0xff]  ;;  %v278_v0 = vld [vmem:[%s7341_s26 + $0x3b0] sm:$0xff]  ;;  %v280_v1 = vld [vmem:[%s7341_s26 + $0x3b8] sm:$0xff] }
  0x29   : > { %193 = vst [vmem:[%s7346_s27 + $0xa8] sm:$0xff] %v192_v21  ;;  %v282_v2 = vld [vmem:[%s7341_s26 + $0x3c0] sm:$0xff]  ;;  %v284_v3 = vld [vmem:[%s7341_s26 + $0x3c8] sm:$0xff]  ;;  %v286_v4 = vld [vmem:[%s7341_s26 + $0x3d0] sm:$0xff] }
  0x2a   : > { %195 = vst [vmem:[%s7346_s27 + $0xb0] sm:$0xff] %v194_v22  ;;  %v288_v5 = vld [vmem:[%s7341_s26 + $0x3d8] sm:$0xff]  ;;  %v290_v6 = vld [vmem:[%s7341_s26 + $0x3e0] sm:$0xff]  ;;  %v292_v7 = vld [vmem:[%s7341_s26 + $0x3e8] sm:$0xff] }
  0x2b   : > { %197 = vst [vmem:[%s7346_s27 + $0xb8] sm:$0xff] %v196_v23  ;;  %v294_v8 = vld [vmem:[%s7341_s26 + $0x480] sm:$0xff]  ;;  %v296_v9 = vld [vmem:[%s7341_s26 + $0x488] sm:$0xff]  ;;  %v298_v10 = vld [vmem:[%s7341_s26 + $0x490] sm:$0xff] }
  0x2c   : > { %199 = vst [vmem:[%s7346_s27 + $0xc0] sm:$0xff] %v198_v24  ;;  %v300_v11 = vld [vmem:[%s7341_s26 + $0x498] sm:$0xff]  ;;  %v302_v12 = vld [vmem:[%s7341_s26 + $0x4a0] sm:$0xff]  ;;  %v304_v13 = vld [vmem:[%s7341_s26 + $0x4a8] sm:$0xff] }
  0x2d   : > { %201 = vst [vmem:[%s7346_s27 + $0xc8] sm:$0xff] %v200_v25  ;;  %v306_v14 = vld [vmem:[%s7341_s26 + $0x4b0] sm:$0xff]  ;;  %v308_v15 = vld [vmem:[%s7341_s26 + $0x4b8] sm:$0xff]  ;;  %v310_v16 = vld [vmem:[%s7341_s26 + $0x4c0] sm:$0xff] }
  0x2e   : > { %203 = vst [vmem:[%s7346_s27 + $0xd0] sm:$0xff] %v202_v26  ;;  %v312_v17 = vld [vmem:[%s7341_s26 + $0x4c8] sm:$0xff]  ;;  %v314_v18 = vld [vmem:[%s7341_s26 + $0x4d0] sm:$0xff]  ;;  %v316_v19 = vld [vmem:[%s7341_s26 + $0x4d8] sm:$0xff] }
  0x2f   : > { %205 = vst [vmem:[%s7346_s27 + $0xd8] sm:$0xff] %v204_v27  ;;  %v318_v20 = vld [vmem:[%s7341_s26 + $0x4e0] sm:$0xff]  ;;  %v320_v21 = vld [vmem:[%s7341_s26 + $0x4e8] sm:$0xff]  ;;  %v322_v22 = vld [vmem:[%s7341_s26 + $0x4f0] sm:$0xff] }
  0x30   : > { %207 = vst [vmem:[%s7346_s27 + $0xe0] sm:$0xff] %v206_v28  ;;  %v324_v23 = vld [vmem:[%s7341_s26 + $0x4f8] sm:$0xff]  ;;  %v326_v24 = vld [vmem:[%s7341_s26 + $0x500] sm:$0xff]  ;;  %v328_v25 = vld [vmem:[%s7341_s26 + $0x508] sm:$0xff] }
  0x31   : > { %209 = vst [vmem:[%s7346_s27 + $0xe8] sm:$0xff] %v208_v29  ;;  %v330_v26 = vld [vmem:[%s7341_s26 + $0x5a0] sm:$0xff]  ;;  %v332_v27 = vld [vmem:[%s7341_s26 + $0x5a8] sm:$0xff]  ;;  %v334_v28 = vld [vmem:[%s7341_s26 + $0x5b0] sm:$0xff] }
  0x32   : > { %211 = vst [vmem:[%s7346_s27 + $0xf0] sm:$0xff] %v210_v30  ;;  %v336_v29 = vld [vmem:[%s7341_s26 + $0x5b8] sm:$0xff]  ;;  %v338_v30 = vld [vmem:[%s7341_s26 + $0x5c0] sm:$0xff] }
  0x33   : > { %213 = vst [vmem:[%s7346_s27 + $0xf8] sm:$0xff] %v212_v31  ;;  %v340_v31 = vld [vmem:[%s7341_s26 + $0x5c8] sm:$0xff] }
  0x34   : > { %215 = vst [vmem:[%s7346_s27 + $0x100] sm:$0xff] %v214_v32  ;;  %v342_v32 = vld [vmem:[%s7341_s26 + $0x5d0] sm:$0xff] }
  0x35   : > { %217 = vst [vmem:[%s7346_s27 + $0x108] sm:$0xff] %v216_v33  ;;  %v344_v33 = vld [vmem:[%s7341_s26 + $0x5d8] sm:$0xff] }
  0x36   : > { %219 = vst [vmem:[%s7346_s27 + $0x110] sm:$0xff] %v218_v34  ;;  %v346_v34 = vld [vmem:[%s7341_s26 + $0x5e0] sm:$0xff] }
  0x37   : > { %221 = vst [vmem:[%s7346_s27 + $0x118] sm:$0xff] %v220_v35  ;;  %v348_v35 = vld [vmem:[%s7341_s26 + $0x5e8] sm:$0xff] }
  0x38   : > { %223 = vst [vmem:[%s7346_s27 + $0x120] sm:$0xff] %v222_v36  ;;  %v350_v36 = vld [vmem:[%s7341_s26 + $0x5f0] sm:$0xff] }
  0x39   : > { %225 = vst [vmem:[%s7346_s27 + $0x128] sm:$0xff] %v224_v37  ;;  %v352_v37 = vld [vmem:[%s7341_s26 + $0x5f8] sm:$0xff] }
  0x3a   : > { %227 = vst [vmem:[%s7346_s27 + $0x130] sm:$0xff] %v226_v38  ;;  %v354_v38 = vld [vmem:[%s7341_s26 + $0x600] sm:$0xff] }
  0x3b   : > { %229 = vst [vmem:[%s7346_s27 + $0x138] sm:$0xff] %v228_v39  ;;  %v356_v39 = vld [vmem:[%s7341_s26 + $0x608] sm:$0xff] }
  0x3c   : > { %231 = vst [vmem:[%s7346_s27 + $0x140] sm:$0xff] %v230_v40  ;;  %v358_v40 = vld [vmem:[%s7341_s26 + $0x610] sm:$0xff] }
  0x3d   : > { %233 = vst [vmem:[%s7346_s27 + $0x148] sm:$0xff] %v232_v41  ;;  %v360_v41 = vld [vmem:[%s7341_s26 + $0x618] sm:$0xff] }
  0x3e   : > { %235 = vst [vmem:[%s7346_s27 + $0x150] sm:$0xff] %v234_v42  ;;  %v362_v42 = vld [vmem:[%s7341_s26 + $0x620] sm:$0xff] }
  0x3f   : > { %237 = vst [vmem:[%s7346_s27 + $0x158] sm:$0xff] %v236_v43  ;;  %v364_v43 = vld [vmem:[%s7341_s26 + $0x628] sm:$0xff] }
  0x40   : > { %239 = vst [vmem:[%s7346_s27 + $0x160] sm:$0xff] %v238_v44  ;;  %v366_v44 = vld [vmem:[%s7341_s26 + $0x6c0] sm:$0xff] }
  0x41   : > { %241 = vst [vmem:[%s7346_s27 + $0x168] sm:$0xff] %v240_v45  ;;  %v368_v45 = vld [vmem:[%s7341_s26 + $0x6c8] sm:$0xff] }
  0x42   : > { %243 = vst [vmem:[%s7346_s27 + $0x170] sm:$0xff] %v242_v46  ;;  %v370_v46 = vld [vmem:[%s7341_s26 + $0x6d0] sm:$0xff] }
  0x43   : > { %245 = vst [vmem:[%s7346_s27 + $0x178] sm:$0xff] %v244_v47  ;;  %v372_v47 = vld [vmem:[%s7341_s26 + $0x6d8] sm:$0xff] }
  0x44   : > { %247 = vst [vmem:[%s7346_s27 + $0x180] sm:$0xff] %v246_v48  ;;  %v374_v48 = vld [vmem:[%s7341_s26 + $0x6e0] sm:$0xff] }
  0x45   : > { %249 = vst [vmem:[%s7346_s27 + $0x188] sm:$0xff] %v248_v49  ;;  %v376_v49 = vld [vmem:[%s7341_s26 + $0x6e8] sm:$0xff] }
  0x46   : > { %251 = vst [vmem:[%s7346_s27 + $0x190] sm:$0xff] %v250_v50  ;;  %v378_v50 = vld [vmem:[%s7341_s26 + $0x6f0] sm:$0xff] }
  0x47   : > { %253 = vst [vmem:[%s7346_s27 + $0x198] sm:$0xff] %v252_v51  ;;  %v380_v51 = vld [vmem:[%s7341_s26 + $0x6f8] sm:$0xff] }
  0x48   : > { %255 = vst [vmem:[%s7346_s27 + $0x1a0] sm:$0xff] %v254_v52  ;;  %v382_v52 = vld [vmem:[%s7341_s26 + $0x700] sm:$0xff] }
  0x49   : > { %257 = vst [vmem:[%s7346_s27 + $0x1a8] sm:$0xff] %v256_v53  ;;  %v384_v53 = vld [vmem:[%s7341_s26 + $0x708] sm:$0xff] }
  0x4a   : > { %259 = vst [vmem:[%s7346_s27 + $0x1b0] sm:$0xff] %v258_v54  ;;  %v386_v54 = vld [vmem:[%s7341_s26 + $0x710] sm:$0xff] }
  0x4b   : > { %261 = vst [vmem:[%s7346_s27 + $0x1b8] sm:$0xff] %v260_v55  ;;  %v388_v55 = vld [vmem:[%s7341_s26 + $0x718] sm:$0xff] }
  0x4c   : > { %263 = vst [vmem:[%s7346_s27 + $0x1c0] sm:$0xff] %v262_v56  ;;  %v390_v56 = vld [vmem:[%s7341_s26 + $0x720] sm:$0xff] }
  0x4d   : > { %265 = vst [vmem:[%s7346_s27 + $0x1c8] sm:$0xff] %v264_v57  ;;  %v392_v57 = vld [vmem:[%s7341_s26 + $0x728] sm:$0xff] }
  0x4e   : > { %267 = vst [vmem:[%s7346_s27 + $0x1d0] sm:$0xff] %v266_v58  ;;  %v394_v58 = vld [vmem:[%s7341_s26 + $0x730] sm:$0xff] }
  0x4f   : > { %269 = vst [vmem:[%s7346_s27 + $0x1d8] sm:$0xff] %v268_v59  ;;  %v396_v59 = vld [vmem:[%s7341_s26 + $0x738] sm:$0xff] }
  0x50   : > { %271 = vst [vmem:[%s7346_s27 + $0x1e0] sm:$0xff] %v270_v60  ;;  %v398_v60 = vld [vmem:[%s7341_s26 + $0x740] sm:$0xff] }
  0x51   : > { %273 = vst [vmem:[%s7346_s27 + $0x1e8] sm:$0xff] %v272_v61  ;;  %v400_v61 = vld [vmem:[%s7341_s26 + $0x748] sm:$0xff] }
  0x52   : > { %275 = vst [vmem:[%s7346_s27 + $0x1f0] sm:$0xff] %v274_v62  ;;  %v402_v62 = vld [vmem:[%s7341_s26 + $0x7e0] sm:$0xff] }
  0x53   : > { %277 = vst [vmem:[%s7346_s27 + $0x1f8] sm:$0xff] %v276_v63  ;;  %v404_v63 = vld [vmem:[%s7341_s26 + $0x7e8] sm:$0xff] }
  0x54   : > { %279 = vst [vmem:[%s7346_s27 + $0x200] sm:$0xff] %v278_v0  ;;  %v406_v0 = vld [vmem:[%s7341_s26 + $0x7f0] sm:$0xff] }
  0x55   : > { %281 = vst [vmem:[%s7346_s27 + $0x208] sm:$0xff] %v280_v1  ;;  %v408_v1 = vld [vmem:[%s7341_s26 + $0x7f8] sm:$0xff] }
  0x56   : > { %283 = vst [vmem:[%s7346_s27 + $0x210] sm:$0xff] %v282_v2  ;;  %v410_v2 = vld [vmem:[%s7341_s26 + $0x800] sm:$0xff] }
  0x57   : > { %285 = vst [vmem:[%s7346_s27 + $0x218] sm:$0xff] %v284_v3  ;;  %v412_v3 = vld [vmem:[%s7341_s26 + $0x808] sm:$0xff] }
  0x58   : > { %287 = vst [vmem:[%s7346_s27 + $0x220] sm:$0xff] %v286_v4  ;;  %v414_v4 = vld [vmem:[%s7341_s26 + $0x810] sm:$0xff] }
  0x59   : > { %289 = vst [vmem:[%s7346_s27 + $0x228] sm:$0xff] %v288_v5  ;;  %v416_v5 = vld [vmem:[%s7341_s26 + $0x818] sm:$0xff] }
  0x5a   : > { %291 = vst [vmem:[%s7346_s27 + $0x230] sm:$0xff] %v290_v6  ;;  %v418_v6 = vld [vmem:[%s7341_s26 + $0x820] sm:$0xff] }
  0x5b   : > { %293 = vst [vmem:[%s7346_s27 + $0x238] sm:$0xff] %v292_v7  ;;  %v420_v7 = vld [vmem:[%s7341_s26 + $0x828] sm:$0xff] }
  0x5c   : > { %295 = vst [vmem:[%s7346_s27 + $0x240] sm:$0xff] %v294_v8  ;;  %v422_v8 = vld [vmem:[%s7341_s26 + $0x830] sm:$0xff] }
  0x5d   : > { %297 = vst [vmem:[%s7346_s27 + $0x248] sm:$0xff] %v296_v9  ;;  %v424_v9 = vld [vmem:[%s7341_s26 + $0x838] sm:$0xff] }
  0x5e   : > { %299 = vst [vmem:[%s7346_s27 + $0x250] sm:$0xff] %v298_v10  ;;  %v426_v10 = vld [vmem:[%s7341_s26 + $0x840] sm:$0xff] }
  0x5f   : > { %301 = vst [vmem:[%s7346_s27 + $0x258] sm:$0xff] %v300_v11  ;;  %v428_v11 = vld [vmem:[%s7341_s26 + $0x848] sm:$0xff] }
  0x60   : > { %303 = vst [vmem:[%s7346_s27 + $0x260] sm:$0xff] %v302_v12  ;;  %v430_v12 = vld [vmem:[%s7341_s26 + $0x850] sm:$0xff] }
  0x61   : > { %305 = vst [vmem:[%s7346_s27 + $0x268] sm:$0xff] %v304_v13  ;;  %v432_v13 = vld [vmem:[%s7341_s26 + $0x858] sm:$0xff] }
  0x62   : > { %307 = vst [vmem:[%s7346_s27 + $0x270] sm:$0xff] %v306_v14  ;;  %v434_v14 = vld [vmem:[%s7341_s26 + $0x860] sm:$0xff] }
  0x63   : > { %309 = vst [vmem:[%s7346_s27 + $0x278] sm:$0xff] %v308_v15  ;;  %v436_v15 = vld [vmem:[%s7341_s26 + $0x868] sm:$0xff] }
  0x64   : > { %311 = vst [vmem:[%s7346_s27 + $0x280] sm:$0xff] %v310_v16  ;;  %v438_v16 = vld [vmem:[%s7341_s26 + $0x900] sm:$0xff] }
  0x65   : > { %313 = vst [vmem:[%s7346_s27 + $0x288] sm:$0xff] %v312_v17  ;;  %v440_v17 = vld [vmem:[%s7341_s26 + $0x908] sm:$0xff] }
  0x66   : > { %315 = vst [vmem:[%s7346_s27 + $0x290] sm:$0xff] %v314_v18  ;;  %v442_v18 = vld [vmem:[%s7341_s26 + $0x910] sm:$0xff] }
  0x67   : > { %317 = vst [vmem:[%s7346_s27 + $0x298] sm:$0xff] %v316_v19  ;;  %v444_v19 = vld [vmem:[%s7341_s26 + $0x918] sm:$0xff] }
  0x68   : > { %319 = vst [vmem:[%s7346_s27 + $0x2a0] sm:$0xff] %v318_v20  ;;  %v446_v20 = vld [vmem:[%s7341_s26 + $0x920] sm:$0xff] }
  0x69   : > { %321 = vst [vmem:[%s7346_s27 + $0x2a8] sm:$0xff] %v320_v21  ;;  %v448_v21 = vld [vmem:[%s7341_s26 + $0x928] sm:$0xff] }
  0x6a   : > { %323 = vst [vmem:[%s7346_s27 + $0x2b0] sm:$0xff] %v322_v22  ;;  %v450_v22 = vld [vmem:[%s7341_s26 + $0x930] sm:$0xff] }
  0x6b   : > { %325 = vst [vmem:[%s7346_s27 + $0x2b8] sm:$0xff] %v324_v23  ;;  %v452_v23 = vld [vmem:[%s7341_s26 + $0x938] sm:$0xff] }
  0x6c   : > { %327 = vst [vmem:[%s7346_s27 + $0x2c0] sm:$0xff] %v326_v24  ;;  %v454_v24 = vld [vmem:[%s7341_s26 + $0x940] sm:$0xff] }
  0x6d   : > { %329 = vst [vmem:[%s7346_s27 + $0x2c8] sm:$0xff] %v328_v25  ;;  %v456_v25 = vld [vmem:[%s7341_s26 + $0x948] sm:$0xff] }
  0x6e   : > { %331 = vst [vmem:[%s7346_s27 + $0x2d0] sm:$0xff] %v330_v26  ;;  %v458_v26 = vld [vmem:[%s7341_s26 + $0x950] sm:$0xff] }
  0x6f   : > { %333 = vst [vmem:[%s7346_s27 + $0x2d8] sm:$0xff] %v332_v27  ;;  %v460_v27 = vld [vmem:[%s7341_s26 + $0x958] sm:$0xff] }
  0x70   : > { %335 = vst [vmem:[%s7346_s27 + $0x2e0] sm:$0xff] %v334_v28  ;;  %v462_v28 = vld [vmem:[%s7341_s26 + $0x960] sm:$0xff] }
  0x71   : > { %337 = vst [vmem:[%s7346_s27 + $0x2e8] sm:$0xff] %v336_v29  ;;  %v464_v29 = vld [vmem:[%s7341_s26 + $0x968] sm:$0xff] }
  0x72   : > { %339 = vst [vmem:[%s7346_s27 + $0x2f0] sm:$0xff] %v338_v30  ;;  %v466_v30 = vld [vmem:[%s7341_s26 + $0x970] sm:$0xff] }
  0x73   : > { %341 = vst [vmem:[%s7346_s27 + $0x2f8] sm:$0xff] %v340_v31  ;;  %v468_v31 = vld [vmem:[%s7341_s26 + $0x978] sm:$0xff] }
  0x74   : > { %343 = vst [vmem:[%s7346_s27 + $0x300] sm:$0xff] %v342_v32  ;;  %v470_v32 = vld [vmem:[%s7341_s26 + $0x980] sm:$0xff] }
  0x75   : > { %345 = vst [vmem:[%s7346_s27 + $0x308] sm:$0xff] %v344_v33  ;;  %v472_v33 = vld [vmem:[%s7341_s26 + $0x988] sm:$0xff] }
  0x76   : > { %347 = vst [vmem:[%s7346_s27 + $0x310] sm:$0xff] %v346_v34  ;;  %v474_v34 = vld [vmem:[%s7341_s26 + $0xa20] sm:$0xff] }
  0x77   : > { %349 = vst [vmem:[%s7346_s27 + $0x318] sm:$0xff] %v348_v35  ;;  %v476_v35 = vld [vmem:[%s7341_s26 + $0xa28] sm:$0xff] }
  0x78   : > { %351 = vst [vmem:[%s7346_s27 + $0x320] sm:$0xff] %v350_v36  ;;  %v478_v36 = vld [vmem:[%s7341_s26 + $0xa30] sm:$0xff] }
  0x79   : > { %353 = vst [vmem:[%s7346_s27 + $0x328] sm:$0xff] %v352_v37  ;;  %v480_v37 = vld [vmem:[%s7341_s26 + $0xa38] sm:$0xff] }
  0x7a   : > { %355 = vst [vmem:[%s7346_s27 + $0x330] sm:$0xff] %v354_v38  ;;  %v482_v38 = vld [vmem:[%s7341_s26 + $0xa40] sm:$0xff] }
  0x7b   : > { %357 = vst [vmem:[%s7346_s27 + $0x338] sm:$0xff] %v356_v39  ;;  %v484_v39 = vld [vmem:[%s7341_s26 + $0xa48] sm:$0xff] }
  0x7c   : > { %359 = vst [vmem:[%s7346_s27 + $0x340] sm:$0xff] %v358_v40  ;;  %v486_v40 = vld [vmem:[%s7341_s26 + $0xa50] sm:$0xff] }
  0x7d   : > { %361 = vst [vmem:[%s7346_s27 + $0x348] sm:$0xff] %v360_v41  ;;  %v488_v41 = vld [vmem:[%s7341_s26 + $0xa58] sm:$0xff] }
  0x7e   : > { %363 = vst [vmem:[%s7346_s27 + $0x350] sm:$0xff] %v362_v42  ;;  %v490_v42 = vld [vmem:[%s7341_s26 + $0xa60] sm:$0xff] }
  0x7f   : > { %365 = vst [vmem:[%s7346_s27 + $0x358] sm:$0xff] %v364_v43  ;;  %v492_v43 = vld [vmem:[%s7341_s26 + $0xa68] sm:$0xff] }
  0x80   : > { %367 = vst [vmem:[%s7346_s27 + $0x360] sm:$0xff] %v366_v44  ;;  %v494_v44 = vld [vmem:[%s7341_s26 + $0xa70] sm:$0xff] }
  0x81   : > { %369 = vst [vmem:[%s7346_s27 + $0x368] sm:$0xff] %v368_v45  ;;  %v496_v45 = vld [vmem:[%s7341_s26 + $0xa78] sm:$0xff] }
  0x82   : > { %371 = vst [vmem:[%s7346_s27 + $0x370] sm:$0xff] %v370_v46  ;;  %v498_v46 = vld [vmem:[%s7341_s26 + $0xa80] sm:$0xff] }
  0x83   : > { %373 = vst [vmem:[%s7346_s27 + $0x378] sm:$0xff] %v372_v47  ;;  %v500_v47 = vld [vmem:[%s7341_s26 + $0xa88] sm:$0xff] }
  0x84   : > { %375 = vst [vmem:[%s7346_s27 + $0x380] sm:$0xff] %v374_v48  ;;  %v502_v48 = vld [vmem:[%s7341_s26 + $0xa90] sm:$0xff] }
  0x85   : > { %377 = vst [vmem:[%s7346_s27 + $0x388] sm:$0xff] %v376_v49  ;;  %v504_v49 = vld [vmem:[%s7341_s26 + $0xa98] sm:$0xff] }
  0x86   : > { %379 = vst [vmem:[%s7346_s27 + $0x390] sm:$0xff] %v378_v50  ;;  %v506_v50 = vld [vmem:[%s7341_s26 + $0xaa0] sm:$0xff] }
  0x87   : > { %381 = vst [vmem:[%s7346_s27 + $0x398] sm:$0xff] %v380_v51  ;;  %v508_v51 = vld [vmem:[%s7341_s26 + $0xaa8] sm:$0xff] }
  0x88   : > { %383 = vst [vmem:[%s7346_s27 + $0x3a0] sm:$0xff] %v382_v52  ;;  %v510_v52 = vld [vmem:[%s7341_s26 + $0xb40] sm:$0xff] }
  0x89   : > { %385 = vst [vmem:[%s7346_s27 + $0x3a8] sm:$0xff] %v384_v53  ;;  %v512_v53 = vld [vmem:[%s7341_s26 + $0xb48] sm:$0xff] }
  0x8a   : > { %387 = vst [vmem:[%s7346_s27 + $0x3b0] sm:$0xff] %v386_v54  ;;  %v514_v54 = vld [vmem:[%s7341_s26 + $0xb50] sm:$0xff] }
  0x8b   : > { %389 = vst [vmem:[%s7346_s27 + $0x3b8] sm:$0xff] %v388_v55  ;;  %v516_v55 = vld [vmem:[%s7341_s26 + $0xb58] sm:$0xff] }
  0x8c   : > { %391 = vst [vmem:[%s7346_s27 + $0x3c0] sm:$0xff] %v390_v56  ;;  %v518_v56 = vld [vmem:[%s7341_s26 + $0xb60] sm:$0xff] }
  0x8d   : > { %393 = vst [vmem:[%s7346_s27 + $0x3c8] sm:$0xff] %v392_v57  ;;  %v520_v57 = vld [vmem:[%s7341_s26 + $0xb68] sm:$0xff] }
  0x8e   : > { %395 = vst [vmem:[%s7346_s27 + $0x3d0] sm:$0xff] %v394_v58  ;;  %v522_v58 = vld [vmem:[%s7341_s26 + $0xb70] sm:$0xff] }
  0x8f   : > { %397 = vst [vmem:[%s7346_s27 + $0x3d8] sm:$0xff] %v396_v59  ;;  %v524_v59 = vld [vmem:[%s7341_s26 + $0xb78] sm:$0xff] }
  0x90   : > { %399 = vst [vmem:[%s7346_s27 + $0x3e0] sm:$0xff] %v398_v60  ;;  %v526_v60 = vld [vmem:[%s7341_s26 + $0xb80] sm:$0xff] }
  0x91   : > { %401 = vst [vmem:[%s7346_s27 + $0x3e8] sm:$0xff] %v400_v61  ;;  %v528_v61 = vld [vmem:[%s7341_s26 + $0xb88] sm:$0xff] }
  0x92   : > { %403 = vst [vmem:[%s7346_s27 + $0x3f0] sm:$0xff] %v402_v62  ;;  %v530_v62 = vld [vmem:[%s7341_s26 + $0xb90] sm:$0xff] }
  0x93   : > { %405 = vst [vmem:[%s7346_s27 + $0x3f8] sm:$0xff] %v404_v63  ;;  %v532_v63 = vld [vmem:[%s7341_s26 + $0xb98] sm:$0xff] }
  0x94   : > { %407 = vst [vmem:[%s7346_s27 + $0x400] sm:$0xff] %v406_v0  ;;  %v534_v0 = vld [vmem:[%s7341_s26 + $0xba0] sm:$0xff] }
  0x95   : > { %409 = vst [vmem:[%s7346_s27 + $0x408] sm:$0xff] %v408_v1  ;;  %v536_v1 = vld [vmem:[%s7341_s26 + $0xba8] sm:$0xff] }
  0x96   : > { %411 = vst [vmem:[%s7346_s27 + $0x410] sm:$0xff] %v410_v2  ;;  %v538_v2 = vld [vmem:[%s7341_s26 + $0xbb0] sm:$0xff] }
  0x97   : > { %413 = vst [vmem:[%s7346_s27 + $0x418] sm:$0xff] %v412_v3  ;;  %v540_v3 = vld [vmem:[%s7341_s26 + $0xbb8] sm:$0xff] }
  0x98   : > { %415 = vst [vmem:[%s7346_s27 + $0x420] sm:$0xff] %v414_v4  ;;  %v542_v4 = vld [vmem:[%s7341_s26 + $0xbc0] sm:$0xff] }
  0x99   : > { %417 = vst [vmem:[%s7346_s27 + $0x428] sm:$0xff] %v416_v5  ;;  %v544_v5 = vld [vmem:[%s7341_s26 + $0xbc8] sm:$0xff] }
  0x9a   : > { %419 = vst [vmem:[%s7346_s27 + $0x430] sm:$0xff] %v418_v6  ;;  %v546_v6 = vld [vmem:[%s7341_s26 + $0xc60] sm:$0xff] }
  0x9b   : > { %421 = vst [vmem:[%s7346_s27 + $0x438] sm:$0xff] %v420_v7  ;;  %v548_v7 = vld [vmem:[%s7341_s26 + $0xc68] sm:$0xff] }
  0x9c   : > { %423 = vst [vmem:[%s7346_s27 + $0x440] sm:$0xff] %v422_v8  ;;  %v550_v8 = vld [vmem:[%s7341_s26 + $0xc70] sm:$0xff] }
  0x9d   : > { %425 = vst [vmem:[%s7346_s27 + $0x448] sm:$0xff] %v424_v9  ;;  %v552_v9 = vld [vmem:[%s7341_s26 + $0xc78] sm:$0xff] }
  0x9e   : > { %427 = vst [vmem:[%s7346_s27 + $0x450] sm:$0xff] %v426_v10  ;;  %v554_v10 = vld [vmem:[%s7341_s26 + $0xc80] sm:$0xff] }
  0x9f   : > { %429 = vst [vmem:[%s7346_s27 + $0x458] sm:$0xff] %v428_v11  ;;  %v556_v11 = vld [vmem:[%s7341_s26 + $0xc88] sm:$0xff] }
  0xa0   : > { %431 = vst [vmem:[%s7346_s27 + $0x460] sm:$0xff] %v430_v12  ;;  %v558_v12 = vld [vmem:[%s7341_s26 + $0xc90] sm:$0xff] }
  0xa1   : > { %433 = vst [vmem:[%s7346_s27 + $0x468] sm:$0xff] %v432_v13  ;;  %v560_v13 = vld [vmem:[%s7341_s26 + $0xc98] sm:$0xff] }
  0xa2   : > { %435 = vst [vmem:[%s7346_s27 + $0x470] sm:$0xff] %v434_v14  ;;  %v562_v14 = vld [vmem:[%s7341_s26 + $0xca0] sm:$0xff] }
  0xa3   : > { %437 = vst [vmem:[%s7346_s27 + $0x478] sm:$0xff] %v436_v15  ;;  %v564_v15 = vld [vmem:[%s7341_s26 + $0xca8] sm:$0xff] }
  0xa4   : > { %439 = vst [vmem:[%s7346_s27 + $0x480] sm:$0xff] %v438_v16  ;;  %v566_v16 = vld [vmem:[%s7341_s26 + $0xcb0] sm:$0xff] }
  0xa5   : > { %441 = vst [vmem:[%s7346_s27 + $0x488] sm:$0xff] %v440_v17  ;;  %v568_v17 = vld [vmem:[%s7341_s26 + $0xcb8] sm:$0xff] }
  0xa6   : > { %443 = vst [vmem:[%s7346_s27 + $0x490] sm:$0xff] %v442_v18  ;;  %v570_v18 = vld [vmem:[%s7341_s26 + $0xcc0] sm:$0xff] }
  0xa7   : > { %445 = vst [vmem:[%s7346_s27 + $0x498] sm:$0xff] %v444_v19  ;;  %v572_v19 = vld [vmem:[%s7341_s26 + $0xcc8] sm:$0xff] }
  0xa8   : > { %447 = vst [vmem:[%s7346_s27 + $0x4a0] sm:$0xff] %v446_v20  ;;  %v574_v20 = vld [vmem:[%s7341_s26 + $0xcd0] sm:$0xff] }
  0xa9   : > { %449 = vst [vmem:[%s7346_s27 + $0x4a8] sm:$0xff] %v448_v21  ;;  %v576_v21 = vld [vmem:[%s7341_s26 + $0xcd8] sm:$0xff] }
  0xaa   : > { %451 = vst [vmem:[%s7346_s27 + $0x4b0] sm:$0xff] %v450_v22  ;;  %v578_v22 = vld [vmem:[%s7341_s26 + $0xce0] sm:$0xff] }
  0xab   : > { %453 = vst [vmem:[%s7346_s27 + $0x4b8] sm:$0xff] %v452_v23  ;;  %v580_v23 = vld [vmem:[%s7341_s26 + $0xce8] sm:$0xff] }
  0xac   : > { %455 = vst [vmem:[%s7346_s27 + $0x4c0] sm:$0xff] %v454_v24  ;;  %v582_v24 = vld [vmem:[%s7341_s26 + $0xd80] sm:$0xff] }
  0xad   : > { %457 = vst [vmem:[%s7346_s27 + $0x4c8] sm:$0xff] %v456_v25  ;;  %v584_v25 = vld [vmem:[%s7341_s26 + $0xd88] sm:$0xff] }
  0xae   : > { %459 = vst [vmem:[%s7346_s27 + $0x4d0] sm:$0xff] %v458_v26  ;;  %v586_v26 = vld [vmem:[%s7341_s26 + $0xd90] sm:$0xff] }
  0xaf   : > { %461 = vst [vmem:[%s7346_s27 + $0x4d8] sm:$0xff] %v460_v27  ;;  %v588_v27 = vld [vmem:[%s7341_s26 + $0xd98] sm:$0xff] }
  0xb0   : > { %463 = vst [vmem:[%s7346_s27 + $0x4e0] sm:$0xff] %v462_v28  ;;  %v590_v28 = vld [vmem:[%s7341_s26 + $0xda0] sm:$0xff] }
  0xb1   : > { %465 = vst [vmem:[%s7346_s27 + $0x4e8] sm:$0xff] %v464_v29  ;;  %v592_v29 = vld [vmem:[%s7341_s26 + $0xda8] sm:$0xff] }
  0xb2   : > { %467 = vst [vmem:[%s7346_s27 + $0x4f0] sm:$0xff] %v466_v30  ;;  %v594_v30 = vld [vmem:[%s7341_s26 + $0xdb0] sm:$0xff] }
  0xb3   : > { %469 = vst [vmem:[%s7346_s27 + $0x4f8] sm:$0xff] %v468_v31  ;;  %v596_v31 = vld [vmem:[%s7341_s26 + $0xdb8] sm:$0xff] }
  0xb4   : > { %471 = vst [vmem:[%s7346_s27 + $0x500] sm:$0xff] %v470_v32  ;;  %v598_v32 = vld [vmem:[%s7341_s26 + $0xdc0] sm:$0xff] }
  0xb5   : > { %473 = vst [vmem:[%s7346_s27 + $0x508] sm:$0xff] %v472_v33  ;;  %v600_v33 = vld [vmem:[%s7341_s26 + $0xdc8] sm:$0xff] }
  0xb6   : > { %475 = vst [vmem:[%s7346_s27 + $0x510] sm:$0xff] %v474_v34  ;;  %v602_v34 = vld [vmem:[%s7341_s26 + $0xdd0] sm:$0xff] }
  0xb7   : > { %477 = vst [vmem:[%s7346_s27 + $0x518] sm:$0xff] %v476_v35  ;;  %v604_v35 = vld [vmem:[%s7341_s26 + $0xdd8] sm:$0xff] }
  0xb8   : > { %479 = vst [vmem:[%s7346_s27 + $0x520] sm:$0xff] %v478_v36  ;;  %v606_v36 = vld [vmem:[%s7341_s26 + $0xde0] sm:$0xff] }
  0xb9   : > { %481 = vst [vmem:[%s7346_s27 + $0x528] sm:$0xff] %v480_v37  ;;  %v608_v37 = vld [vmem:[%s7341_s26 + $0xde8] sm:$0xff] }
  0xba   : > { %483 = vst [vmem:[%s7346_s27 + $0x530] sm:$0xff] %v482_v38  ;;  %v610_v38 = vld [vmem:[%s7341_s26 + $0xdf0] sm:$0xff] }
  0xbb   : > { %485 = vst [vmem:[%s7346_s27 + $0x538] sm:$0xff] %v484_v39  ;;  %v612_v39 = vld [vmem:[%s7341_s26 + $0xdf8] sm:$0xff] }
  0xbc   : > { %487 = vst [vmem:[%s7346_s27 + $0x540] sm:$0xff] %v486_v40  ;;  %v614_v40 = vld [vmem:[%s7341_s26 + $0xe00] sm:$0xff] }
  0xbd   : > { %489 = vst [vmem:[%s7346_s27 + $0x548] sm:$0xff] %v488_v41  ;;  %v616_v41 = vld [vmem:[%s7341_s26 + $0xe08] sm:$0xff] }
  0xbe   : > { %491 = vst [vmem:[%s7346_s27 + $0x550] sm:$0xff] %v490_v42  ;;  %v618_v42 = vld [vmem:[%s7341_s26 + $0xea0] sm:$0xff] }
  0xbf   : > { %493 = vst [vmem:[%s7346_s27 + $0x558] sm:$0xff] %v492_v43  ;;  %v620_v43 = vld [vmem:[%s7341_s26 + $0xea8] sm:$0xff] }
  0xc0   : > { %495 = vst [vmem:[%s7346_s27 + $0x560] sm:$0xff] %v494_v44  ;;  %v622_v44 = vld [vmem:[%s7341_s26 + $0xeb0] sm:$0xff] }
  0xc1   : > { %497 = vst [vmem:[%s7346_s27 + $0x568] sm:$0xff] %v496_v45  ;;  %v624_v45 = vld [vmem:[%s7341_s26 + $0xeb8] sm:$0xff] }
  0xc2   : > { %499 = vst [vmem:[%s7346_s27 + $0x570] sm:$0xff] %v498_v46  ;;  %v626_v46 = vld [vmem:[%s7341_s26 + $0xec0] sm:$0xff] }
  0xc3   : > { %501 = vst [vmem:[%s7346_s27 + $0x578] sm:$0xff] %v500_v47  ;;  %v628_v47 = vld [vmem:[%s7341_s26 + $0xec8] sm:$0xff] }
  0xc4   : > { %503 = vst [vmem:[%s7346_s27 + $0x580] sm:$0xff] %v502_v48  ;;  %v630_v48 = vld [vmem:[%s7341_s26 + $0xed0] sm:$0xff] }
  0xc5   : > { %505 = vst [vmem:[%s7346_s27 + $0x588] sm:$0xff] %v504_v49  ;;  %v632_v49 = vld [vmem:[%s7341_s26 + $0xed8] sm:$0xff] }
  0xc6   : > { %507 = vst [vmem:[%s7346_s27 + $0x590] sm:$0xff] %v506_v50  ;;  %v634_v50 = vld [vmem:[%s7341_s26 + $0xee0] sm:$0xff] }
  0xc7   : > { %509 = vst [vmem:[%s7346_s27 + $0x598] sm:$0xff] %v508_v51  ;;  %v636_v51 = vld [vmem:[%s7341_s26 + $0xee8] sm:$0xff] }
  0xc8   : > { %511 = vst [vmem:[%s7346_s27 + $0x5a0] sm:$0xff] %v510_v52  ;;  %v638_v52 = vld [vmem:[%s7341_s26 + $0xef0] sm:$0xff] }
  0xc9   : > { %513 = vst [vmem:[%s7346_s27 + $0x5a8] sm:$0xff] %v512_v53  ;;  %v640_v53 = vld [vmem:[%s7341_s26 + $0xef8] sm:$0xff] }
  0xca   : > { %515 = vst [vmem:[%s7346_s27 + $0x5b0] sm:$0xff] %v514_v54  ;;  %v642_v54 = vld [vmem:[%s7341_s26 + $0xf00] sm:$0xff] }
  0xcb   : > { %517 = vst [vmem:[%s7346_s27 + $0x5b8] sm:$0xff] %v516_v55  ;;  %v644_v55 = vld [vmem:[%s7341_s26 + $0xf08] sm:$0xff] }
  0xcc   : > { %519 = vst [vmem:[%s7346_s27 + $0x5c0] sm:$0xff] %v518_v56  ;;  %v646_v56 = vld [vmem:[%s7341_s26 + $0xf10] sm:$0xff] }
  0xcd   : > { %521 = vst [vmem:[%s7346_s27 + $0x5c8] sm:$0xff] %v520_v57  ;;  %v648_v57 = vld [vmem:[%s7341_s26 + $0xf18] sm:$0xff] }
  0xce   : > { %523 = vst [vmem:[%s7346_s27 + $0x5d0] sm:$0xff] %v522_v58  ;;  %v650_v58 = vld [vmem:[%s7341_s26 + $0xf20] sm:$0xff] }
  0xcf   : > { %525 = vst [vmem:[%s7346_s27 + $0x5d8] sm:$0xff] %v524_v59  ;;  %v652_v59 = vld [vmem:[%s7341_s26 + $0xf28] sm:$0xff] }
  0xd0   : > { %527 = vst [vmem:[%s7346_s27 + $0x5e0] sm:$0xff] %v526_v60  ;;  %v654_v60 = vld [vmem:[%s7341_s26 + $0xfc0] sm:$0xff] }
  0xd1   : > { %529 = vst [vmem:[%s7346_s27 + $0x5e8] sm:$0xff] %v528_v61  ;;  %v656_v61 = vld [vmem:[%s7341_s26 + $0xfc8] sm:$0xff] }
  0xd2   : > { %531 = vst [vmem:[%s7346_s27 + $0x5f0] sm:$0xff] %v530_v62  ;;  %v658_v62 = vld [vmem:[%s7341_s26 + $0xfd0] sm:$0xff] }
  0xd3   : > { %533 = vst [vmem:[%s7346_s27 + $0x5f8] sm:$0xff] %v532_v63  ;;  %v660_v63 = vld [vmem:[%s7341_s26 + $0xfd8] sm:$0xff] }
  0xd4   : > { %535 = vst [vmem:[%s7346_s27 + $0x600] sm:$0xff] %v534_v0  ;;  %v662_v0 = vld [vmem:[%s7341_s26 + $0xfe0] sm:$0xff] }
  0xd5   : > { %537 = vst [vmem:[%s7346_s27 + $0x608] sm:$0xff] %v536_v1  ;;  %v664_v1 = vld [vmem:[%s7341_s26 + $0xfe8] sm:$0xff] }
  0xd6   : > { %539 = vst [vmem:[%s7346_s27 + $0x610] sm:$0xff] %v538_v2  ;;  %v666_v2 = vld [vmem:[%s7341_s26 + $0xff0] sm:$0xff] }
  0xd7   : > { %541 = vst [vmem:[%s7346_s27 + $0x618] sm:$0xff] %v540_v3  ;;  %v668_v3 = vld [vmem:[%s7341_s26 + $0xff8] sm:$0xff] }
  0xd8   : > { %543 = vst [vmem:[%s7346_s27 + $0x620] sm:$0xff] %v542_v4  ;;  %v670_v4 = vld [vmem:[%s7341_s26 + $0x1000] sm:$0xff] }
  0xd9   : > { %545 = vst [vmem:[%s7346_s27 + $0x628] sm:$0xff] %v544_v5  ;;  %v672_v5 = vld [vmem:[%s7341_s26 + $0x1008] sm:$0xff] }
  0xda   : > { %547 = vst [vmem:[%s7346_s27 + $0x630] sm:$0xff] %v546_v6  ;;  %v674_v6 = vld [vmem:[%s7341_s26 + $0x1010] sm:$0xff] }
  0xdb   : > { %549 = vst [vmem:[%s7346_s27 + $0x638] sm:$0xff] %v548_v7  ;;  %v676_v7 = vld [vmem:[%s7341_s26 + $0x1018] sm:$0xff] }
  0xdc   : > { %551 = vst [vmem:[%s7346_s27 + $0x640] sm:$0xff] %v550_v8  ;;  %v678_v8 = vld [vmem:[%s7341_s26 + $0x1020] sm:$0xff] }
  0xdd   : > { %553 = vst [vmem:[%s7346_s27 + $0x648] sm:$0xff] %v552_v9  ;;  %v680_v9 = vld [vmem:[%s7341_s26 + $0x1028] sm:$0xff] }
  0xde   : > { %555 = vst [vmem:[%s7346_s27 + $0x650] sm:$0xff] %v554_v10  ;;  %v682_v10 = vld [vmem:[%s7341_s26 + $0x1030] sm:$0xff] }
  0xdf   : > { %557 = vst [vmem:[%s7346_s27 + $0x658] sm:$0xff] %v556_v11  ;;  %v684_v11 = vld [vmem:[%s7341_s26 + $0x1038] sm:$0xff] }
  0xe0   : > { %559 = vst [vmem:[%s7346_s27 + $0x660] sm:$0xff] %v558_v12  ;;  %v686_v12 = vld [vmem:[%s7341_s26 + $0x1040] sm:$0xff] }
  0xe1   : > { %561 = vst [vmem:[%s7346_s27 + $0x668] sm:$0xff] %v560_v13  ;;  %v688_v13 = vld [vmem:[%s7341_s26 + $0x1048] sm:$0xff] }
  0xe2   : > { %563 = vst [vmem:[%s7346_s27 + $0x670] sm:$0xff] %v562_v14  ;;  %v690_v14 = vld [vmem:[%s7341_s26 + $0x10e0] sm:$0xff] }
  0xe3   : > { %565 = vst [vmem:[%s7346_s27 + $0x678] sm:$0xff] %v564_v15  ;;  %v692_v15 = vld [vmem:[%s7341_s26 + $0x10e8] sm:$0xff] }
  0xe4   : > { %567 = vst [vmem:[%s7346_s27 + $0x680] sm:$0xff] %v566_v16  ;;  %v694_v16 = vld [vmem:[%s7341_s26 + $0x10f0] sm:$0xff] }
  0xe5   : > { %569 = vst [vmem:[%s7346_s27 + $0x688] sm:$0xff] %v568_v17  ;;  %v696_v17 = vld [vmem:[%s7341_s26 + $0x10f8] sm:$0xff] }
  0xe6   : > { %571 = vst [vmem:[%s7346_s27 + $0x690] sm:$0xff] %v570_v18  ;;  %v698_v18 = vld [vmem:[%s7341_s26 + $0x1100] sm:$0xff] }
  0xe7   : > { %573 = vst [vmem:[%s7346_s27 + $0x698] sm:$0xff] %v572_v19  ;;  %v700_v19 = vld [vmem:[%s7341_s26 + $0x1108] sm:$0xff] }
  0xe8   : > { %575 = vst [vmem:[%s7346_s27 + $0x6a0] sm:$0xff] %v574_v20  ;;  %v702_v20 = vld [vmem:[%s7341_s26 + $0x1110] sm:$0xff] }
  0xe9   : > { %577 = vst [vmem:[%s7346_s27 + $0x6a8] sm:$0xff] %v576_v21  ;;  %v704_v21 = vld [vmem:[%s7341_s26 + $0x1118] sm:$0xff] }
  0xea   : > { %579 = vst [vmem:[%s7346_s27 + $0x6b0] sm:$0xff] %v578_v22  ;;  %v706_v22 = vld [vmem:[%s7341_s26 + $0x1120] sm:$0xff] }
  0xeb   : > { %581 = vst [vmem:[%s7346_s27 + $0x6b8] sm:$0xff] %v580_v23  ;;  %v708_v23 = vld [vmem:[%s7341_s26 + $0x1128] sm:$0xff] }
  0xec   : > { %583 = vst [vmem:[%s7346_s27 + $0x6c0] sm:$0xff] %v582_v24  ;;  %v710_v24 = vld [vmem:[%s7341_s26 + $0x1130] sm:$0xff] }
  0xed   : > { %585 = vst [vmem:[%s7346_s27 + $0x6c8] sm:$0xff] %v584_v25  ;;  %v712_v25 = vld [vmem:[%s7341_s26 + $0x1138] sm:$0xff] }
  0xee   : > { %587 = vst [vmem:[%s7346_s27 + $0x6d0] sm:$0xff] %v586_v26  ;;  %v714_v26 = vld [vmem:[%s7341_s26 + $0x1140] sm:$0xff] }
  0xef   : > { %589 = vst [vmem:[%s7346_s27 + $0x6d8] sm:$0xff] %v588_v27  ;;  %v716_v27 = vld [vmem:[%s7341_s26 + $0x1148] sm:$0xff] }
  0xf0   : > { %591 = vst [vmem:[%s7346_s27 + $0x6e0] sm:$0xff] %v590_v28  ;;  %v718_v28 = vld [vmem:[%s7341_s26 + $0x1150] sm:$0xff] }
  0xf1   : > { %593 = vst [vmem:[%s7346_s27 + $0x6e8] sm:$0xff] %v592_v29  ;;  %v720_v29 = vld [vmem:[%s7341_s26 + $0x1158] sm:$0xff] }
  0xf2   : > { %595 = vst [vmem:[%s7346_s27 + $0x6f0] sm:$0xff] %v594_v30  ;;  %v722_v30 = vld [vmem:[%s7341_s26 + $0x1160] sm:$0xff] }
  0xf3   : > { %597 = vst [vmem:[%s7346_s27 + $0x6f8] sm:$0xff] %v596_v31  ;;  %v724_v31 = vld [vmem:[%s7341_s26 + $0x1168] sm:$0xff] }
  0xf4   : > { %599 = vst [vmem:[%s7346_s27 + $0x700] sm:$0xff] %v598_v32 }
  0xf5   : > { %601 = vst [vmem:[%s7346_s27 + $0x708] sm:$0xff] %v600_v33 }
  0xf6   : > { %603 = vst [vmem:[%s7346_s27 + $0x710] sm:$0xff] %v602_v34 }
  0xf7   : > { %605 = vst [vmem:[%s7346_s27 + $0x718] sm:$0xff] %v604_v35 }
  0xf8   : > { %607 = vst [vmem:[%s7346_s27 + $0x720] sm:$0xff] %v606_v36 }
  0xf9   : > { %609 = vst [vmem:[%s7346_s27 + $0x728] sm:$0xff] %v608_v37 }
  0xfa   : > { %611 = vst [vmem:[%s7346_s27 + $0x730] sm:$0xff] %v610_v38 }
  0xfb   : > { %613 = vst [vmem:[%s7346_s27 + $0x738] sm:$0xff] %v612_v39 }
  0xfc   : > { %615 = vst [vmem:[%s7346_s27 + $0x740] sm:$0xff] %v614_v40 }
  0xfd   : > { %617 = vst [vmem:[%s7346_s27 + $0x748] sm:$0xff] %v616_v41 }
  0xfe   : > { %619 = vst [vmem:[%s7346_s27 + $0x750] sm:$0xff] %v618_v42 }
  0xff   : > { %621 = vst [vmem:[%s7346_s27 + $0x758] sm:$0xff] %v620_v43 }
 0x100   : > { %623 = vst [vmem:[%s7346_s27 + $0x760] sm:$0xff] %v622_v44 }
 0x101   : > { %625 = vst [vmem:[%s7346_s27 + $0x768] sm:$0xff] %v624_v45 }
 0x102   : > { %627 = vst [vmem:[%s7346_s27 + $0x770] sm:$0xff] %v626_v46 }
 0x103   : > { %629 = vst [vmem:[%s7346_s27 + $0x778] sm:$0xff] %v628_v47 }
 0x104   : > { %631 = vst [vmem:[%s7346_s27 + $0x780] sm:$0xff] %v630_v48 }
 0x105   : > { %633 = vst [vmem:[%s7346_s27 + $0x788] sm:$0xff] %v632_v49 }
 0x106   : > { %635 = vst [vmem:[%s7346_s27 + $0x790] sm:$0xff] %v634_v50 }
 0x107   : > { %637 = vst [vmem:[%s7346_s27 + $0x798] sm:$0xff] %v636_v51 }
 0x108   : > { %639 = vst [vmem:[%s7346_s27 + $0x7a0] sm:$0xff] %v638_v52 }
 0x109   : > { %641 = vst [vmem:[%s7346_s27 + $0x7a8] sm:$0xff] %v640_v53 }
 0x10a   : > { %643 = vst [vmem:[%s7346_s27 + $0x7b0] sm:$0xff] %v642_v54 }
 0x10b   : > { %645 = vst [vmem:[%s7346_s27 + $0x7b8] sm:$0xff] %v644_v55 }
 0x10c   : > { %647 = vst [vmem:[%s7346_s27 + $0x7c0] sm:$0xff] %v646_v56 }
 0x10d   : > { %649 = vst [vmem:[%s7346_s27 + $0x7c8] sm:$0xff] %v648_v57 }
 0x10e   : > { %651 = vst [vmem:[%s7346_s27 + $0x7d0] sm:$0xff] %v650_v58 }
 0x10f   : > { %653 = vst [vmem:[%s7346_s27 + $0x7d8] sm:$0xff] %v652_v59 }
 0x110   : > { %655 = vst [vmem:[%s7346_s27 + $0x7e0] sm:$0xff] %v654_v60 }
 0x111   : > { %657 = vst [vmem:[%s7346_s27 + $0x7e8] sm:$0xff] %v656_v61 }
 0x112   : > { %659 = vst [vmem:[%s7346_s27 + $0x7f0] sm:$0xff] %v658_v62 }
 0x113   : > { %661 = vst [vmem:[%s7346_s27 + $0x7f8] sm:$0xff] %v660_v63 }
 0x114   : > { %663 = vst [vmem:[%s7346_s27 + $0x800] sm:$0xff] %v662_v0 }
 0x115   : > { %665 = vst [vmem:[%s7346_s27 + $0x808] sm:$0xff] %v664_v1 }
 0x116   : > { %667 = vst [vmem:[%s7346_s27 + $0x810] sm:$0xff] %v666_v2 }
 0x117   : > { %669 = vst [vmem:[%s7346_s27 + $0x818] sm:$0xff] %v668_v3 }
 0x118   : > { %671 = vst [vmem:[%s7346_s27 + $0x820] sm:$0xff] %v670_v4 }
 0x119   : > { %673 = vst [vmem:[%s7346_s27 + $0x828] sm:$0xff] %v672_v5 }
 0x11a   : > { %675 = vst [vmem:[%s7346_s27 + $0x830] sm:$0xff] %v674_v6 }
 0x11b   : > { %677 = vst [vmem:[%s7346_s27 + $0x838] sm:$0xff] %v676_v7 }
 0x11c   : > { %679 = vst [vmem:[%s7346_s27 + $0x840] sm:$0xff] %v678_v8 }
 0x11d   : > { %681 = vst [vmem:[%s7346_s27 + $0x848] sm:$0xff] %v680_v9 }
 0x11e   : > { %683 = vst [vmem:[%s7346_s27 + $0x850] sm:$0xff] %v682_v10 }
 0x11f   : > { %685 = vst [vmem:[%s7346_s27 + $0x858] sm:$0xff] %v684_v11 }
 0x120   : > { %687 = vst [vmem:[%s7346_s27 + $0x860] sm:$0xff] %v686_v12 }
 0x121   : > { %689 = vst [vmem:[%s7346_s27 + $0x868] sm:$0xff] %v688_v13 }
 0x122   : > { %691 = vst [vmem:[%s7346_s27 + $0x870] sm:$0xff] %v690_v14 }
 0x123   : > { %693 = vst [vmem:[%s7346_s27 + $0x878] sm:$0xff] %v692_v15 }
 0x124   : > { %695 = vst [vmem:[%s7346_s27 + $0x880] sm:$0xff] %v694_v16 }
 0x125   : > { %697 = vst [vmem:[%s7346_s27 + $0x888] sm:$0xff] %v696_v17 }
 0x126   : > { %699 = vst [vmem:[%s7346_s27 + $0x890] sm:$0xff] %v698_v18 }
 0x127   : > { %701 = vst [vmem:[%s7346_s27 + $0x898] sm:$0xff] %v700_v19 }
 0x128   : > { %703 = vst [vmem:[%s7346_s27 + $0x8a0] sm:$0xff] %v702_v20 }
 0x129   : > { %705 = vst [vmem:[%s7346_s27 + $0x8a8] sm:$0xff] %v704_v21 }
 0x12a   : > { %707 = vst [vmem:[%s7346_s27 + $0x8b0] sm:$0xff] %v706_v22 }
 0x12b   : > { %709 = vst [vmem:[%s7346_s27 + $0x8b8] sm:$0xff] %v708_v23 }
 0x12c   : > { %711 = vst [vmem:[%s7346_s27 + $0x8c0] sm:$0xff] %v710_v24 }
 0x12d   : > { %713 = vst [vmem:[%s7346_s27 + $0x8c8] sm:$0xff] %v712_v25 }
 0x12e   : > { %715 = vst [vmem:[%s7346_s27 + $0x8d0] sm:$0xff] %v714_v26 }
 0x12f   : > { %717 = vst [vmem:[%s7346_s27 + $0x8d8] sm:$0xff] %v716_v27 }
 0x130   : > { %719 = vst [vmem:[%s7346_s27 + $0x8e0] sm:$0xff] %v718_v28 }
 0x131   : > { %721 = vst [vmem:[%s7346_s27 + $0x8e8] sm:$0xff] %v720_v29 }
 0x132   : > { %723 = vst [vmem:[%s7346_s27 + $0x8f0] sm:$0xff] %v722_v30 }
 0x133   : > { %725 = vst [vmem:[%s7346_s27 + $0x8f8] sm:$0xff] %v724_v31 }
 0x134 PF: > { %p5414_p7 = scmp.ge.s32.totalorder %s7277_s14, 1  ;;  %p730_p8 = scmp.lt.s32.totalorder %s7277_s14, 3 }
 0x136   : > { %p731_p9 = pnand %p5414_p7, %p730_p8 }
 0x138   : > { %734 = sbr.rel (%p731_p9) target bundleno = 1059 (0x423), region = 51 }
 0x13d   : > { %s737_s28 = sand.u32 1, %s7269_s12   ;;  %vm1169_vm0 = vcmask 1043456   ;;  %vm1170_vm1 = vcmask 1044480   ;;  %v7279_v32 = vmov 65535   ;;  %vm1165_vm2 = vcmask 203776   ;;  %s7224_s18 = smul.u32 (%p7331_p5), 144, %s5409_s15 }
 0x13e   : > { %s7226_s29 = smul.u32 2304, %s737_s28  ;;  %v1171_v33 = vsel %vm1169_vm0, 4294967295, %v7279_v32  ;;  %v5417_v52 = vld [vmem:[%s9808_s1] sm:$0xf]  ;;  %v6935_v53 = vld [vmem:[%s9808_s1] sm:$0x10] }
 0x13f   : > { %v7926_v34 = vsel %vm1170_vm1, %v1171_v33, 0  ;;  %v7964_v11 = vor.u32 %v6935_v53, %v5417_v52  ;;  %s7227_s17 = smul.u32 288, %s737_s28  ;;  %s9725_s20 = scalar_lea.vmem (%p7331_p5), %s9810_s3, %s7224_s18 }
 0x140   : > { %s7928_s30 = scalar_lea.vmem [#allocation2], %s7226_s29 }
 0x141   : > { %v5565_v35 = vld [vmem:[%s7928_s30 + $0x120] sm:$0xf]  ;;  %v6990_v36 = vld [vmem:[%s7928_s30 + $0x1ac] sm:$0x10]  ;;  %v6972_v37 = vld [vmem:[%s7928_s30 + $0x124] sm:$0xf] }
 0x142   : > { %v5566_v38 = vor.u32 %v6990_v36, %v5565_v35  ;;  %v5567_v39 = vld [vmem:[%s7928_s30 + $0x1b0] sm:$0x10]  ;;  %v5573_v40 = vld [vmem:[%s7928_s30 + $0x128] sm:$0xf]  ;;  %v6991_v41 = vld [vmem:[%s7928_s30 + $0x1b4] sm:$0x10] }
 0x143   : > { %v5570_v42 = vor.u32 %v6972_v37, %v5567_v39  ;;  %v5574_v43 = vor.u32 %v6991_v41, %v5573_v40  ;;  %v6973_v44 = vld [vmem:[%s7928_s30 + $0x12c] sm:$0xf]  ;;  %v5575_v45 = vld [vmem:[%s7928_s30 + $0x1b8] sm:$0x10]  ;;  %v5421_v46 = vld [vmem:[%s7928_s30] sm:$0xf] }
 0x144   : > { %v1174_v47 = vand.u32 %v5566_v38, %v7926_v34  ;;  %v5578_v48 = vor.u32 %v6973_v44, %v5575_v45  ;;  %v6954_v49 = vld [vmem:[%s7928_s30 + $0x8c] sm:$0xf0]  ;;  %v6936_v50 = vld [vmem:[%s7928_s30 + $0x4] sm:$0xf]  ;;  %v5423_v51 = vld [vmem:[%s7928_s30 + $0x90] sm:$0xf0] }
 0x145   : > { %v1177_v54 = vand.u32 %v5570_v42, %v7926_v34  ;;  %v1180_v55 = vand.u32 %v5574_v43, %v7926_v34  ;;  %v5429_v56 = vld [vmem:[%s7928_s30 + $0x8] sm:$0xf]  ;;  %v6955_v57 = vld [vmem:[%s7928_s30 + $0x94] sm:$0xf0]  ;;  %v6937_v58 = vld [vmem:[%s7928_s30 + $0xc] sm:$0xf]  ;;  %v5422_v60 = vor.u32 %v6954_v49, %v5421_v46  ;;  %v5426_v0 = vor.u32 %v6936_v50, %v5423_v51 }
 0x146   : > { %1287 = vmatpush.bf16.msra.mxu0 %v1174_v47  ;;  %v1183_v59 = vand.u32 %v5578_v48, %v7926_v34  ;;  %v5431_v61 = vld [vmem:[%s7928_s30 + $0x98] sm:$0xf0]  ;;  %v5589_v62 = vld [vmem:[%s7928_s30 + $0x138] sm:$0xf]  ;;  %v6993_v63 = vld [vmem:[%s7928_s30 + $0x1c4] sm:$0x10]  ;;  %v5430_v1 = vor.u32 %v6955_v57, %v5429_v56 }
 0x147   : > { %1301 = vmatpush.bf16.msra.mxu1 %v1177_v54  ;;  %1315 = vmatpush.bf16.msra.mxu2 %v1180_v55  ;;  %v5590_v2 = vor.u32 %v6993_v63, %v5589_v62  ;;  %v6975_v3 = vld [vmem:[%s7928_s30 + $0x13c] sm:$0xf]  ;;  %v5591_v4 = vld [vmem:[%s7928_s30 + $0x1c8] sm:$0x10]  ;;  %v5581_v5 = vld [vmem:[%s7928_s30 + $0x130] sm:$0xf]  ;;  %v5434_v6 = vor.u32 %v6937_v58, %v5431_v61 }
 0x148   : > { %1329 = vmatpush.bf16.msra.mxu3 %v1183_v59  ;;  %v5594_v7 = vor.u32 %v6975_v3, %v5591_v4  ;;  %v6992_v8 = vld [vmem:[%s7928_s30 + $0x1bc] sm:$0x10]  ;;  %v6974_v9 = vld [vmem:[%s7928_s30 + $0x134] sm:$0xf]  ;;  %v5583_v10 = vld [vmem:[%s7928_s30 + $0x1c0] sm:$0x10] }
 0x149   : > { %v1192_v12 = vand.u32 %v5590_v2, %v7926_v34  ;;  %v5582_v13 = vor.u32 %v6992_v8, %v5581_v5  ;;  %v5586_v14 = vor.u32 %v6974_v9, %v5583_v10  ;;  %v5445_v15 = vld [vmem:[%s7928_s30 + $0x18] sm:$0xf]  ;;  %v6957_v16 = vld [vmem:[%s7928_s30 + $0xa4] sm:$0xf0]  ;;  %v6939_v17 = vld [vmem:[%s7928_s30 + $0x1c] sm:$0xf] }
 0x14a   : > { %1288 = vmatpush.bf16.msra.mxu0 %v5422_v60  ;;  %v1195_v18 = vand.u32 %v5594_v7, %v7926_v34  ;;  %v5447_v19 = vld [vmem:[%s7928_s30 + $0xa8] sm:$0xf0]  ;;  %v5437_v20 = vld [vmem:[%s7928_s30 + $0x10] sm:$0xf]  ;;  %v6956_v21 = vld [vmem:[%s7928_s30 + $0x9c] sm:$0xf0]  ;;  %v5446_v27 = vor.u32 %v6957_v16, %v5445_v15 }
 0x14b   : > { %1302 = vmatpush.bf16.msra.mxu1 %v5426_v0  ;;  %1316 = vmatpush.bf16.msra.mxu2 %v5430_v1  ;;  %v1186_v22 = vand.u32 %v5582_v13, %v7926_v34  ;;  %v6938_v23 = vld [vmem:[%s7928_s30 + $0x14] sm:$0xf]  ;;  %v5439_v24 = vld [vmem:[%s7928_s30 + $0xa0] sm:$0xf0]  ;;  %v5605_v25 = vld [vmem:[%s7928_s30 + $0x148] sm:$0xf]  ;;  %v1189_v26 = vand.u32 %v5586_v14, %v7926_v34  ;;  %v5450_v31 = vor.u32 %v6939_v17, %v5447_v19 }
 0x14c   : > { %1330 = vmatpush.bf16.msra.mxu3 %v5434_v6  ;;  %v6995_v28 = vld [vmem:[%s7928_s30 + $0x1d4] sm:$0x10]  ;;  %v6977_v29 = vld [vmem:[%s7928_s30 + $0x14c] sm:$0xf]  ;;  %v5607_v30 = vld [vmem:[%s7928_s30 + $0x1d8] sm:$0x10]  ;;  %v5438_v38 = vor.u32 %v6956_v21, %v5437_v20  ;;  %v5442_v48 = vor.u32 %v6938_v23, %v5439_v24 }
 0x14d   : > { %5707 = vmatmul.msk.bf16.vlgmr.msra.gmra.mxu0 %vm1165_vm2, %v7964_v11  ;;  %v5606_v32 = vor.u32 %v6995_v28, %v5605_v25  ;;  %v5610_v33 = vor.u32 %v6977_v29, %v5607_v30  ;;  %v5597_v35 = vld [vmem:[%s7928_s30 + $0x140] sm:$0xf]  ;;  %v6994_v36 = vld [vmem:[%s7928_s30 + $0x1cc] sm:$0x10]  ;;  %v6976_v37 = vld [vmem:[%s7928_s30 + $0x144] sm:$0xf] }
 0x14e   : > { %5708 = vmatmul.msk.bf16.vlgmr.msra.gmra.mxu1 %vm1165_vm2, %v7964_v11  ;;  %5709 = vmatmul.msk.bf16.vlgmr.msra.gmra.mxu2 %vm1165_vm2, %v7964_v11  ;;  %v5598_v39 = vor.u32 %v6994_v36, %v5597_v35  ;;  %v5599_v40 = vld [vmem:[%s7928_s30 + $0x1d0] sm:$0x10]  ;;  %v5461_v41 = vld [vmem:[%s7928_s30 + $0x28] sm:$0xf]  ;;  %v6959_v42 = vld [vmem:[%s7928_s30 + $0xb4] sm:$0xf0] }
 0x14f   : > { %1371 = vmatpush.bf16.msrb.mxu2 %v1192_v12  ;;  %5710 = vmatmul.msk.bf16.vlgmr.msra.gmra.mxu3 %vm1165_vm2, %v7964_v11  ;;  %v1204_v43 = vand.u32 %v5606_v32, %v7926_v34  ;;  %v1207_v44 = vand.u32 %v5610_v33, %v7926_v34  ;;  %v5602_v45 = vor.u32 %v6976_v37, %v5599_v40  ;;  %v6941_v46 = vld [vmem:[%s7928_s30 + $0x2c] sm:$0xf]  ;;  %v5463_v47 = vld [vmem:[%s7928_s30 + $0xb8] sm:$0xf0]  ;;  %v5453_v52 = vld [vmem:[%s7928_s30 + $0x20] sm:$0xf] }
 0x150   : > { %1385 = vmatpush.bf16.msrb.mxu3 %v1195_v18  ;;  %1343 = vmatpush.bf16.msrb.mxu0 %v1186_v22  ;;  %v1198_v49 = vand.u32 %v5598_v39, %v7926_v34  ;;  %v5462_v51 = vor.u32 %v6959_v42, %v5461_v41  ;;  %v6958_v53 = vld [vmem:[%s7928_s30 + $0xac] sm:$0xf0]  ;;  %v5466_v54 = vor.u32 %v6941_v46, %v5463_v47  ;;  %v6940_v55 = vld [vmem:[%s7928_s30 + $0x24] sm:$0xf]  ;;  %v5455_v56 = vld [vmem:[%s7928_s30 + $0xb0] sm:$0xf0] }
 0x151   : > { %1357 = vmatpush.bf16.msrb.mxu1 %v1189_v26  ;;  %v1201_v50 = vand.u32 %v5602_v45, %v7926_v34  ;;  %v5454_v57 = vor.u32 %v6958_v53, %v5453_v52  ;;  %v5621_v58 = vld [vmem:[%s7928_s30 + $0x158] sm:$0xf]  ;;  %v6997_v59 = vld [vmem:[%s7928_s30 + $0x1e4] sm:$0x10]  ;;  %v6979_v60 = vld [vmem:[%s7928_s30 + $0x15c] sm:$0xf]  ;;  %v5458_v61 = vor.u32 %v6940_v55, %v5455_v56 }
 0x152   : > { %v5623_v62 = vld [vmem:[%s7928_s30 + $0x1e8] sm:$0x10]  ;;  %v5613_v63 = vld [vmem:[%s7928_s30 + $0x150] sm:$0xf]  ;;  %v6996_v0 = vld [vmem:[%s7928_s30 + $0x1dc] sm:$0x10]  ;;  %v5622_v3 = vor.u32 %v6997_v59, %v5621_v58 }
 0x153   : > { %1372 = vmatpush.bf16.msrb.mxu2 %v5446_v27  ;;  %v6978_v1 = vld [vmem:[%s7928_s30 + $0x154] sm:$0xf]  ;;  %v5615_v2 = vld [vmem:[%s7928_s30 + $0x1e0] sm:$0x10]  ;;  %v5626_v4 = vor.u32 %v6979_v60, %v5623_v62  ;;  %v5614_v5 = vor.u32 %v6996_v0, %v5613_v63  ;;  %v5477_v10 = vld [vmem:[%s7928_s30 + $0x38] sm:$0xf] }
 0x154   : > { %1386 = vmatpush.bf16.msrb.mxu3 %v5450_v31  ;;  %1344 = vmatpush.bf16.msrb.mxu0 %v5438_v38  ;;  %v5618_v6 = vor.u32 %v6978_v1, %v5615_v2  ;;  %v1216_v7 = vand.u32 %v5622_v3, %v7926_v34  ;;  %v6961_v12 = vld [vmem:[%s7928_s30 + $0xc4] sm:$0xf0]  ;;  %v6943_v13 = vld [vmem:[%s7928_s30 + $0x3c] sm:$0xf]  ;;  %v5479_v15 = vld [vmem:[%s7928_s30 + $0xc8] sm:$0xf0] }
 0x155   : > { %1358 = vmatpush.bf16.msrb.mxu1 %v5442_v48  ;;  %v1219_v8 = vand.u32 %v5626_v4, %v7926_v34  ;;  %v1210_v9 = vand.u32 %v5614_v5, %v7926_v34  ;;  %v5469_v16 = vld [vmem:[%s7928_s30 + $0x30] sm:$0xf]  ;;  %v6960_v17 = vld [vmem:[%s7928_s30 + $0xbc] sm:$0xf0]  ;;  %v6942_v18 = vld [vmem:[%s7928_s30 + $0x34] sm:$0xf]  ;;  %v5478_v20 = vor.u32 %v6961_v12, %v5477_v10  ;;  %v5482_v21 = vor.u32 %v6943_v13, %v5479_v15 }
 0x156   : > { %v1213_v14 = vand.u32 %v5618_v6, %v7926_v34  ;;  %v5471_v19 = vld [vmem:[%s7928_s30 + $0xc0] sm:$0xf0]  ;;  %v5470_v22 = vor.u32 %v6960_v17, %v5469_v16  ;;  %v5637_v24 = vld [vmem:[%s7928_s30 + $0x168] sm:$0xf]  ;;  %v6999_v25 = vld [vmem:[%s7928_s30 + $0x1f4] sm:$0x10] }
 0x157   : > { %1427 = vmatpush.bf16.msra.mxu2 %v1204_v43  ;;  %v5474_v23 = vor.u32 %v6942_v18, %v5471_v19  ;;  %v6981_v26 = vld [vmem:[%s7928_s30 + $0x16c] sm:$0xf]  ;;  %v5639_v27 = vld [vmem:[%s7928_s30 + $0x1f8] sm:$0x10]  ;;  %v5629_v28 = vld [vmem:[%s7928_s30 + $0x160] sm:$0xf]  ;;  %v5638_v32 = vor.u32 %v6999_v25, %v5637_v24 }
 0x158   : > { %1441 = vmatpush.bf16.msra.mxu3 %v1207_v44  ;;  %1399 = vmatpush.bf16.msra.mxu0 %v1198_v49  ;;  %v6998_v29 = vld [vmem:[%s7928_s30 + $0x1ec] sm:$0x10]  ;;  %v6980_v30 = vld [vmem:[%s7928_s30 + $0x164] sm:$0xf]  ;;  %v5631_v31 = vld [vmem:[%s7928_s30 + $0x1f0] sm:$0x10]  ;;  %v5642_v33 = vor.u32 %v6981_v26, %v5639_v27 }
 0x159   : > { %1413 = vmatpush.bf16.msra.mxu1 %v1201_v50  ;;  %v5630_v35 = vor.u32 %v6998_v29, %v5629_v28  ;;  %v5634_v36 = vor.u32 %v6980_v30, %v5631_v31  ;;  %v1228_v37 = vand.u32 %v5638_v32, %v7926_v34  ;;  %v5493_v40 = vld [vmem:[%s7928_s30 + $0x48] sm:$0xf]  ;;  %v6963_v41 = vld [vmem:[%s7928_s30 + $0xd4] sm:$0xf0]  ;;  %v6945_v42 = vld [vmem:[%s7928_s30 + $0x4c] sm:$0xf] }
 0x15a   : > { %v1231_v38 = vand.u32 %v5642_v33, %v7926_v34  ;;  %v5495_v44 = vld [vmem:[%s7928_s30 + $0xd8] sm:$0xf0]  ;;  %v5485_v45 = vld [vmem:[%s7928_s30 + $0x40] sm:$0xf]  ;;  %v6962_v46 = vld [vmem:[%s7928_s30 + $0xcc] sm:$0xf0]  ;;  %v5494_v49 = vor.u32 %v6963_v41, %v5493_v40 }
 0x15b   : > { %1428 = vmatpush.bf16.msra.mxu2 %v5462_v51  ;;  %v1222_v39 = vand.u32 %v5630_v35, %v7926_v34  ;;  %v1225_v43 = vand.u32 %v5634_v36, %v7926_v34  ;;  %v6944_v47 = vld [vmem:[%s7928_s30 + $0x44] sm:$0xf]  ;;  %v5487_v48 = vld [vmem:[%s7928_s30 + $0xd0] sm:$0xf0]  ;;  %v5498_v50 = vor.u32 %v6945_v42, %v5495_v44  ;;  %v5486_v51 = vor.u32 %v6962_v46, %v5485_v45  ;;  %v5653_v53 = vld [vmem:[%s7928_s30 + $0x178] sm:$0xf] }
 0x15c   : > { %1442 = vmatpush.bf16.msra.mxu3 %v5466_v54  ;;  %1400 = vmatpush.bf16.msra.mxu0 %v5454_v57  ;;  %v5490_v52 = vor.u32 %v6944_v47, %v5487_v48  ;;  %v7001_v54 = vld [vmem:[%s7928_s30 + $0x204] sm:$0x10]  ;;  %v6983_v55 = vld [vmem:[%s7928_s30 + $0x17c] sm:$0xf]  ;;  %v5655_v56 = vld [vmem:[%s7928_s30 + $0x208] sm:$0x10] }
 0x15d   : > { %1414 = vmatpush.bf16.msra.mxu1 %v5458_v61  ;;  %5711 = vmatmul.msk.bf16.vlgmr.msrb.gmra.mxu0 %vm1165_vm2, %v7964_v11  ;;  %v5645_v57 = vld [vmem:[%s7928_s30 + $0x170] sm:$0xf]  ;;  %v7000_v58 = vld [vmem:[%s7928_s30 + $0x1fc] sm:$0x10]  ;;  %v6982_v59 = vld [vmem:[%s7928_s30 + $0x174] sm:$0xf]  ;;  %v5654_v61 = vor.u32 %v7001_v54, %v5653_v53  ;;  %v5658_v62 = vor.u32 %v6983_v55, %v5655_v56 }
 0x15e   : > { %5712 = vmatmul.msk.bf16.vlgmr.msrb.gmra.mxu1 %vm1165_vm2, %v7964_v11  ;;  %5713 = vmatmul.msk.bf16.vlgmr.msrb.gmra.mxu2 %vm1165_vm2, %v7964_v11  ;;  %v5647_v60 = vld [vmem:[%s7928_s30 + $0x200] sm:$0x10]  ;;  %v5646_v63 = vor.u32 %v7000_v58, %v5645_v57  ;;  %v5509_v4 = vld [vmem:[%s7928_s30 + $0x58] sm:$0xf]  ;;  %v6965_v5 = vld [vmem:[%s7928_s30 + $0xe4] sm:$0xf0] }
 0x15f   : > { %5714 = vmatmul.msk.bf16.vlgmr.msrb.gmra.mxu3 %vm1165_vm2, %v7964_v11  ;;  %1483 = vmatpush.bf16.msrb.mxu2 %v1216_v7  ;;  %v5650_v0 = vor.u32 %v6982_v59, %v5647_v60  ;;  %v1240_v1 = vand.u32 %v5654_v61, %v7926_v34  ;;  %v1243_v2 = vand.u32 %v5658_v62, %v7926_v34  ;;  %v6947_v6 = vld [vmem:[%s7928_s30 + $0x5c] sm:$0xf]  ;;  %v6964_v10 = vld [vmem:[%s7928_s30 + $0xdc] sm:$0xf0]  ;;  %v6946_v12 = vld [vmem:[%s7928_s30 + $0x54] sm:$0xf] }
 0x160   : > { %1497 = vmatpush.bf16.msrb.mxu3 %v1219_v8  ;;  %1455 = vmatpush.bf16.msrb.mxu0 %v1210_v9  ;;  %v1234_v3 = vand.u32 %v5646_v63, %v7926_v34  ;;  %v5511_v8 = vld [vmem:[%s7928_s30 + $0xe8] sm:$0xf0]  ;;  %v5501_v9 = vld [vmem:[%s7928_s30 + $0x50] sm:$0xf]  ;;  %v5503_v13 = vld [vmem:[%s7928_s30 + $0xe0] sm:$0xf0] }
 0x161   : > { %1469 = vmatpush.bf16.msrb.mxu1 %v1213_v14  ;;  %v1237_v7 = vand.u32 %v5650_v0, %v7926_v34  ;;  %v5510_v14 = vor.u32 %v6965_v5, %v5509_v4  ;;  %v5514_v15 = vor.u32 %v6947_v6, %v5511_v8  ;;  %v5502_v16 = vor.u32 %v6964_v10, %v5501_v9  ;;  %v5669_v18 = vld [vmem:[%s7928_s30 + $0x188] sm:$0xf]  ;;  %v7003_v19 = vld [vmem:[%s7928_s30 + $0x214] sm:$0x10]  ;;  %v6984_v24 = vld [vmem:[%s7928_s30 + $0x184] sm:$0xf] }
 0x162   : > { %v5506_v17 = vor.u32 %v6946_v12, %v5503_v13  ;;  %v5663_v25 = vld [vmem:[%s7928_s30 + $0x210] sm:$0x10]  ;;  %v5670_v26 = vor.u32 %v7003_v19, %v5669_v18  ;;  %v5525_v33 = vld [vmem:[%s7928_s30 + $0x68] sm:$0xf]  ;;  %v6967_v35 = vld [vmem:[%s7928_s30 + $0xf4] sm:$0xf0] }
 0x163   : > { %1484 = vmatpush.bf16.msrb.mxu2 %v5478_v20  ;;  %v6985_v20 = vld [vmem:[%s7928_s30 + $0x18c] sm:$0xf]  ;;  %v5666_v29 = vor.u32 %v6984_v24, %v5663_v25  ;;  %v6966_v40 = vld [vmem:[%s7928_s30 + $0xec] sm:$0xf0]  ;;  %v6948_v41 = vld [vmem:[%s7928_s30 + $0x64] sm:$0xf] }
 0x164   : > { %1498 = vmatpush.bf16.msrb.mxu3 %v5482_v21  ;;  %1456 = vmatpush.bf16.msrb.mxu0 %v5470_v22  ;;  %v5671_v21 = vld [vmem:[%s7928_s30 + $0x218] sm:$0x10]  ;;  %v5661_v22 = vld [vmem:[%s7928_s30 + $0x180] sm:$0xf]  ;;  %v1252_v30 = vand.u32 %v5670_v26, %v7926_v34  ;;  %v6949_v36 = vld [vmem:[%s7928_s30 + $0x6c] sm:$0xf] }
 0x165   : > { %1470 = vmatpush.bf16.msrb.mxu1 %v5474_v23  ;;  %v7002_v23 = vld [vmem:[%s7928_s30 + $0x20c] sm:$0x10]  ;;  %v5674_v27 = vor.u32 %v6985_v20, %v5671_v21  ;;  %v5519_v42 = vld [vmem:[%s7928_s30 + $0xf0] sm:$0xf0]  ;;  %v5685_v47 = vld [vmem:[%s7928_s30 + $0x198] sm:$0xf] }
 0x166   : > { %v5662_v28 = vor.u32 %v7002_v23, %v5661_v22  ;;  %v5522_v46 = vor.u32 %v6948_v41, %v5519_v42  ;;  %v7005_v48 = vld [vmem:[%s7928_s30 + $0x224] sm:$0x10]  ;;  %v6986_v53 = vld [vmem:[%s7928_s30 + $0x194] sm:$0xf]  ;;  %v5679_v54 = vld [vmem:[%s7928_s30 + $0x220] sm:$0x10] }
 0x167   : > { %v1255_v31 = vand.u32 %v5674_v27, %v7926_v34  ;;  %v5686_v55 = vor.u32 %v7005_v48, %v5685_v47  ;;  %v5682_v58 = vor.u32 %v6986_v53, %v5679_v54  ;;  %v5541_v62 = vld [vmem:[%s7928_s30 + $0x78] sm:$0xf]  ;;  %v6969_v63 = vld [vmem:[%s7928_s30 + $0x104] sm:$0xf0]  ;;  %v6951_v0 = vld [vmem:[%s7928_s30 + $0x7c] sm:$0xf] }
 0x168   : > { %v1246_v32 = vand.u32 %v5662_v28, %v7926_v34  ;;  %v6968_v4 = vld [vmem:[%s7928_s30 + $0xfc] sm:$0xf0]  ;;  %v6950_v5 = vld [vmem:[%s7928_s30 + $0x74] sm:$0xf]  ;;  %v5535_v6 = vld [vmem:[%s7928_s30 + $0x100] sm:$0xf0] }
 0x169   : > { %v1264_v59 = vand.u32 %v5686_v55, %v7926_v34  ;;  %v5538_v10 = vor.u32 %v6950_v5, %v5535_v6  ;;  %v5701_v12 = vld [vmem:[%s7928_s30 + $0x1a8] sm:$0xf]  ;;  %v7007_v13 = vld [vmem:[%s7928_s30 + $0x234] sm:$0x10]  ;;  %v6988_v18 = vld [vmem:[%s7928_s30 + $0x1a4] sm:$0xf] }
 0x16a   : > { %v5695_v19 = vld [vmem:[%s7928_s30 + $0x230] sm:$0x10]  ;;  %v5702_v20 = vor.u32 %v7007_v13, %v5701_v12  ;;  %v5557_v27 = vld [vmem:[%s7928_s30 + $0x88] sm:$0xf]  ;;  %v6971_v28 = vld [vmem:[%s7928_s30 + $0x114] sm:$0xf0] }
 0x16b   : > { %v5698_v23 = vor.u32 %v6988_v18, %v5695_v19  ;;  %v5969_v41 = vld [vmem:[%s7928_s30 + $0x368] sm:$0xf]  ;;  %v7063_v42 = vld [vmem:[%s7928_s30 + $0x3f4] sm:$0x10]  ;;  %v7044_v47 = vld [vmem:[%s7928_s30 + $0x364] sm:$0xf] }
 0x16c   : > { %v1276_v24 = vand.u32 %v5702_v20, %v7926_v34  ;;  %v5963_v48 = vld [vmem:[%s7928_s30 + $0x3f0] sm:$0x10]  ;;  %v5985_v5 = vld [vmem:[%s7928_s30 + $0x378] sm:$0xf]  ;;  %v7065_v6 = vld [vmem:[%s7928_s30 + $0x404] sm:$0x10] }
 0x16d   : > { %5715 = vmatmul.msk.bf16.vlgmr.msra.gmra.mxu0 %vm1165_vm2, %v7964_v11  ;;  %v7046_v12 = vld [vmem:[%s7928_s30 + $0x374] sm:$0xf]  ;;  %v5979_v13 = vld [vmem:[%s7928_s30 + $0x400] sm:$0x10]  ;;  %s9410_s12 = scalar_lea.vmem [#allocation3], %s7227_s17 }
 0x16e   : > { %5716 = vmatmul.msk.bf16.vlgmr.msra.gmra.mxu1 %vm1165_vm2, %v7964_v11  ;;  %5717 = vmatmul.msk.bf16.vlgmr.msra.gmra.mxu2 %vm1165_vm2, %v7964_v11 }
 0x16f   : > { %5718 = vmatmul.msk.bf16.vlgmr.msra.gmra.mxu3 %vm1165_vm2, %v7964_v11  ;;  %1539 = vmatpush.bf16.msra.mxu2 %v1228_v37  ;;  %v1249_v37 = vand.u32 %v5666_v29, %v7926_v34  ;;  %v6953_v29 = vld [vmem:[%s7928_s30 + $0x8c] sm:$0xf] }
 0x170   : > { %1553 = vmatpush.bf16.msra.mxu3 %v1231_v38  ;;  %1511 = vmatpush.bf16.msra.mxu0 %v1222_v39  ;;  %v5527_v38 = vld [vmem:[%s7928_s30 + $0xf8] sm:$0xf0]  ;;  %v5517_v39 = vld [vmem:[%s7928_s30 + $0x60] sm:$0xf] }
 0x171   : > { %1525 = vmatpush.bf16.msra.mxu1 %v1225_v43  ;;  %v5526_v43 = vor.u32 %v6967_v35, %v5525_v33  ;;  %v5530_v44 = vor.u32 %v6949_v36, %v5527_v38  ;;  %v5518_v45 = vor.u32 %v6966_v40, %v5517_v39  ;;  %v6970_v33 = vld [vmem:[%s7928_s30 + $0x10c] sm:$0xf0]  ;;  %v6952_v35 = vld [vmem:[%s7928_s30 + $0x84] sm:$0xf]  ;;  %v5551_v36 = vld [vmem:[%s7928_s30 + $0x110] sm:$0xf0] }
 0x172   : > { %v5554_v40 = vor.u32 %v6952_v35, %v5551_v36 }
 0x173   : > { %1540 = vmatpush.bf16.msra.mxu2 %v5494_v49  ;;  %v6987_v49 = vld [vmem:[%s7928_s30 + $0x19c] sm:$0xf] }
 0x174   : > { %1554 = vmatpush.bf16.msra.mxu3 %v5498_v50  ;;  %1512 = vmatpush.bf16.msra.mxu0 %v5486_v51  ;;  %v5687_v50 = vld [vmem:[%s7928_s30 + $0x228] sm:$0x10]  ;;  %v5677_v51 = vld [vmem:[%s7928_s30 + $0x190] sm:$0xf] }
 0x175   : > { %1526 = vmatpush.bf16.msra.mxu1 %v5490_v52  ;;  %v7004_v52 = vld [vmem:[%s7928_s30 + $0x21c] sm:$0x10]  ;;  %v5690_v56 = vor.u32 %v6987_v49, %v5687_v50  ;;  %v5970_v49 = vor.u32 %v7063_v42, %v5969_v41  ;;  %v6001_v41 = vld [vmem:[%s7928_s30 + $0x388] sm:$0xf]  ;;  %v7067_v42 = vld [vmem:[%s7928_s30 + $0x414] sm:$0x10] }
 0x176   : > { %v5678_v57 = vor.u32 %v7004_v52, %v5677_v51  ;;  %v5966_v52 = vor.u32 %v7044_v47, %v5963_v48  ;;  %v7048_v47 = vld [vmem:[%s7928_s30 + $0x384] sm:$0xf]  ;;  %v5995_v48 = vld [vmem:[%s7928_s30 + $0x410] sm:$0x10] }
 0x177   : > { %v1267_v60 = vand.u32 %v5690_v56, %v7926_v34  ;;  %v2189_v53 = vand.u32 %v5970_v49, %v7926_v34  ;;  %v5825_v56 = vld [vmem:[%s7928_s30 + $0x248] sm:$0xf]  ;;  %v6002_v49 = vor.u32 %v7067_v42, %v6001_v41  ;;  %v7015_v42 = vld [vmem:[%s7928_s30 + $0x27c] sm:$0xf] }
 0x178   : > { %v1258_v61 = vand.u32 %v5678_v57, %v7926_v34  ;;  %v7027_v57 = vld [vmem:[%s7928_s30 + $0x2d4] sm:$0xf0]  ;;  %v7033_v41 = vld [vmem:[%s7928_s30 + $0x304] sm:$0xf0] }
 0x17d   : > { %5719 = vmatmul.msk.bf16.vlgmr.msrb.gmra.mxu0 %vm1165_vm2, %v7964_v11 }
 0x17e   : > { %5720 = vmatmul.msk.bf16.vlgmr.msrb.gmra.mxu1 %vm1165_vm2, %v7964_v11  ;;  %5721 = vmatmul.msk.bf16.vlgmr.msrb.gmra.mxu2 %vm1165_vm2, %v7964_v11 }
 0x17f   : > { %5722 = vmatmul.msk.bf16.vlgmr.msrb.gmra.mxu3 %vm1165_vm2, %v7964_v11  ;;  %1595 = vmatpush.bf16.msrb.mxu2 %v1240_v1  ;;  %v1261_v1 = vand.u32 %v5682_v58, %v7926_v34  ;;  %v7009_v58 = vld [vmem:[%s7928_s30 + $0x24c] sm:$0xf] }
 0x180   : > { %1609 = vmatpush.bf16.msrb.mxu3 %v1243_v2  ;;  %1567 = vmatpush.bf16.msrb.mxu0 %v1234_v3  ;;  %v5543_v2 = vld [vmem:[%s7928_s30 + $0x108] sm:$0xf0]  ;;  %v5533_v3 = vld [vmem:[%s7928_s30 + $0x70] sm:$0xf] }
 0x181   : > { %1581 = vmatpush.bf16.msrb.mxu1 %v1237_v7  ;;  %v5542_v7 = vor.u32 %v6969_v63, %v5541_v62  ;;  %v5546_v8 = vor.u32 %v6951_v0, %v5543_v2  ;;  %v5534_v9 = vor.u32 %v6968_v4, %v5533_v3  ;;  %v7026_v62 = vld [vmem:[%s7928_s30 + $0x2cc] sm:$0xf0]  ;;  %v7008_v63 = vld [vmem:[%s7928_s30 + $0x244] sm:$0xf]  ;;  %v5819_v0 = vld [vmem:[%s7928_s30 + $0x2d0] sm:$0xf0] }
 0x182   : > { %v5822_v4 = vor.u32 %v7008_v63, %v5819_v0  ;;  %v5859_v0 = vld [vmem:[%s7928_s30 + $0x2f8] sm:$0xf0] }
 0x183   : > { %1596 = vmatpush.bf16.msrb.mxu2 %v5510_v14  ;;  %v6989_v14 = vld [vmem:[%s7928_s30 + $0x1ac] sm:$0xf] }
 0x184   : > { %1610 = vmatpush.bf16.msrb.mxu3 %v5514_v15  ;;  %1568 = vmatpush.bf16.msrb.mxu0 %v5502_v16  ;;  %v5703_v15 = vld [vmem:[%s7928_s30 + $0x238] sm:$0x10]  ;;  %v5693_v16 = vld [vmem:[%s7928_s30 + $0x1a0] sm:$0xf] }
 0x185   : > { %1582 = vmatpush.bf16.msrb.mxu1 %v5506_v17  ;;  %v7006_v17 = vld [vmem:[%s7928_s30 + $0x22c] sm:$0x10]  ;;  %v5706_v21 = vor.u32 %v6989_v14, %v5703_v15  ;;  %v5986_v14 = vor.u32 %v7065_v6, %v5985_v5 }
 0x186   : > { %v5694_v22 = vor.u32 %v7006_v17, %v5693_v16  ;;  %v5982_v17 = vor.u32 %v7046_v12, %v5979_v13 }
 0x187   : > { %v1279_v25 = vand.u32 %v5706_v21, %v7926_v34  ;;  %v2201_v20 = vand.u32 %v5986_v14, %v7926_v34  ;;  %v6017_v14 = vld [vmem:[%s7928_s30 + $0x398] sm:$0xf] }
 0x188   : > { %v1270_v26 = vand.u32 %v5694_v22, %v7926_v34 }
 0x18d   : > { %5723 = vmatmul.msk.bf16.vlgmr.msra.gmra.mxu0 %vm1165_vm2, %v7964_v11 }
 0x18e   : > { %5724 = vmatmul.msk.bf16.vlgmr.msra.gmra.mxu1 %vm1165_vm2, %v7964_v11  ;;  %5725 = vmatmul.msk.bf16.vlgmr.msra.gmra.mxu2 %vm1165_vm2, %v7964_v11 }
 0x18f   : > { %5726 = vmatmul.msk.bf16.vlgmr.msra.gmra.mxu3 %vm1165_vm2, %v7964_v11  ;;  %1651 = vmatpush.bf16.msra.mxu2 %v1252_v30  ;;  %v1273_v30 = vand.u32 %v5698_v23, %v7926_v34  ;;  %v5841_v23 = vld [vmem:[%s7928_s30 + $0x258] sm:$0xf] }
 0x190   : > { %1665 = vmatpush.bf16.msra.mxu3 %v1255_v31  ;;  %1623 = vmatpush.bf16.msra.mxu0 %v1246_v32  ;;  %v5559_v31 = vld [vmem:[%s7928_s30 + $0x118] sm:$0xf0]  ;;  %v5549_v32 = vld [vmem:[%s7928_s30 + $0x80] sm:$0xf] }
 0x191   : > { %1637 = vmatpush.bf16.msra.mxu1 %v1249_v37  ;;  %v5558_v37 = vor.u32 %v6971_v28, %v5557_v27  ;;  %v5562_v38 = vor.u32 %v6953_v29, %v5559_v31  ;;  %v5550_v39 = vor.u32 %v6970_v33, %v5549_v32  ;;  %v5843_v27 = vld [vmem:[%s7928_s30 + $0x2e8] sm:$0xf0]  ;;  %v5833_v28 = vld [vmem:[%s7928_s30 + $0x250] sm:$0xf]  ;;  %v7028_v29 = vld [vmem:[%s7928_s30 + $0x2dc] sm:$0xf0] }
 0x192   : > { %v5835_v31 = vld [vmem:[%s7928_s30 + $0x2e0] sm:$0xf0]  ;;  %v5834_v35 = vor.u32 %v7028_v29, %v5833_v28 }
 0x193   : > { %1652 = vmatpush.bf16.msra.mxu2 %v5526_v43  ;;  %v7045_v43 = vld [vmem:[%s7928_s30 + $0x36c] sm:$0xf] }
 0x194   : > { %1666 = vmatpush.bf16.msra.mxu3 %v5530_v44  ;;  %1624 = vmatpush.bf16.msra.mxu0 %v5518_v45  ;;  %v5971_v44 = vld [vmem:[%s7928_s30 + $0x3f8] sm:$0x10]  ;;  %v5961_v45 = vld [vmem:[%s7928_s30 + $0x360] sm:$0xf] }
 0x195   : > { %1638 = vmatpush.bf16.msra.mxu1 %v5522_v46  ;;  %v7062_v46 = vld [vmem:[%s7928_s30 + $0x3ec] sm:$0x10]  ;;  %v5974_v50 = vor.u32 %v7045_v43, %v5971_v44  ;;  %v7049_v43 = vld [vmem:[%s7928_s30 + $0x38c] sm:$0xf]  ;;  %v6003_v44 = vld [vmem:[%s7928_s30 + $0x418] sm:$0x10] }
 0x196   : > { %v5962_v51 = vor.u32 %v7062_v46, %v5961_v45  ;;  %v5993_v45 = vld [vmem:[%s7928_s30 + $0x380] sm:$0xf]  ;;  %v7066_v46 = vld [vmem:[%s7928_s30 + $0x40c] sm:$0x10] }
 0x197   : > { %v2192_v54 = vand.u32 %v5974_v50, %v7926_v34  ;;  %v6006_v50 = vor.u32 %v7049_v43, %v6003_v44  ;;  %v5875_v44 = vld [vmem:[%s7928_s30 + $0x308] sm:$0xf0] }
 0x198   : > { %v2183_v55 = vand.u32 %v5962_v51, %v7926_v34  ;;  %v5994_v51 = vor.u32 %v7066_v46, %v5993_v45  ;;  %v5865_v45 = vld [vmem:[%s7928_s30 + $0x270] sm:$0xf]  ;;  %v7032_v46 = vld [vmem:[%s7928_s30 + $0x2fc] sm:$0xf0] }
 0x19d   : > { %5727 = vmatmul.msk.bf16.vlgmr.msrb.gmra.mxu0 %vm1165_vm2, %v7964_v11 }
 0x19e   : > { %5728 = vmatmul.msk.bf16.vlgmr.msrb.gmra.mxu1 %vm1165_vm2, %v7964_v11  ;;  %5729 = vmatmul.msk.bf16.vlgmr.msrb.gmra.mxu2 %vm1165_vm2, %v7964_v11 }
 0x19f   : > { %5730 = vmatmul.msk.bf16.vlgmr.msrb.gmra.mxu3 %vm1165_vm2, %v7964_v11  ;;  %1707 = vmatpush.bf16.msrb.mxu2 %v1264_v59  ;;  %v2186_v59 = vand.u32 %v5966_v52, %v7926_v34 }
 0x1a0   : > { %1721 = vmatpush.bf16.msrb.mxu3 %v1267_v60  ;;  %1679 = vmatpush.bf16.msrb.mxu0 %v1258_v61  ;;  %v5827_v60 = vld [vmem:[%s7928_s30 + $0x2d8] sm:$0xf0]  ;;  %v5817_v61 = vld [vmem:[%s7928_s30 + $0x240] sm:$0xf] }
 0x1a1   : > { %1693 = vmatpush.bf16.msrb.mxu1 %v1261_v1  ;;  %v5826_v1 = vor.u32 %v7027_v57, %v5825_v56  ;;  %v5830_v2 = vor.u32 %v7009_v58, %v5827_v60  ;;  %v5818_v3 = vor.u32 %v7026_v62, %v5817_v61  ;;  %v2213_v57 = vand.u32 %v6002_v49, %v7926_v34  ;;  %v5857_v60 = vld [vmem:[%s7928_s30 + $0x268] sm:$0xf]  ;;  %v7031_v61 = vld [vmem:[%s7928_s30 + $0x2f4] sm:$0xf0]  ;;  %v7013_v62 = vld [vmem:[%s7928_s30 + $0x26c] sm:$0xf] }
 0x1a2   : > { %v2216_v58 = vand.u32 %v6006_v50, %v7926_v34  ;;  %v5858_v5 = vor.u32 %v7031_v61, %v5857_v60  ;;  %v5862_v6 = vor.u32 %v7013_v62, %v5859_v0  ;;  %v5878_v50 = vor.u32 %v7015_v42, %v5875_v44  ;;  %v6033_v61 = vld [vmem:[%s7928_s30 + $0x3a8] sm:$0xf]  ;;  %v7071_v62 = vld [vmem:[%s7928_s30 + $0x434] sm:$0x10]  ;;  %v6035_v0 = vld [vmem:[%s7928_s30 + $0x438] sm:$0x10] }
 0x1a3   : > { %1708 = vmatpush.bf16.msrb.mxu2 %v5542_v7  ;;  %v7047_v7 = vld [vmem:[%s7928_s30 + $0x37c] sm:$0xf] }
 0x1a4   : > { %1722 = vmatpush.bf16.msrb.mxu3 %v5546_v8  ;;  %1680 = vmatpush.bf16.msrb.mxu0 %v5534_v9  ;;  %v5987_v8 = vld [vmem:[%s7928_s30 + $0x408] sm:$0x10]  ;;  %v5977_v9 = vld [vmem:[%s7928_s30 + $0x370] sm:$0xf] }
 0x1a5   : > { %1694 = vmatpush.bf16.msrb.mxu1 %v5538_v10  ;;  %v7064_v10 = vld [vmem:[%s7928_s30 + $0x3fc] sm:$0x10]  ;;  %v5990_v15 = vor.u32 %v7047_v7, %v5987_v8 }
 0x1a6   : > { %v5978_v16 = vor.u32 %v7064_v10, %v5977_v9 }
 0x1a7   : > { %v2204_v21 = vand.u32 %v5990_v15, %v7926_v34  ;;  %v7069_v15 = vld [vmem:[%s7928_s30 + $0x424] sm:$0x10] }
 0x1a8   : > { %v2195_v22 = vand.u32 %v5978_v16, %v7926_v34  ;;  %v7051_v16 = vld [vmem:[%s7928_s30 + $0x39c] sm:$0xf] }
 0x1ad   : > { %5731 = vmatmul.msk.bf16.vlgmr.msra.gmra.mxu0 %vm1165_vm2, %v7964_v11 }
 0x1ae   : > { %5732 = vmatmul.msk.bf16.vlgmr.msra.gmra.mxu1 %vm1165_vm2, %v7964_v11  ;;  %5733 = vmatmul.msk.bf16.vlgmr.msra.gmra.mxu2 %vm1165_vm2, %v7964_v11 }
 0x1af   : > { %5734 = vmatmul.msk.bf16.vlgmr.msra.gmra.mxu3 %vm1165_vm2, %v7964_v11  ;;  %1763 = vmatpush.bf16.msra.mxu2 %v1276_v24  ;;  %v7029_v24 = vld [vmem:[%s7928_s30 + $0x2e4] sm:$0xf0] }
 0x1b0   : > { %1777 = vmatpush.bf16.msra.mxu3 %v1279_v25  ;;  %1735 = vmatpush.bf16.msra.mxu0 %v1270_v26  ;;  %v7011_v25 = vld [vmem:[%s7928_s30 + $0x25c] sm:$0xf]  ;;  %v2198_v26 = vand.u32 %v5982_v17, %v7926_v34  ;;  %v5842_v32 = vor.u32 %v7029_v24, %v5841_v23  ;;  %v6019_v17 = vld [vmem:[%s7928_s30 + $0x428] sm:$0x10]  ;;  %v6011_v23 = vld [vmem:[%s7928_s30 + $0x420] sm:$0x10]  ;;  %v6018_v24 = vor.u32 %v7069_v15, %v6017_v14 }
 0x1b1   : > { %1749 = vmatpush.bf16.msra.mxu1 %v1273_v30  ;;  %v7010_v30 = vld [vmem:[%s7928_s30 + $0x254] sm:$0xf]  ;;  %v5846_v33 = vor.u32 %v7011_v25, %v5843_v27  ;;  %v6022_v25 = vor.u32 %v7051_v16, %v6019_v17 }
 0x1b3   : > { %1764 = vmatpush.bf16.msra.mxu2 %v5558_v37  ;;  %v5838_v37 = vor.u32 %v7010_v30, %v5835_v31 }
 0x1b4   : > { %1778 = vmatpush.bf16.msra.mxu3 %v5562_v38  ;;  %1736 = vmatpush.bf16.msra.mxu0 %v5550_v39 }
 0x1b5   : > { %1750 = vmatpush.bf16.msra.mxu1 %v5554_v40 }
 0x1bd   : > { %5735 = vmatmul.msk.bf16.vlgmr.msrb.gmra.mxu0 %vm1165_vm2, %v7964_v11 }
 0x1be   : > { %5736 = vmatmul.msk.bf16.vlgmr.msrb.gmra.mxu1 %vm1165_vm2, %v7964_v11  ;;  %5737 = vmatmul.msk.bf16.vlgmr.msrb.gmra.mxu2 %vm1165_vm2, %v7964_v11 }
 0x1bf   : > { %5738 = vmatmul.msk.bf16.vlgmr.msrb.gmra.mxu3 %vm1165_vm2, %v7964_v11  ;;  %2324 = vmatpush.bf16.msrb.mxu2 %v2189_v53  ;;  %v5998_v53 = vor.u32 %v7048_v47, %v5995_v48  ;;  %v7014_v47 = vld [vmem:[%s7928_s30 + $0x274] sm:$0xf]  ;;  %v5867_v48 = vld [vmem:[%s7928_s30 + $0x300] sm:$0xf0] }
 0x1c0   : > { %2338 = vmatpush.bf16.msrb.mxu3 %v2192_v54  ;;  %2296 = vmatpush.bf16.msrb.mxu0 %v2183_v55 }
 0x1c1   : > { %2310 = vmatpush.bf16.msrb.mxu1 %v2186_v59  ;;  %v2207_v59 = vand.u32 %v5994_v51, %v7926_v34  ;;  %v2210_v63 = vand.u32 %v5998_v53, %v7926_v34  ;;  %v5866_v51 = vor.u32 %v7032_v46, %v5865_v45 }
 0x1c3   : > { %2325 = vmatpush.bf16.msrb.mxu2 %v5826_v1  ;;  %v5849_v1 = vld [vmem:[%s7928_s30 + $0x260] sm:$0xf] }
 0x1c4   : > { %2339 = vmatpush.bf16.msrb.mxu3 %v5830_v2  ;;  %2297 = vmatpush.bf16.msrb.mxu0 %v5818_v3  ;;  %v7030_v2 = vld [vmem:[%s7928_s30 + $0x2ec] sm:$0xf0]  ;;  %v7012_v3 = vld [vmem:[%s7928_s30 + $0x264] sm:$0xf] }
 0x1c5   : > { %2311 = vmatpush.bf16.msrb.mxu1 %v5822_v4  ;;  %v5851_v4 = vld [vmem:[%s7928_s30 + $0x2f0] sm:$0xf0]  ;;  %v5850_v7 = vor.u32 %v7030_v2, %v5849_v1  ;;  %v6025_v1 = vld [vmem:[%s7928_s30 + $0x3a0] sm:$0xf]  ;;  %v7070_v2 = vld [vmem:[%s7928_s30 + $0x42c] sm:$0x10] }
 0x1c6   : > { %v5854_v9 = vor.u32 %v7012_v3, %v5851_v4  ;;  %v7052_v3 = vld [vmem:[%s7928_s30 + $0x3a4] sm:$0xf]  ;;  %v6027_v4 = vld [vmem:[%s7928_s30 + $0x430] sm:$0x10] }
 0x1c7   : > { %v6030_v14 = vor.u32 %v7052_v3, %v6027_v4 }
 0x1ca   : > { %v8210_v18 = vpop.f32.mrf.mxu0 }
 0x1cb   : > { %v8212_v19 = vpop.f32.mrf.mxu1 }
 0x1cd   : > { %5739 = vmatmul.msk.bf16.vlgmr.msra.gmra.mxu0 %vm1165_vm2, %v7964_v11 }
 0x1ce   : > { %5740 = vmatmul.msk.bf16.vlgmr.msra.gmra.mxu1 %vm1165_vm2, %v7964_v11  ;;  %5741 = vmatmul.msk.bf16.vlgmr.msra.gmra.mxu2 %vm1165_vm2, %v7964_v11 }
 0x1cf   : > { %5742 = vmatmul.msk.bf16.vlgmr.msra.gmra.mxu3 %vm1165_vm2, %v7964_v11  ;;  %2380 = vmatpush.bf16.msra.mxu2 %v2201_v20  ;;  %v6009_v20 = vld [vmem:[%s7928_s30 + $0x390] sm:$0xf] }
 0x1d0   : > { %2394 = vmatpush.bf16.msra.mxu3 %v2204_v21  ;;  %2352 = vmatpush.bf16.msra.mxu0 %v2195_v22  ;;  %v7068_v21 = vld [vmem:[%s7928_s30 + $0x41c] sm:$0x10]  ;;  %v7050_v22 = vld [vmem:[%s7928_s30 + $0x394] sm:$0xf] }
 0x1d1   : > { %v8234_v36 = vpop.f32.mrf.mxu2  ;;  %2366 = vmatpush.bf16.msra.mxu1 %v2198_v26  ;;  %v6010_v26 = vor.u32 %v7068_v21, %v6009_v20  ;;  %v6014_v28 = vor.u32 %v7050_v22, %v6011_v23  ;;  %v5889_v23 = vld [vmem:[%s7928_s30 + $0x288] sm:$0xf] }
 0x1d2   : > { %v8236_v38 = vpop.f32.mrf.mxu3  ;;  %v8238_v39 = vpop.f32.mrf.mxu0 }
 0x1d3   : > { %v8240_v40 = vpop.f32.mrf.mxu1  ;;  %2381 = vmatpush.bf16.msra.mxu2 %v5842_v32  ;;  %v2225_v32 = vand.u32 %v6018_v24, %v7926_v34  ;;  %v2222_v43 = vand.u32 %v6014_v28, %v7926_v34  ;;  %v7035_v24 = vld [vmem:[%s7928_s30 + $0x314] sm:$0xf0]  ;;  %v5891_v28 = vld [vmem:[%s7928_s30 + $0x318] sm:$0xf0] }
 0x1d4   : > { %2395 = vmatpush.bf16.msra.mxu3 %v5846_v33  ;;  %2353 = vmatpush.bf16.msra.mxu0 %v5834_v35  ;;  %v2228_v33 = vand.u32 %v6022_v25, %v7926_v34  ;;  %v2219_v35 = vand.u32 %v6010_v26, %v7926_v34  ;;  %v7017_v25 = vld [vmem:[%s7928_s30 + $0x28c] sm:$0xf]  ;;  %v2234_v26 = vand.u32 %v6030_v14, %v7926_v34 }
 0x1d5   : > { %2367 = vmatpush.bf16.msra.mxu1 %v5838_v37  ;;  %v5873_v37 = vld [vmem:[%s7928_s30 + $0x278] sm:$0xf]  ;;  %v5894_v42 = vor.u32 %v7017_v25, %v5891_v28  ;;  %v7019_v25 = vld [vmem:[%s7928_s30 + $0x29c] sm:$0xf]  ;;  %v5907_v28 = vld [vmem:[%s7928_s30 + $0x328] sm:$0xf0] }
 0x1d6   : > { %v5874_v49 = vor.u32 %v7033_v41, %v5873_v37  ;;  %v5883_v37 = vld [vmem:[%s7928_s30 + $0x310] sm:$0xf0]  ;;  %v5890_v41 = vor.u32 %v7035_v24, %v5889_v23  ;;  %v5905_v23 = vld [vmem:[%s7928_s30 + $0x298] sm:$0xf]  ;;  %v7037_v24 = vld [vmem:[%s7928_s30 + $0x324] sm:$0xf0] }
 0x1d9   : > { %v8250_v52 = vpop.f32.mrf.mxu2 }
 0x1da   : > { %v8252_v54 = vpop.f32.mrf.mxu3  ;;  %v8254_v55 = vpop.f32.mrf.mxu0 }
 0x1db   : > { %v8256_v56 = vpop.f32.mrf.mxu1 }
 0x1dd   : > { %6103 = vmatmul.msk.bf16.vlgmr.msrb.gmra.mxu0 %vm1165_vm2, %v7964_v11 }
 0x1de   : > { %6104 = vmatmul.msk.bf16.vlgmr.msrb.gmra.mxu1 %vm1165_vm2, %v7964_v11  ;;  %6105 = vmatmul.msk.bf16.vlgmr.msrb.gmra.mxu2 %vm1165_vm2, %v7964_v11 }
 0x1df   : > { %6106 = vmatmul.msk.bf16.vlgmr.msrb.gmra.mxu3 %vm1165_vm2, %v7964_v11  ;;  %2436 = vmatpush.bf16.msrb.mxu2 %v2213_v57  ;;  %v5870_v57 = vor.u32 %v7014_v47, %v5867_v48 }
 0x1e0   : > { %2450 = vmatpush.bf16.msrb.mxu3 %v2216_v58  ;;  %2408 = vmatpush.bf16.msrb.mxu0 %v2207_v59 }
 0x1e1   : > { %v8278_v8 = vpop.f32.mrf.mxu2  ;;  %2422 = vmatpush.bf16.msrb.mxu1 %v2210_v63  ;;  %v7053_v63 = vld [vmem:[%s7928_s30 + $0x3ac] sm:$0xf] }
 0x1e2   : > { %v8280_v10 = vpop.f32.mrf.mxu3  ;;  %v8282_v12 = vpop.f32.mrf.mxu0 }
 0x1e3   : > { %v8284_v13 = vpop.f32.mrf.mxu1  ;;  %2437 = vmatpush.bf16.msrb.mxu2 %v5858_v5  ;;  %v6034_v5 = vor.u32 %v7071_v62, %v6033_v61  ;;  %v6041_v61 = vld [vmem:[%s7928_s30 + $0x3b0] sm:$0xf]  ;;  %v7072_v62 = vld [vmem:[%s7928_s30 + $0x43c] sm:$0x10] }
 0x1e4   : > { %2451 = vmatpush.bf16.msrb.mxu3 %v5862_v6  ;;  %2409 = vmatpush.bf16.msrb.mxu0 %v5850_v7  ;;  %v6038_v6 = vor.u32 %v7053_v63, %v6035_v0  ;;  %v6026_v7 = vor.u32 %v7070_v2, %v6025_v1  ;;  %v7054_v63 = vld [vmem:[%s7928_s30 + $0x3b4] sm:$0xf]  ;;  %v6043_v0 = vld [vmem:[%s7928_s30 + $0x440] sm:$0x10]  ;;  %v6042_v3 = vor.u32 %v7072_v62, %v6041_v61  ;;  %v6065_v61 = vld [vmem:[%s7928_s30 + $0x3c8] sm:$0xf] }
 0x1e5   : > { %2423 = vmatpush.bf16.msrb.mxu1 %v5854_v9  ;;  %v2237_v20 = vand.u32 %v6034_v5, %v7926_v34  ;;  %v6046_v5 = vor.u32 %v7054_v63, %v6043_v0  ;;  %v7075_v62 = vld [vmem:[%s7928_s30 + $0x454] sm:$0x10]  ;;  %v7057_v63 = vld [vmem:[%s7928_s30 + $0x3cc] sm:$0xf]  ;;  %v6067_v0 = vld [vmem:[%s7928_s30 + $0x458] sm:$0x10] }
 0x1e6   : > { %v2240_v21 = vand.u32 %v6038_v6, %v7926_v34  ;;  %v2231_v22 = vand.u32 %v6026_v7, %v7926_v34 }
 0x1e9   : > { %v8294_v27 = vpop.f32.mrf.mxu2 }
 0x1ea   : > { %9812 = vst [vmem:[#allocation4_spill] sm:$0xff] %v8294_v27  ;;  %v8296_v29 = vpop.f32.mrf.mxu3  ;;  %v8298_v30 = vpop.f32.mrf.mxu0 }
 0x1eb   : > { %9813 = vst [vmem:[#allocation5_spill] sm:$0xff] %v8296_v29  ;;  %v8300_v31 = vpop.f32.mrf.mxu1 }
 0x1ec   : > { %9814 = vst [vmem:[#allocation6_spill] sm:$0xff] %v8298_v30 }
 0x1ed   : > { %9815 = vst [vmem:[#allocation7_spill] sm:$0xff] %v8300_v31  ;;  %6107 = vmatmul.msk.bf16.vlgmr.msra.gmra.mxu0 %vm1165_vm2, %v7964_v11 }
 0x1ee   : > { %6108 = vmatmul.msk.bf16.vlgmr.msra.gmra.mxu1 %vm1165_vm2, %v7964_v11  ;;  %6109 = vmatmul.msk.bf16.vlgmr.msra.gmra.mxu2 %vm1165_vm2, %v7964_v11 }
 0x1ef   : > { %6110 = vmatmul.msk.bf16.vlgmr.msra.gmra.mxu3 %vm1165_vm2, %v7964_v11  ;;  %2492 = vmatpush.bf16.msra.mxu2 %v2225_v32  ;;  %v5881_v32 = vld [vmem:[%s7928_s30 + $0x280] sm:$0xf] }
 0x1f0   : > { %2506 = vmatpush.bf16.msra.mxu3 %v2228_v33  ;;  %2464 = vmatpush.bf16.msra.mxu0 %v2219_v35  ;;  %v7034_v33 = vld [vmem:[%s7928_s30 + $0x30c] sm:$0xf0]  ;;  %v7016_v35 = vld [vmem:[%s7928_s30 + $0x284] sm:$0xf] }
 0x1f1   : > { %v8322_v53 = vpop.f32.mrf.mxu2  ;;  %2478 = vmatpush.bf16.msra.mxu1 %v2222_v43  ;;  %v5882_v43 = vor.u32 %v7034_v33, %v5881_v32  ;;  %v5886_v45 = vor.u32 %v7016_v35, %v5883_v37  ;;  %v5897_v32 = vld [vmem:[%s7928_s30 + $0x290] sm:$0xf]  ;;  %v7036_v33 = vld [vmem:[%s7928_s30 + $0x31c] sm:$0xf0]  ;;  %v7018_v35 = vld [vmem:[%s7928_s30 + $0x294] sm:$0xf] }
 0x1f2   : > { %9816 = vst [vmem:[#allocation8_spill] sm:$0xff] %v8322_v53  ;;  %v8324_v58 = vpop.f32.mrf.mxu3  ;;  %v8326_v59 = vpop.f32.mrf.mxu0  ;;  %v5899_v37 = vld [vmem:[%s7928_s30 + $0x320] sm:$0xf0] }
 0x1f3   : > { %9817 = vst [vmem:[#allocation9_spill] sm:$0xff] %v8324_v58  ;;  %v8328_v60 = vpop.f32.mrf.mxu1  ;;  %2493 = vmatpush.bf16.msra.mxu2 %v5874_v49  ;;  %v6049_v49 = vld [vmem:[%s7928_s30 + $0x3b8] sm:$0xf] }
 0x1f4   : > { %9818 = vst [vmem:[#allocation10_spill] sm:$0xff] %v8326_v59  ;;  %2507 = vmatpush.bf16.msra.mxu3 %v5878_v50  ;;  %2465 = vmatpush.bf16.msra.mxu0 %v5866_v51  ;;  %v7073_v50 = vld [vmem:[%s7928_s30 + $0x444] sm:$0x10]  ;;  %v7055_v51 = vld [vmem:[%s7928_s30 + $0x3bc] sm:$0xf] }
 0x1f5   : > { %9819 = vst [vmem:[#allocation11_spill] sm:$0xff] %v8328_v60  ;;  %2479 = vmatpush.bf16.msra.mxu1 %v5870_v57  ;;  %v6051_v57 = vld [vmem:[%s7928_s30 + $0x448] sm:$0x10]  ;;  %v6050_v1 = vor.u32 %v7073_v50, %v6049_v49  ;;  %v5902_v49 = vor.u32 %v7018_v35, %v5899_v37  ;;  %v5921_v37 = vld [vmem:[%s7928_s30 + $0x2a8] sm:$0xf] }
 0x1f6   : > { %v6054_v2 = vor.u32 %v7055_v51, %v6051_v57 }
 0x1f9   : > { %v8338_v9 = vpop.f32.mrf.mxu2 }
 0x1fa   : > { %9820 = vst [vmem:[#allocation12_spill] sm:$0xff] %v8338_v9  ;;  %v8340_v15 = vpop.f32.mrf.mxu3  ;;  %v8342_v16 = vpop.f32.mrf.mxu0 }
 0x1fb   : > { %9821 = vst [vmem:[#allocation13_spill] sm:$0xff] %v8340_v15  ;;  %v8344_v17 = vpop.f32.mrf.mxu1 }
 0x1fc   : > { %9822 = vst [vmem:[#allocation14_spill] sm:$0xff] %v8342_v16 }
 0x1fd   : > { %9823 = vst [vmem:[#allocation15_spill] sm:$0xff] %v8344_v17  ;;  %6111 = vmatmul.msk.bf16.vlgmr.msrb.gmra.mxu0 %vm1165_vm2, %v7964_v11 }
 0x1fe   : > { %6112 = vmatmul.msk.bf16.vlgmr.msrb.gmra.mxu1 %vm1165_vm2, %v7964_v11  ;;  %6113 = vmatmul.msk.bf16.vlgmr.msrb.gmra.mxu2 %vm1165_vm2, %v7964_v11 }
 0x1ff   : > { %6114 = vmatmul.msk.bf16.vlgmr.msrb.gmra.mxu3 %vm1165_vm2, %v7964_v11  ;;  %2548 = vmatpush.bf16.msrb.mxu2 %v2237_v20  ;;  %v2249_v20 = vand.u32 %v6050_v1, %v7926_v34  ;;  %v6057_v1 = vld [vmem:[%s7928_s30 + $0x3c0] sm:$0xf] }
 0x200   : > { %2562 = vmatpush.bf16.msrb.mxu3 %v2240_v21  ;;  %2520 = vmatpush.bf16.msrb.mxu0 %v2231_v22  ;;  %v2252_v21 = vand.u32 %v6054_v2, %v7926_v34  ;;  %v2243_v22 = vand.u32 %v6042_v3, %v7926_v34  ;;  %v7074_v2 = vld [vmem:[%s7928_s30 + $0x44c] sm:$0x10]  ;;  %v7056_v3 = vld [vmem:[%s7928_s30 + $0x3c4] sm:$0xf] }
 0x201   : > { %v8366_v44 = vpop.f32.mrf.mxu2  ;;  %2534 = vmatpush.bf16.msrb.mxu1 %v2234_v26  ;;  %v2246_v26 = vand.u32 %v6046_v5, %v7926_v34  ;;  %v6059_v5 = vld [vmem:[%s7928_s30 + $0x450] sm:$0x10] }
 0x202   : > { %9824 = vst [vmem:[#allocation16_spill] sm:$0xff] %v8366_v44  ;;  %v8368_v46 = vpop.f32.mrf.mxu3  ;;  %v8370_v47 = vpop.f32.mrf.mxu0 }
 0x203   : > { %9825 = vst [vmem:[#allocation17_spill] sm:$0xff] %v8368_v46  ;;  %v8372_v48 = vpop.f32.mrf.mxu1  ;;  %2549 = vmatpush.bf16.msrb.mxu2 %v5890_v41  ;;  %v5906_v41 = vor.u32 %v7037_v24, %v5905_v23  ;;  %v6062_v24 = vor.u32 %v7056_v3, %v6059_v5 }
 0x204   : > { %9826 = vst [vmem:[#allocation18_spill] sm:$0xff] %v8370_v47  ;;  %2563 = vmatpush.bf16.msrb.mxu3 %v5894_v42  ;;  %2521 = vmatpush.bf16.msrb.mxu0 %v5882_v43  ;;  %v5910_v42 = vor.u32 %v7019_v25, %v5907_v28  ;;  %v5898_v43 = vor.u32 %v7036_v33, %v5897_v32 }
 0x205   : > { %9827 = vst [vmem:[#allocation19_spill] sm:$0xff] %v8372_v48  ;;  %2535 = vmatpush.bf16.msrb.mxu1 %v5886_v45 }
 0x209   : > { %v8382_v4 = vpop.f32.mrf.mxu2 }
 0x20a   : > { %9828 = vst [vmem:[#allocation20_spill] sm:$0xff] %v8382_v4  ;;  %v8384_v6 = vpop.f32.mrf.mxu3  ;;  %v8386_v7 = vpop.f32.mrf.mxu0  ;;  %v7104_v4 = vld [vmem:[%s7928_s30 + $0x53c] sm:$0xf0] }
 0x20b   : > { %9829 = vst [vmem:[#allocation21_spill] sm:$0xff] %v8384_v6  ;;  %v8388_v14 = vpop.f32.mrf.mxu1 }
 0x20c   : > { %9830 = vst [vmem:[#allocation22_spill] sm:$0xff] %v8386_v7 }
 0x20d   : > { %9831 = vst [vmem:[#allocation23_spill] sm:$0xff] %v8388_v14  ;;  %6115 = vmatmul.msk.bf16.vlgmr.msra.gmra.mxu0 %vm1165_vm2, %v7964_v11 }
 0x20e   : > { %6116 = vmatmul.msk.bf16.vlgmr.msra.gmra.mxu1 %vm1165_vm2, %v7964_v11  ;;  %6117 = vmatmul.msk.bf16.vlgmr.msra.gmra.mxu2 %vm1165_vm2, %v7964_v11 }
 0x20f   : > { %6118 = vmatmul.msk.bf16.vlgmr.msra.gmra.mxu3 %vm1165_vm2, %v7964_v11  ;;  %2604 = vmatpush.bf16.msra.mxu2 %v2249_v20  ;;  %v6066_v20 = vor.u32 %v7075_v62, %v6065_v61  ;;  %v5913_v61 = vld [vmem:[%s7928_s30 + $0x2a0] sm:$0xf]  ;;  %v7038_v62 = vld [vmem:[%s7928_s30 + $0x32c] sm:$0xf0] }
 0x210   : > { %2618 = vmatpush.bf16.msra.mxu3 %v2252_v21  ;;  %2576 = vmatpush.bf16.msra.mxu0 %v2243_v22  ;;  %v6070_v21 = vor.u32 %v7057_v63, %v6067_v0  ;;  %v6058_v22 = vor.u32 %v7074_v2, %v6057_v1  ;;  %v7020_v63 = vld [vmem:[%s7928_s30 + $0x2a4] sm:$0xf]  ;;  %v5915_v0 = vld [vmem:[%s7928_s30 + $0x330] sm:$0xf0]  ;;  %v5914_v3 = vor.u32 %v7038_v62, %v5913_v61 }
 0x211   : > { %v8410_v45 = vpop.f32.mrf.mxu2  ;;  %2590 = vmatpush.bf16.msra.mxu1 %v2246_v26  ;;  %v2261_v32 = vand.u32 %v6066_v20, %v7926_v34  ;;  %v5918_v20 = vor.u32 %v7020_v63, %v5915_v0 }
 0x212   : > { %9832 = vst [vmem:[#allocation24_spill] sm:$0xff] %v8410_v45  ;;  %v8412_v50 = vpop.f32.mrf.mxu3  ;;  %v8414_v51 = vpop.f32.mrf.mxu0  ;;  %v2264_v33 = vand.u32 %v6070_v21, %v7926_v34  ;;  %v2255_v35 = vand.u32 %v6058_v22, %v7926_v34 }
 0x213   : > { %9833 = vst [vmem:[#allocation25_spill] sm:$0xff] %v8412_v50  ;;  %v8416_v57 = vpop.f32.mrf.mxu1  ;;  %2605 = vmatpush.bf16.msra.mxu2 %v5906_v41  ;;  %v7039_v41 = vld [vmem:[%s7928_s30 + $0x334] sm:$0xf0] }
 0x214   : > { %9834 = vst [vmem:[#allocation26_spill] sm:$0xff] %v8414_v51  ;;  %2619 = vmatpush.bf16.msra.mxu3 %v5910_v42  ;;  %2577 = vmatpush.bf16.msra.mxu0 %v5898_v43  ;;  %v7021_v42 = vld [vmem:[%s7928_s30 + $0x2ac] sm:$0xf]  ;;  %v2258_v43 = vand.u32 %v6062_v24, %v7926_v34  ;;  %v5922_v1 = vor.u32 %v7039_v41, %v5921_v37  ;;  %v6073_v41 = vld [vmem:[%s7928_s30 + $0x3d0] sm:$0xf] }
 0x215   : > { %9835 = vst [vmem:[#allocation27_spill] sm:$0xff] %v8416_v57  ;;  %2591 = vmatpush.bf16.msra.mxu1 %v5902_v49  ;;  %v5923_v49 = vld [vmem:[%s7928_s30 + $0x338] sm:$0xf0]  ;;  %v6083_v37 = vld [vmem:[%s7928_s30 + $0x468] sm:$0x10] }
 0x216   : > { %v5926_v2 = vor.u32 %v7021_v42, %v5923_v49  ;;  %v7076_v42 = vld [vmem:[%s7928_s30 + $0x45c] sm:$0x10]  ;;  %v6075_v49 = vld [vmem:[%s7928_s30 + $0x460] sm:$0x10] }
 0x217   : > { %v6074_v63 = vor.u32 %v7076_v42, %v6073_v41  ;;  %v7023_v41 = vld [vmem:[%s7928_s30 + $0x2bc] sm:$0xf] }
 0x219   : > { %v8426_v23 = vpop.f32.mrf.mxu2 }
 0x21a   : > { %9836 = vst [vmem:[#allocation28_spill] sm:$0xff] %v8426_v23  ;;  %v8428_v25 = vpop.f32.mrf.mxu3  ;;  %v8430_v26 = vpop.f32.mrf.mxu0  ;;  %v7102_v23 = vld [vmem:[%s7928_s30 + $0x52c] sm:$0xf0] }
 0x21b   : > { %9837 = vst [vmem:[#allocation29_spill] sm:$0xff] %v8428_v25  ;;  %v8432_v28 = vpop.f32.mrf.mxu1 }
 0x21c   : > { %9838 = vst [vmem:[#allocation30_spill] sm:$0xff] %v8430_v26 }
 0x21d   : > { %9839 = vst [vmem:[#allocation31_spill] sm:$0xff] %v8432_v28  ;;  %6119 = vmatmul.msk.bf16.vlgmr.msrb.gmra.mxu0 %vm1165_vm2, %v7964_v11 }
 0x21e   : > { %6120 = vmatmul.msk.bf16.vlgmr.msrb.gmra.mxu1 %vm1165_vm2, %v7964_v11  ;;  %6121 = vmatmul.msk.bf16.vlgmr.msrb.gmra.mxu2 %vm1165_vm2, %v7964_v11 }
 0x21f   : > { %6122 = vmatmul.msk.bf16.vlgmr.msrb.gmra.mxu3 %vm1165_vm2, %v7964_v11  ;;  %2660 = vmatpush.bf16.msrb.mxu2 %v2261_v32  ;;  %v6081_v32 = vld [vmem:[%s7928_s30 + $0x3d8] sm:$0xf] }
 0x220   : > { %2674 = vmatpush.bf16.msrb.mxu3 %v2264_v33  ;;  %2632 = vmatpush.bf16.msrb.mxu0 %v2255_v35  ;;  %v7077_v33 = vld [vmem:[%s7928_s30 + $0x464] sm:$0x10]  ;;  %v7059_v35 = vld [vmem:[%s7928_s30 + $0x3dc] sm:$0xf] }
 0x221   : > { %v8454_v5 = vpop.f32.mrf.mxu2  ;;  %2646 = vmatpush.bf16.msrb.mxu1 %v2258_v43  ;;  %v7058_v43 = vld [vmem:[%s7928_s30 + $0x3d4] sm:$0xf]  ;;  %v6082_v61 = vor.u32 %v7077_v33, %v6081_v32  ;;  %v6086_v62 = vor.u32 %v7059_v35, %v6083_v37  ;;  %v2267_v33 = vand.u32 %v6074_v63, %v7926_v34  ;;  %v5937_v35 = vld [vmem:[%s7928_s30 + $0x2b8] sm:$0xf]  ;;  %v7041_v37 = vld [vmem:[%s7928_s30 + $0x344] sm:$0xf0] }
 0x222   : > { %9840 = vst [vmem:[#allocation32_spill] sm:$0xff] %v8454_v5  ;;  %v8456_v21 = vpop.f32.mrf.mxu3  ;;  %v8458_v22 = vpop.f32.mrf.mxu0  ;;  %v5938_v63 = vor.u32 %v7041_v37, %v5937_v35  ;;  %v7061_v35 = vld [vmem:[%s7928_s30 + $0x3ec] sm:$0xf]  ;;  %v6089_v37 = vld [vmem:[%s7928_s30 + $0x3e0] sm:$0xf] }
 0x223   : > { %9841 = vst [vmem:[#allocation33_spill] sm:$0xff] %v8456_v21  ;;  %v8460_v24 = vpop.f32.mrf.mxu1  ;;  %2661 = vmatpush.bf16.msrb.mxu2 %v5922_v1  ;;  %v6078_v1 = vor.u32 %v7058_v43, %v6075_v49  ;;  %v2276_v32 = vand.u32 %v6086_v62, %v7926_v34  ;;  %v5939_v43 = vld [vmem:[%s7928_s30 + $0x348] sm:$0xf0]  ;;  %v5929_v49 = vld [vmem:[%s7928_s30 + $0x2b0] sm:$0xf] }
 0x224   : > { %9842 = vst [vmem:[#allocation34_spill] sm:$0xff] %v8458_v22  ;;  %2675 = vmatpush.bf16.msrb.mxu3 %v5926_v2  ;;  %2633 = vmatpush.bf16.msrb.mxu0 %v5914_v3  ;;  %v5931_v62 = vld [vmem:[%s7928_s30 + $0x340] sm:$0xf0] }
 0x225   : > { %9843 = vst [vmem:[#allocation35_spill] sm:$0xff] %v8460_v24  ;;  %2647 = vmatpush.bf16.msrb.mxu1 %v5918_v20  ;;  %v2273_v24 = vand.u32 %v6082_v61, %v7926_v34  ;;  %v2270_v42 = vand.u32 %v6078_v1, %v7926_v34  ;;  %v7022_v61 = vld [vmem:[%s7928_s30 + $0x2b4] sm:$0xf]  ;;  %v5942_v1 = vor.u32 %v7023_v41, %v5939_v43  ;;  %v7078_v41 = vld [vmem:[%s7928_s30 + $0x46c] sm:$0x10] }
 0x226   : > { %v6091_v43 = vld [vmem:[%s7928_s30 + $0x470] sm:$0x10] }
 0x229   : > { %v8470_v0 = vpop.f32.mrf.mxu2 }
 0x22a   : > { %9844 = vst [vmem:[#allocation36_spill] sm:$0xff] %v8470_v0  ;;  %v8472_v2 = vpop.f32.mrf.mxu3  ;;  %v8474_v3 = vpop.f32.mrf.mxu0  ;;  %v5934_v0 = vor.u32 %v7022_v61, %v5931_v62  ;;  %v6090_v62 = vor.u32 %v7078_v41, %v6089_v37  ;;  %v7025_v37 = vld [vmem:[%s7928_s30 + $0x2cc] sm:$0xf] }
 0x22b   : > { %9845 = vst [vmem:[#allocation37_spill] sm:$0xff] %v8472_v2  ;;  %v8476_v20 = vpop.f32.mrf.mxu1 }
 0x22c   : > { %9846 = vst [vmem:[#allocation38_spill] sm:$0xff] %v8474_v3  ;;  %v7040_v3 = vld [vmem:[%s7928_s30 + $0x33c] sm:$0xf0] }
 0x22d   : > { %9847 = vst [vmem:[#allocation39_spill] sm:$0xff] %v8476_v20  ;;  %6123 = vmatmul.msk.bf16.vlgmr.msra.gmra.mxu0 %vm1165_vm2, %v7964_v11  ;;  %v5930_v20 = vor.u32 %v7040_v3, %v5929_v49  ;;  %v6099_v3 = vld [vmem:[%s7928_s30 + $0x478] sm:$0x10] }
 0x22e   : > { %6124 = vmatmul.msk.bf16.vlgmr.msra.gmra.mxu1 %vm1165_vm2, %v7964_v11  ;;  %6125 = vmatmul.msk.bf16.vlgmr.msra.gmra.mxu2 %vm1165_vm2, %v7964_v11  ;;  %v6102_v61 = vor.u32 %v7061_v35, %v6099_v3  ;;  %v5953_v35 = vld [vmem:[%s7928_s30 + $0x2c8] sm:$0xf]  ;;  %v7043_v3 = vld [vmem:[%s7928_s30 + $0x354] sm:$0xf0] }
 0x22f   : > { %6126 = vmatmul.msk.bf16.vlgmr.msra.gmra.mxu3 %vm1165_vm2, %v7964_v11  ;;  %2716 = vmatpush.bf16.msra.mxu2 %v2273_v24 }
 0x230   : > { %2730 = vmatpush.bf16.msra.mxu3 %v2276_v32  ;;  %2688 = vmatpush.bf16.msra.mxu0 %v2267_v33  ;;  %v6097_v32 = vld [vmem:[%s7928_s30 + $0x3e8] sm:$0xf]  ;;  %v7079_v33 = vld [vmem:[%s7928_s30 + $0x474] sm:$0x10] }
 0x231   : > { %v8498_v2 = vpop.f32.mrf.mxu2  ;;  %2702 = vmatpush.bf16.msra.mxu1 %v2270_v42  ;;  %v7060_v42 = vld [vmem:[%s7928_s30 + $0x3e4] sm:$0xf]  ;;  %v6098_v49 = vor.u32 %v7079_v33, %v6097_v32  ;;  %v2288_v32 = vand.u32 %v6102_v61, %v7926_v34  ;;  %v2279_v33 = vand.u32 %v6090_v62, %v7926_v34  ;;  %v5947_v61 = vld [vmem:[%s7928_s30 + $0x350] sm:$0xf0]  ;;  %v5954_v62 = vor.u32 %v7043_v3, %v5953_v35  ;;  %v7117_v35 = vld [vmem:[%s7928_s30 + $0x5ac] sm:$0xf] }
 0x232   : > { %9848 = vst [vmem:[#allocation40_spill] sm:$0xff] %v8498_v2  ;;  %v8500_v22 = vpop.f32.mrf.mxu3  ;;  %v8502_v21 = vpop.f32.mrf.mxu0  ;;  %v6357_v3 = vld [vmem:[%s7928_s30 + $0x5a0] sm:$0xf] }
 0x233   : > { %9849 = vst [vmem:[#allocation41_spill] sm:$0xff] %v8500_v22  ;;  %v8504_v24 = vpop.f32.mrf.mxu1  ;;  %2717 = vmatpush.bf16.msra.mxu2 %v5938_v63 }
 0x234   : > { %9850 = vst [vmem:[#allocation42_spill] sm:$0xff] %v8502_v21  ;;  %2731 = vmatpush.bf16.msra.mxu3 %v5942_v1  ;;  %2689 = vmatpush.bf16.msra.mxu0 %v5930_v20  ;;  %v6094_v20 = vor.u32 %v7060_v42, %v6091_v43  ;;  %v2285_v21 = vand.u32 %v6098_v49, %v7926_v34  ;;  %v5955_v42 = vld [vmem:[%s7928_s30 + $0x358] sm:$0xf0]  ;;  %v5945_v43 = vld [vmem:[%s7928_s30 + $0x2c0] sm:$0xf] }
 0x235   : > { %9851 = vst [vmem:[#allocation43_spill] sm:$0xff] %v8504_v24  ;;  %2703 = vmatpush.bf16.msra.mxu1 %v5934_v0  ;;  %v7024_v49 = vld [vmem:[%s7928_s30 + $0x2c4] sm:$0xf] }
 0x236   : > { %v2282_v41 = vand.u32 %v6094_v20, %v7926_v34  ;;  %v5958_v20 = vor.u32 %v7025_v37, %v5955_v42  ;;  %v7134_v37 = vld [vmem:[%s7928_s30 + $0x62c] sm:$0x10]  ;;  %v6359_v42 = vld [vmem:[%s7928_s30 + $0x630] sm:$0x10] }
 0x239   : > { %v8514_v63 = vpop.f32.mrf.mxu2 }
 0x23a   : > { %9852 = vst [vmem:[#allocation44_spill] sm:$0xff] %v8514_v63  ;;  %v8516_v1 = vpop.f32.mrf.mxu3  ;;  %v8518_v0 = vpop.f32.mrf.mxu0  ;;  %v5950_v63 = vor.u32 %v7024_v49, %v5947_v61  ;;  %v6358_v61 = vor.u32 %v7134_v37, %v6357_v3  ;;  %v7081_v3 = vld [vmem:[%s7928_s30 + $0x48c] sm:$0xf] }
 0x23b   : > { %9853 = vst [vmem:[#allocation45_spill] sm:$0xff] %v8516_v1  ;;  %v8520_v24 = vpop.f32.mrf.mxu1 }
 0x23c   : > { %9854 = vst [vmem:[#allocation46_spill] sm:$0xff] %v8518_v0  ;;  %v7042_v0 = vld [vmem:[%s7928_s30 + $0x34c] sm:$0xf0] }
 0x23d   : > { %9855 = vst [vmem:[#allocation47_spill] sm:$0xff] %v8520_v24  ;;  %6127 = vmatmul.msk.bf16.vlgmr.msrb.gmra.mxu0 %vm1165_vm2, %v7964_v11  ;;  %v5946_v24 = vor.u32 %v7042_v0, %v5945_v43  ;;  %v6367_v0 = vld [vmem:[%s7928_s30 + $0x638] sm:$0x10] }
 0x23e   : > { %6128 = vmatmul.msk.bf16.vlgmr.msrb.gmra.mxu1 %vm1165_vm2, %v7964_v11  ;;  %6129 = vmatmul.msk.bf16.vlgmr.msrb.gmra.mxu2 %vm1165_vm2, %v7964_v11  ;;  %v6370_v49 = vor.u32 %v7117_v35, %v6367_v0  ;;  %v6221_v35 = vld [vmem:[%s7928_s30 + $0x488] sm:$0xf]  ;;  %v7099_v0 = vld [vmem:[%s7928_s30 + $0x514] sm:$0xf0] }
 0x23f   : > { %6130 = vmatmul.msk.bf16.vlgmr.msrb.gmra.mxu3 %vm1165_vm2, %v7964_v11  ;;  %2772 = vmatpush.bf16.msrb.mxu2 %v2285_v21 }
 0x240   : > { %2786 = vmatpush.bf16.msrb.mxu3 %v2288_v32  ;;  %2744 = vmatpush.bf16.msrb.mxu0 %v2279_v33  ;;  %v6365_v32 = vld [vmem:[%s7928_s30 + $0x5a8] sm:$0xf]  ;;  %v7135_v33 = vld [vmem:[%s7928_s30 + $0x634] sm:$0x10] }
 0x241   : > { %v8542_v1 = vpop.f32.mrf.mxu2  ;;  %2758 = vmatpush.bf16.msrb.mxu1 %v2282_v41  ;;  %v7116_v41 = vld [vmem:[%s7928_s30 + $0x5a4] sm:$0xf]  ;;  %v6366_v43 = vor.u32 %v7135_v33, %v6365_v32  ;;  %v3201_v32 = vand.u32 %v6370_v49, %v7926_v34  ;;  %v3192_v33 = vand.u32 %v6358_v61, %v7926_v34  ;;  %v6215_v49 = vld [vmem:[%s7928_s30 + $0x510] sm:$0xf0]  ;;  %v6222_v61 = vor.u32 %v7099_v0, %v6221_v35  ;;  %v7119_v35 = vld [vmem:[%s7928_s30 + $0x5bc] sm:$0xf] }
 0x242   : > { %9856 = vst [vmem:[#allocation48_spill] sm:$0xff] %v8542_v1  ;;  %v8544_v22 = vpop.f32.mrf.mxu3  ;;  %v8546_v2 = vpop.f32.mrf.mxu0  ;;  %v6373_v0 = vld [vmem:[%s7928_s30 + $0x5b0] sm:$0xf] }
 0x243   : > { %9857 = vst [vmem:[#allocation49_spill] sm:$0xff] %v8544_v22  ;;  %v8548_v21 = vpop.f32.mrf.mxu1  ;;  %2773 = vmatpush.bf16.msrb.mxu2 %v5954_v62 }
 0x244   : > { %9858 = vst [vmem:[#allocation50_spill] sm:$0xff] %v8546_v2  ;;  %2787 = vmatpush.bf16.msrb.mxu3 %v5958_v20  ;;  %2745 = vmatpush.bf16.msrb.mxu0 %v5946_v24  ;;  %v6362_v24 = vor.u32 %v7116_v41, %v6359_v42  ;;  %v3198_v2 = vand.u32 %v6366_v43, %v7926_v34  ;;  %v6223_v41 = vld [vmem:[%s7928_s30 + $0x518] sm:$0xf0]  ;;  %v6213_v42 = vld [vmem:[%s7928_s30 + $0x480] sm:$0xf] }
 0x245   : > { %9859 = vst [vmem:[#allocation51_spill] sm:$0xff] %v8548_v21  ;;  %2759 = vmatpush.bf16.msrb.mxu1 %v5950_v63  ;;  %v7080_v43 = vld [vmem:[%s7928_s30 + $0x484] sm:$0xf] }
 0x246   : > { %v3195_v37 = vand.u32 %v6362_v24, %v7926_v34  ;;  %v6226_v24 = vor.u32 %v7081_v3, %v6223_v41  ;;  %v7136_v3 = vld [vmem:[%s7928_s30 + $0x63c] sm:$0x10]  ;;  %v6375_v41 = vld [vmem:[%s7928_s30 + $0x640] sm:$0x10] }
 0x249   : > { %v8558_v62 = vpop.f32.mrf.mxu2 }
 0x24a   : > { %9860 = vst [vmem:[#allocation52_spill] sm:$0xff] %v8558_v62  ;;  %v8560_v20 = vpop.f32.mrf.mxu3  ;;  %v8562_v63 = vpop.f32.mrf.mxu0  ;;  %v6218_v62 = vor.u32 %v7080_v43, %v6215_v49  ;;  %v6374_v49 = vor.u32 %v7136_v3, %v6373_v0  ;;  %v7083_v0 = vld [vmem:[%s7928_s30 + $0x49c] sm:$0xf] }
 0x24b   : > { %9861 = vst [vmem:[#allocation53_spill] sm:$0xff] %v8560_v20  ;;  %v8564_v21 = vpop.f32.mrf.mxu1 }
 0x24c   : > { %9862 = vst [vmem:[#allocation54_spill] sm:$0xff] %v8562_v63  ;;  %v7098_v63 = vld [vmem:[%s7928_s30 + $0x50c] sm:$0xf0] }
 0x24d   : > { %9863 = vst [vmem:[#allocation55_spill] sm:$0xff] %v8564_v21  ;;  %6131 = vmatmul.msk.bf16.vlgmr.msra.gmra.mxu0 %vm1165_vm2, %v7964_v11  ;;  %v6214_v21 = vor.u32 %v7098_v63, %v6213_v42  ;;  %v6383_v63 = vld [vmem:[%s7928_s30 + $0x648] sm:$0x10] }
 0x24e   : > { %6132 = vmatmul.msk.bf16.vlgmr.msra.gmra.mxu1 %vm1165_vm2, %v7964_v11  ;;  %6133 = vmatmul.msk.bf16.vlgmr.msra.gmra.mxu2 %vm1165_vm2, %v7964_v11  ;;  %v6386_v43 = vor.u32 %v7119_v35, %v6383_v63  ;;  %v6237_v35 = vld [vmem:[%s7928_s30 + $0x498] sm:$0xf]  ;;  %v7101_v63 = vld [vmem:[%s7928_s30 + $0x524] sm:$0xf0] }
 0x24f   : > { %6134 = vmatmul.msk.bf16.vlgmr.msra.gmra.mxu3 %vm1165_vm2, %v7964_v11  ;;  %3333 = vmatpush.bf16.msra.mxu2 %v3198_v2 }
 0x250   : > { %3347 = vmatpush.bf16.msra.mxu3 %v3201_v32  ;;  %3305 = vmatpush.bf16.msra.mxu0 %v3192_v33  ;;  %v6381_v32 = vld [vmem:[%s7928_s30 + $0x5b8] sm:$0xf]  ;;  %v7137_v33 = vld [vmem:[%s7928_s30 + $0x644] sm:$0x10] }
 0x251   : > { %v8586_v20 = vpop.f32.mrf.mxu2  ;;  %3319 = vmatpush.bf16.msra.mxu1 %v3195_v37  ;;  %v7118_v37 = vld [vmem:[%s7928_s30 + $0x5b4] sm:$0xf]  ;;  %v6382_v42 = vor.u32 %v7137_v33, %v6381_v32  ;;  %v3213_v32 = vand.u32 %v6386_v43, %v7926_v34  ;;  %v3204_v33 = vand.u32 %v6374_v49, %v7926_v34  ;;  %v6231_v43 = vld [vmem:[%s7928_s30 + $0x520] sm:$0xf0]  ;;  %v6238_v49 = vor.u32 %v7101_v63, %v6237_v35  ;;  %v7121_v35 = vld [vmem:[%s7928_s30 + $0x5cc] sm:$0xf] }
 0x252   : > { %9864 = vst [vmem:[#allocation56_spill] sm:$0xff] %v8586_v20  ;;  %v8588_v22 = vpop.f32.mrf.mxu3  ;;  %v8590_v1 = vpop.f32.mrf.mxu0  ;;  %v6389_v63 = vld [vmem:[%s7928_s30 + $0x5c0] sm:$0xf] }
 0x253   : > { %9865 = vst [vmem:[#allocation57_spill] sm:$0xff] %v8588_v22  ;;  %v8592_v2 = vpop.f32.mrf.mxu1  ;;  %3334 = vmatpush.bf16.msra.mxu2 %v6222_v61 }
 0x254   : > { %9866 = vst [vmem:[#allocation58_spill] sm:$0xff] %v8590_v1  ;;  %3348 = vmatpush.bf16.msra.mxu3 %v6226_v24  ;;  %3306 = vmatpush.bf16.msra.mxu0 %v6214_v21  ;;  %v6378_v21 = vor.u32 %v7118_v37, %v6375_v41  ;;  %v3210_v1 = vand.u32 %v6382_v42, %v7926_v34  ;;  %v6239_v37 = vld [vmem:[%s7928_s30 + $0x528] sm:$0xf0]  ;;  %v6229_v41 = vld [vmem:[%s7928_s30 + $0x490] sm:$0xf] }
 0x255   : > { %9867 = vst [vmem:[#allocation59_spill] sm:$0xff] %v8592_v2  ;;  %3320 = vmatpush.bf16.msra.mxu1 %v6218_v62  ;;  %v7082_v42 = vld [vmem:[%s7928_s30 + $0x494] sm:$0xf] }
 0x256   : > { %v3207_v3 = vand.u32 %v6378_v21, %v7926_v34  ;;  %v6242_v21 = vor.u32 %v7083_v0, %v6239_v37  ;;  %v6234_v20 = vor.u32 %v7082_v42, %v6231_v43  ;;  %v7138_v0 = vld [vmem:[%s7928_s30 + $0x64c] sm:$0x10]  ;;  %v6391_v37 = vld [vmem:[%s7928_s30 + $0x650] sm:$0x10] }
 0x257   : > { %v6390_v43 = vor.u32 %v7138_v0, %v6389_v63  ;;  %v7085_v63 = vld [vmem:[%s7928_s30 + $0x4ac] sm:$0xf] }
 0x259   : > { %v8602_v61 = vpop.f32.mrf.mxu2 }
 0x25a   : > { %9868 = vst [vmem:[#allocation60_spill] sm:$0xff] %v8602_v61  ;;  %v8604_v24 = vpop.f32.mrf.mxu3  ;;  %v8606_v62 = vpop.f32.mrf.mxu0 }
 0x25b   : > { %9869 = vst [vmem:[#allocation61_spill] sm:$0xff] %v8604_v24  ;;  %v8608_v2 = vpop.f32.mrf.mxu1  ;;  %v7100_v24 = vld [vmem:[%s7928_s30 + $0x51c] sm:$0xf0] }
 0x25c   : > { %v6230_v61 = vor.u32 %v7100_v24, %v6229_v41  ;;  %v6399_v24 = vld [vmem:[%s7928_s30 + $0x658] sm:$0x10] }
 0x25d   : > { %6135 = vmatmul.msk.bf16.vlgmr.msrb.gmra.mxu0 %vm1165_vm2, %v7964_v11  ;;  %v6402_v42 = vor.u32 %v7121_v35, %v6399_v24  ;;  %v6253_v35 = vld [vmem:[%s7928_s30 + $0x4a8] sm:$0xf]  ;;  %v7103_v24 = vld [vmem:[%s7928_s30 + $0x534] sm:$0xf0] }
 0x25e   : > { %6136 = vmatmul.msk.bf16.vlgmr.msrb.gmra.mxu1 %vm1165_vm2, %v7964_v11  ;;  %6137 = vmatmul.msk.bf16.vlgmr.msrb.gmra.mxu2 %vm1165_vm2, %v7964_v11 }
 0x25f   : > { %6138 = vmatmul.msk.bf16.vlgmr.msrb.gmra.mxu3 %vm1165_vm2, %v7964_v11  ;;  %3389 = vmatpush.bf16.msrb.mxu2 %v3210_v1 }
 0x260   : > { %3403 = vmatpush.bf16.msrb.mxu3 %v3213_v32  ;;  %3361 = vmatpush.bf16.msrb.mxu0 %v3204_v33  ;;  %v6397_v32 = vld [vmem:[%s7928_s30 + $0x5c8] sm:$0xf]  ;;  %v7139_v33 = vld [vmem:[%s7928_s30 + $0x654] sm:$0x10] }
 0x261   : > { %v8630_v22 = vpop.f32.mrf.mxu2  ;;  %3375 = vmatpush.bf16.msrb.mxu1 %v3207_v3  ;;  %v7120_v3 = vld [vmem:[%s7928_s30 + $0x5c4] sm:$0xf]  ;;  %v6398_v41 = vor.u32 %v7139_v33, %v6397_v32  ;;  %v3225_v32 = vand.u32 %v6402_v42, %v7926_v34  ;;  %v3216_v33 = vand.u32 %v6390_v43, %v7926_v34  ;;  %v6247_v42 = vld [vmem:[%s7928_s30 + $0x530] sm:$0xf0]  ;;  %v6254_v43 = vor.u32 %v7103_v24, %v6253_v35  ;;  %v7123_v35 = vld [vmem:[%s7928_s30 + $0x5dc] sm:$0xf] }
 0x262   : > { %v8632_v5 = vpop.f32.mrf.mxu3  ;;  %v8634_v28 = vpop.f32.mrf.mxu0  ;;  %v6405_v24 = vld [vmem:[%s7928_s30 + $0x5d0] sm:$0xf] }
 0x263   : > { %v8636_v1 = vpop.f32.mrf.mxu1  ;;  %3390 = vmatpush.bf16.msrb.mxu2 %v6238_v49  ;;  %v3222_v25 = vand.u32 %v6398_v41, %v7926_v34  ;;  %v7084_v41 = vld [vmem:[%s7928_s30 + $0x4a4] sm:$0xf] }
 0x264   : > { %3404 = vmatpush.bf16.msrb.mxu3 %v6242_v21  ;;  %3362 = vmatpush.bf16.msrb.mxu0 %v6230_v61  ;;  %v6394_v61 = vor.u32 %v7120_v3, %v6391_v37  ;;  %v6255_v3 = vld [vmem:[%s7928_s30 + $0x538] sm:$0xf0]  ;;  %v6245_v37 = vld [vmem:[%s7928_s30 + $0x4a0] sm:$0xf]  ;;  %v6250_v50 = vor.u32 %v7084_v41, %v6247_v42 }
 0x265   : > { %3376 = vmatpush.bf16.msrb.mxu1 %v6234_v20  ;;  %v6246_v57 = vor.u32 %v7102_v23, %v6245_v37  ;;  %v6415_v23 = vld [vmem:[%s7928_s30 + $0x668] sm:$0x10] }
 0x266   : > { %v3219_v0 = vand.u32 %v6394_v61, %v7926_v34  ;;  %v6258_v61 = vor.u32 %v7085_v63, %v6255_v3  ;;  %v7140_v63 = vld [vmem:[%s7928_s30 + $0x65c] sm:$0x10]  ;;  %v6407_v3 = vld [vmem:[%s7928_s30 + $0x660] sm:$0x10]  ;;  %v6418_v41 = vor.u32 %v7123_v35, %v6415_v23  ;;  %v6269_v35 = vld [vmem:[%s7928_s30 + $0x4b8] sm:$0xf] }
 0x267   : > { %v6406_v42 = vor.u32 %v7140_v63, %v6405_v24  ;;  %v7105_v23 = vld [vmem:[%s7928_s30 + $0x544] sm:$0xf0]  ;;  %v7087_v24 = vld [vmem:[%s7928_s30 + $0x4bc] sm:$0xf] }
 0x269   : > { %v8646_v49 = vpop.f32.mrf.mxu2 }
 0x26a   : > { %v8648_v21 = vpop.f32.mrf.mxu3  ;;  %v8650_v20 = vpop.f32.mrf.mxu0 }
 0x26b   : > { %v8652_v26 = vpop.f32.mrf.mxu1 }
 0x26d   : > { %6499 = vmatmul.msk.bf16.vlgmr.msra.gmra.mxu0 %vm1165_vm2, %v7964_v11 }
 0x26e   : > { %6500 = vmatmul.msk.bf16.vlgmr.msra.gmra.mxu1 %vm1165_vm2, %v7964_v11  ;;  %6501 = vmatmul.msk.bf16.vlgmr.msra.gmra.mxu2 %vm1165_vm2, %v7964_v11 }
 0x26f   : > { %6502 = vmatmul.msk.bf16.vlgmr.msra.gmra.mxu3 %vm1165_vm2, %v7964_v11  ;;  %3445 = vmatpush.bf16.msra.mxu2 %v3222_v25 }
 0x270   : > { %3459 = vmatpush.bf16.msra.mxu3 %v3225_v32  ;;  %3417 = vmatpush.bf16.msra.mxu0 %v3216_v33  ;;  %v6413_v32 = vld [vmem:[%s7928_s30 + $0x5d8] sm:$0xf]  ;;  %v7141_v33 = vld [vmem:[%s7928_s30 + $0x664] sm:$0x10] }
 0x271   : > { %v8674_v51 = vpop.f32.mrf.mxu2  ;;  %3431 = vmatpush.bf16.msra.mxu1 %v3219_v0  ;;  %v7122_v0 = vld [vmem:[%s7928_s30 + $0x5d4] sm:$0xf]  ;;  %v6414_v37 = vor.u32 %v7141_v33, %v6413_v32  ;;  %v3237_v32 = vand.u32 %v6418_v41, %v7926_v34  ;;  %v3228_v33 = vand.u32 %v6406_v42, %v7926_v34  ;;  %v6263_v41 = vld [vmem:[%s7928_s30 + $0x540] sm:$0xf0]  ;;  %v6270_v42 = vor.u32 %v7105_v23, %v6269_v35  ;;  %v7125_v35 = vld [vmem:[%s7928_s30 + $0x5ec] sm:$0xf] }
 0x272   : > { %v8676_v45 = vpop.f32.mrf.mxu3  ;;  %v8678_v14 = vpop.f32.mrf.mxu0  ;;  %v6421_v23 = vld [vmem:[%s7928_s30 + $0x5e0] sm:$0xf] }
 0x273   : > { %v8680_v25 = vpop.f32.mrf.mxu1  ;;  %3446 = vmatpush.bf16.msra.mxu2 %v6254_v43  ;;  %v3234_v6 = vand.u32 %v6414_v37, %v7926_v34  ;;  %v7086_v37 = vld [vmem:[%s7928_s30 + $0x4b4] sm:$0xf] }
 0x274   : > { %3460 = vmatpush.bf16.msra.mxu3 %v6258_v61  ;;  %3418 = vmatpush.bf16.msra.mxu0 %v6246_v57  ;;  %v6410_v57 = vor.u32 %v7122_v0, %v6407_v3  ;;  %v6271_v0 = vld [vmem:[%s7928_s30 + $0x548] sm:$0xf0]  ;;  %v6261_v3 = vld [vmem:[%s7928_s30 + $0x4b0] sm:$0xf]  ;;  %v6266_v46 = vor.u32 %v7086_v37, %v6263_v41 }
 0x275   : > { %3432 = vmatpush.bf16.msra.mxu1 %v6250_v50  ;;  %v6262_v48 = vor.u32 %v7104_v4, %v6261_v3  ;;  %v6431_v4 = vld [vmem:[%s7928_s30 + $0x678] sm:$0x10] }
 0x276   : > { %v3231_v63 = vand.u32 %v6410_v57, %v7926_v34  ;;  %v6274_v57 = vor.u32 %v7087_v24, %v6271_v0  ;;  %v7142_v24 = vld [vmem:[%s7928_s30 + $0x66c] sm:$0x10]  ;;  %v6423_v0 = vld [vmem:[%s7928_s30 + $0x670] sm:$0x10]  ;;  %v6434_v37 = vor.u32 %v7125_v35, %v6431_v4  ;;  %v6285_v35 = vld [vmem:[%s7928_s30 + $0x4c8] sm:$0xf] }
 0x277   : > { %v6422_v41 = vor.u32 %v7142_v24, %v6421_v23  ;;  %v7107_v4 = vld [vmem:[%s7928_s30 + $0x554] sm:$0xf0]  ;;  %v7089_v23 = vld [vmem:[%s7928_s30 + $0x4cc] sm:$0xf] }
 0x279   : > { %v8690_v43 = vpop.f32.mrf.mxu2 }
 0x27a   : > { %v8692_v61 = vpop.f32.mrf.mxu3  ;;  %v8694_v50 = vpop.f32.mrf.mxu0 }
 0x27b   : > { %9870 = vst [vmem:[#allocation62_spill] sm:$0xff] %v8692_v61  ;;  %v8696_v7 = vpop.f32.mrf.mxu1 }
 0x27c   : > { %9871 = vst [vmem:[#allocation63_spill] sm:$0xff] %v8694_v50 }
 0x27d   : > { %9872 = vst [vmem:[#allocation64_spill] sm:$0xff] %v8696_v7  ;;  %6503 = vmatmul.msk.bf16.vlgmr.msrb.gmra.mxu0 %vm1165_vm2, %v7964_v11 }
 0x27e   : > { %6504 = vmatmul.msk.bf16.vlgmr.msrb.gmra.mxu1 %vm1165_vm2, %v7964_v11  ;;  %6505 = vmatmul.msk.bf16.vlgmr.msrb.gmra.mxu2 %vm1165_vm2, %v7964_v11 }
 0x27f   : > { %6506 = vmatmul.msk.bf16.vlgmr.msrb.gmra.mxu3 %vm1165_vm2, %v7964_v11  ;;  %3501 = vmatpush.bf16.msrb.mxu2 %v3234_v6 }
 0x280   : > { %3515 = vmatpush.bf16.msrb.mxu3 %v3237_v32  ;;  %3473 = vmatpush.bf16.msrb.mxu0 %v3228_v33  ;;  %v6429_v32 = vld [vmem:[%s7928_s30 + $0x5e8] sm:$0xf]  ;;  %v7143_v33 = vld [vmem:[%s7928_s30 + $0x674] sm:$0x10] }
 0x281   : > { %v8718_v47 = vpop.f32.mrf.mxu2  ;;  %3487 = vmatpush.bf16.msrb.mxu1 %v3231_v63  ;;  %v7124_v63 = vld [vmem:[%s7928_s30 + $0x5e4] sm:$0xf]  ;;  %v6430_v3 = vor.u32 %v7143_v33, %v6429_v32  ;;  %v3249_v32 = vand.u32 %v6434_v37, %v7926_v34  ;;  %v3240_v33 = vand.u32 %v6422_v41, %v7926_v34  ;;  %v6279_v37 = vld [vmem:[%s7928_s30 + $0x550] sm:$0xf0]  ;;  %v6286_v41 = vor.u32 %v7107_v4, %v6285_v35  ;;  %v7127_v35 = vld [vmem:[%s7928_s30 + $0x5fc] sm:$0xf] }
 0x282   : > { %9873 = vst [vmem:[#allocation65_spill] sm:$0xff] %v8718_v47  ;;  %v8720_v44 = vpop.f32.mrf.mxu3  ;;  %v8722_v17 = vpop.f32.mrf.mxu0  ;;  %v6437_v4 = vld [vmem:[%s7928_s30 + $0x5f0] sm:$0xf] }
 0x283   : > { %9874 = vst [vmem:[#allocation66_spill] sm:$0xff] %v8720_v44  ;;  %v8724_v6 = vpop.f32.mrf.mxu1  ;;  %3502 = vmatpush.bf16.msrb.mxu2 %v6270_v42  ;;  %v3246_v15 = vand.u32 %v6430_v3, %v7926_v34  ;;  %v7088_v3 = vld [vmem:[%s7928_s30 + $0x4c4] sm:$0xf]  ;;  %v7174_v44 = vld [vmem:[%s7928_s30 + $0x76c] sm:$0xf0] }
 0x284   : > { %9875 = vst [vmem:[#allocation67_spill] sm:$0xff] %v8722_v17  ;;  %3516 = vmatpush.bf16.msrb.mxu3 %v6274_v57  ;;  %3474 = vmatpush.bf16.msrb.mxu0 %v6262_v48  ;;  %v6426_v48 = vor.u32 %v7124_v63, %v6423_v0  ;;  %v6287_v63 = vld [vmem:[%s7928_s30 + $0x558] sm:$0xf0]  ;;  %v6277_v0 = vld [vmem:[%s7928_s30 + $0x4c0] sm:$0xf]  ;;  %v6282_v9 = vor.u32 %v7088_v3, %v6279_v37 }
 0x285   : > { %9876 = vst [vmem:[#allocation68_spill] sm:$0xff] %v8724_v6  ;;  %3488 = vmatpush.bf16.msrb.mxu1 %v6266_v46 }
 0x286   : > { %v3243_v24 = vand.u32 %v6426_v48, %v7926_v34  ;;  %v6290_v48 = vor.u32 %v7089_v23, %v6287_v63  ;;  %v7144_v23 = vld [vmem:[%s7928_s30 + $0x67c] sm:$0x10]  ;;  %v6439_v63 = vld [vmem:[%s7928_s30 + $0x680] sm:$0x10] }
 0x287   : > { %v6438_v37 = vor.u32 %v7144_v23, %v6437_v4  ;;  %v7091_v4 = vld [vmem:[%s7928_s30 + $0x4dc] sm:$0xf] }
 0x289   : > { %v8734_v42 = vpop.f32.mrf.mxu2 }
 0x28a   : > { %9877 = vst [vmem:[#allocation69_spill] sm:$0xff] %v8734_v42  ;;  %v8736_v57 = vpop.f32.mrf.mxu3  ;;  %v8738_v46 = vpop.f32.mrf.mxu0 }
 0x28b   : > { %9878 = vst [vmem:[#allocation70_spill] sm:$0xff] %v8736_v57  ;;  %v8740_v16 = vpop.f32.mrf.mxu1 }
 0x28c   : > { %9879 = vst [vmem:[#allocation71_spill] sm:$0xff] %v8738_v46  ;;  %v7106_v46 = vld [vmem:[%s7928_s30 + $0x54c] sm:$0xf0] }
 0x28d   : > { %9880 = vst [vmem:[#allocation72_spill] sm:$0xff] %v8740_v16  ;;  %6507 = vmatmul.msk.bf16.vlgmr.msra.gmra.mxu0 %vm1165_vm2, %v7964_v11  ;;  %v6278_v16 = vor.u32 %v7106_v46, %v6277_v0  ;;  %v6447_v46 = vld [vmem:[%s7928_s30 + $0x688] sm:$0x10] }
 0x28e   : > { %6508 = vmatmul.msk.bf16.vlgmr.msra.gmra.mxu1 %vm1165_vm2, %v7964_v11  ;;  %6509 = vmatmul.msk.bf16.vlgmr.msra.gmra.mxu2 %vm1165_vm2, %v7964_v11  ;;  %v6450_v3 = vor.u32 %v7127_v35, %v6447_v46  ;;  %v6301_v35 = vld [vmem:[%s7928_s30 + $0x4d8] sm:$0xf]  ;;  %v7109_v46 = vld [vmem:[%s7928_s30 + $0x564] sm:$0xf0] }
 0x28f   : > { %6510 = vmatmul.msk.bf16.vlgmr.msra.gmra.mxu3 %vm1165_vm2, %v7964_v11  ;;  %3557 = vmatpush.bf16.msra.mxu2 %v3246_v15 }
 0x290   : > { %3571 = vmatpush.bf16.msra.mxu3 %v3249_v32  ;;  %3529 = vmatpush.bf16.msra.mxu0 %v3240_v33  ;;  %v6445_v32 = vld [vmem:[%s7928_s30 + $0x5f8] sm:$0xf]  ;;  %v7145_v33 = vld [vmem:[%s7928_s30 + $0x684] sm:$0x10] }
 0x291   : > { %v8762_v57 = vpop.f32.mrf.mxu2  ;;  %3543 = vmatpush.bf16.msra.mxu1 %v3243_v24  ;;  %v7126_v24 = vld [vmem:[%s7928_s30 + $0x5f4] sm:$0xf]  ;;  %v6446_v0 = vor.u32 %v7145_v33, %v6445_v32  ;;  %v3261_v32 = vand.u32 %v6450_v3, %v7926_v34  ;;  %v3252_v33 = vand.u32 %v6438_v37, %v7926_v34  ;;  %v6295_v3 = vld [vmem:[%s7928_s30 + $0x560] sm:$0xf0]  ;;  %v6302_v37 = vor.u32 %v7109_v46, %v6301_v35  ;;  %v7129_v35 = vld [vmem:[%s7928_s30 + $0x60c] sm:$0xf] }
 0x292   : > { %9881 = vst [vmem:[#allocation73_spill] sm:$0xff] %v8762_v57  ;;  %v8764_v42 = vpop.f32.mrf.mxu3  ;;  %v8766_v60 = vpop.f32.mrf.mxu0  ;;  %v6453_v46 = vld [vmem:[%s7928_s30 + $0x600] sm:$0xf] }
 0x293   : > { %9882 = vst [vmem:[#allocation74_spill] sm:$0xff] %v8764_v42  ;;  %v8768_v15 = vpop.f32.mrf.mxu1  ;;  %3558 = vmatpush.bf16.msra.mxu2 %v6286_v41 }
 0x294   : > { %9883 = vst [vmem:[#allocation75_spill] sm:$0xff] %v8766_v60  ;;  %3572 = vmatpush.bf16.msra.mxu3 %v6290_v48  ;;  %3530 = vmatpush.bf16.msra.mxu0 %v6278_v16  ;;  %v6442_v16 = vor.u32 %v7126_v24, %v6439_v63  ;;  %v3258_v60 = vand.u32 %v6446_v0, %v7926_v34  ;;  %v6303_v24 = vld [vmem:[%s7928_s30 + $0x568] sm:$0xf0]  ;;  %v6293_v63 = vld [vmem:[%s7928_s30 + $0x4d0] sm:$0xf] }
 0x295   : > { %9884 = vst [vmem:[#allocation76_spill] sm:$0xff] %v8768_v15  ;;  %3544 = vmatpush.bf16.msra.mxu1 %v6282_v9  ;;  %v7090_v0 = vld [vmem:[%s7928_s30 + $0x4d4] sm:$0xf] }
 0x296   : > { %v3255_v23 = vand.u32 %v6442_v16, %v7926_v34  ;;  %v6306_v16 = vor.u32 %v7091_v4, %v6303_v24  ;;  %v7146_v4 = vld [vmem:[%s7928_s30 + $0x68c] sm:$0x10]  ;;  %v6455_v24 = vld [vmem:[%s7928_s30 + $0x690] sm:$0x10] }
 0x299   : > { %v8778_v41 = vpop.f32.mrf.mxu2 }
 0x29a   : > { %9885 = vst [vmem:[#allocation77_spill] sm:$0xff] %v8778_v41  ;;  %v8780_v48 = vpop.f32.mrf.mxu3  ;;  %v8782_v9 = vpop.f32.mrf.mxu0  ;;  %v6298_v41 = vor.u32 %v7090_v0, %v6295_v3  ;;  %v6454_v3 = vor.u32 %v7146_v4, %v6453_v46  ;;  %v7093_v46 = vld [vmem:[%s7928_s30 + $0x4ec] sm:$0xf] }
 0x29b   : > { %9886 = vst [vmem:[#allocation78_spill] sm:$0xff] %v8780_v48  ;;  %v8784_v15 = vpop.f32.mrf.mxu1 }
 0x29c   : > { %9887 = vst [vmem:[#allocation79_spill] sm:$0xff] %v8782_v9  ;;  %v7108_v9 = vld [vmem:[%s7928_s30 + $0x55c] sm:$0xf0] }
 0x29d   : > { %9888 = vst [vmem:[#allocation80_spill] sm:$0xff] %v8784_v15  ;;  %6511 = vmatmul.msk.bf16.vlgmr.msrb.gmra.mxu0 %vm1165_vm2, %v7964_v11  ;;  %v6294_v15 = vor.u32 %v7108_v9, %v6293_v63  ;;  %v6463_v9 = vld [vmem:[%s7928_s30 + $0x698] sm:$0x10] }
 0x29e   : > { %6512 = vmatmul.msk.bf16.vlgmr.msrb.gmra.mxu1 %vm1165_vm2, %v7964_v11  ;;  %6513 = vmatmul.msk.bf16.vlgmr.msrb.gmra.mxu2 %vm1165_vm2, %v7964_v11  ;;  %v6466_v0 = vor.u32 %v7129_v35, %v6463_v9  ;;  %v6317_v35 = vld [vmem:[%s7928_s30 + $0x4e8] sm:$0xf]  ;;  %v7111_v9 = vld [vmem:[%s7928_s30 + $0x574] sm:$0xf0] }
 0x29f   : > { %6514 = vmatmul.msk.bf16.vlgmr.msrb.gmra.mxu3 %vm1165_vm2, %v7964_v11  ;;  %3613 = vmatpush.bf16.msrb.mxu2 %v3258_v60 }
 0x2a0   : > { %3627 = vmatpush.bf16.msrb.mxu3 %v3261_v32  ;;  %3585 = vmatpush.bf16.msrb.mxu0 %v3252_v33  ;;  %v6461_v32 = vld [vmem:[%s7928_s30 + $0x608] sm:$0xf]  ;;  %v7147_v33 = vld [vmem:[%s7928_s30 + $0x694] sm:$0x10] }
 0x2a1   : > { %v8806_v48 = vpop.f32.mrf.mxu2  ;;  %3599 = vmatpush.bf16.msrb.mxu1 %v3255_v23  ;;  %v7128_v23 = vld [vmem:[%s7928_s30 + $0x604] sm:$0xf]  ;;  %v6462_v63 = vor.u32 %v7147_v33, %v6461_v32  ;;  %v3273_v32 = vand.u32 %v6466_v0, %v7926_v34  ;;  %v3264_v33 = vand.u32 %v6454_v3, %v7926_v34  ;;  %v6311_v0 = vld [vmem:[%s7928_s30 + $0x570] sm:$0xf0]  ;;  %v6318_v3 = vor.u32 %v7111_v9, %v6317_v35  ;;  %v7131_v35 = vld [vmem:[%s7928_s30 + $0x61c] sm:$0xf] }
 0x2a2   : > { %9889 = vst [vmem:[#allocation81_spill] sm:$0xff] %v8806_v48  ;;  %v8808_v42 = vpop.f32.mrf.mxu3  ;;  %v8810_v57 = vpop.f32.mrf.mxu0  ;;  %v6469_v9 = vld [vmem:[%s7928_s30 + $0x610] sm:$0xf] }
 0x2a3   : > { %9890 = vst [vmem:[#allocation82_spill] sm:$0xff] %v8808_v42  ;;  %v8812_v60 = vpop.f32.mrf.mxu1  ;;  %3614 = vmatpush.bf16.msrb.mxu2 %v6302_v37 }
 0x2a4   : > { %9891 = vst [vmem:[#allocation83_spill] sm:$0xff] %v8810_v57  ;;  %3628 = vmatpush.bf16.msrb.mxu3 %v6306_v16  ;;  %3586 = vmatpush.bf16.msrb.mxu0 %v6294_v15  ;;  %v6458_v15 = vor.u32 %v7128_v23, %v6455_v24  ;;  %v3270_v57 = vand.u32 %v6462_v63, %v7926_v34  ;;  %v6319_v23 = vld [vmem:[%s7928_s30 + $0x578] sm:$0xf0]  ;;  %v6309_v24 = vld [vmem:[%s7928_s30 + $0x4e0] sm:$0xf] }
 0x2a5   : > { %9892 = vst [vmem:[#allocation84_spill] sm:$0xff] %v8812_v60  ;;  %3600 = vmatpush.bf16.msrb.mxu1 %v6298_v41  ;;  %v7092_v63 = vld [vmem:[%s7928_s30 + $0x4e4] sm:$0xf] }
 0x2a6   : > { %v3267_v4 = vand.u32 %v6458_v15, %v7926_v34  ;;  %v6322_v15 = vor.u32 %v7093_v46, %v6319_v23  ;;  %v7148_v46 = vld [vmem:[%s7928_s30 + $0x69c] sm:$0x10]  ;;  %v6471_v23 = vld [vmem:[%s7928_s30 + $0x6a0] sm:$0x10] }
 0x2a9   : > { %v8822_v37 = vpop.f32.mrf.mxu2 }
 0x2aa   : > { %9893 = vst [vmem:[#allocation85_spill] sm:$0xff] %v8822_v37  ;;  %v8824_v16 = vpop.f32.mrf.mxu3  ;;  %v8826_v41 = vpop.f32.mrf.mxu0  ;;  %v6314_v37 = vor.u32 %v7092_v63, %v6311_v0  ;;  %v6470_v0 = vor.u32 %v7148_v46, %v6469_v9  ;;  %v7095_v9 = vld [vmem:[%s7928_s30 + $0x4fc] sm:$0xf] }
 0x2ab   : > { %9894 = vst [vmem:[#allocation86_spill] sm:$0xff] %v8824_v16  ;;  %v8828_v60 = vpop.f32.mrf.mxu1 }
 0x2ac   : > { %9895 = vst [vmem:[#allocation87_spill] sm:$0xff] %v8826_v41  ;;  %v7110_v41 = vld [vmem:[%s7928_s30 + $0x56c] sm:$0xf0] }
 0x2ad   : > { %9896 = vst [vmem:[#allocation88_spill] sm:$0xff] %v8828_v60  ;;  %6515 = vmatmul.msk.bf16.vlgmr.msra.gmra.mxu0 %vm1165_vm2, %v7964_v11  ;;  %v6310_v60 = vor.u32 %v7110_v41, %v6309_v24  ;;  %v6479_v41 = vld [vmem:[%s7928_s30 + $0x6a8] sm:$0x10] }
 0x2ae   : > { %6516 = vmatmul.msk.bf16.vlgmr.msra.gmra.mxu1 %vm1165_vm2, %v7964_v11  ;;  %6517 = vmatmul.msk.bf16.vlgmr.msra.gmra.mxu2 %vm1165_vm2, %v7964_v11  ;;  %v6482_v63 = vor.u32 %v7131_v35, %v6479_v41  ;;  %v6333_v35 = vld [vmem:[%s7928_s30 + $0x4f8] sm:$0xf]  ;;  %v7113_v41 = vld [vmem:[%s7928_s30 + $0x584] sm:$0xf0] }
 0x2af   : > { %6518 = vmatmul.msk.bf16.vlgmr.msra.gmra.mxu3 %vm1165_vm2, %v7964_v11  ;;  %3669 = vmatpush.bf16.msra.mxu2 %v3270_v57 }
 0x2b0   : > { %3683 = vmatpush.bf16.msra.mxu3 %v3273_v32  ;;  %3641 = vmatpush.bf16.msra.mxu0 %v3264_v33  ;;  %v6477_v32 = vld [vmem:[%s7928_s30 + $0x618] sm:$0xf]  ;;  %v7149_v33 = vld [vmem:[%s7928_s30 + $0x6a4] sm:$0x10] }
 0x2b1   : > { %v8850_v16 = vpop.f32.mrf.mxu2  ;;  %3655 = vmatpush.bf16.msra.mxu1 %v3267_v4  ;;  %v7130_v4 = vld [vmem:[%s7928_s30 + $0x614] sm:$0xf]  ;;  %v6478_v24 = vor.u32 %v7149_v33, %v6477_v32  ;;  %v3285_v32 = vand.u32 %v6482_v63, %v7926_v34  ;;  %v3276_v33 = vand.u32 %v6470_v0, %v7926_v34  ;;  %v6327_v63 = vld [vmem:[%s7928_s30 + $0x580] sm:$0xf0]  ;;  %v6334_v0 = vor.u32 %v7113_v41, %v6333_v35  ;;  %v7133_v35 = vld [vmem:[%s7928_s30 + $0x62c] sm:$0xf] }
 0x2b2   : > { %9897 = vst [vmem:[#allocation89_spill] sm:$0xff] %v8850_v16  ;;  %v8852_v42 = vpop.f32.mrf.mxu3  ;;  %v8854_v48 = vpop.f32.mrf.mxu0  ;;  %v6485_v41 = vld [vmem:[%s7928_s30 + $0x620] sm:$0xf] }
 0x2b3   : > { %9898 = vst [vmem:[#allocation90_spill] sm:$0xff] %v8852_v42  ;;  %v8856_v57 = vpop.f32.mrf.mxu1  ;;  %3670 = vmatpush.bf16.msra.mxu2 %v6318_v3 }
 0x2b4   : > { %9899 = vst [vmem:[#allocation91_spill] sm:$0xff] %v8854_v48  ;;  %3684 = vmatpush.bf16.msra.mxu3 %v6322_v15  ;;  %3642 = vmatpush.bf16.msra.mxu0 %v6310_v60  ;;  %v6474_v60 = vor.u32 %v7130_v4, %v6471_v23  ;;  %v3282_v48 = vand.u32 %v6478_v24, %v7926_v34  ;;  %v6335_v4 = vld [vmem:[%s7928_s30 + $0x588] sm:$0xf0]  ;;  %v6325_v23 = vld [vmem:[%s7928_s30 + $0x4f0] sm:$0xf] }
 0x2b5   : > { %9900 = vst [vmem:[#allocation92_spill] sm:$0xff] %v8856_v57  ;;  %3656 = vmatpush.bf16.msra.mxu1 %v6314_v37  ;;  %v7094_v24 = vld [vmem:[%s7928_s30 + $0x4f4] sm:$0xf] }
 0x2b6   : > { %v3279_v46 = vand.u32 %v6474_v60, %v7926_v34  ;;  %v6338_v60 = vor.u32 %v7095_v9, %v6335_v4  ;;  %v7150_v9 = vld [vmem:[%s7928_s30 + $0x6ac] sm:$0x10]  ;;  %v6487_v4 = vld [vmem:[%s7928_s30 + $0x6b0] sm:$0x10] }
 0x2b9   : > { %v8866_v3 = vpop.f32.mrf.mxu2 }
 0x2ba   : > { %9901 = vst [vmem:[#allocation93_spill] sm:$0xff] %v8866_v3  ;;  %v8868_v15 = vpop.f32.mrf.mxu3  ;;  %v8870_v37 = vpop.f32.mrf.mxu0  ;;  %v6330_v3 = vor.u32 %v7094_v24, %v6327_v63  ;;  %v6486_v63 = vor.u32 %v7150_v9, %v6485_v41  ;;  %v7097_v41 = vld [vmem:[%s7928_s30 + $0x50c] sm:$0xf] }
 0x2bb   : > { %9902 = vst [vmem:[#allocation94_spill] sm:$0xff] %v8868_v15  ;;  %v8872_v57 = vpop.f32.mrf.mxu1 }
 0x2bc   : > { %9903 = vst [vmem:[#allocation95_spill] sm:$0xff] %v8870_v37  ;;  %v7112_v37 = vld [vmem:[%s7928_s30 + $0x57c] sm:$0xf0] }
 0x2bd   : > { %9904 = vst [vmem:[#allocation96_spill] sm:$0xff] %v8872_v57  ;;  %6519 = vmatmul.msk.bf16.vlgmr.msrb.gmra.mxu0 %vm1165_vm2, %v7964_v11  ;;  %v6326_v57 = vor.u32 %v7112_v37, %v6325_v23  ;;  %v6495_v37 = vld [vmem:[%s7928_s30 + $0x6b8] sm:$0x10] }
 0x2be   : > { %6520 = vmatmul.msk.bf16.vlgmr.msrb.gmra.mxu1 %vm1165_vm2, %v7964_v11  ;;  %6521 = vmatmul.msk.bf16.vlgmr.msrb.gmra.mxu2 %vm1165_vm2, %v7964_v11  ;;  %v6498_v24 = vor.u32 %v7133_v35, %v6495_v37  ;;  %v6349_v35 = vld [vmem:[%s7928_s30 + $0x508] sm:$0xf]  ;;  %v7115_v37 = vld [vmem:[%s7928_s30 + $0x594] sm:$0xf0] }
 0x2bf   : > { %6522 = vmatmul.msk.bf16.vlgmr.msrb.gmra.mxu3 %vm1165_vm2, %v7964_v11  ;;  %3725 = vmatpush.bf16.msrb.mxu2 %v3282_v48 }
 0x2c0   : > { %3739 = vmatpush.bf16.msrb.mxu3 %v3285_v32  ;;  %3697 = vmatpush.bf16.msrb.mxu0 %v3276_v33  ;;  %v6493_v32 = vld [vmem:[%s7928_s30 + $0x628] sm:$0xf]  ;;  %v7151_v33 = vld [vmem:[%s7928_s30 + $0x6b4] sm:$0x10] }
 0x2c1   : > { %v8894_v15 = vpop.f32.mrf.mxu2  ;;  %3711 = vmatpush.bf16.msrb.mxu1 %v3279_v46  ;;  %v7132_v46 = vld [vmem:[%s7928_s30 + $0x624] sm:$0xf]  ;;  %v6494_v23 = vor.u32 %v7151_v33, %v6493_v32  ;;  %v3297_v32 = vand.u32 %v6498_v24, %v7926_v34  ;;  %v3288_v33 = vand.u32 %v6486_v63, %v7926_v34  ;;  %v6343_v24 = vld [vmem:[%s7928_s30 + $0x590] sm:$0xf0]  ;;  %v6350_v63 = vor.u32 %v7115_v37, %v6349_v35  ;;  %v7189_v35 = vld [vmem:[%s7928_s30 + $0x7ec] sm:$0xf] }
 0x2c2   : > { %9905 = vst [vmem:[#allocation97_spill] sm:$0xff] %v8894_v15  ;;  %v8896_v42 = vpop.f32.mrf.mxu3  ;;  %v8898_v16 = vpop.f32.mrf.mxu0  ;;  %v6753_v37 = vld [vmem:[%s7928_s30 + $0x7e0] sm:$0xf] }
 0x2c3   : > { %9906 = vst [vmem:[#allocation98_spill] sm:$0xff] %v8896_v42  ;;  %v8900_v48 = vpop.f32.mrf.mxu1  ;;  %3726 = vmatpush.bf16.msrb.mxu2 %v6334_v0 }
 0x2c4   : > { %9907 = vst [vmem:[#allocation99_spill] sm:$0xff] %v8898_v16  ;;  %3740 = vmatpush.bf16.msrb.mxu3 %v6338_v60  ;;  %3698 = vmatpush.bf16.msrb.mxu0 %v6326_v57  ;;  %v6490_v57 = vor.u32 %v7132_v46, %v6487_v4  ;;  %v3294_v16 = vand.u32 %v6494_v23, %v7926_v34  ;;  %v6351_v46 = vld [vmem:[%s7928_s30 + $0x598] sm:$0xf0]  ;;  %v6341_v4 = vld [vmem:[%s7928_s30 + $0x500] sm:$0xf] }
 0x2c5   : > { %9908 = vst [vmem:[#allocation100_spill] sm:$0xff] %v8900_v48  ;;  %3712 = vmatpush.bf16.msrb.mxu1 %v6330_v3  ;;  %v7096_v23 = vld [vmem:[%s7928_s30 + $0x504] sm:$0xf] }
 0x2c6   : > { %v3291_v9 = vand.u32 %v6490_v57, %v7926_v34  ;;  %v6354_v57 = vor.u32 %v7097_v41, %v6351_v46  ;;  %v7206_v41 = vld [vmem:[%s7928_s30 + $0x86c] sm:$0x10]  ;;  %v6755_v46 = vld [vmem:[%s7928_s30 + $0x870] sm:$0x10] }
 0x2c9   : > { %v8910_v0 = vpop.f32.mrf.mxu2 }
 0x2ca   : > { %9909 = vst [vmem:[#allocation101_spill] sm:$0xff] %v8910_v0  ;;  %v8912_v60 = vpop.f32.mrf.mxu3  ;;  %v8914_v3 = vpop.f32.mrf.mxu0  ;;  %v6346_v0 = vor.u32 %v7096_v23, %v6343_v24  ;;  %v6754_v24 = vor.u32 %v7206_v41, %v6753_v37  ;;  %v7153_v37 = vld [vmem:[%s7928_s30 + $0x6cc] sm:$0xf] }
 0x2cb   : > { %9910 = vst [vmem:[#allocation102_spill] sm:$0xff] %v8912_v60  ;;  %v8916_v48 = vpop.f32.mrf.mxu1 }
 0x2cc   : > { %9911 = vst [vmem:[#allocation103_spill] sm:$0xff] %v8914_v3  ;;  %v7114_v3 = vld [vmem:[%s7928_s30 + $0x58c] sm:$0xf0] }
 0x2cd   : > { %9912 = vst [vmem:[#allocation104_spill] sm:$0xff] %v8916_v48  ;;  %6523 = vmatmul.msk.bf16.vlgmr.msra.gmra.mxu0 %vm1165_vm2, %v7964_v11  ;;  %v6342_v48 = vor.u32 %v7114_v3, %v6341_v4  ;;  %v6763_v3 = vld [vmem:[%s7928_s30 + $0x878] sm:$0x10] }
 0x2ce   : > { %6524 = vmatmul.msk.bf16.vlgmr.msra.gmra.mxu1 %vm1165_vm2, %v7964_v11  ;;  %6525 = vmatmul.msk.bf16.vlgmr.msra.gmra.mxu2 %vm1165_vm2, %v7964_v11  ;;  %v6766_v23 = vor.u32 %v7189_v35, %v6763_v3  ;;  %v6617_v35 = vld [vmem:[%s7928_s30 + $0x6c8] sm:$0xf]  ;;  %v7171_v3 = vld [vmem:[%s7928_s30 + $0x754] sm:$0xf0] }
 0x2cf   : > { %6526 = vmatmul.msk.bf16.vlgmr.msra.gmra.mxu3 %vm1165_vm2, %v7964_v11  ;;  %3781 = vmatpush.bf16.msra.mxu2 %v3294_v16 }
 0x2d0   : > { %3795 = vmatpush.bf16.msra.mxu3 %v3297_v32  ;;  %3753 = vmatpush.bf16.msra.mxu0 %v3288_v33  ;;  %v6761_v32 = vld [vmem:[%s7928_s30 + $0x7e8] sm:$0xf]  ;;  %v7207_v33 = vld [vmem:[%s7928_s30 + $0x874] sm:$0x10] }
 0x2d1   : > { %v8938_v60 = vpop.f32.mrf.mxu2  ;;  %3767 = vmatpush.bf16.msra.mxu1 %v3291_v9  ;;  %v7188_v9 = vld [vmem:[%s7928_s30 + $0x7e4] sm:$0xf]  ;;  %v6762_v4 = vor.u32 %v7207_v33, %v6761_v32  ;;  %v4210_v32 = vand.u32 %v6766_v23, %v7926_v34  ;;  %v4201_v33 = vand.u32 %v6754_v24, %v7926_v34  ;;  %v6611_v23 = vld [vmem:[%s7928_s30 + $0x750] sm:$0xf0]  ;;  %v6618_v24 = vor.u32 %v7171_v3, %v6617_v35  ;;  %v7191_v35 = vld [vmem:[%s7928_s30 + $0x7fc] sm:$0xf] }
 0x2d2   : > { %9913 = vst [vmem:[#allocation105_spill] sm:$0xff] %v8938_v60  ;;  %v8940_v42 = vpop.f32.mrf.mxu3  ;;  %v8942_v15 = vpop.f32.mrf.mxu0  ;;  %v6769_v3 = vld [vmem:[%s7928_s30 + $0x7f0] sm:$0xf] }
 0x2d3   : > { %9914 = vst [vmem:[#allocation106_spill] sm:$0xff] %v8940_v42  ;;  %v8944_v16 = vpop.f32.mrf.mxu1  ;;  %3782 = vmatpush.bf16.msra.mxu2 %v6350_v63 }
 0x2d4   : > { %9915 = vst [vmem:[#allocation107_spill] sm:$0xff] %v8942_v15  ;;  %3796 = vmatpush.bf16.msra.mxu3 %v6354_v57  ;;  %3754 = vmatpush.bf16.msra.mxu0 %v6342_v48  ;;  %v6758_v48 = vor.u32 %v7188_v9, %v6755_v46  ;;  %v4207_v15 = vand.u32 %v6762_v4, %v7926_v34  ;;  %v6619_v9 = vld [vmem:[%s7928_s30 + $0x758] sm:$0xf0]  ;;  %v6609_v46 = vld [vmem:[%s7928_s30 + $0x6c0] sm:$0xf] }
 0x2d5   : > { %9916 = vst [vmem:[#allocation108_spill] sm:$0xff] %v8944_v16  ;;  %3768 = vmatpush.bf16.msra.mxu1 %v6346_v0  ;;  %v7152_v4 = vld [vmem:[%s7928_s30 + $0x6c4] sm:$0xf] }
 0x2d6   : > { %v4204_v41 = vand.u32 %v6758_v48, %v7926_v34  ;;  %v6622_v48 = vor.u32 %v7153_v37, %v6619_v9  ;;  %v7208_v37 = vld [vmem:[%s7928_s30 + $0x87c] sm:$0x10]  ;;  %v6771_v9 = vld [vmem:[%s7928_s30 + $0x880] sm:$0x10] }
 0x2d9   : > { %v8954_v63 = vpop.f32.mrf.mxu2 }
 0x2da   : > { %9917 = vst [vmem:[#allocation109_spill] sm:$0xff] %v8954_v63  ;;  %v8956_v57 = vpop.f32.mrf.mxu3  ;;  %v8958_v0 = vpop.f32.mrf.mxu0  ;;  %v6614_v63 = vor.u32 %v7152_v4, %v6611_v23  ;;  %v6770_v23 = vor.u32 %v7208_v37, %v6769_v3  ;;  %v7173_v3 = vld [vmem:[%s7928_s30 + $0x764] sm:$0xf0]  ;;  %v7155_v37 = vld [vmem:[%s7928_s30 + $0x6dc] sm:$0xf] }
 0x2db   : > { %9918 = vst [vmem:[#allocation110_spill] sm:$0xff] %v8956_v57  ;;  %v8960_v16 = vpop.f32.mrf.mxu1 }
 0x2dc   : > { %9919 = vst [vmem:[#allocation111_spill] sm:$0xff] %v8958_v0  ;;  %v7170_v0 = vld [vmem:[%s7928_s30 + $0x74c] sm:$0xf0] }
 0x2dd   : > { %9920 = vst [vmem:[#allocation112_spill] sm:$0xff] %v8960_v16  ;;  %6527 = vmatmul.msk.bf16.vlgmr.msrb.gmra.mxu0 %vm1165_vm2, %v7964_v11  ;;  %v6610_v16 = vor.u32 %v7170_v0, %v6609_v46  ;;  %v6779_v0 = vld [vmem:[%s7928_s30 + $0x888] sm:$0x10] }
 0x2de   : > { %6528 = vmatmul.msk.bf16.vlgmr.msrb.gmra.mxu1 %vm1165_vm2, %v7964_v11  ;;  %6529 = vmatmul.msk.bf16.vlgmr.msrb.gmra.mxu2 %vm1165_vm2, %v7964_v11  ;;  %v6782_v4 = vor.u32 %v7191_v35, %v6779_v0  ;;  %v4213_v35 = vand.u32 %v6770_v23, %v7926_v34  ;;  %v6633_v0 = vld [vmem:[%s7928_s30 + $0x6d8] sm:$0xf]  ;;  %v6627_v23 = vld [vmem:[%s7928_s30 + $0x760] sm:$0xf0] }
 0x2df   : > { %6530 = vmatmul.msk.bf16.vlgmr.msrb.gmra.mxu3 %vm1165_vm2, %v7964_v11  ;;  %4342 = vmatpush.bf16.msrb.mxu2 %v4207_v15 }
 0x2e0   : > { %4356 = vmatpush.bf16.msrb.mxu3 %v4210_v32  ;;  %4314 = vmatpush.bf16.msrb.mxu0 %v4201_v33  ;;  %v6777_v32 = vld [vmem:[%s7928_s30 + $0x7f8] sm:$0xf]  ;;  %v7209_v33 = vld [vmem:[%s7928_s30 + $0x884] sm:$0x10] }
 0x2e1   : > { %v8982_v57 = vpop.f32.mrf.mxu2  ;;  %4328 = vmatpush.bf16.msrb.mxu1 %v4204_v41  ;;  %v7190_v41 = vld [vmem:[%s7928_s30 + $0x7f4] sm:$0xf]  ;;  %v6778_v46 = vor.u32 %v7209_v33, %v6777_v32  ;;  %v5028_v32 = vld [vmem:[%s9809_s2] sm:$0xff]  ;;  %v4222_v33 = vand.u32 %v6782_v4, %v7926_v34 }
 0x2e2   : > { %9921 = vst [vmem:[#allocation113_spill] sm:$0xff] %v8982_v57  ;;  %v8984_v42 = vpop.f32.mrf.mxu3  ;;  %v8986_v60 = vpop.f32.mrf.mxu0  ;;  %v7154_v4 = vld [vmem:[%s7928_s30 + $0x6d4] sm:$0xf] }
 0x2e3   : > { %9922 = vst [vmem:[#allocation114_spill] sm:$0xff] %v8984_v42  ;;  %v8988_v15 = vpop.f32.mrf.mxu1  ;;  %4343 = vmatpush.bf16.msrb.mxu2 %v6618_v24  ;;  %v6774_v24 = vor.u32 %v7190_v41, %v6771_v9  ;;  %v7280_v41 = vmov 0   ;;  %v6630_v57 = vor.u32 %v7154_v4, %v6627_v23 }
 0x2e4   : > { %9923 = vst [vmem:[#allocation115_spill] sm:$0xff] %v8986_v60  ;;  %4357 = vmatpush.bf16.msrb.mxu3 %v6622_v48  ;;  %4315 = vmatpush.bf16.msrb.mxu0 %v6610_v16 }
 0x2e5   : > { %9924 = vst [vmem:[#allocation116_spill] sm:$0xff] %v8988_v15  ;;  %4329 = vmatpush.bf16.msrb.mxu1 %v6614_v63  ;;  %v4219_v15 = vand.u32 %v6778_v46, %v7926_v34  ;;  %7254 = vset.pattern.permute.xlu0 %v7280_v41  ;;  %v4216_v9 = vand.u32 %v6774_v24, %v7926_v34  ;;  %v6635_v46 = vld [vmem:[%s7928_s30 + $0x768] sm:$0xf0] }
 0x2e6   : > { %5032 = vperm.xlu0 %7254, %v5028_v32   ;;  %v6634_v41 = vor.u32 %v7173_v3, %v6633_v0  ;;  %v6638_v24 = vor.u32 %v7155_v37, %v6635_v46  ;;  %v6795_v0 = vld [vmem:[%s7928_s30 + $0x898] sm:$0x10]  ;;  %v6785_v3 = vld [vmem:[%s7928_s30 + $0x800] sm:$0xf]  ;;  %v7210_v37 = vld [vmem:[%s7928_s30 + $0x88c] sm:$0x10] }
 0x2e7   : > { %v6787_v46 = vld [vmem:[%s7928_s30 + $0x890] sm:$0x10] }
 0x2e9   : > { %v8998_v60 = vpop.f32.mrf.mxu2 }
 0x2ea   : > { %9925 = vst [vmem:[#allocation117_spill] sm:$0xff] %v8998_v60  ;;  %v9000_v16 = vpop.f32.mrf.mxu3  ;;  %v9002_v63 = vpop.f32.mrf.mxu0  ;;  %v7172_v60 = vld [vmem:[%s7928_s30 + $0x75c] sm:$0xf0] }
 0x2eb   : > { %9926 = vst [vmem:[#allocation118_spill] sm:$0xff] %v9000_v16  ;;  %v9004_v48 = vpop.f32.mrf.mxu1  ;;  %v6625_v16 = vld [vmem:[%s7928_s30 + $0x6d0] sm:$0xf] }
 0x2ec   : > { %v6626_v32 = vor.u32 %v7172_v60, %v6625_v16  ;;  %v7193_v60 = vld [vmem:[%s7928_s30 + $0x80c] sm:$0xf]  ;;  %v5029_v16 = vld [vmem:[%s9809_s2 + $0x8] sm:$0x3] }
 0x2ed   : > { %6531 = vmatmul.msk.bf16.vlgmr.msra.gmra.mxu0 %vm1165_vm2, %v7964_v11  ;;  %v6798_v23 = vor.u32 %v7193_v60, %v6795_v0  ;;  %v6649_v60 = vld [vmem:[%s7928_s30 + $0x6e8] sm:$0xf]  ;;  %v7175_v0 = vld [vmem:[%s7928_s30 + $0x774] sm:$0xf0] }
 0x2ee   : > { %6532 = vmatmul.msk.bf16.vlgmr.msra.gmra.mxu1 %vm1165_vm2, %v7964_v11  ;;  %6533 = vmatmul.msk.bf16.vlgmr.msra.gmra.mxu2 %vm1165_vm2, %v7964_v11 }
 0x2ef   : > { %6534 = vmatmul.msk.bf16.vlgmr.msra.gmra.mxu3 %vm1165_vm2, %v7964_v11  ;;  %4398 = vmatpush.bf16.msra.mxu2 %v4219_v15 }
 0x2f0   : > { %4412 = vmatpush.bf16.msra.mxu3 %v4222_v33  ;;  %4370 = vmatpush.bf16.msra.mxu0 %v4213_v35  ;;  %v6793_v33 = vld [vmem:[%s7928_s30 + $0x808] sm:$0xf]  ;;  %v7211_v35 = vld [vmem:[%s7928_s30 + $0x894] sm:$0x10] }
 0x2f1   : > { %v9029_v42 = vpop.f32.mrf.mxu2  ;;  %4384 = vmatpush.bf16.msra.mxu1 %v4216_v9  ;;  %5037 = vperm.xlu0 %7254, %v5029_v16   ;;  %v7192_v9 = vld [vmem:[%s7928_s30 + $0x804] sm:$0xf]  ;;  %v6794_v4 = vor.u32 %v7211_v35, %v6793_v33  ;;  %v4234_v33 = vand.u32 %v6798_v23, %v7926_v34  ;;  %v6643_v23 = vld [vmem:[%s7928_s30 + $0x770] sm:$0xf0] }
 0x2f2   : > { %v9031_v6 = vpop.f32.mrf.mxu3  ;;  %v9033_v59 = vpop.f32.mrf.mxu0 }
 0x2f3   : > { %v9035_v15 = vpop.f32.mrf.mxu1  ;;  %4399 = vmatpush.bf16.msra.mxu2 %v6634_v41  ;;  %v6786_v41 = vor.u32 %v7210_v37, %v6785_v3  ;;  %v4231_v16 = vand.u32 %v6794_v4, %v7926_v34  ;;  %v7157_v3 = vld [vmem:[%s7928_s30 + $0x6ec] sm:$0xf]  ;;  %v7156_v4 = vld [vmem:[%s7928_s30 + $0x6e4] sm:$0xf] }
 0x2f4   : > { %4413 = vmatpush.bf16.msra.mxu3 %v6638_v24  ;;  %4371 = vmatpush.bf16.msra.mxu0 %v6626_v32  ;;  %v6790_v32 = vor.u32 %v7192_v9, %v6787_v46  ;;  %v6651_v9 = vld [vmem:[%s7928_s30 + $0x778] sm:$0xf0]  ;;  %v6641_v46 = vld [vmem:[%s7928_s30 + $0x6e0] sm:$0xf]  ;;  %v6646_v31 = vor.u32 %v7156_v4, %v6643_v23 }
 0x2f5   : > { %4385 = vmatpush.bf16.msra.mxu1 %v6630_v57  ;;  %v4225_v35 = vand.u32 %v6786_v41, %v7926_v34  ;;  %v6650_v41 = vor.u32 %v7175_v0, %v6649_v60  ;;  %v6642_v53 = vor.u32 %v7174_v44, %v6641_v46  ;;  %v7195_v60 = vld [vmem:[%s7928_s30 + $0x81c] sm:$0xf]  ;;  %v6811_v44 = vld [vmem:[%s7928_s30 + $0x8a8] sm:$0x10]  ;;  %v6801_v0 = vld [vmem:[%s7928_s30 + $0x810] sm:$0xf] }
 0x2f6   : > { %v4228_v37 = vand.u32 %v6790_v32, %v7926_v34  ;;  %v6654_v32 = vor.u32 %v7157_v3, %v6651_v9  ;;  %v7212_v3 = vld [vmem:[%s7928_s30 + $0x89c] sm:$0x10]  ;;  %v6803_v9 = vld [vmem:[%s7928_s30 + $0x8a0] sm:$0x10]  ;;  %v6814_v4 = vor.u32 %v7195_v60, %v6811_v44  ;;  %v6665_v60 = vld [vmem:[%s7928_s30 + $0x6f8] sm:$0xf] }
 0x2f7   : > { %v6802_v23 = vor.u32 %v7212_v3, %v6801_v0  ;;  %v7177_v44 = vld [vmem:[%s7928_s30 + $0x784] sm:$0xf0]  ;;  %v7159_v0 = vld [vmem:[%s7928_s30 + $0x6fc] sm:$0xf] }
 0x2f9   : > { %v9048_v24 = vpop.f32.mrf.mxu2 }
 0x2fa   : > { %v9050_v17 = vpop.f32.mrf.mxu3  ;;  %v9052_v57 = vpop.f32.mrf.mxu0 }
 0x2fb   : > { %v9054_v58 = vpop.f32.mrf.mxu1 }
 0x2fd   : > { %6895 = vmatmul.msk.bf16.vlgmr.msrb.gmra.mxu0 %vm1165_vm2, %v7964_v11 }
 0x2fe   : > { %6896 = vmatmul.msk.bf16.vlgmr.msrb.gmra.mxu1 %vm1165_vm2, %v7964_v11  ;;  %6897 = vmatmul.msk.bf16.vlgmr.msrb.gmra.mxu2 %vm1165_vm2, %v7964_v11 }
 0x2ff   : > { %6898 = vmatmul.msk.bf16.vlgmr.msrb.gmra.mxu3 %vm1165_vm2, %v7964_v11  ;;  %4454 = vmatpush.bf16.msrb.mxu2 %v4231_v16 }
 0x300   : > { %4468 = vmatpush.bf16.msrb.mxu3 %v4234_v33  ;;  %4426 = vmatpush.bf16.msrb.mxu0 %v4225_v35  ;;  %v6809_v33 = vld [vmem:[%s7928_s30 + $0x818] sm:$0xf]  ;;  %v7213_v35 = vld [vmem:[%s7928_s30 + $0x8a4] sm:$0x10] }
 0x301   : > { %v9076_v47 = vpop.f32.mrf.mxu2  ;;  %4440 = vmatpush.bf16.msrb.mxu1 %v4228_v37  ;;  %v7194_v37 = vld [vmem:[%s7928_s30 + $0x814] sm:$0xf]  ;;  %v6810_v46 = vor.u32 %v7213_v35, %v6809_v33  ;;  %v4246_v33 = vand.u32 %v6814_v4, %v7926_v34  ;;  %v4237_v35 = vand.u32 %v6802_v23, %v7926_v34  ;;  %v6659_v4 = vld [vmem:[%s7928_s30 + $0x780] sm:$0xf0]  ;;  %v6666_v23 = vor.u32 %v7177_v44, %v6665_v60  ;;  %v7197_v60 = vld [vmem:[%s7928_s30 + $0x82c] sm:$0xf] }
 0x302   : > { %v9078_v7 = vpop.f32.mrf.mxu3  ;;  %v9080_v30 = vpop.f32.mrf.mxu0  ;;  %v6817_v44 = vld [vmem:[%s7928_s30 + $0x820] sm:$0xf] }
 0x303   : > { %v9082_v16 = vpop.f32.mrf.mxu1  ;;  %4455 = vmatpush.bf16.msrb.mxu2 %v6650_v41  ;;  %v4243_v29 = vand.u32 %v6810_v46, %v7926_v34  ;;  %v7158_v46 = vld [vmem:[%s7928_s30 + $0x6f4] sm:$0xf] }
 0x304   : > { %4469 = vmatpush.bf16.msrb.mxu3 %v6654_v32  ;;  %4427 = vmatpush.bf16.msrb.mxu0 %v6642_v53  ;;  %v6806_v53 = vor.u32 %v7194_v37, %v6803_v9  ;;  %v6667_v37 = vld [vmem:[%s7928_s30 + $0x788] sm:$0xf0]  ;;  %v6657_v9 = vld [vmem:[%s7928_s30 + $0x6f0] sm:$0xf] }
 0x305   : > { %4441 = vmatpush.bf16.msrb.mxu1 %v6646_v31 }
 0x306   : > { %v4240_v3 = vand.u32 %v6806_v53, %v7926_v34  ;;  %v6670_v53 = vor.u32 %v7159_v0, %v6667_v37  ;;  %v7214_v0 = vld [vmem:[%s7928_s30 + $0x8ac] sm:$0x10]  ;;  %v6819_v37 = vld [vmem:[%s7928_s30 + $0x8b0] sm:$0x10] }
 0x309   : > { %v9092_v41 = vpop.f32.mrf.mxu2 }
 0x30a   : > { %9927 = vst [vmem:[#allocation119_spill] sm:$0xff] %v9092_v41  ;;  %v9094_v32 = vpop.f32.mrf.mxu3  ;;  %v9096_v31 = vpop.f32.mrf.mxu0  ;;  %v6662_v41 = vor.u32 %v7158_v46, %v6659_v4  ;;  %v6818_v4 = vor.u32 %v7214_v0, %v6817_v44  ;;  %v7161_v44 = vld [vmem:[%s7928_s30 + $0x70c] sm:$0xf] }
 0x30b   : > { %9928 = vst [vmem:[#allocation120_spill] sm:$0xff] %v9094_v32  ;;  %v9098_v50 = vpop.f32.mrf.mxu1 }
 0x30c   : > { %9929 = vst [vmem:[#allocation121_spill] sm:$0xff] %v9096_v31  ;;  %v7176_v31 = vld [vmem:[%s7928_s30 + $0x77c] sm:$0xf0] }
 0x30d   : > { %9930 = vst [vmem:[#allocation122_spill] sm:$0xff] %v9098_v50  ;;  %6899 = vmatmul.msk.bf16.vlgmr.msra.gmra.mxu0 %vm1165_vm2, %v7964_v11  ;;  %v6658_v50 = vor.u32 %v7176_v31, %v6657_v9  ;;  %v6827_v31 = vld [vmem:[%s7928_s30 + $0x8b8] sm:$0x10] }
 0x30e   : > { %6900 = vmatmul.msk.bf16.vlgmr.msra.gmra.mxu1 %vm1165_vm2, %v7964_v11  ;;  %6901 = vmatmul.msk.bf16.vlgmr.msra.gmra.mxu2 %vm1165_vm2, %v7964_v11  ;;  %v6830_v46 = vor.u32 %v7197_v60, %v6827_v31  ;;  %v6681_v60 = vld [vmem:[%s7928_s30 + $0x708] sm:$0xf]  ;;  %v7179_v31 = vld [vmem:[%s7928_s30 + $0x794] sm:$0xf0] }
 0x30f   : > { %6902 = vmatmul.msk.bf16.vlgmr.msra.gmra.mxu3 %vm1165_vm2, %v7964_v11  ;;  %4510 = vmatpush.bf16.msra.mxu2 %v4243_v29 }
 0x310   : > { %4524 = vmatpush.bf16.msra.mxu3 %v4246_v33  ;;  %4482 = vmatpush.bf16.msra.mxu0 %v4237_v35  ;;  %v6825_v33 = vld [vmem:[%s7928_s30 + $0x828] sm:$0xf]  ;;  %v7215_v35 = vld [vmem:[%s7928_s30 + $0x8b4] sm:$0x10] }
 0x311   : > { %v9120_v32 = vpop.f32.mrf.mxu2  ;;  %4496 = vmatpush.bf16.msra.mxu1 %v4240_v3  ;;  %v7196_v3 = vld [vmem:[%s7928_s30 + $0x824] sm:$0xf]  ;;  %v6826_v9 = vor.u32 %v7215_v35, %v6825_v33  ;;  %v4258_v33 = vand.u32 %v6830_v46, %v7926_v34  ;;  %v4249_v35 = vand.u32 %v6818_v4, %v7926_v34  ;;  %v6675_v46 = vld [vmem:[%s7928_s30 + $0x790] sm:$0xf0]  ;;  %v6682_v4 = vor.u32 %v7179_v31, %v6681_v60  ;;  %v7199_v60 = vld [vmem:[%s7928_s30 + $0x83c] sm:$0xf] }
 0x312   : > { %9931 = vst [vmem:[#allocation123_spill] sm:$0xff] %v9120_v32  ;;  %v9122_v61 = vpop.f32.mrf.mxu3  ;;  %v9124_v27 = vpop.f32.mrf.mxu0  ;;  %v6833_v31 = vld [vmem:[%s7928_s30 + $0x830] sm:$0xf] }
 0x313   : > { %9932 = vst [vmem:[#allocation124_spill] sm:$0xff] %v9122_v61  ;;  %v9126_v29 = vpop.f32.mrf.mxu1  ;;  %4511 = vmatpush.bf16.msra.mxu2 %v6666_v23 }
 0x314   : > { %9933 = vst [vmem:[#allocation125_spill] sm:$0xff] %v9124_v27  ;;  %4525 = vmatpush.bf16.msra.mxu3 %v6670_v53  ;;  %4483 = vmatpush.bf16.msra.mxu0 %v6658_v50  ;;  %v6822_v50 = vor.u32 %v7196_v3, %v6819_v37  ;;  %v4255_v27 = vand.u32 %v6826_v9, %v7926_v34  ;;  %v6683_v3 = vld [vmem:[%s7928_s30 + $0x798] sm:$0xf0]  ;;  %v6673_v37 = vld [vmem:[%s7928_s30 + $0x700] sm:$0xf] }
 0x315   : > { %9934 = vst [vmem:[#allocation126_spill] sm:$0xff] %v9126_v29  ;;  %4497 = vmatpush.bf16.msra.mxu1 %v6662_v41  ;;  %v7160_v9 = vld [vmem:[%s7928_s30 + $0x704] sm:$0xf] }
 0x316   : > { %v4252_v0 = vand.u32 %v6822_v50, %v7926_v34  ;;  %v6686_v50 = vor.u32 %v7161_v44, %v6683_v3  ;;  %v7216_v44 = vld [vmem:[%s7928_s30 + $0x8bc] sm:$0x10]  ;;  %v6835_v3 = vld [vmem:[%s7928_s30 + $0x8c0] sm:$0x10] }
 0x319   : > { %v9136_v23 = vpop.f32.mrf.mxu2 }
 0x31a   : > { %9935 = vst [vmem:[#allocation127_spill] sm:$0xff] %v9136_v23  ;;  %v9138_v53 = vpop.f32.mrf.mxu3  ;;  %v9140_v41 = vpop.f32.mrf.mxu0  ;;  %v6678_v23 = vor.u32 %v7160_v9, %v6675_v46  ;;  %v6834_v46 = vor.u32 %v7216_v44, %v6833_v31  ;;  %v7163_v31 = vld [vmem:[%s7928_s30 + $0x71c] sm:$0xf] }
 0x31b   : > { %9936 = vst [vmem:[#allocation128_spill] sm:$0xff] %v9138_v53  ;;  %v9142_v29 = vpop.f32.mrf.mxu1 }
 0x31c   : > { %9937 = vst [vmem:[#allocation129_spill] sm:$0xff] %v9140_v41  ;;  %v7178_v41 = vld [vmem:[%s7928_s30 + $0x78c] sm:$0xf0] }
 0x31d   : > { %9938 = vst [vmem:[#allocation130_spill] sm:$0xff] %v9142_v29  ;;  %6903 = vmatmul.msk.bf16.vlgmr.msrb.gmra.mxu0 %vm1165_vm2, %v7964_v11  ;;  %v6674_v29 = vor.u32 %v7178_v41, %v6673_v37  ;;  %v6843_v41 = vld [vmem:[%s7928_s30 + $0x8c8] sm:$0x10] }
 0x31e   : > { %6904 = vmatmul.msk.bf16.vlgmr.msrb.gmra.mxu1 %vm1165_vm2, %v7964_v11  ;;  %6905 = vmatmul.msk.bf16.vlgmr.msrb.gmra.mxu2 %vm1165_vm2, %v7964_v11  ;;  %v6846_v9 = vor.u32 %v7199_v60, %v6843_v41  ;;  %v6697_v60 = vld [vmem:[%s7928_s30 + $0x718] sm:$0xf]  ;;  %v7181_v41 = vld [vmem:[%s7928_s30 + $0x7a4] sm:$0xf0] }
 0x31f   : > { %6906 = vmatmul.msk.bf16.vlgmr.msrb.gmra.mxu3 %vm1165_vm2, %v7964_v11  ;;  %4566 = vmatpush.bf16.msrb.mxu2 %v4255_v27 }
 0x320   : > { %4580 = vmatpush.bf16.msrb.mxu3 %v4258_v33  ;;  %4538 = vmatpush.bf16.msrb.mxu0 %v4249_v35  ;;  %v6841_v33 = vld [vmem:[%s7928_s30 + $0x838] sm:$0xf]  ;;  %v7217_v35 = vld [vmem:[%s7928_s30 + $0x8c4] sm:$0x10] }
 0x321   : > { %v9164_v53 = vpop.f32.mrf.mxu2  ;;  %4552 = vmatpush.bf16.msrb.mxu1 %v4252_v0  ;;  %v7198_v0 = vld [vmem:[%s7928_s30 + $0x834] sm:$0xf]  ;;  %v6842_v37 = vor.u32 %v7217_v35, %v6841_v33  ;;  %v4270_v33 = vand.u32 %v6846_v9, %v7926_v34  ;;  %v4261_v35 = vand.u32 %v6834_v46, %v7926_v34  ;;  %v6691_v9 = vld [vmem:[%s7928_s30 + $0x7a0] sm:$0xf0]  ;;  %v6698_v46 = vor.u32 %v7181_v41, %v6697_v60  ;;  %v7201_v60 = vld [vmem:[%s7928_s30 + $0x84c] sm:$0xf] }
 0x322   : > { %9939 = vst [vmem:[#allocation131_spill] sm:$0xff] %v9164_v53  ;;  %v9166_v61 = vpop.f32.mrf.mxu3  ;;  %v9168_v32 = vpop.f32.mrf.mxu0  ;;  %v6849_v41 = vld [vmem:[%s7928_s30 + $0x840] sm:$0xf] }
 0x323   : > { %9940 = vst [vmem:[#allocation132_spill] sm:$0xff] %v9166_v61  ;;  %v9170_v27 = vpop.f32.mrf.mxu1  ;;  %4567 = vmatpush.bf16.msrb.mxu2 %v6682_v4 }
 0x324   : > { %9941 = vst [vmem:[#allocation133_spill] sm:$0xff] %v9168_v32  ;;  %4581 = vmatpush.bf16.msrb.mxu3 %v6686_v50  ;;  %4539 = vmatpush.bf16.msrb.mxu0 %v6674_v29  ;;  %v6838_v29 = vor.u32 %v7198_v0, %v6835_v3  ;;  %v4267_v32 = vand.u32 %v6842_v37, %v7926_v34  ;;  %v6699_v0 = vld [vmem:[%s7928_s30 + $0x7a8] sm:$0xf0]  ;;  %v6689_v3 = vld [vmem:[%s7928_s30 + $0x710] sm:$0xf] }
 0x325   : > { %9942 = vst [vmem:[#allocation134_spill] sm:$0xff] %v9170_v27  ;;  %4553 = vmatpush.bf16.msrb.mxu1 %v6678_v23  ;;  %v7162_v37 = vld [vmem:[%s7928_s30 + $0x714] sm:$0xf] }
 0x326   : > { %v4264_v44 = vand.u32 %v6838_v29, %v7926_v34  ;;  %v6702_v29 = vor.u32 %v7163_v31, %v6699_v0  ;;  %v7218_v31 = vld [vmem:[%s7928_s30 + $0x8cc] sm:$0x10]  ;;  %v6851_v0 = vld [vmem:[%s7928_s30 + $0x8d0] sm:$0x10] }
 0x329   : > { %v9180_v4 = vpop.f32.mrf.mxu2 }
 0x32a   : > { %9943 = vst [vmem:[#allocation135_spill] sm:$0xff] %v9180_v4  ;;  %v9182_v50 = vpop.f32.mrf.mxu3  ;;  %v9184_v23 = vpop.f32.mrf.mxu0  ;;  %v6694_v4 = vor.u32 %v7162_v37, %v6691_v9  ;;  %v6850_v9 = vor.u32 %v7218_v31, %v6849_v41  ;;  %v7165_v41 = vld [vmem:[%s7928_s30 + $0x72c] sm:$0xf] }
 0x32b   : > { %9944 = vst [vmem:[#allocation136_spill] sm:$0xff] %v9182_v50  ;;  %v9186_v27 = vpop.f32.mrf.mxu1 }
 0x32c   : > { %9945 = vst [vmem:[#allocation137_spill] sm:$0xff] %v9184_v23  ;;  %v7180_v23 = vld [vmem:[%s7928_s30 + $0x79c] sm:$0xf0] }
 0x32d   : > { %9946 = vst [vmem:[#allocation138_spill] sm:$0xff] %v9186_v27  ;;  %6907 = vmatmul.msk.bf16.vlgmr.msra.gmra.mxu0 %vm1165_vm2, %v7964_v11  ;;  %v6690_v27 = vor.u32 %v7180_v23, %v6689_v3  ;;  %v6859_v23 = vld [vmem:[%s7928_s30 + $0x8d8] sm:$0x10] }
 0x32e   : > { %6908 = vmatmul.msk.bf16.vlgmr.msra.gmra.mxu1 %vm1165_vm2, %v7964_v11  ;;  %6909 = vmatmul.msk.bf16.vlgmr.msra.gmra.mxu2 %vm1165_vm2, %v7964_v11  ;;  %v6862_v37 = vor.u32 %v7201_v60, %v6859_v23  ;;  %v6713_v60 = vld [vmem:[%s7928_s30 + $0x728] sm:$0xf]  ;;  %v7183_v23 = vld [vmem:[%s7928_s30 + $0x7b4] sm:$0xf0] }
 0x32f   : > { %6910 = vmatmul.msk.bf16.vlgmr.msra.gmra.mxu3 %vm1165_vm2, %v7964_v11  ;;  %4622 = vmatpush.bf16.msra.mxu2 %v4267_v32 }
 0x330   : > { %4636 = vmatpush.bf16.msra.mxu3 %v4270_v33  ;;  %4594 = vmatpush.bf16.msra.mxu0 %v4261_v35  ;;  %v6857_v33 = vld [vmem:[%s7928_s30 + $0x848] sm:$0xf]  ;;  %v7219_v35 = vld [vmem:[%s7928_s30 + $0x8d4] sm:$0x10] }
 0x331   : > { %v9208_v50 = vpop.f32.mrf.mxu2  ;;  %4608 = vmatpush.bf16.msra.mxu1 %v4264_v44  ;;  %v7200_v44 = vld [vmem:[%s7928_s30 + $0x844] sm:$0xf]  ;;  %v6858_v3 = vor.u32 %v7219_v35, %v6857_v33  ;;  %v4282_v33 = vand.u32 %v6862_v37, %v7926_v34  ;;  %v4273_v35 = vand.u32 %v6850_v9, %v7926_v34  ;;  %v6707_v37 = vld [vmem:[%s7928_s30 + $0x7b0] sm:$0xf0]  ;;  %v6714_v9 = vor.u32 %v7183_v23, %v6713_v60  ;;  %v7203_v60 = vld [vmem:[%s7928_s30 + $0x85c] sm:$0xf] }
 0x332   : > { %9947 = vst [vmem:[#allocation139_spill] sm:$0xff] %v9208_v50  ;;  %v9210_v61 = vpop.f32.mrf.mxu3  ;;  %v9212_v53 = vpop.f32.mrf.mxu0  ;;  %v6865_v23 = vld [vmem:[%s7928_s30 + $0x850] sm:$0xf] }
 0x333   : > { %9948 = vst [vmem:[#allocation140_spill] sm:$0xff] %v9210_v61  ;;  %v9214_v32 = vpop.f32.mrf.mxu1  ;;  %4623 = vmatpush.bf16.msra.mxu2 %v6698_v46 }
 0x334   : > { %9949 = vst [vmem:[#allocation141_spill] sm:$0xff] %v9212_v53  ;;  %4637 = vmatpush.bf16.msra.mxu3 %v6702_v29  ;;  %4595 = vmatpush.bf16.msra.mxu0 %v6690_v27  ;;  %v6854_v27 = vor.u32 %v7200_v44, %v6851_v0  ;;  %v4279_v53 = vand.u32 %v6858_v3, %v7926_v34  ;;  %v6715_v44 = vld [vmem:[%s7928_s30 + $0x7b8] sm:$0xf0]  ;;  %v6705_v0 = vld [vmem:[%s7928_s30 + $0x720] sm:$0xf] }
 0x335   : > { %9950 = vst [vmem:[#allocation142_spill] sm:$0xff] %v9214_v32  ;;  %4609 = vmatpush.bf16.msra.mxu1 %v6694_v4  ;;  %v7164_v3 = vld [vmem:[%s7928_s30 + $0x724] sm:$0xf] }
 0x336   : > { %v4276_v31 = vand.u32 %v6854_v27, %v7926_v34  ;;  %v6718_v27 = vor.u32 %v7165_v41, %v6715_v44  ;;  %v7220_v41 = vld [vmem:[%s7928_s30 + $0x8dc] sm:$0x10]  ;;  %v6867_v44 = vld [vmem:[%s7928_s30 + $0x8e0] sm:$0x10] }
 0x339   : > { %v9224_v46 = vpop.f32.mrf.mxu2 }
 0x33a   : > { %9951 = vst [vmem:[#allocation143_spill] sm:$0xff] %v9224_v46  ;;  %v9226_v29 = vpop.f32.mrf.mxu3  ;;  %v9228_v4 = vpop.f32.mrf.mxu0  ;;  %v6710_v46 = vor.u32 %v7164_v3, %v6707_v37  ;;  %v6866_v37 = vor.u32 %v7220_v41, %v6865_v23  ;;  %v7167_v23 = vld [vmem:[%s7928_s30 + $0x73c] sm:$0xf] }
 0x33b   : > { %9952 = vst [vmem:[#allocation144_spill] sm:$0xff] %v9226_v29  ;;  %v9230_v32 = vpop.f32.mrf.mxu1 }
 0x33c   : > { %9953 = vst [vmem:[#allocation145_spill] sm:$0xff] %v9228_v4  ;;  %v7182_v4 = vld [vmem:[%s7928_s30 + $0x7ac] sm:$0xf0] }
 0x33d   : > { %9954 = vst [vmem:[#allocation146_spill] sm:$0xff] %v9230_v32  ;;  %6911 = vmatmul.msk.bf16.vlgmr.msrb.gmra.mxu0 %vm1165_vm2, %v7964_v11  ;;  %v6706_v32 = vor.u32 %v7182_v4, %v6705_v0  ;;  %v6875_v4 = vld [vmem:[%s7928_s30 + $0x8e8] sm:$0x10] }
 0x33e   : > { %6912 = vmatmul.msk.bf16.vlgmr.msrb.gmra.mxu1 %vm1165_vm2, %v7964_v11  ;;  %6913 = vmatmul.msk.bf16.vlgmr.msrb.gmra.mxu2 %vm1165_vm2, %v7964_v11  ;;  %v6878_v3 = vor.u32 %v7203_v60, %v6875_v4  ;;  %v6729_v60 = vld [vmem:[%s7928_s30 + $0x738] sm:$0xf]  ;;  %v7185_v4 = vld [vmem:[%s7928_s30 + $0x7c4] sm:$0xf0] }
 0x33f   : > { %6914 = vmatmul.msk.bf16.vlgmr.msrb.gmra.mxu3 %vm1165_vm2, %v7964_v11  ;;  %4678 = vmatpush.bf16.msrb.mxu2 %v4279_v53 }
 0x340   : > { %4692 = vmatpush.bf16.msrb.mxu3 %v4282_v33  ;;  %4650 = vmatpush.bf16.msrb.mxu0 %v4273_v35  ;;  %v6873_v33 = vld [vmem:[%s7928_s30 + $0x858] sm:$0xf]  ;;  %v7221_v35 = vld [vmem:[%s7928_s30 + $0x8e4] sm:$0x10] }
 0x341   : > { %v9252_v29 = vpop.f32.mrf.mxu2  ;;  %4664 = vmatpush.bf16.msrb.mxu1 %v4276_v31  ;;  %v7202_v31 = vld [vmem:[%s7928_s30 + $0x854] sm:$0xf]  ;;  %v6874_v0 = vor.u32 %v7221_v35, %v6873_v33  ;;  %v4294_v33 = vand.u32 %v6878_v3, %v7926_v34  ;;  %v4285_v35 = vand.u32 %v6866_v37, %v7926_v34  ;;  %v6723_v3 = vld [vmem:[%s7928_s30 + $0x7c0] sm:$0xf0]  ;;  %v6730_v37 = vor.u32 %v7185_v4, %v6729_v60  ;;  %v7205_v60 = vld [vmem:[%s7928_s30 + $0x86c] sm:$0xf] }
 0x342   : > { %9955 = vst [vmem:[#allocation147_spill] sm:$0xff] %v9252_v29  ;;  %v9254_v61 = vpop.f32.mrf.mxu3  ;;  %v9256_v50 = vpop.f32.mrf.mxu0  ;;  %v6881_v4 = vld [vmem:[%s7928_s30 + $0x860] sm:$0xf] }
 0x343   : > { %9956 = vst [vmem:[#allocation148_spill] sm:$0xff] %v9254_v61  ;;  %v9258_v53 = vpop.f32.mrf.mxu1  ;;  %4679 = vmatpush.bf16.msrb.mxu2 %v6714_v9 }
 0x344   : > { %9957 = vst [vmem:[#allocation149_spill] sm:$0xff] %v9256_v50  ;;  %4693 = vmatpush.bf16.msrb.mxu3 %v6718_v27  ;;  %4651 = vmatpush.bf16.msrb.mxu0 %v6706_v32  ;;  %v6870_v32 = vor.u32 %v7202_v31, %v6867_v44  ;;  %v4291_v50 = vand.u32 %v6874_v0, %v7926_v34  ;;  %v6731_v31 = vld [vmem:[%s7928_s30 + $0x7c8] sm:$0xf0]  ;;  %v6721_v44 = vld [vmem:[%s7928_s30 + $0x730] sm:$0xf] }
 0x345   : > { %9958 = vst [vmem:[#allocation150_spill] sm:$0xff] %v9258_v53  ;;  %4665 = vmatpush.bf16.msrb.mxu1 %v6710_v46  ;;  %v7166_v0 = vld [vmem:[%s7928_s30 + $0x734] sm:$0xf] }
 0x346   : > { %v4288_v41 = vand.u32 %v6870_v32, %v7926_v34  ;;  %v6734_v32 = vor.u32 %v7167_v23, %v6731_v31  ;;  %v7222_v23 = vld [vmem:[%s7928_s30 + $0x8ec] sm:$0x10]  ;;  %v6883_v31 = vld [vmem:[%s7928_s30 + $0x8f0] sm:$0x10] }
 0x349   : > { %v9268_v9 = vpop.f32.mrf.mxu2 }
 0x34a   : > { %9959 = vst [vmem:[#allocation151_spill] sm:$0xff] %v9268_v9  ;;  %v9270_v27 = vpop.f32.mrf.mxu3  ;;  %v9272_v46 = vpop.f32.mrf.mxu0  ;;  %v6726_v9 = vor.u32 %v7166_v0, %v6723_v3  ;;  %v6882_v3 = vor.u32 %v7222_v23, %v6881_v4  ;;  %v7169_v4 = vld [vmem:[%s7928_s30 + $0x74c] sm:$0xf] }
 0x34b   : > { %9960 = vst [vmem:[#allocation152_spill] sm:$0xff] %v9270_v27  ;;  %v9274_v53 = vpop.f32.mrf.mxu1 }
 0x34c   : > { %9961 = vst [vmem:[#allocation153_spill] sm:$0xff] %v9272_v46  ;;  %v7184_v46 = vld [vmem:[%s7928_s30 + $0x7bc] sm:$0xf0] }
 0x34d   : > { %9962 = vst [vmem:[#allocation154_spill] sm:$0xff] %v9274_v53  ;;  %6915 = vmatmul.msk.bf16.vlgmr.msra.gmra.mxu0 %vm1165_vm2, %v7964_v11  ;;  %v6722_v53 = vor.u32 %v7184_v46, %v6721_v44  ;;  %v6891_v46 = vld [vmem:[%s7928_s30 + $0x8f8] sm:$0x10] }
 0x34e   : > { %6916 = vmatmul.msk.bf16.vlgmr.msra.gmra.mxu1 %vm1165_vm2, %v7964_v11  ;;  %6917 = vmatmul.msk.bf16.vlgmr.msra.gmra.mxu2 %vm1165_vm2, %v7964_v11  ;;  %v6894_v0 = vor.u32 %v7205_v60, %v6891_v46  ;;  %v6745_v60 = vld [vmem:[%s7928_s30 + $0x748] sm:$0xf]  ;;  %v7187_v46 = vld [vmem:[%s7928_s30 + $0x7d4] sm:$0xf0] }
 0x34f   : > { %6918 = vmatmul.msk.bf16.vlgmr.msra.gmra.mxu3 %vm1165_vm2, %v7964_v11  ;;  %4734 = vmatpush.bf16.msra.mxu2 %v4291_v50 }
 0x350   : > { %4748 = vmatpush.bf16.msra.mxu3 %v4294_v33  ;;  %4706 = vmatpush.bf16.msra.mxu0 %v4285_v35  ;;  %v6889_v33 = vld [vmem:[%s7928_s30 + $0x868] sm:$0xf]  ;;  %v7223_v35 = vld [vmem:[%s7928_s30 + $0x8f4] sm:$0x10] }
 0x351   : > { %v9296_v27 = vpop.f32.mrf.mxu2  ;;  %4720 = vmatpush.bf16.msra.mxu1 %v4288_v41  ;;  %v7204_v41 = vld [vmem:[%s7928_s30 + $0x864] sm:$0xf]  ;;  %v6890_v44 = vor.u32 %v7223_v35, %v6889_v33  ;;  %v4306_v33 = vand.u32 %v6894_v0, %v7926_v34  ;;  %v4297_v35 = vand.u32 %v6882_v3, %v7926_v34  ;;  %v6739_v0 = vld [vmem:[%s7928_s30 + $0x7d0] sm:$0xf0]  ;;  %v6746_v3 = vor.u32 %v7187_v46, %v6745_v60 }
 0x352   : > { %9963 = vst [vmem:[#allocation155_spill] sm:$0xff] %v9296_v27  ;;  %v9298_v61 = vpop.f32.mrf.mxu3  ;;  %v9300_v29 = vpop.f32.mrf.mxu0 }
 0x353   : > { %9964 = vst [vmem:[#allocation156_spill] sm:$0xff] %v9298_v61  ;;  %v9302_v50 = vpop.f32.mrf.mxu1  ;;  %4735 = vmatpush.bf16.msra.mxu2 %v6730_v37 }
 0x354   : > { %9965 = vst [vmem:[#allocation157_spill] sm:$0xff] %v9300_v29  ;;  %4749 = vmatpush.bf16.msra.mxu3 %v6734_v32  ;;  %4707 = vmatpush.bf16.msra.mxu0 %v6722_v53  ;;  %v6886_v53 = vor.u32 %v7204_v41, %v6883_v31  ;;  %v4303_v29 = vand.u32 %v6890_v44, %v7926_v34  ;;  %v6747_v41 = vld [vmem:[%s7928_s30 + $0x7d8] sm:$0xf0]  ;;  %v6737_v31 = vld [vmem:[%s7928_s30 + $0x740] sm:$0xf] }
 0x355   : > { %9966 = vst [vmem:[#allocation158_spill] sm:$0xff] %v9302_v50  ;;  %4721 = vmatpush.bf16.msra.mxu1 %v6726_v9  ;;  %v7168_v44 = vld [vmem:[%s7928_s30 + $0x744] sm:$0xf] }
 0x356   : > { %v4300_v23 = vand.u32 %v6886_v53, %v7926_v34 }
 0x359   : > { %v9312_v37 = vpop.f32.mrf.mxu2 }
 0x35a   : > { %9967 = vst [vmem:[#allocation159_spill] sm:$0xff] %v9312_v37  ;;  %v9314_v32 = vpop.f32.mrf.mxu3  ;;  %v9316_v9 = vpop.f32.mrf.mxu0 }
 0x35b   : > { %9968 = vst [vmem:[#allocation160_spill] sm:$0xff] %v9314_v32  ;;  %v9318_v50 = vpop.f32.mrf.mxu1  ;;  %v6742_v32 = vor.u32 %v7168_v44, %v6739_v0  ;;  %v4812_v44 = vmax.f32 %v8210_v18, %v8606_v62 }
 0x35c   : > { %9969 = vst [vmem:[#allocation161_spill] sm:$0xff] %v9316_v9  ;;  %v7186_v9 = vld [vmem:[%s7928_s30 + $0x7cc] sm:$0xf0] }
 0x35d   : > { %9970 = vst [vmem:[#allocation162_spill] sm:$0xff] %v9318_v50  ;;  %6919 = vmatmul.msk.bf16.vlgmr.msrb.gmra.mxu0 %vm1165_vm2, %v7964_v11  ;;  %v6750_v50 = vor.u32 %v7169_v4, %v6747_v41  ;;  %v6738_v34 = vor.u32 %v7186_v9, %v6737_v31 }
 0x35e   : > { %6920 = vmatmul.msk.bf16.vlgmr.msrb.gmra.mxu1 %vm1165_vm2, %v7964_v11  ;;  %6921 = vmatmul.msk.bf16.vlgmr.msrb.gmra.mxu2 %vm1165_vm2, %v7964_v11 }
 0x35f   : > { %6922 = vmatmul.msk.bf16.vlgmr.msrb.gmra.mxu3 %vm1165_vm2, %v7964_v11  ;;  %4790 = vmatpush.bf16.msrb.mxu2 %v4303_v29 }
 0x360   : > { %4804 = vmatpush.bf16.msrb.mxu3 %v4306_v33  ;;  %4762 = vmatpush.bf16.msrb.mxu0 %v4297_v35 }
 0x361   : > { %v9340_v53 = vpop.f32.mrf.mxu2  ;;  %4776 = vmatpush.bf16.msrb.mxu1 %v4300_v23  ;;  %v9374_v23 = vpop.permute.xlu0 %5032 }
 0x362   : > { %v9342_v37 = vpop.f32.mrf.mxu3  ;;  %v9344_v61 = vpop.f32.mrf.mxu0 }
 0x363   : > { %v9346_v27 = vpop.f32.mrf.mxu1  ;;  %4791 = vmatpush.bf16.msrb.mxu2 %v6746_v3 }
 0x364   : > { %4805 = vmatpush.bf16.msrb.mxu3 %v6750_v50  ;;  %4763 = vmatpush.bf16.msrb.mxu0 %v6738_v34  ;;  %v4813_v34 = vmax.f32 %v8212_v19, %v8608_v2 }
 0x365   : > { %4777 = vmatpush.bf16.msrb.mxu1 %v6742_v32 }
 0x369   : > { %v9348_v29 = vpop.f32.mrf.mxu2 }
 0x36a   : > { %v9350_v33 = vpop.f32.mrf.mxu3  ;;  %v9352_v35 = vpop.f32.mrf.mxu0 }
 0x36b   : > { %v9354_v9 = vpop.f32.mrf.mxu1 }
 0x36d   : > { %6923 = vmatmul.msk.bf16.vlgmr.msra.gmra.mxu0 %vm1165_vm2, %v7964_v11 }
 0x36e   : > { %6924 = vmatmul.msk.bf16.vlgmr.msra.gmra.mxu1 %vm1165_vm2, %v7964_v11  ;;  %6925 = vmatmul.msk.bf16.vlgmr.msra.gmra.mxu2 %vm1165_vm2, %v7964_v11 }
 0x36f   : > { %6926 = vmatmul.msk.bf16.vlgmr.msra.gmra.mxu3 %vm1165_vm2, %v7964_v11 }
 0x371   : > { %v9364_v50 = vpop.f32.mrf.mxu2 }
 0x372   : > { %v9366_v32 = vpop.f32.mrf.mxu3  ;;  %v9368_v60 = vpop.f32.mrf.mxu0 }
 0x373   : > { %9971 = vst [vmem:[#allocation163_spill] sm:$0xff] %v9368_v60  ;;  %v9370_v46 = vpop.f32.mrf.mxu1 }
 0x374   : > { %9972 = vst [vmem:[#allocation164_spill] sm:$0xff] %v9370_v46 }
 0x379   : > { %v9372_v4 = vpop.f32.mrf.mxu2 }
 0x37a   : > { %9973 = vst [vmem:[#allocation165_spill] sm:$0xff] %v9372_v4  ;;  %v9376_v41 = vpop.f32.mrf.mxu3  ;;  %v4317_v31 = vpop.f32.mrf.mxu0 }
 0x37b   : > { %v4884_v0 = vmax.f32 %v9002_v63, %v4317_v31  ;;  %v4331_v3 = vpop.f32.mrf.mxu1  ;;  %v4814_v63 = vmax.f32 %v8234_v36, %v8630_v22 }
 0x37c   : > { %v4885_v60 = vmax.f32 %v9004_v48, %v4331_v3 }
 0x37d   : > { %v4956_v46 = vmax.f32 %v4812_v44, %v4884_v0  ;;  %6927 = vmatmul.msk.bf16.vlgmr.msrb.gmra.mxu0 %vm1165_vm2, %v7964_v11  ;;  %v4815_v0 = vmax.f32 %v8236_v38, %v8632_v5 }
 0x37e   : > { %v4957_v4 = vmax.f32 %v4813_v34, %v4885_v60  ;;  %6928 = vmatmul.msk.bf16.vlgmr.msrb.gmra.mxu1 %vm1165_vm2, %v7964_v11  ;;  %6929 = vmatmul.msk.bf16.vlgmr.msrb.gmra.mxu2 %vm1165_vm2, %v7964_v11  ;;  %v4849_v34 = vmax.f32 %v8240_v40, %v8636_v1 }
 0x37f   : > { %6930 = vmatmul.msk.bf16.vlgmr.msrb.gmra.mxu3 %vm1165_vm2, %v7964_v11  ;;  %v5040_v18 = vadd.f32 %v9374_v23, %v4956_v46  ;;  %v4848_v11 = vmax.f32 %v8238_v39, %v8634_v28 }
 0x380   : > { %v5041_v19 = vadd.f32 %v9374_v23, %v4957_v4 }
 0x381   : > { %v5112_v2 = vmax.f32 %v5040_v18, 0.0  ;;  %v4345_v62 = vpop.f32.mrf.mxu2  ;;  %v9408_v18 = vpop.permute.xlu0 %5037 }
 0x382   : > { %v5113_v48 = vmax.f32 %v5041_v19, 0.0  ;;  %v4886_v60 = vmax.f32 %v9029_v42, %v4345_v62  ;;  %v4359_v31 = vpop.f32.mrf.mxu3  ;;  %v4319_v44 = vpop.f32.mrf.mxu0 }
 0x383   : > { %v4887_v46 = vmax.f32 %v9031_v6, %v4359_v31  ;;  %v4920_v4 = vmax.f32 %v9033_v59, %v4319_v44  ;;  %v4333_v3 = vpop.f32.mrf.mxu1 }
 0x384   : > { %v5184_v36 = vpack.c.bf16 %v5113_v48, %v5112_v2  ;;  %v4958_v22 = vmax.f32 %v4814_v63, %v4886_v60  ;;  %v4921_v42 = vmax.f32 %v9035_v15, %v4333_v3  ;;  %v4850_v2 = vmax.f32 %v8250_v52, %v8646_v49 }
 0x385   : > { %v4959_v19 = vmax.f32 %v4815_v0, %v4887_v46  ;;  %v4992_v62 = vmax.f32 %v4848_v11, %v4920_v4  ;;  %v4851_v63 = vmax.f32 %v8252_v54, %v8648_v21  ;;  %v4816_v0 = vmax.f32 %v8254_v55, %v8650_v20 }
 0x386   : > { %5220 = vst [vmem:[%s9410_s12] sm:$0xff] %v5184_v36  ;;  %v5042_v38 = vadd.f32 %v9374_v23, %v4958_v22  ;;  %v4993_v39 = vmax.f32 %v4849_v34, %v4921_v42  ;;  %v4817_v52 = vmax.f32 %v8256_v56, %v8652_v26 }
 0x387   : > { %v5043_v59 = vadd.f32 %v9374_v23, %v4959_v19  ;;  %v5076_v28 = vadd.f32 %v9408_v18, %v4992_v62  ;;  %v4819_v19 = vmax.f32 %v8280_v10, %v8676_v45 }
 0x388   : > { %v5114_v40 = vmax.f32 %v5042_v38, 0.0  ;;  %v5077_v5 = vadd.f32 %v9408_v18, %v4993_v39 }
 0x389   : > { %v5115_v1 = vmax.f32 %v5043_v59, 0.0  ;;  %v5148_v6 = vmax.f32 %v5076_v28, 0.0  ;;  %v4347_v15 = vpop.f32.mrf.mxu2  ;;  %v4852_v28 = vmax.f32 %v8282_v12, %v8678_v14 }
 0x38a   : > { %v5149_v48 = vmax.f32 %v5077_v5, 0.0  ;;  %v4922_v60 = vmax.f32 %v9048_v24, %v4347_v15  ;;  %v4361_v31 = vpop.f32.mrf.mxu3  ;;  %v4373_v44 = vpop.f32.mrf.mxu0 }
 0x38b   : > { %v5185_v11 = vpack.c.bf16 %v5115_v1, %v5114_v40  ;;  %v4923_v46 = vmax.f32 %v9050_v17, %v4361_v31  ;;  %v4888_v4 = vmax.f32 %v9052_v57, %v4373_v44  ;;  %v4387_v3 = vpop.f32.mrf.mxu1  ;;  %v9975_v31 = vld [vmem:[#allocation62_spill] sm:$0xff]  ;;  %v9976_v44 = vld [vmem:[#allocation5_spill] sm:$0xff] }
 0x38c   : > { %v5202_v49 = vpack.c.bf16 %v5149_v48, %v5148_v6  ;;  %v4994_v54 = vmax.f32 %v4850_v2, %v4922_v60  ;;  %v4889_v21 = vmax.f32 %v9054_v58, %v4387_v3  ;;  %v4818_v58 = vmax.f32 %v8278_v8, %v8674_v51  ;;  %v9974_v60 = vld [vmem:[#allocation4_spill] sm:$0xff] }
 0x38d   : > { %5221 = vst [vmem:[%s9410_s12 + $0x8] sm:$0xff] %v5185_v11  ;;  %v4995_v24 = vmax.f32 %v4851_v63, %v4923_v46  ;;  %v4960_v34 = vmax.f32 %v4816_v0, %v4888_v4  ;;  %v4853_v8 = vmax.f32 %v8284_v13, %v8680_v25  ;;  %v4855_v0 = vmax.f32 %v9976_v44, %v9975_v31  ;;  %v9977_v46 = vld [vmem:[#allocation119_spill] sm:$0xff]  ;;  %v9993_v44 = vld [vmem:[#allocation125_spill] sm:$0xff] }
 0x38e   : > { %5238 = vst [vmem:[%s9410_s12 + $0x90] sm:$0x11] %v5202_v49  ;;  %v5078_v36 = vadd.f32 %v9408_v18, %v4994_v54  ;;  %v4961_v55 = vmax.f32 %v4817_v52, %v4889_v21  ;;  %v9978_v49 = vld [vmem:[#allocation63_spill] sm:$0xff]  ;;  %v9979_v54 = vld [vmem:[#allocation6_spill] sm:$0xff] }
 0x38f   : > { %v5079_v20 = vadd.f32 %v9408_v18, %v4995_v24  ;;  %v5044_v17 = vadd.f32 %v9374_v23, %v4960_v34  ;;  %v4820_v21 = vmax.f32 %v9979_v54, %v9978_v49  ;;  %v9980_v34 = vld [vmem:[#allocation120_spill] sm:$0xff]  ;;  %v9996_v54 = vld [vmem:[#allocation126_spill] sm:$0xff] }
 0x390   : > { %v5150_v57 = vmax.f32 %v5078_v36, 0.0  ;;  %v5045_v22 = vadd.f32 %v9374_v23, %v4961_v55  ;;  %v9981_v55 = vld [vmem:[#allocation121_spill] sm:$0xff] }
 0x391   : > { %v5151_v42 = vmax.f32 %v5079_v20, 0.0  ;;  %v5116_v56 = vmax.f32 %v5044_v17, 0.0  ;;  %v4401_v26 = vpop.f32.mrf.mxu2 }
 0x392   : > { %v5117_v62 = vmax.f32 %v5045_v22, 0.0  ;;  %v4890_v38 = vmax.f32 %v9076_v47, %v4401_v26  ;;  %v4415_v39 = vpop.f32.mrf.mxu3  ;;  %v4375_v59 = vpop.f32.mrf.mxu0  ;;  %v9984_v26 = vld [vmem:[#allocation122_spill] sm:$0xff] }
 0x393   : > { %v5203_v40 = vpack.c.bf16 %v5151_v42, %v5150_v57  ;;  %v4891_v5 = vmax.f32 %v9078_v7, %v4415_v39  ;;  %v4924_v1 = vmax.f32 %v9080_v30, %v4375_v59  ;;  %v4389_v6 = vpop.f32.mrf.mxu1  ;;  %v9982_v57 = vld [vmem:[#allocation64_spill] sm:$0xff] }
 0x394   : > { %v5186_v51 = vpack.c.bf16 %v5117_v62, %v5116_v56  ;;  %v4962_v10 = vmax.f32 %v4818_v58, %v4890_v38  ;;  %v4925_v45 = vmax.f32 %v9082_v16, %v4389_v6  ;;  %v4854_v16 = vmax.f32 %v9974_v60, %v8690_v43  ;;  %v9983_v43 = vld [vmem:[#allocation7_spill] sm:$0xff] }
 0x395   : > { %5239 = vst [vmem:[%s9410_s12 + $0x98] sm:$0x11] %v5203_v40  ;;  %v4963_v47 = vmax.f32 %v4819_v19, %v4891_v5  ;;  %v4996_v15 = vmax.f32 %v4852_v28, %v4924_v1  ;;  %v4821_v22 = vmax.f32 %v9983_v43, %v9982_v57 }
 0x396   : > { %5222 = vst [vmem:[%s9410_s12 + $0x10] sm:$0xff] %v5186_v51  ;;  %v5046_v2 = vadd.f32 %v9374_v23, %v4962_v10  ;;  %v4997_v12 = vmax.f32 %v4853_v8, %v4925_v45  ;;  %v9985_v51 = vld [vmem:[#allocation65_spill] sm:$0xff]  ;;  %v9986_v10 = vld [vmem:[#allocation8_spill] sm:$0xff] }
 0x397   : > { %v5047_v14 = vadd.f32 %v9374_v23, %v4963_v47  ;;  %v5080_v7 = vadd.f32 %v9408_v18, %v4996_v15  ;;  %v4822_v45 = vmax.f32 %v9986_v10, %v9985_v51  ;;  %v9987_v47 = vld [vmem:[#allocation66_spill] sm:$0xff]  ;;  %v9988_v15 = vld [vmem:[#allocation9_spill] sm:$0xff] }
 0x398   : > { %v5118_v30 = vmax.f32 %v5046_v2, 0.0  ;;  %v5081_v63 = vadd.f32 %v9408_v18, %v4997_v12  ;;  %v4823_v2 = vmax.f32 %v9988_v15, %v9987_v47  ;;  %v10005_v15 = vld [vmem:[#allocation129_spill] sm:$0xff] }
 0x399   : > { %v5119_v48 = vmax.f32 %v5047_v14, 0.0  ;;  %v5152_v13 = vmax.f32 %v5080_v7, 0.0  ;;  %v4403_v25 = vpop.f32.mrf.mxu2  ;;  %v9989_v14 = vld [vmem:[#allocation123_spill] sm:$0xff] }
 0x39a   : > { %v5153_v11 = vmax.f32 %v5081_v63, 0.0  ;;  %v4926_v4 = vmax.f32 %v9977_v46, %v4403_v25  ;;  %v4417_v3 = vpop.f32.mrf.mxu3  ;;  %v4429_v52 = vpop.f32.mrf.mxu0  ;;  %v9994_v46 = vld [vmem:[#allocation68_spill] sm:$0xff] }
 0x39b   : > { %v5187_v24 = vpack.c.bf16 %v5119_v48, %v5118_v30  ;;  %v4927_v36 = vmax.f32 %v9980_v34, %v4417_v3  ;;  %v4892_v20 = vmax.f32 %v9981_v55, %v4429_v52  ;;  %v4443_v17 = vpop.f32.mrf.mxu1  ;;  %v9990_v48 = vld [vmem:[#allocation67_spill] sm:$0xff] }
 0x39c   : > { %v5204_v42 = vpack.c.bf16 %v5153_v11, %v5152_v13  ;;  %v4998_v56 = vmax.f32 %v4854_v16, %v4926_v4  ;;  %v4893_v58 = vmax.f32 %v9984_v26, %v4443_v17  ;;  %v9991_v13 = vld [vmem:[#allocation10_spill] sm:$0xff]  ;;  %v9992_v16 = vld [vmem:[#allocation124_spill] sm:$0xff]  ;;  %v9995_v4 = vld [vmem:[#allocation11_spill] sm:$0xff] }
 0x39d   : > { %5223 = vst [vmem:[%s9410_s12 + $0x18] sm:$0xff] %v5187_v24  ;;  %v4999_v19 = vmax.f32 %v4855_v0, %v4927_v36  ;;  %v4964_v62 = vmax.f32 %v4820_v21, %v4892_v20  ;;  %v4856_v25 = vmax.f32 %v9991_v13, %v9990_v48  ;;  %v4857_v3 = vmax.f32 %v9995_v4, %v9994_v46  ;;  %v9997_v26 = vld [vmem:[#allocation69_spill] sm:$0xff]  ;;  %v10008_v13 = vld [vmem:[#allocation130_spill] sm:$0xff] }
 0x39e   : > { %5240 = vst [vmem:[%s9410_s12 + $0xa0] sm:$0x11] %v5204_v42  ;;  %v5082_v38 = vadd.f32 %v9408_v18, %v4998_v56  ;;  %v4965_v39 = vmax.f32 %v4821_v22, %v4893_v58  ;;  %v9998_v58 = vld [vmem:[#allocation12_spill] sm:$0xff] }
 0x39f   : > { %v5083_v59 = vadd.f32 %v9408_v18, %v4999_v19  ;;  %v5048_v28 = vadd.f32 %v9374_v23, %v4964_v62  ;;  %v4858_v19 = vmax.f32 %v9998_v58, %v9997_v26  ;;  %v9999_v62 = vld [vmem:[#allocation70_spill] sm:$0xff] }
 0x3a0   : > { %v5154_v40 = vmax.f32 %v5082_v38, 0.0  ;;  %v5049_v5 = vadd.f32 %v9374_v23, %v4965_v39  ;;  %v10000_v38 = vld [vmem:[#allocation13_spill] sm:$0xff] }
 0x3a1   : > { %v5155_v1 = vmax.f32 %v5083_v59, 0.0  ;;  %v5120_v6 = vmax.f32 %v5048_v28, 0.0  ;;  %v4457_v8 = vpop.f32.mrf.mxu2  ;;  %v4859_v39 = vmax.f32 %v10000_v38, %v9999_v62  ;;  %v10001_v28 = vld [vmem:[#allocation127_spill] sm:$0xff]  ;;  %v10017_v38 = vld [vmem:[#allocation133_spill] sm:$0xff] }
 0x3a2   : > { %v5121_v12 = vmax.f32 %v5049_v5, 0.0  ;;  %v4894_v7 = vmax.f32 %v9989_v14, %v4457_v8  ;;  %v4471_v30 = vpop.f32.mrf.mxu3  ;;  %v4431_v63 = vpop.f32.mrf.mxu0  ;;  %v10003_v8 = vld [vmem:[#allocation14_spill] sm:$0xff]  ;;  %v10006_v14 = vld [vmem:[#allocation72_spill] sm:$0xff] }
 0x3a3   : > { %v5205_v60 = vpack.c.bf16 %v5155_v1, %v5154_v40  ;;  %v4895_v31 = vmax.f32 %v9992_v16, %v4471_v30  ;;  %v4928_v0 = vmax.f32 %v9993_v44, %v4431_v63  ;;  %v4445_v11 = vpop.f32.mrf.mxu1 }
 0x3a4   : > { %v5188_v52 = vpack.c.bf16 %v5121_v12, %v5120_v6  ;;  %v4966_v49 = vmax.f32 %v4822_v45, %v4894_v7  ;;  %v4929_v21 = vmax.f32 %v9996_v54, %v4445_v11  ;;  %v10002_v6 = vld [vmem:[#allocation71_spill] sm:$0xff]  ;;  %v10004_v45 = vld [vmem:[#allocation128_spill] sm:$0xff]  ;;  %v10009_v54 = vld [vmem:[#allocation73_spill] sm:$0xff] }
 0x3a5   : > { %5241 = vst [vmem:[%s9410_s12 + $0xa8] sm:$0x11] %v5205_v60  ;;  %v4967_v24 = vmax.f32 %v4823_v2, %v4895_v31  ;;  %v5000_v34 = vmax.f32 %v4856_v25, %v4928_v0  ;;  %v4824_v51 = vmax.f32 %v10003_v8, %v10002_v6  ;;  %v10007_v7 = vld [vmem:[#allocation15_spill] sm:$0xff]  ;;  %v10020_v8 = vld [vmem:[#allocation134_spill] sm:$0xff] }
 0x3a6   : > { %5224 = vst [vmem:[%s9410_s12 + $0x20] sm:$0xff] %v5188_v52  ;;  %v5050_v36 = vadd.f32 %v9374_v23, %v4966_v49  ;;  %v5001_v55 = vmax.f32 %v4857_v3, %v4929_v21  ;;  %v4825_v30 = vmax.f32 %v10007_v7, %v10006_v14  ;;  %v10010_v21 = vld [vmem:[#allocation16_spill] sm:$0xff] }
 0x3a7   : > { %v5051_v20 = vadd.f32 %v9374_v23, %v4967_v24  ;;  %v5084_v17 = vadd.f32 %v9408_v18, %v5000_v34  ;;  %v4826_v24 = vmax.f32 %v10010_v21, %v10009_v54  ;;  %v10011_v34 = vld [vmem:[#allocation74_spill] sm:$0xff] }
 0x3a8   : > { %v5122_v57 = vmax.f32 %v5050_v36, 0.0  ;;  %v5085_v43 = vadd.f32 %v9408_v18, %v5001_v55  ;;  %v10012_v36 = vld [vmem:[#allocation17_spill] sm:$0xff] }
 0x3a9   : > { %v5123_v22 = vmax.f32 %v5051_v20, 0.0  ;;  %v5156_v42 = vmax.f32 %v5084_v17, 0.0  ;;  %v4459_v56 = vpop.f32.mrf.mxu2  ;;  %v4827_v55 = vmax.f32 %v10012_v36, %v10011_v34  ;;  %v10013_v17 = vld [vmem:[#allocation131_spill] sm:$0xff]  ;;  %v10029_v36 = vld [vmem:[#allocation137_spill] sm:$0xff] }
 0x3aa   : > { %v5157_v59 = vmax.f32 %v5085_v43, 0.0  ;;  %v4930_v40 = vmax.f32 %v10001_v28, %v4459_v56  ;;  %v4473_v5 = vpop.f32.mrf.mxu3  ;;  %v4485_v1 = vpop.f32.mrf.mxu0  ;;  %v10015_v56 = vld [vmem:[#allocation18_spill] sm:$0xff]  ;;  %v10018_v28 = vld [vmem:[#allocation76_spill] sm:$0xff] }
 0x3ab   : > { %v5189_v10 = vpack.c.bf16 %v5123_v22, %v5122_v57  ;;  %v4931_v47 = vmax.f32 %v10004_v45, %v4473_v5  ;;  %v4896_v2 = vmax.f32 %v10005_v15, %v4485_v1  ;;  %v4499_v12 = vpop.f32.mrf.mxu1 }
 0x3ac   : > { %v5206_v63 = vpack.c.bf16 %v5157_v59, %v5156_v42  ;;  %v5002_v48 = vmax.f32 %v4858_v19, %v4930_v40  ;;  %v4897_v25 = vmax.f32 %v10008_v13, %v4499_v12  ;;  %v10014_v42 = vld [vmem:[#allocation75_spill] sm:$0xff]  ;;  %v10016_v19 = vld [vmem:[#allocation132_spill] sm:$0xff]  ;;  %v10021_v13 = vld [vmem:[#allocation77_spill] sm:$0xff] }
 0x3ad   : > { %5225 = vst [vmem:[%s9410_s12 + $0x28] sm:$0xff] %v5189_v10  ;;  %v5003_v60 = vmax.f32 %v4859_v39, %v4931_v47  ;;  %v4968_v16 = vmax.f32 %v4824_v51, %v4896_v2  ;;  %v4860_v26 = vmax.f32 %v10015_v56, %v10014_v42  ;;  %v10019_v40 = vld [vmem:[#allocation19_spill] sm:$0xff]  ;;  %v10032_v56 = vld [vmem:[#allocation138_spill] sm:$0xff] }
 0x3ae   : > { %5242 = vst [vmem:[%s9410_s12 + $0xb0] sm:$0x11] %v5206_v63  ;;  %v5086_v31 = vadd.f32 %v9408_v18, %v5002_v48  ;;  %v4969_v44 = vmax.f32 %v4825_v30, %v4897_v25  ;;  %v4861_v5 = vmax.f32 %v10019_v40, %v10018_v28  ;;  %v10022_v25 = vld [vmem:[#allocation20_spill] sm:$0xff] }
 0x3af   : > { %v5087_v0 = vadd.f32 %v9408_v18, %v5003_v60  ;;  %v5052_v11 = vadd.f32 %v9374_v23, %v4968_v16  ;;  %v4862_v60 = vmax.f32 %v10022_v25, %v10021_v13  ;;  %v10023_v16 = vld [vmem:[#allocation78_spill] sm:$0xff] }
 0x3b0   : > { %v5158_v46 = vmax.f32 %v5086_v31, 0.0  ;;  %v5053_v4 = vadd.f32 %v9374_v23, %v4969_v44  ;;  %v10024_v31 = vld [vmem:[#allocation21_spill] sm:$0xff] }
 0x3b1   : > { %v5159_v3 = vmax.f32 %v5087_v0, 0.0  ;;  %v5124_v52 = vmax.f32 %v5052_v11, 0.0  ;;  %v4513_v49 = vpop.f32.mrf.mxu2  ;;  %v4863_v44 = vmax.f32 %v10024_v31, %v10023_v16  ;;  %v10025_v11 = vld [vmem:[#allocation135_spill] sm:$0xff]  ;;  %v10041_v31 = vld [vmem:[#allocation141_spill] sm:$0xff] }
 0x3b2   : > { %v5125_v20 = vmax.f32 %v5053_v4, 0.0  ;;  %v4898_v57 = vmax.f32 %v10013_v17, %v4513_v49  ;;  %v4527_v43 = vpop.f32.mrf.mxu3  ;;  %v4487_v22 = vpop.f32.mrf.mxu0  ;;  %v10027_v49 = vld [vmem:[#allocation22_spill] sm:$0xff]  ;;  %v10030_v17 = vld [vmem:[#allocation80_spill] sm:$0xff] }
 0x3b3   : > { %v5207_v58 = vpack.c.bf16 %v5159_v3, %v5158_v46  ;;  %v4899_v62 = vmax.f32 %v10016_v19, %v4527_v43  ;;  %v4932_v39 = vmax.f32 %v10017_v38, %v4487_v22  ;;  %v4501_v59 = vpop.f32.mrf.mxu1 }
 0x3b4   : > { %v5190_v1 = vpack.c.bf16 %v5125_v20, %v5124_v52  ;;  %v4970_v6 = vmax.f32 %v4826_v24, %v4898_v57  ;;  %v4933_v51 = vmax.f32 %v10020_v8, %v4501_v59  ;;  %v10026_v52 = vld [vmem:[#allocation79_spill] sm:$0xff]  ;;  %v10028_v24 = vld [vmem:[#allocation136_spill] sm:$0xff]  ;;  %v10033_v8 = vld [vmem:[#allocation81_spill] sm:$0xff] }
 0x3b5   : > { %5243 = vst [vmem:[%s9410_s12 + $0xb8] sm:$0x11] %v5207_v58  ;;  %v4971_v10 = vmax.f32 %v4827_v55, %v4899_v62  ;;  %v5004_v45 = vmax.f32 %v4860_v26, %v4932_v39  ;;  %v4828_v54 = vmax.f32 %v10027_v49, %v10026_v52  ;;  %v10031_v57 = vld [vmem:[#allocation23_spill] sm:$0xff]  ;;  %v10044_v49 = vld [vmem:[#allocation142_spill] sm:$0xff] }
 0x3b6   : > { %5226 = vst [vmem:[%s9410_s12 + $0x30] sm:$0xff] %v5190_v1  ;;  %v5054_v47 = vadd.f32 %v9374_v23, %v4970_v6  ;;  %v5005_v15 = vmax.f32 %v4861_v5, %v4933_v51  ;;  %v4829_v43 = vmax.f32 %v10031_v57, %v10030_v17  ;;  %v10034_v51 = vld [vmem:[#allocation24_spill] sm:$0xff] }
 0x3b7   : > { %v5055_v2 = vadd.f32 %v9374_v23, %v4971_v10  ;;  %v5088_v12 = vadd.f32 %v9408_v18, %v5004_v45  ;;  %v4830_v10 = vmax.f32 %v10034_v51, %v10033_v8  ;;  %v10035_v45 = vld [vmem:[#allocation82_spill] sm:$0xff] }
 0x3b8   : > { %v5126_v14 = vmax.f32 %v5054_v47, 0.0  ;;  %v5089_v7 = vadd.f32 %v9408_v18, %v5005_v15  ;;  %v10036_v47 = vld [vmem:[#allocation25_spill] sm:$0xff] }
 0x3b9   : > { %v5127_v30 = vmax.f32 %v5055_v2, 0.0  ;;  %v5160_v63 = vmax.f32 %v5088_v12, 0.0  ;;  %v4515_v48 = vpop.f32.mrf.mxu2  ;;  %v4831_v15 = vmax.f32 %v10036_v47, %v10035_v45  ;;  %v10037_v12 = vld [vmem:[#allocation139_spill] sm:$0xff]  ;;  %v10053_v47 = vld [vmem:[#allocation145_spill] sm:$0xff] }
 0x3ba   : > { %v5161_v0 = vmax.f32 %v5089_v7, 0.0  ;;  %v4934_v46 = vmax.f32 %v10025_v11, %v4515_v48  ;;  %v4529_v4 = vpop.f32.mrf.mxu3  ;;  %v4541_v3 = vpop.f32.mrf.mxu0  ;;  %v10039_v48 = vld [vmem:[#allocation26_spill] sm:$0xff]  ;;  %v10042_v11 = vld [vmem:[#allocation84_spill] sm:$0xff] }
 0x3bb   : > { %v5191_v21 = vpack.c.bf16 %v5127_v30, %v5126_v14  ;;  %v4935_v34 = vmax.f32 %v10028_v24, %v4529_v4  ;;  %v4900_v55 = vmax.f32 %v10029_v36, %v4541_v3  ;;  %v4555_v20 = vpop.f32.mrf.mxu1 }
 0x3bc   : > { %v5208_v22 = vpack.c.bf16 %v5161_v0, %v5160_v63  ;;  %v5006_v42 = vmax.f32 %v4862_v60, %v4934_v46  ;;  %v4901_v26 = vmax.f32 %v10032_v56, %v4555_v20  ;;  %v10038_v63 = vld [vmem:[#allocation83_spill] sm:$0xff]  ;;  %v10040_v60 = vld [vmem:[#allocation140_spill] sm:$0xff]  ;;  %v10045_v56 = vld [vmem:[#allocation85_spill] sm:$0xff] }
 0x3bd   : > { %5227 = vst [vmem:[%s9410_s12 + $0x38] sm:$0xff] %v5191_v21  ;;  %v5007_v58 = vmax.f32 %v4863_v44, %v4935_v34  ;;  %v4972_v19 = vmax.f32 %v4828_v54, %v4900_v55  ;;  %v4864_v13 = vmax.f32 %v10039_v48, %v10038_v63  ;;  %v10043_v46 = vld [vmem:[#allocation27_spill] sm:$0xff]  ;;  %v10056_v48 = vld [vmem:[#allocation146_spill] sm:$0xff] }
 0x3be   : > { %5244 = vst [vmem:[%s9410_s12 + $0xc0] sm:$0x11] %v5208_v22  ;;  %v5090_v62 = vadd.f32 %v9408_v18, %v5006_v42  ;;  %v4973_v38 = vmax.f32 %v4829_v43, %v4901_v26  ;;  %v4865_v4 = vmax.f32 %v10043_v46, %v10042_v11  ;;  %v10046_v26 = vld [vmem:[#allocation28_spill] sm:$0xff] }
 0x3bf   : > { %v5091_v39 = vadd.f32 %v9408_v18, %v5007_v58  ;;  %v5056_v59 = vadd.f32 %v9374_v23, %v4972_v19  ;;  %v4866_v58 = vmax.f32 %v10046_v26, %v10045_v56  ;;  %v10047_v19 = vld [vmem:[#allocation86_spill] sm:$0xff] }
 0x3c0   : > { %v5162_v28 = vmax.f32 %v5090_v62, 0.0  ;;  %v5057_v40 = vadd.f32 %v9374_v23, %v4973_v38  ;;  %v10048_v62 = vld [vmem:[#allocation29_spill] sm:$0xff] }
 0x3c1   : > { %v5163_v5 = vmax.f32 %v5091_v39, 0.0  ;;  %v5128_v1 = vmax.f32 %v5056_v59, 0.0  ;;  %v4569_v6 = vpop.f32.mrf.mxu2  ;;  %v4867_v38 = vmax.f32 %v10048_v62, %v10047_v19  ;;  %v10049_v59 = vld [vmem:[#allocation143_spill] sm:$0xff]  ;;  %v10065_v62 = vld [vmem:[#allocation149_spill] sm:$0xff] }
 0x3c2   : > { %v5129_v2 = vmax.f32 %v5057_v40, 0.0  ;;  %v4902_v14 = vmax.f32 %v10037_v12, %v4569_v6  ;;  %v4583_v7 = vpop.f32.mrf.mxu3  ;;  %v4543_v30 = vpop.f32.mrf.mxu0  ;;  %v10051_v6 = vld [vmem:[#allocation30_spill] sm:$0xff]  ;;  %v10054_v12 = vld [vmem:[#allocation88_spill] sm:$0xff] }
 0x3c3   : > { %v5209_v25 = vpack.c.bf16 %v5163_v5, %v5162_v28  ;;  %v4903_v16 = vmax.f32 %v10040_v60, %v4583_v7  ;;  %v4936_v44 = vmax.f32 %v10041_v31, %v4543_v30  ;;  %v4557_v0 = vpop.f32.mrf.mxu1 }
 0x3c4   : > { %v5192_v3 = vpack.c.bf16 %v5129_v2, %v5128_v1  ;;  %v4974_v52 = vmax.f32 %v4830_v10, %v4902_v14  ;;  %v4937_v54 = vmax.f32 %v10044_v49, %v4557_v0  ;;  %v10050_v1 = vld [vmem:[#allocation87_spill] sm:$0xff]  ;;  %v10052_v10 = vld [vmem:[#allocation144_spill] sm:$0xff]  ;;  %v10057_v49 = vld [vmem:[#allocation89_spill] sm:$0xff] }
 0x3c5   : > { %5245 = vst [vmem:[%s9410_s12 + $0xc8] sm:$0x11] %v5209_v25  ;;  %v4975_v21 = vmax.f32 %v4831_v15, %v4903_v16  ;;  %v5008_v24 = vmax.f32 %v4864_v13, %v4936_v44  ;;  %v4832_v8 = vmax.f32 %v10051_v6, %v10050_v1  ;;  %v10055_v14 = vld [vmem:[#allocation31_spill] sm:$0xff]  ;;  %v10068_v6 = vld [vmem:[#allocation150_spill] sm:$0xff] }
 0x3c6   : > { %5228 = vst [vmem:[%s9410_s12 + $0x40] sm:$0xff] %v5192_v3  ;;  %v5058_v34 = vadd.f32 %v9374_v23, %v4974_v52  ;;  %v5009_v36 = vmax.f32 %v4865_v4, %v4937_v54  ;;  %v4833_v7 = vmax.f32 %v10055_v14, %v10054_v12  ;;  %v10058_v54 = vld [vmem:[#allocation32_spill] sm:$0xff] }
 0x3c7   : > { %v5059_v55 = vadd.f32 %v9374_v23, %v4975_v21  ;;  %v5092_v20 = vadd.f32 %v9408_v18, %v5008_v24  ;;  %v4834_v21 = vmax.f32 %v10058_v54, %v10057_v49  ;;  %v10059_v24 = vld [vmem:[#allocation90_spill] sm:$0xff] }
 0x3c8   : > { %v5130_v17 = vmax.f32 %v5058_v34, 0.0  ;;  %v5093_v57 = vadd.f32 %v9408_v18, %v5009_v36  ;;  %v10060_v34 = vld [vmem:[#allocation33_spill] sm:$0xff] }
 0x3c9   : > { %v5131_v43 = vmax.f32 %v5059_v55, 0.0  ;;  %v5164_v22 = vmax.f32 %v5092_v20, 0.0  ;;  %v4571_v42 = vpop.f32.mrf.mxu2  ;;  %v4835_v36 = vmax.f32 %v10060_v34, %v10059_v24  ;;  %v10061_v20 = vld [vmem:[#allocation147_spill] sm:$0xff]  ;;  %v10077_v34 = vld [vmem:[#allocation153_spill] sm:$0xff] }
 0x3ca   : > { %v5165_v39 = vmax.f32 %v5093_v57, 0.0  ;;  %v4938_v28 = vmax.f32 %v10049_v59, %v4571_v42  ;;  %v4585_v40 = vpop.f32.mrf.mxu3  ;;  %v4597_v5 = vpop.f32.mrf.mxu0  ;;  %v10063_v42 = vld [vmem:[#allocation34_spill] sm:$0xff]  ;;  %v10066_v59 = vld [vmem:[#allocation92_spill] sm:$0xff] }
 0x3cb   : > { %v5193_v51 = vpack.c.bf16 %v5131_v43, %v5130_v17  ;;  %v4939_v45 = vmax.f32 %v10052_v10, %v4585_v40  ;;  %v4904_v15 = vmax.f32 %v10053_v47, %v4597_v5  ;;  %v4611_v2 = vpop.f32.mrf.mxu1 }
 0x3cc   : > { %v5210_v30 = vpack.c.bf16 %v5165_v39, %v5164_v22  ;;  %v5010_v63 = vmax.f32 %v4866_v58, %v4938_v28  ;;  %v4905_v13 = vmax.f32 %v10056_v48, %v4611_v2  ;;  %v10062_v22 = vld [vmem:[#allocation91_spill] sm:$0xff]  ;;  %v10064_v58 = vld [vmem:[#allocation148_spill] sm:$0xff]  ;;  %v10069_v48 = vld [vmem:[#allocation93_spill] sm:$0xff] }
 0x3cd   : > { %5229 = vst [vmem:[%s9410_s12 + $0x48] sm:$0xff] %v5193_v51  ;;  %v5011_v25 = vmax.f32 %v4867_v38, %v4939_v45  ;;  %v4976_v60 = vmax.f32 %v4832_v8, %v4904_v15  ;;  %v4868_v56 = vmax.f32 %v10063_v42, %v10062_v22  ;;  %v10067_v28 = vld [vmem:[#allocation35_spill] sm:$0xff]  ;;  %v10080_v42 = vld [vmem:[#allocation154_spill] sm:$0xff] }
 0x3ce   : > { %5246 = vst [vmem:[%s9410_s12 + $0xd0] sm:$0x11] %v5210_v30  ;;  %v5094_v16 = vadd.f32 %v9408_v18, %v5010_v63  ;;  %v4977_v31 = vmax.f32 %v4833_v7, %v4905_v13  ;;  %v4869_v40 = vmax.f32 %v10067_v28, %v10066_v59  ;;  %v10070_v13 = vld [vmem:[#allocation36_spill] sm:$0xff] }
 0x3cf   : > { %v5095_v44 = vadd.f32 %v9408_v18, %v5011_v25  ;;  %v5060_v0 = vadd.f32 %v9374_v23, %v4976_v60  ;;  %v4870_v25 = vmax.f32 %v10070_v13, %v10069_v48  ;;  %v10071_v60 = vld [vmem:[#allocation94_spill] sm:$0xff] }
 0x3d0   : > { %v5166_v11 = vmax.f32 %v5094_v16, 0.0  ;;  %v5061_v46 = vadd.f32 %v9374_v23, %v4977_v31  ;;  %v10072_v16 = vld [vmem:[#allocation37_spill] sm:$0xff] }
 0x3d1   : > { %v5167_v4 = vmax.f32 %v5095_v44, 0.0  ;;  %v5132_v3 = vmax.f32 %v5060_v0, 0.0  ;;  %v4625_v52 = vpop.f32.mrf.mxu2  ;;  %v4871_v31 = vmax.f32 %v10072_v16, %v10071_v60  ;;  %v10073_v0 = vld [vmem:[#allocation151_spill] sm:$0xff]  ;;  %v10089_v16 = vld [vmem:[#allocation157_spill] sm:$0xff] }
 0x3d2   : > { %v5133_v55 = vmax.f32 %v5061_v46, 0.0  ;;  %v4906_v17 = vmax.f32 %v10061_v20, %v4625_v52  ;;  %v4639_v57 = vpop.f32.mrf.mxu3  ;;  %v4599_v43 = vpop.f32.mrf.mxu0  ;;  %v10075_v52 = vld [vmem:[#allocation38_spill] sm:$0xff]  ;;  %v10078_v20 = vld [vmem:[#allocation96_spill] sm:$0xff] }
 0x3d3   : > { %v5211_v26 = vpack.c.bf16 %v5167_v4, %v5166_v11  ;;  %v4907_v19 = vmax.f32 %v10064_v58, %v4639_v57  ;;  %v4940_v38 = vmax.f32 %v10065_v62, %v4599_v43  ;;  %v4613_v39 = vpop.f32.mrf.mxu1 }
 0x3d4   : > { %v5194_v5 = vpack.c.bf16 %v5133_v55, %v5132_v3  ;;  %v4978_v1 = vmax.f32 %v4834_v21, %v4906_v17  ;;  %v4941_v8 = vmax.f32 %v10068_v6, %v4613_v39  ;;  %v10074_v3 = vld [vmem:[#allocation95_spill] sm:$0xff]  ;;  %v10076_v21 = vld [vmem:[#allocation152_spill] sm:$0xff]  ;;  %v10081_v6 = vld [vmem:[#allocation97_spill] sm:$0xff] }
 0x3d5   : > { %5247 = vst [vmem:[%s9410_s12 + $0xd8] sm:$0x11] %v5211_v26  ;;  %v4979_v51 = vmax.f32 %v4835_v36, %v4907_v19  ;;  %v5012_v10 = vmax.f32 %v4868_v56, %v4940_v38  ;;  %v4836_v49 = vmax.f32 %v10075_v52, %v10074_v3  ;;  %v10079_v17 = vld [vmem:[#allocation39_spill] sm:$0xff]  ;;  %v10092_v52 = vld [vmem:[#allocation158_spill] sm:$0xff] }
 0x3d6   : > { %5230 = vst [vmem:[%s9410_s12 + $0x50] sm:$0xff] %v5194_v5  ;;  %v5062_v45 = vadd.f32 %v9374_v23, %v4978_v1  ;;  %v5013_v47 = vmax.f32 %v4869_v40, %v4941_v8  ;;  %v4837_v57 = vmax.f32 %v10079_v17, %v10078_v20  ;;  %v10082_v8 = vld [vmem:[#allocation40_spill] sm:$0xff] }
 0x3d7   : > { %v5063_v15 = vadd.f32 %v9374_v23, %v4979_v51  ;;  %v5096_v2 = vadd.f32 %v9408_v18, %v5012_v10  ;;  %v4838_v51 = vmax.f32 %v10082_v8, %v10081_v6  ;;  %v10083_v10 = vld [vmem:[#allocation98_spill] sm:$0xff] }
 0x3d8   : > { %v5134_v12 = vmax.f32 %v5062_v45, 0.0  ;;  %v5097_v14 = vadd.f32 %v9408_v18, %v5013_v47  ;;  %v10084_v45 = vld [vmem:[#allocation41_spill] sm:$0xff] }
 0x3d9   : > { %v5135_v7 = vmax.f32 %v5063_v15, 0.0  ;;  %v5168_v30 = vmax.f32 %v5096_v2, 0.0  ;;  %v4627_v63 = vpop.f32.mrf.mxu2  ;;  %v4839_v47 = vmax.f32 %v10084_v45, %v10083_v10  ;;  %v10085_v2 = vld [vmem:[#allocation155_spill] sm:$0xff]  ;;  %v10101_v45 = vld [vmem:[#allocation161_spill] sm:$0xff] }
 0x3da   : > { %v5169_v44 = vmax.f32 %v5097_v14, 0.0  ;;  %v4942_v11 = vmax.f32 %v10073_v0, %v4627_v63  ;;  %v4641_v46 = vpop.f32.mrf.mxu3  ;;  %v4653_v4 = vpop.f32.mrf.mxu0  ;;  %v10087_v63 = vld [vmem:[#allocation42_spill] sm:$0xff]  ;;  %v10090_v0 = vld [vmem:[#allocation100_spill] sm:$0xff] }
 0x3db   : > { %v5195_v54 = vpack.c.bf16 %v5135_v7, %v5134_v12  ;;  %v4943_v24 = vmax.f32 %v10076_v21, %v4641_v46  ;;  %v4908_v36 = vmax.f32 %v10077_v34, %v4653_v4  ;;  %v4667_v55 = vpop.f32.mrf.mxu1 }
 0x3dc   : > { %v5212_v43 = vpack.c.bf16 %v5169_v44, %v5168_v30  ;;  %v5014_v22 = vmax.f32 %v4870_v25, %v4942_v11  ;;  %v4909_v56 = vmax.f32 %v10080_v42, %v4667_v55  ;;  %v10086_v30 = vld [vmem:[#allocation99_spill] sm:$0xff]  ;;  %v10088_v25 = vld [vmem:[#allocation156_spill] sm:$0xff]  ;;  %v10093_v42 = vld [vmem:[#allocation101_spill] sm:$0xff] }
 0x3dd   : > { %5231 = vst [vmem:[%s9410_s12 + $0x58] sm:$0xff] %v5195_v54  ;;  %v5015_v26 = vmax.f32 %v4871_v31, %v4943_v24  ;;  %v4980_v58 = vmax.f32 %v4836_v49, %v4908_v36  ;;  %v4872_v48 = vmax.f32 %v10087_v63, %v10086_v30  ;;  %v10091_v11 = vld [vmem:[#allocation43_spill] sm:$0xff]  ;;  %v10104_v63 = vld [vmem:[#allocation162_spill] sm:$0xff] }
 0x3de   : > { %5248 = vst [vmem:[%s9410_s12 + $0xe0] sm:$0x11] %v5212_v43  ;;  %v5098_v19 = vadd.f32 %v9408_v18, %v5014_v22  ;;  %v4981_v62 = vmax.f32 %v4837_v57, %v4909_v56  ;;  %v4873_v46 = vmax.f32 %v10091_v11, %v10090_v0  ;;  %v10094_v56 = vld [vmem:[#allocation44_spill] sm:$0xff] }
 0x3df   : > { %v5099_v38 = vadd.f32 %v9408_v18, %v5015_v26  ;;  %v5064_v39 = vadd.f32 %v9374_v23, %v4980_v58  ;;  %v4874_v26 = vmax.f32 %v10094_v56, %v10093_v42  ;;  %v10095_v58 = vld [vmem:[#allocation102_spill] sm:$0xff] }
 0x3e0   : > { %v5170_v59 = vmax.f32 %v5098_v19, 0.0  ;;  %v5065_v28 = vadd.f32 %v9374_v23, %v4981_v62  ;;  %v10096_v19 = vld [vmem:[#allocation45_spill] sm:$0xff] }
 0x3e1   : > { %v5171_v40 = vmax.f32 %v5099_v38, 0.0  ;;  %v5136_v5 = vmax.f32 %v5064_v39, 0.0  ;;  %v4681_v1 = vpop.f32.mrf.mxu2  ;;  %v4875_v62 = vmax.f32 %v10096_v19, %v10095_v58  ;;  %v10097_v39 = vld [vmem:[#allocation159_spill] sm:$0xff]  ;;  %v10111_v19 = vld [vmem:[#allocation108_spill] sm:$0xff] }
 0x3e2   : > { %v5137_v15 = vmax.f32 %v5065_v28, 0.0  ;;  %v4910_v12 = vmax.f32 %v10085_v2, %v4681_v1  ;;  %v4695_v14 = vpop.f32.mrf.mxu3  ;;  %v4655_v7 = vpop.f32.mrf.mxu0  ;;  %v10099_v1 = vld [vmem:[#allocation46_spill] sm:$0xff]  ;;  %v10102_v2 = vld [vmem:[#allocation104_spill] sm:$0xff] }
 0x3e3   : > { %v5213_v13 = vpack.c.bf16 %v5171_v40, %v5170_v59  ;;  %v4911_v60 = vmax.f32 %v10088_v25, %v4695_v14  ;;  %v4944_v31 = vmax.f32 %v10089_v16, %v4655_v7  ;;  %v4669_v44 = vpop.f32.mrf.mxu1 }
 0x3e4   : > { %v5196_v4 = vpack.c.bf16 %v5137_v15, %v5136_v5  ;;  %v4982_v3 = vmax.f32 %v4838_v51, %v4910_v12  ;;  %v4945_v49 = vmax.f32 %v10092_v52, %v4669_v44  ;;  %v10098_v5 = vld [vmem:[#allocation103_spill] sm:$0xff]  ;;  %v10100_v51 = vld [vmem:[#allocation160_spill] sm:$0xff]  ;;  %v10105_v52 = vld [vmem:[#allocation105_spill] sm:$0xff] }
 0x3e5   : > { %5249 = vst [vmem:[%s9410_s12 + $0xe8] sm:$0x11] %v5213_v13  ;;  %v4983_v54 = vmax.f32 %v4839_v47, %v4911_v60  ;;  %v5016_v21 = vmax.f32 %v4872_v48, %v4944_v31  ;;  %v4840_v6 = vmax.f32 %v10099_v1, %v10098_v5  ;;  %v10103_v12 = vld [vmem:[#allocation47_spill] sm:$0xff] }
 0x3e6   : > { %5232 = vst [vmem:[%s9410_s12 + $0x60] sm:$0xff] %v5196_v4  ;;  %v5066_v24 = vadd.f32 %v9374_v23, %v4982_v3  ;;  %v5017_v34 = vmax.f32 %v4873_v46, %v4945_v49  ;;  %v4841_v14 = vmax.f32 %v10103_v12, %v10102_v2  ;;  %v10106_v49 = vld [vmem:[#allocation48_spill] sm:$0xff]  ;;  %v10115_v2 = vld [vmem:[#allocation110_spill] sm:$0xff]  ;;  %v10116_v12 = vld [vmem:[#allocation53_spill] sm:$0xff] }
 0x3e7   : > { %v5067_v36 = vadd.f32 %v9374_v23, %v4983_v54  ;;  %v5100_v55 = vadd.f32 %v9408_v18, %v5016_v21  ;;  %v4842_v54 = vmax.f32 %v10106_v49, %v10105_v52  ;;  %v10107_v21 = vld [vmem:[#allocation106_spill] sm:$0xff] }
 0x3e8   : > { %v5138_v20 = vmax.f32 %v5066_v24, 0.0  ;;  %v5101_v17 = vadd.f32 %v9408_v18, %v5017_v34  ;;  %v10108_v24 = vld [vmem:[#allocation49_spill] sm:$0xff] }
 0x3e9   : > { %v5139_v57 = vmax.f32 %v5067_v36, 0.0  ;;  %v5172_v43 = vmax.f32 %v5100_v55, 0.0  ;;  %v4683_v22 = vpop.f32.mrf.mxu2  ;;  %v4843_v34 = vmax.f32 %v10108_v24, %v10107_v21 }
 0x3ea   : > { %v5173_v38 = vmax.f32 %v5101_v17, 0.0  ;;  %v4946_v59 = vmax.f32 %v10097_v39, %v4683_v22  ;;  %v4697_v28 = vpop.f32.mrf.mxu3  ;;  %v4709_v40 = vpop.f32.mrf.mxu0 }
 0x3eb   : > { %v5197_v8 = vpack.c.bf16 %v5139_v57, %v5138_v20  ;;  %v4947_v10 = vmax.f32 %v10100_v51, %v4697_v28  ;;  %v4912_v47 = vmax.f32 %v10101_v45, %v4709_v40  ;;  %v4723_v15 = vpop.f32.mrf.mxu1  ;;  %v10109_v57 = vld [vmem:[#allocation107_spill] sm:$0xff] }
 0x3ec   : > { %v5214_v7 = vpack.c.bf16 %v5173_v38, %v5172_v43  ;;  %v5018_v30 = vmax.f32 %v4874_v26, %v4946_v59  ;;  %v4913_v48 = vmax.f32 %v10104_v63, %v4723_v15  ;;  %v10110_v43 = vld [vmem:[#allocation50_spill] sm:$0xff]  ;;  %v10114_v15 = vld [vmem:[#allocation52_spill] sm:$0xff] }
 0x3ed   : > { %5233 = vst [vmem:[%s9410_s12 + $0x68] sm:$0xff] %v5197_v8  ;;  %v5019_v13 = vmax.f32 %v4875_v62, %v4947_v10  ;;  %v4984_v25 = vmax.f32 %v4840_v6, %v4912_v47  ;;  %v4876_v22 = vmax.f32 %v10110_v43, %v10109_v57  ;;  %v10112_v62 = vld [vmem:[#allocation51_spill] sm:$0xff]  ;;  %v10113_v47 = vld [vmem:[#allocation109_spill] sm:$0xff]  ;;  %v10122_v43 = vld [vmem:[#allocation56_spill] sm:$0xff] }
 0x3ee   : > { %5250 = vst [vmem:[%s9410_s12 + $0xf0] sm:$0x11] %v5214_v7  ;;  %v5102_v60 = vadd.f32 %v9408_v18, %v5018_v30  ;;  %v4985_v16 = vmax.f32 %v4841_v14, %v4913_v48  ;;  %v4877_v38 = vmax.f32 %v10112_v62, %v10111_v19  ;;  %v4879_v14 = vmax.f32 %v10116_v12, %v10115_v2  ;;  %v10121_v57 = vld [vmem:[#allocation113_spill] sm:$0xff] }
 0x3ef   : > { %v5103_v31 = vadd.f32 %v9408_v18, %v5019_v13  ;;  %v5068_v44 = vadd.f32 %v9374_v23, %v4984_v25  ;;  %v10117_v13 = vld [vmem:[#allocation111_spill] sm:$0xff]  ;;  %v10118_v25 = vld [vmem:[#allocation54_spill] sm:$0xff] }
 0x3f0   : > { %v5174_v0 = vmax.f32 %v5102_v60, 0.0  ;;  %v5069_v11 = vadd.f32 %v9374_v23, %v4985_v16  ;;  %v4844_v60 = vmax.f32 %v10118_v25, %v10117_v13  ;;  %v10132_v13 = vld [vmem:[#allocation60_spill] sm:$0xff] }
 0x3f1   : > { %v5175_v46 = vmax.f32 %v5103_v31, 0.0  ;;  %v5140_v4 = vmax.f32 %v5068_v44, 0.0  ;;  %v4737_v3 = vpop.f32.mrf.mxu2 }
 0x3f2   : > { %v5141_v36 = vmax.f32 %v5069_v11, 0.0  ;;  %v4914_v55 = vmax.f32 %v9340_v53, %v4737_v3  ;;  %v4751_v20 = vpop.f32.mrf.mxu3  ;;  %v4711_v17 = vpop.f32.mrf.mxu0  ;;  %v10119_v11 = vld [vmem:[#allocation112_spill] sm:$0xff] }
 0x3f3   : > { %v5215_v42 = vpack.c.bf16 %v5175_v46, %v5174_v0  ;;  %v4915_v56 = vmax.f32 %v9342_v37, %v4751_v20  ;;  %v4948_v26 = vmax.f32 %v9344_v61, %v4711_v17  ;;  %v4725_v58 = vpop.f32.mrf.mxu1  ;;  %v10120_v46 = vld [vmem:[#allocation55_spill] sm:$0xff] }
 0x3f4   : > { %v5198_v39 = vpack.c.bf16 %v5141_v36, %v5140_v4  ;;  %v4986_v59 = vmax.f32 %v4842_v54, %v4914_v55  ;;  %v4949_v28 = vmax.f32 %v9346_v27, %v4725_v58  ;;  %v4878_v27 = vmax.f32 %v10114_v15, %v10113_v47 }
 0x3f5   : > { %5251 = vst [vmem:[%s9410_s12 + $0xf8] sm:$0x11] %v5215_v42  ;;  %v4987_v53 = vmax.f32 %v4843_v34, %v4915_v56  ;;  %v5020_v40 = vmax.f32 %v4876_v22, %v4948_v26  ;;  %v4845_v4 = vmax.f32 %v10120_v46, %v10119_v11  ;;  %v10123_v22 = vld [vmem:[#allocation114_spill] sm:$0xff]  ;;  %v10124_v42 = vld [vmem:[#allocation57_spill] sm:$0xff] }
 0x3f6   : > { %5234 = vst [vmem:[%s9410_s12 + $0x70] sm:$0xff] %v5198_v39  ;;  %v5070_v5 = vadd.f32 %v9374_v23, %v4986_v59  ;;  %v5021_v1 = vmax.f32 %v4877_v38, %v4949_v28  ;;  %v4847_v56 = vmax.f32 %v10124_v42, %v10123_v22  ;;  %v10125_v38 = vld [vmem:[#allocation115_spill] sm:$0xff]  ;;  %v10126_v39 = vld [vmem:[#allocation58_spill] sm:$0xff]  ;;  %v5302_v42 = vld [vmem:[%s9410_s12 + $0x60] sm:$0xff] (%p7331_p5) }
 0x3f7   : > { %v5071_v6 = vadd.f32 %v9374_v23, %v4987_v53  ;;  %v5104_v37 = vadd.f32 %v9408_v18, %v5020_v40  ;;  %v4880_v59 = vmax.f32 %v10126_v39, %v10125_v38  ;;  %v10127_v40 = vld [vmem:[#allocation163_spill] sm:$0xff]  ;;  %5303 = vst [vmem:[%s9725_s20 + $0x60] sm:$0xff] (%p7331_p5), %v5302_v42  ;;  %v5314_v38 = vld [vmem:[%s9410_s12 + $0x90] sm:$0xff] (%p7331_p5) }
 0x3f8   : > { %v5142_v61 = vmax.f32 %v5070_v5, 0.0  ;;  %v5105_v8 = vadd.f32 %v9408_v18, %v5021_v1  ;;  %v5300_v22 = vld [vmem:[%s9410_s12 + $0x58] sm:$0xff] (%p7331_p5)  ;;  %5315 = vst [vmem:[%s9725_s20 + $0x120] sm:$0xff] (%p7331_p5), %v5314_v38 }
 0x3f9   : > { %v5143_v51 = vmax.f32 %v5071_v6, 0.0  ;;  %v5176_v10 = vmax.f32 %v5104_v37, 0.0  ;;  %v4739_v45 = vpop.f32.mrf.mxu2  ;;  %v10128_v6 = vld [vmem:[#allocation116_spill] sm:$0xff]  ;;  %v10129_v37 = vld [vmem:[#allocation59_spill] sm:$0xff]  ;;  %5301 = vst [vmem:[%s9725_s20 + $0x58] sm:$0xff] (%p7331_p5), %v5300_v22 }
 0x3fa   : > { %v5177_v7 = vmax.f32 %v5105_v8, 0.0  ;;  %v4950_v30 = vmax.f32 %v9348_v29, %v4739_v45  ;;  %v4753_v63 = vpop.f32.mrf.mxu3  ;;  %v4765_v48 = vpop.f32.mrf.mxu0  ;;  %v5316_v39 = vld [vmem:[%s9410_s12 + $0x98] sm:$0xff] (%p7331_p5) }
 0x3fb   : > { %v5199_v16 = vpack.c.bf16 %v5143_v51, %v5142_v61  ;;  %v4951_v31 = vmax.f32 %v9350_v33, %v4753_v63  ;;  %v4916_v44 = vmax.f32 %v9352_v35, %v4765_v48  ;;  %v4779_v0 = vpop.f32.mrf.mxu1  ;;  %v4881_v61 = vmax.f32 %v10129_v37, %v10128_v6  ;;  %v10131_v48 = vld [vmem:[#allocation117_spill] sm:$0xff]  ;;  %5317 = vst [vmem:[%s9725_s20 + $0x128] sm:$0xff] (%p7331_p5), %v5316_v39  ;;  %v5330_v6 = vld [vmem:[%s9410_s12 + $0xd0] sm:$0xff] (%p7331_p5)  ;;  %v5332_v37 = vld [vmem:[%s9410_s12 + $0xd8] sm:$0xff] (%p7331_p5) }
 0x3fc   : > { %v5216_v3 = vpack.c.bf16 %v5177_v7, %v5176_v10  ;;  %v5022_v52 = vmax.f32 %v4878_v27, %v4950_v30  ;;  %v4917_v49 = vmax.f32 %v9354_v9, %v4779_v0  ;;  %v4846_v9 = vmax.f32 %v10122_v43, %v10121_v57  ;;  %v10130_v10 = vld [vmem:[#allocation164_spill] sm:$0xff]  ;;  %v10134_v0 = vld [vmem:[#allocation118_spill] sm:$0xff]  ;;  %v5296_v43 = vld [vmem:[%s9410_s12 + $0x48] sm:$0xff] (%p7331_p5)  ;;  %5331 = vst [vmem:[%s9725_s20 + $0x160] sm:$0xff] (%p7331_p5), %v5330_v6 }
 0x3fd   : > { %5235 = vst [vmem:[%s9410_s12 + $0x78] sm:$0xff] %v5199_v16  ;;  %v5023_v29 = vmax.f32 %v4879_v14, %v4951_v31  ;;  %v4988_v54 = vmax.f32 %v4844_v60, %v4916_v44  ;;  %v4882_v25 = vmax.f32 %v10132_v13, %v10131_v48  ;;  %v10133_v16 = vld [vmem:[#allocation165_spill] sm:$0xff]  ;;  %v5294_v57 = vld [vmem:[%s9410_s12 + $0x40] sm:$0xff] (%p7331_p5) }
 0x3fe   : > { %5252 = vst [vmem:[%s9410_s12 + $0x100] sm:$0x11] %v5216_v3  ;;  %v5106_v21 = vadd.f32 %v9408_v18, %v5022_v52  ;;  %v4989_v24 = vmax.f32 %v4845_v4, %v4917_v49 }
 0x3ff   : > { %v5107_v34 = vadd.f32 %v9408_v18, %v5023_v29  ;;  %v5072_v33 = vadd.f32 %v9374_v23, %v4988_v54  ;;  %5295 = vst [vmem:[%s9725_s20 + $0x40] sm:$0xff] (%p7331_p5), %v5294_v57 }
 0x400   : > { %v5178_v35 = vmax.f32 %v5106_v21, 0.0  ;;  %v5073_v36 = vadd.f32 %v9374_v23, %v4989_v24  ;;  %5297 = vst [vmem:[%s9725_s20 + $0x48] sm:$0xff] (%p7331_p5), %v5296_v43 }
 0x401   : > { %v5179_v55 = vmax.f32 %v5107_v34, 0.0  ;;  %v5144_v20 = vmax.f32 %v5072_v33, 0.0  ;;  %v4793_v17 = vpop.f32.mrf.mxu2  ;;  %v5282_v33 = vld [vmem:[%s9410_s12 + $0x10] sm:$0xff] (%p7331_p5)  ;;  %5333 = vst [vmem:[%s9725_s20 + $0x168] sm:$0xff] (%p7331_p5), %v5332_v37 }
 0x402   : > { %v5145_v26 = vmax.f32 %v5073_v36, 0.0  ;;  %v4918_v58 = vmax.f32 %v9364_v50, %v4793_v17  ;;  %v4807_v19 = vpop.f32.mrf.mxu3  ;;  %v4767_v62 = vpop.f32.mrf.mxu0  ;;  %v5286_v36 = vld [vmem:[%s9410_s12 + $0x20] sm:$0xff] (%p7331_p5)  ;;  %5283 = vst [vmem:[%s9725_s20 + $0x10] sm:$0xff] (%p7331_p5), %v5282_v33  ;;  %v5292_v17 = vld [vmem:[%s9410_s12 + $0x38] sm:$0xff] (%p7331_p5) }
 0x403   : > { %v5217_v28 = vpack.c.bf16 %v5179_v55, %v5178_v35  ;;  %v4919_v53 = vmax.f32 %v9366_v32, %v4807_v19  ;;  %v4952_v5 = vmax.f32 %v10127_v40, %v4767_v62  ;;  %v4781_v1 = vpop.f32.mrf.mxu1  ;;  %v5284_v35 = vld [vmem:[%s9410_s12 + $0x18] sm:$0xff] (%p7331_p5)  ;;  %v5288_v55 = vld [vmem:[%s9410_s12 + $0x28] sm:$0xff] (%p7331_p5)  ;;  %5287 = vst [vmem:[%s9725_s20 + $0x20] sm:$0xff] (%p7331_p5), %v5286_v36 }
 0x404   : > { %v5200_v8 = vpack.c.bf16 %v5145_v26, %v5144_v20  ;;  %v4990_v51 = vmax.f32 %v4846_v9, %v4918_v58  ;;  %v4953_v45 = vmax.f32 %v10130_v10, %v4781_v1  ;;  %5285 = vst [vmem:[%s9725_s20 + $0x18] sm:$0xff] (%p7331_p5), %v5284_v35  ;;  %v5290_v20 = vld [vmem:[%s9410_s12 + $0x30] sm:$0xff] (%p7331_p5)  ;;  %v5308_v58 = vld [vmem:[%s9410_s12 + $0x78] sm:$0xff] (%p7331_p5)  ;;  %v5328_v1 = vld [vmem:[%s9410_s12 + $0xc8] sm:$0xff] (%p7331_p5) }
 0x405   : > { %5253 = vst [vmem:[%s9410_s12 + $0x108] sm:$0x11] %v5217_v28  ;;  %v4991_v50 = vmax.f32 %v4847_v56, %v4919_v53  ;;  %v5024_v47 = vmax.f32 %v4880_v59, %v4952_v5  ;;  %v5298_v9 = vld [vmem:[%s9410_s12 + $0x50] sm:$0xff] (%p7331_p5)  ;;  %v5304_v56 = vld [vmem:[%s9410_s12 + $0x68] sm:$0xff] (%p7331_p5)  ;;  %v5318_v59 = vld [vmem:[%s9410_s12 + $0xa0] sm:$0xff] (%p7331_p5) }
 0x406   : > { %5236 = vst [vmem:[%s9410_s12 + $0x80] sm:$0xff] %v5200_v8  ;;  %v5074_v15 = vadd.f32 %v9374_v23, %v4990_v51  ;;  %v5025_v27 = vmax.f32 %v4881_v61, %v4953_v45  ;;  %v5306_v26 = vld [vmem:[%s9410_s12 + $0x70] sm:$0xff] (%p7331_p5)  ;;  %v5320_v28 = vld [vmem:[%s9410_s12 + $0xa8] sm:$0xff] (%p7331_p5)  ;;  %v5324_v40 = vld [vmem:[%s9410_s12 + $0xb8] sm:$0xff] (%p7331_p5) }
 0x407   : > { %v5075_v2 = vadd.f32 %v9374_v23, %v4991_v50  ;;  %v5108_v32 = vadd.f32 %v9408_v18, %v5024_v47  ;;  %v10135_v23 = vld [vmem:[#allocation61_spill] sm:$0xff]  ;;  %5289 = vst [vmem:[%s9725_s20 + $0x28] sm:$0xff] (%p7331_p5), %v5288_v55  ;;  %v5322_v53 = vld [vmem:[%s9410_s12 + $0xb0] sm:$0xff] (%p7331_p5)  ;;  %v5326_v5 = vld [vmem:[%s9410_s12 + $0xc0] sm:$0xff] (%p7331_p5) }
 0x408   : > { %v5146_v12 = vmax.f32 %v5074_v15, 0.0  ;;  %v5109_v14 = vadd.f32 %v9408_v18, %v5025_v27  ;;  %v4883_v11 = vmax.f32 %v10135_v23, %v10134_v0  ;;  %5291 = vst [vmem:[%s9725_s20 + $0x30] sm:$0xff] (%p7331_p5), %v5290_v20  ;;  %v5334_v61 = vld [vmem:[%s9410_s12 + $0xe0] sm:$0xff] (%p7331_p5)  ;;  %v5336_v8 = vld [vmem:[%s9410_s12 + $0xe8] sm:$0xff] (%p7331_p5)  ;;  %v5338_v51 = vld [vmem:[%s9410_s12 + $0xf0] sm:$0xff] (%p7331_p5) }
 0x409   : > { %v5147_v7 = vmax.f32 %v5075_v2, 0.0  ;;  %v5180_v30 = vmax.f32 %v5108_v32, 0.0  ;;  %v4795_v63 = vpop.f32.mrf.mxu2  ;;  %5293 = vst [vmem:[%s9725_s20 + $0x38] sm:$0xff] (%p7331_p5), %v5292_v17  ;;  %v5340_v10 = vld [vmem:[%s9410_s12 + $0xf8] sm:$0xff] (%p7331_p5)  ;;  %v5342_v45 = vld [vmem:[%s9410_s12 + $0x100] sm:$0xff] (%p7331_p5) }
 0x40a   : > { %v5181_v60 = vmax.f32 %v5109_v14, 0.0  ;;  %v4954_v31 = vmax.f32 %v10133_v16, %v4795_v63  ;;  %v4809_v44 = vpop.f32.mrf.mxu3  ;;  %5299 = vst [vmem:[%s9725_s20 + $0x50] sm:$0xff] (%p7331_p5), %v5298_v9 }
 0x40b   : > { %v5201_v46 = vpack.c.bf16 %v5147_v7, %v5146_v12  ;;  %v4955_v4 = vmax.f32 %v9376_v41, %v4809_v44  ;;  %v5278_v41 = vld [vmem:[%s9410_s12] sm:$0xff] (%p7331_p5)  ;;  %5305 = vst [vmem:[%s9725_s20 + $0x68] sm:$0xff] (%p7331_p5), %v5304_v56 }
 0x40c   : > { %v5218_v3 = vpack.c.bf16 %v5181_v60, %v5180_v30  ;;  %v5026_v52 = vmax.f32 %v4882_v25, %v4954_v31  ;;  %5279 = vst [vmem:[%s9725_s20] sm:$0xff] (%p7331_p5), %v5278_v41  ;;  %v5344_v50 = vld [vmem:[%s9410_s12 + $0x108] sm:$0xff] (%p7331_p5) }
 0x40d   : > { %5237 = vst [vmem:[%s9410_s12 + $0x88] sm:$0xff] %v5201_v46  ;;  %v5027_v49 = vmax.f32 %v4883_v11, %v4955_v4  ;;  %v5310_v19 = vld [vmem:[%s9410_s12 + $0x80] sm:$0xff] (%p7331_p5) }
 0x40e   : > { %5254 = vst [vmem:[%s9410_s12 + $0x110] sm:$0x11] %v5218_v3  ;;  %v5110_v29 = vadd.f32 %v9408_v18, %v5026_v52 }
 0x40f   : > { %v5111_v54 = vadd.f32 %v9408_v18, %v5027_v49  ;;  %v5280_v18 = vld [vmem:[%s9410_s12 + $0x8] sm:$0xff] (%p7331_p5)  ;;  %5307 = vst [vmem:[%s9725_s20 + $0x70] sm:$0xff] (%p7331_p5), %v5306_v26 }
 0x410   : > { %v5182_v21 = vmax.f32 %v5110_v29, 0.0  ;;  %5281 = vst [vmem:[%s9725_s20 + $0x8] sm:$0xff] (%p7331_p5), %v5280_v18 }
 0x411   : > { %v5183_v24 = vmax.f32 %v5111_v54, 0.0  ;;  %5262 = sbr.rel (!%p7331_p5) target bundleno = 1059 (0x423), region = 59  ;;  %5309 = vst [vmem:[%s9725_s20 + $0x78] sm:$0xff] (%p7331_p5), %v5308_v58 }
 0x412   : > { %5311 = vst [vmem:[%s9725_s20 + $0x80] sm:$0xff] (%p7331_p5), %v5310_v19 }
 0x413   : > { %v5219_v34 = vpack.c.bf16 %v5183_v24, %v5182_v21  ;;  %5319 = vst [vmem:[%s9725_s20 + $0x130] sm:$0xff] (%p7331_p5), %v5318_v59 }
 0x414   : > { %v5312_v62 = vld [vmem:[%s9410_s12 + $0x88] sm:$0xff] (%p7331_p5)  ;;  %5321 = vst [vmem:[%s9725_s20 + $0x138] sm:$0xff] (%p7331_p5), %v5320_v28 }
 0x415   : > { %5255 = vst [vmem:[%s9410_s12 + $0x118] sm:$0x11] %v5219_v34  ;;  %v5346_v47 = vld [vmem:[%s9410_s12 + $0x110] sm:$0xff] (%p7331_p5) }
 0x416   : > { %5313 = vst [vmem:[%s9725_s20 + $0x88] sm:$0xff] %v5312_v62 }
 0x417   : > { %5323 = vst [vmem:[%s9725_s20 + $0x140] sm:$0xff] %v5322_v53 }
 0x418   : > { %5325 = vst [vmem:[%s9725_s20 + $0x148] sm:$0xff] %v5324_v40 }
 0x419   : > { %5327 = vst [vmem:[%s9725_s20 + $0x150] sm:$0xff] %v5326_v5 }
 0x41a   : > { %5329 = vst [vmem:[%s9725_s20 + $0x158] sm:$0xff] %v5328_v1 }
 0x41b   : > { %5335 = vst [vmem:[%s9725_s20 + $0x170] sm:$0xff] %v5334_v61 }
 0x41c   : > { %5337 = vst [vmem:[%s9725_s20 + $0x178] sm:$0xff] %v5336_v8  ;;  %v5348_v15 = vld [vmem:[%s9410_s12 + $0x118] sm:$0xff] }
 0x41d   : > { %5339 = vst [vmem:[%s9725_s20 + $0x180] sm:$0xff] %v5338_v51 }
 0x41e   : > { %5341 = vst [vmem:[%s9725_s20 + $0x188] sm:$0xff] %v5340_v10 }
 0x41f   : > { %5343 = vst [vmem:[%s9725_s20 + $0x190] sm:$0xff] %v5342_v45 }
 0x420   : > { %5345 = vst [vmem:[%s9725_s20 + $0x198] sm:$0xff] %v5344_v50 }
 0x421   : > { %5347 = vst [vmem:[%s9725_s20 + $0x1a0] sm:$0xff] %v5346_v47 }
 0x422   : > { %5349 = vst [vmem:[%s9725_s20 + $0x1a8] sm:$0xff] %v5348_v15 }
 0x423 PF: > { %p10_p10 = scmp.ge.s32.totalorder %s7318_s16, 4   ;;  %s10136_s12 = smov %s7273_s13 }
 0x424   : > { %s10137_s13 = smov %s7329_s19  ;;  %s10138_s14 = smov %s7318_s16 }
 0x425   :  { %12 = sbr.rel (!%p10_p10) target bundleno = 2 (0x2), region = 116 }

// kernel: cnn_mnist_forward.3
= control target key start
LH: loop header
LB: loop body
LE: loop exit
PB: predicated region body
PF: predicated region fallthrough
CT: control target
= control target key end

     0   :  { %s8822_s24 = smov 0   ;;  %s8824_s25 = smov 0   ;;  %s11231_s0 = inlined_call_operand.vmem [shape: bf16[16,4,64,250], index: 0, kind: input, shape index: {}]   ;;  %s11232_s1 = inlined_call_operand.vmem [shape: bf16[250,20], index: 1, kind: input, shape index: {}]   ;;  %s11233_s2 = inlined_call_operand.vmem [shape: f32[1,1,20], index: 2, kind: input, shape index: {}]   ;;  %s11234_s3 = inlined_call_operand.vmem [shape: bf16[16,20,50], index: 3, kind: input, shape index: {}]   ;;  %s11235_s4 = inlined_call_operand.vmem [shape: f32[1,50], index: 4, kind: input, shape index: {}]   ;;  %s11236_s5 = inlined_call_operand.vmem [shape: bf16[50,10], index: 5, kind: input, shape index: {}]   ;;  %s11237_s6 = inlined_call_operand.vmem [shape: f32[1,10], index: 6, kind: input, shape index: {}]   ;;  %s11238_s7 = inlined_call_operand.vmem [shape: f32[64,10], index: 7, kind: output, shape index: {}]  }
   0x1   :  { %s8826_s26 = smov 0  }
   0x2 LB: > { %s7034_s27 = sadd.s32 4294967295, %s8780_s26   ;;  %s8839_s28 = sadd.s32 1, %s8780_s26   ;;  %s8780_s26 = sphi %s8826_s26, %s11288_s26   ;;  %s8776_s25 = sphi %s8824_s25, %s11287_s25   ;;  %s8772_s24 = sphi %s8822_s24, %s11286_s24  }
   0x3   : > { %s21_s29 = ssub.s32 %s8780_s26, %s8839_s28  ;;  %s24_s30 = sadd.s32 1, %s8776_s25 }
   0x4   : > { %p22_p0 = scmp.eq.s32.totalorder %s21_s29, 0  ;;  %p31_p1 = scmp.ne.s32.totalorder %s8776_s25, %s8772_s24 }
   0x5   : > { %p32_p2 = scmp.eq.s32.totalorder %s8780_s26, 0  ;;  %p7037_p4 = scmp.ge.s32.totalorder %s8780_s26, 2 }
   0x6   : > { %s8848_s8 = scalar_select %p22_p0, %s8776_s25, %s24_s30  }
   0x7   : > { %p33_p3 = por %p32_p2, %p31_p1  ;;  %227 = sbr.rel (%p7037_p4) target bundleno = 272 (0x110), region = 40 }
   0xc   : > { %230 = sbr.rel (!%p33_p3) target bundleno = 272 (0x110), region = 44  ;;  %s232_s9 = sand.u32 (%p33_p3), 1, %s8776_s25  }
   0xd   : > { %s8420_s10 = sshll.u32 (%p33_p3), %s8780_s26, 5  ;;  %s7038_s11 = sshll.u32 (%p33_p3), %s232_s9, 11 }
   0xe   : > { %s8856_s14 = scalar_lea.vmem (%p33_p3), %s11231_s0, %s8420_s10  ;;  %s8861_s15 = scalar_lea.vmem (%p33_p3), [#allocation2], %s7038_s11 }
   0xf   : > { %v778_v0 = vld [vmem:[%s8856_s14] sm:$0xff] (%p33_p3)  ;;  %v780_v1 = vld [vmem:[%s8856_s14 + $0x8] sm:$0xff] (%p33_p3)  ;;  %v782_v2 = vld [vmem:[%s8856_s14 + $0x10] sm:$0xff] (%p33_p3) }
  0x10   : > { %779 = vst [vmem:[%s8861_s15] sm:$0xff] (%p33_p3), %v778_v0  ;;  %v784_v3 = vld [vmem:[%s8856_s14 + $0x18] sm:$0xff] (%p33_p3)  ;;  %v786_v4 = vld [vmem:[%s8856_s14 + $0x40] sm:$0xff] (%p33_p3)  ;;  %v788_v5 = vld [vmem:[%s8856_s14 + $0x48] sm:$0xff] (%p33_p3) }
  0x11   : > { %781 = vst [vmem:[%s8861_s15 + $0x8] sm:$0xff] %v780_v1  ;;  %v790_v6 = vld [vmem:[%s8856_s14 + $0x50] sm:$0xff]  ;;  %v792_v7 = vld [vmem:[%s8856_s14 + $0x58] sm:$0xff]  ;;  %v794_v8 = vld [vmem:[%s8856_s14 + $0x80] sm:$0xff] }
  0x12   : > { %783 = vst [vmem:[%s8861_s15 + $0x10] sm:$0xff] %v782_v2  ;;  %v796_v9 = vld [vmem:[%s8856_s14 + $0x88] sm:$0xff]  ;;  %v798_v10 = vld [vmem:[%s8856_s14 + $0x90] sm:$0xff]  ;;  %v800_v11 = vld [vmem:[%s8856_s14 + $0x98] sm:$0xff] }
  0x13   : > { %785 = vst [vmem:[%s8861_s15 + $0x18] sm:$0xff] %v784_v3  ;;  %v802_v12 = vld [vmem:[%s8856_s14 + $0xc0] sm:$0xff]  ;;  %v804_v13 = vld [vmem:[%s8856_s14 + $0xc8] sm:$0xff]  ;;  %v806_v14 = vld [vmem:[%s8856_s14 + $0xd0] sm:$0xff] }
  0x14   : > { %787 = vst [vmem:[%s8861_s15 + $0x20] sm:$0xff] %v786_v4  ;;  %v808_v15 = vld [vmem:[%s8856_s14 + $0xd8] sm:$0xff]  ;;  %v810_v16 = vld [vmem:[%s8856_s14 + $0x100] sm:$0xff]  ;;  %v812_v17 = vld [vmem:[%s8856_s14 + $0x108] sm:$0xff] }
  0x15   : > { %789 = vst [vmem:[%s8861_s15 + $0x28] sm:$0xff] %v788_v5  ;;  %v814_v18 = vld [vmem:[%s8856_s14 + $0x110] sm:$0xff]  ;;  %v816_v19 = vld [vmem:[%s8856_s14 + $0x118] sm:$0xff]  ;;  %v818_v20 = vld [vmem:[%s8856_s14 + $0x140] sm:$0xff] }
  0x16   : > { %791 = vst [vmem:[%s8861_s15 + $0x30] sm:$0xff] %v790_v6  ;;  %v820_v21 = vld [vmem:[%s8856_s14 + $0x148] sm:$0xff]  ;;  %v822_v22 = vld [vmem:[%s8856_s14 + $0x150] sm:$0xff]  ;;  %v824_v23 = vld [vmem:[%s8856_s14 + $0x158] sm:$0xff] }
  0x17   : > { %793 = vst [vmem:[%s8861_s15 + $0x38] sm:$0xff] %v792_v7  ;;  %v826_v24 = vld [vmem:[%s8856_s14 + $0x180] sm:$0xff]  ;;  %v828_v25 = vld [vmem:[%s8856_s14 + $0x188] sm:$0xff]  ;;  %v830_v26 = vld [vmem:[%s8856_s14 + $0x190] sm:$0xff] }
  0x18   : > { %795 = vst [vmem:[%s8861_s15 + $0x40] sm:$0xff] %v794_v8  ;;  %v832_v27 = vld [vmem:[%s8856_s14 + $0x198] sm:$0xff]  ;;  %v834_v28 = vld [vmem:[%s8856_s14 + $0x1c0] sm:$0xff]  ;;  %v836_v29 = vld [vmem:[%s8856_s14 + $0x1c8] sm:$0xff] }
  0x19   : > { %797 = vst [vmem:[%s8861_s15 + $0x48] sm:$0xff] %v796_v9  ;;  %v838_v30 = vld [vmem:[%s8856_s14 + $0x1d0] sm:$0xff]  ;;  %v840_v31 = vld [vmem:[%s8856_s14 + $0x1d8] sm:$0xff]  ;;  %v842_v32 = vld [vmem:[%s8856_s14 + $0x200] sm:$0xff] }
  0x1a   : > { %799 = vst [vmem:[%s8861_s15 + $0x50] sm:$0xff] %v798_v10  ;;  %v844_v33 = vld [vmem:[%s8856_s14 + $0x208] sm:$0xff]  ;;  %v846_v34 = vld [vmem:[%s8856_s14 + $0x210] sm:$0xff]  ;;  %v848_v35 = vld [vmem:[%s8856_s14 + $0x218] sm:$0xff] }
  0x1b   : > { %801 = vst [vmem:[%s8861_s15 + $0x58] sm:$0xff] %v800_v11  ;;  %v850_v36 = vld [vmem:[%s8856_s14 + $0x240] sm:$0xff]  ;;  %v852_v37 = vld [vmem:[%s8856_s14 + $0x248] sm:$0xff]  ;;  %v854_v38 = vld [vmem:[%s8856_s14 + $0x250] sm:$0xff] }
  0x1c   : > { %803 = vst [vmem:[%s8861_s15 + $0x60] sm:$0xff] %v802_v12  ;;  %v856_v39 = vld [vmem:[%s8856_s14 + $0x258] sm:$0xff]  ;;  %v858_v40 = vld [vmem:[%s8856_s14 + $0x280] sm:$0xff]  ;;  %v860_v41 = vld [vmem:[%s8856_s14 + $0x288] sm:$0xff] }
  0x1d   : > { %805 = vst [vmem:[%s8861_s15 + $0x68] sm:$0xff] %v804_v13  ;;  %v862_v42 = vld [vmem:[%s8856_s14 + $0x290] sm:$0xff]  ;;  %v864_v43 = vld [vmem:[%s8856_s14 + $0x298] sm:$0xff]  ;;  %v866_v44 = vld [vmem:[%s8856_s14 + $0x2c0] sm:$0xff] }
  0x1e   : > { %807 = vst [vmem:[%s8861_s15 + $0x70] sm:$0xff] %v806_v14  ;;  %v868_v45 = vld [vmem:[%s8856_s14 + $0x2c8] sm:$0xff]  ;;  %v870_v46 = vld [vmem:[%s8856_s14 + $0x2d0] sm:$0xff]  ;;  %v872_v47 = vld [vmem:[%s8856_s14 + $0x2d8] sm:$0xff] }
  0x1f   : > { %809 = vst [vmem:[%s8861_s15 + $0x78] sm:$0xff] %v808_v15  ;;  %v874_v48 = vld [vmem:[%s8856_s14 + $0x300] sm:$0xff]  ;;  %v876_v49 = vld [vmem:[%s8856_s14 + $0x308] sm:$0xff]  ;;  %v878_v50 = vld [vmem:[%s8856_s14 + $0x310] sm:$0xff] }
  0x20   : > { %811 = vst [vmem:[%s8861_s15 + $0x80] sm:$0xff] %v810_v16  ;;  %v880_v51 = vld [vmem:[%s8856_s14 + $0x318] sm:$0xff]  ;;  %v882_v52 = vld [vmem:[%s8856_s14 + $0x340] sm:$0xff]  ;;  %v884_v53 = vld [vmem:[%s8856_s14 + $0x348] sm:$0xff] }
  0x21   : > { %813 = vst [vmem:[%s8861_s15 + $0x88] sm:$0xff] %v812_v17  ;;  %v886_v54 = vld [vmem:[%s8856_s14 + $0x350] sm:$0xff]  ;;  %v888_v55 = vld [vmem:[%s8856_s14 + $0x358] sm:$0xff]  ;;  %v890_v56 = vld [vmem:[%s8856_s14 + $0x380] sm:$0xff] }
  0x22   : > { %815 = vst [vmem:[%s8861_s15 + $0x90] sm:$0xff] %v814_v18  ;;  %v892_v57 = vld [vmem:[%s8856_s14 + $0x388] sm:$0xff]  ;;  %v894_v58 = vld [vmem:[%s8856_s14 + $0x390] sm:$0xff]  ;;  %v896_v59 = vld [vmem:[%s8856_s14 + $0x398] sm:$0xff] }
  0x23   : > { %817 = vst [vmem:[%s8861_s15 + $0x98] sm:$0xff] %v816_v19  ;;  %v898_v60 = vld [vmem:[%s8856_s14 + $0x3c0] sm:$0xff]  ;;  %v900_v61 = vld [vmem:[%s8856_s14 + $0x3c8] sm:$0xff]  ;;  %v902_v62 = vld [vmem:[%s8856_s14 + $0x3d0] sm:$0xff] }
  0x24   : > { %819 = vst [vmem:[%s8861_s15 + $0xa0] sm:$0xff] %v818_v20  ;;  %v904_v63 = vld [vmem:[%s8856_s14 + $0x3d8] sm:$0xff]  ;;  %v906_v0 = vld [vmem:[%s8856_s14 + $0x400] sm:$0xff]  ;;  %v908_v1 = vld [vmem:[%s8856_s14 + $0x408] sm:$0xff] }
  0x25   : > { %821 = vst [vmem:[%s8861_s15 + $0xa8] sm:$0xff] %v820_v21  ;;  %v910_v2 = vld [vmem:[%s8856_s14 + $0x410] sm:$0xff]  ;;  %v912_v3 = vld [vmem:[%s8856_s14 + $0x418] sm:$0xff]  ;;  %v914_v4 = vld [vmem:[%s8856_s14 + $0x440] sm:$0xff] }
  0x26   : > { %823 = vst [vmem:[%s8861_s15 + $0xb0] sm:$0xff] %v822_v22  ;;  %v916_v5 = vld [vmem:[%s8856_s14 + $0x448] sm:$0xff]  ;;  %v918_v6 = vld [vmem:[%s8856_s14 + $0x450] sm:$0xff]  ;;  %v920_v7 = vld [vmem:[%s8856_s14 + $0x458] sm:$0xff] }
  0x27   : > { %825 = vst [vmem:[%s8861_s15 + $0xb8] sm:$0xff] %v824_v23  ;;  %v922_v8 = vld [vmem:[%s8856_s14 + $0x480] sm:$0xff]  ;;  %v924_v9 = vld [vmem:[%s8856_s14 + $0x488] sm:$0xff]  ;;  %v926_v10 = vld [vmem:[%s8856_s14 + $0x490] sm:$0xff] }
  0x28   : > { %827 = vst [vmem:[%s8861_s15 + $0xc0] sm:$0xff] %v826_v24  ;;  %v928_v11 = vld [vmem:[%s8856_s14 + $0x498] sm:$0xff]  ;;  %v930_v12 = vld [vmem:[%s8856_s14 + $0x4c0] sm:$0xff]  ;;  %v932_v13 = vld [vmem:[%s8856_s14 + $0x4c8] sm:$0xff] }
  0x29   : > { %829 = vst [vmem:[%s8861_s15 + $0xc8] sm:$0xff] %v828_v25  ;;  %v934_v14 = vld [vmem:[%s8856_s14 + $0x4d0] sm:$0xff]  ;;  %v936_v15 = vld [vmem:[%s8856_s14 + $0x4d8] sm:$0xff]  ;;  %v938_v16 = vld [vmem:[%s8856_s14 + $0x500] sm:$0xff] }
  0x2a   : > { %831 = vst [vmem:[%s8861_s15 + $0xd0] sm:$0xff] %v830_v26  ;;  %v940_v17 = vld [vmem:[%s8856_s14 + $0x508] sm:$0xff]  ;;  %v942_v18 = vld [vmem:[%s8856_s14 + $0x510] sm:$0xff]  ;;  %v944_v19 = vld [vmem:[%s8856_s14 + $0x518] sm:$0xff] }
  0x2b   : > { %833 = vst [vmem:[%s8861_s15 + $0xd8] sm:$0xff] %v832_v27  ;;  %v946_v20 = vld [vmem:[%s8856_s14 + $0x540] sm:$0xff]  ;;  %v948_v21 = vld [vmem:[%s8856_s14 + $0x548] sm:$0xff]  ;;  %v950_v22 = vld [vmem:[%s8856_s14 + $0x550] sm:$0xff] }
  0x2c   : > { %835 = vst [vmem:[%s8861_s15 + $0xe0] sm:$0xff] %v834_v28  ;;  %v952_v23 = vld [vmem:[%s8856_s14 + $0x558] sm:$0xff]  ;;  %v954_v24 = vld [vmem:[%s8856_s14 + $0x580] sm:$0xff]  ;;  %v956_v25 = vld [vmem:[%s8856_s14 + $0x588] sm:$0xff] }
  0x2d   : > { %837 = vst [vmem:[%s8861_s15 + $0xe8] sm:$0xff] %v836_v29  ;;  %v958_v26 = vld [vmem:[%s8856_s14 + $0x590] sm:$0xff]  ;;  %v960_v27 = vld [vmem:[%s8856_s14 + $0x598] sm:$0xff]  ;;  %v962_v28 = vld [vmem:[%s8856_s14 + $0x5c0] sm:$0xff] }
  0x2e   : > { %839 = vst [vmem:[%s8861_s15 + $0xf0] sm:$0xff] %v838_v30  ;;  %v964_v29 = vld [vmem:[%s8856_s14 + $0x5c8] sm:$0xff]  ;;  %v966_v30 = vld [vmem:[%s8856_s14 + $0x5d0] sm:$0xff] }
  0x2f   : > { %841 = vst [vmem:[%s8861_s15 + $0xf8] sm:$0xff] %v840_v31  ;;  %v968_v31 = vld [vmem:[%s8856_s14 + $0x5d8] sm:$0xff] }
  0x30   : > { %843 = vst [vmem:[%s8861_s15 + $0x100] sm:$0xff] %v842_v32  ;;  %v970_v32 = vld [vmem:[%s8856_s14 + $0x600] sm:$0xff] }
  0x31   : > { %845 = vst [vmem:[%s8861_s15 + $0x108] sm:$0xff] %v844_v33  ;;  %v972_v33 = vld [vmem:[%s8856_s14 + $0x608] sm:$0xff] }
  0x32   : > { %847 = vst [vmem:[%s8861_s15 + $0x110] sm:$0xff] %v846_v34  ;;  %v974_v34 = vld [vmem:[%s8856_s14 + $0x610] sm:$0xff] }
  0x33   : > { %849 = vst [vmem:[%s8861_s15 + $0x118] sm:$0xff] %v848_v35  ;;  %v976_v35 = vld [vmem:[%s8856_s14 + $0x618] sm:$0xff] }
  0x34   : > { %851 = vst [vmem:[%s8861_s15 + $0x120] sm:$0xff] %v850_v36  ;;  %v978_v36 = vld [vmem:[%s8856_s14 + $0x640] sm:$0xff] }
  0x35   : > { %853 = vst [vmem:[%s8861_s15 + $0x128] sm:$0xff] %v852_v37  ;;  %v980_v37 = vld [vmem:[%s8856_s14 + $0x648] sm:$0xff] }
  0x36   : > { %855 = vst [vmem:[%s8861_s15 + $0x130] sm:$0xff] %v854_v38  ;;  %v982_v38 = vld [vmem:[%s8856_s14 + $0x650] sm:$0xff] }
  0x37   : > { %857 = vst [vmem:[%s8861_s15 + $0x138] sm:$0xff] %v856_v39  ;;  %v984_v39 = vld [vmem:[%s8856_s14 + $0x658] sm:$0xff] }
  0x38   : > { %859 = vst [vmem:[%s8861_s15 + $0x140] sm:$0xff] %v858_v40  ;;  %v986_v40 = vld [vmem:[%s8856_s14 + $0x680] sm:$0xff] }
  0x39   : > { %861 = vst [vmem:[%s8861_s15 + $0x148] sm:$0xff] %v860_v41  ;;  %v988_v41 = vld [vmem:[%s8856_s14 + $0x688] sm:$0xff] }
  0x3a   : > { %863 = vst [vmem:[%s8861_s15 + $0x150] sm:$0xff] %v862_v42  ;;  %v990_v42 = vld [vmem:[%s8856_s14 + $0x690] sm:$0xff] }
  0x3b   : > { %865 = vst [vmem:[%s8861_s15 + $0x158] sm:$0xff] %v864_v43  ;;  %v992_v43 = vld [vmem:[%s8856_s14 + $0x698] sm:$0xff] }
  0x3c   : > { %867 = vst [vmem:[%s8861_s15 + $0x160] sm:$0xff] %v866_v44  ;;  %v994_v44 = vld [vmem:[%s8856_s14 + $0x6c0] sm:$0xff] }
  0x3d   : > { %869 = vst [vmem:[%s8861_s15 + $0x168] sm:$0xff] %v868_v45  ;;  %v996_v45 = vld [vmem:[%s8856_s14 + $0x6c8] sm:$0xff] }
  0x3e   : > { %871 = vst [vmem:[%s8861_s15 + $0x170] sm:$0xff] %v870_v46  ;;  %v998_v46 = vld [vmem:[%s8856_s14 + $0x6d0] sm:$0xff] }
  0x3f   : > { %873 = vst [vmem:[%s8861_s15 + $0x178] sm:$0xff] %v872_v47  ;;  %v1000_v47 = vld [vmem:[%s8856_s14 + $0x6d8] sm:$0xff] }
  0x40   : > { %875 = vst [vmem:[%s8861_s15 + $0x180] sm:$0xff] %v874_v48  ;;  %v1002_v48 = vld [vmem:[%s8856_s14 + $0x700] sm:$0xff] }
  0x41   : > { %877 = vst [vmem:[%s8861_s15 + $0x188] sm:$0xff] %v876_v49  ;;  %v1004_v49 = vld [vmem:[%s8856_s14 + $0x708] sm:$0xff] }
  0x42   : > { %879 = vst [vmem:[%s8861_s15 + $0x190] sm:$0xff] %v878_v50  ;;  %v1006_v50 = vld [vmem:[%s8856_s14 + $0x710] sm:$0xff] }
  0x43   : > { %881 = vst [vmem:[%s8861_s15 + $0x198] sm:$0xff] %v880_v51  ;;  %v1008_v51 = vld [vmem:[%s8856_s14 + $0x718] sm:$0xff] }
  0x44   : > { %883 = vst [vmem:[%s8861_s15 + $0x1a0] sm:$0xff] %v882_v52  ;;  %v1010_v52 = vld [vmem:[%s8856_s14 + $0x740] sm:$0xff] }
  0x45   : > { %885 = vst [vmem:[%s8861_s15 + $0x1a8] sm:$0xff] %v884_v53  ;;  %v1012_v53 = vld [vmem:[%s8856_s14 + $0x748] sm:$0xff] }
  0x46   : > { %887 = vst [vmem:[%s8861_s15 + $0x1b0] sm:$0xff] %v886_v54  ;;  %v1014_v54 = vld [vmem:[%s8856_s14 + $0x750] sm:$0xff] }
  0x47   : > { %889 = vst [vmem:[%s8861_s15 + $0x1b8] sm:$0xff] %v888_v55  ;;  %v1016_v55 = vld [vmem:[%s8856_s14 + $0x758] sm:$0xff] }
  0x48   : > { %891 = vst [vmem:[%s8861_s15 + $0x1c0] sm:$0xff] %v890_v56  ;;  %v1018_v56 = vld [vmem:[%s8856_s14 + $0x780] sm:$0xff] }
  0x49   : > { %893 = vst [vmem:[%s8861_s15 + $0x1c8] sm:$0xff] %v892_v57  ;;  %v1020_v57 = vld [vmem:[%s8856_s14 + $0x788] sm:$0xff] }
  0x4a   : > { %895 = vst [vmem:[%s8861_s15 + $0x1d0] sm:$0xff] %v894_v58  ;;  %v1022_v58 = vld [vmem:[%s8856_s14 + $0x790] sm:$0xff] }
  0x4b   : > { %897 = vst [vmem:[%s8861_s15 + $0x1d8] sm:$0xff] %v896_v59  ;;  %v1024_v59 = vld [vmem:[%s8856_s14 + $0x798] sm:$0xff] }
  0x4c   : > { %899 = vst [vmem:[%s8861_s15 + $0x1e0] sm:$0xff] %v898_v60  ;;  %v1026_v60 = vld [vmem:[%s8856_s14 + $0x7c0] sm:$0xff] }
  0x4d   : > { %901 = vst [vmem:[%s8861_s15 + $0x1e8] sm:$0xff] %v900_v61  ;;  %v1028_v61 = vld [vmem:[%s8856_s14 + $0x7c8] sm:$0xff] }
  0x4e   : > { %903 = vst [vmem:[%s8861_s15 + $0x1f0] sm:$0xff] %v902_v62  ;;  %v1030_v62 = vld [vmem:[%s8856_s14 + $0x7d0] sm:$0xff] }
  0x4f   : > { %905 = vst [vmem:[%s8861_s15 + $0x1f8] sm:$0xff] %v904_v63  ;;  %v1032_v63 = vld [vmem:[%s8856_s14 + $0x7d8] sm:$0xff] }
  0x50   : > { %907 = vst [vmem:[%s8861_s15 + $0x200] sm:$0xff] %v906_v0  ;;  %v1034_v0 = vld [vmem:[%s8856_s14 + $0x800] sm:$0xff] }
  0x51   : > { %909 = vst [vmem:[%s8861_s15 + $0x208] sm:$0xff] %v908_v1  ;;  %v1036_v1 = vld [vmem:[%s8856_s14 + $0x808] sm:$0xff] }
  0x52   : > { %911 = vst [vmem:[%s8861_s15 + $0x210] sm:$0xff] %v910_v2  ;;  %v1038_v2 = vld [vmem:[%s8856_s14 + $0x810] sm:$0xff] }
  0x53   : > { %913 = vst [vmem:[%s8861_s15 + $0x218] sm:$0xff] %v912_v3  ;;  %v1040_v3 = vld [vmem:[%s8856_s14 + $0x818] sm:$0xff] }
  0x54   : > { %915 = vst [vmem:[%s8861_s15 + $0x220] sm:$0xff] %v914_v4  ;;  %v1042_v4 = vld [vmem:[%s8856_s14 + $0x840] sm:$0xff] }
  0x55   : > { %917 = vst [vmem:[%s8861_s15 + $0x228] sm:$0xff] %v916_v5  ;;  %v1044_v5 = vld [vmem:[%s8856_s14 + $0x848] sm:$0xff] }
  0x56   : > { %919 = vst [vmem:[%s8861_s15 + $0x230] sm:$0xff] %v918_v6  ;;  %v1046_v6 = vld [vmem:[%s8856_s14 + $0x850] sm:$0xff] }
  0x57   : > { %921 = vst [vmem:[%s8861_s15 + $0x238] sm:$0xff] %v920_v7  ;;  %v1048_v7 = vld [vmem:[%s8856_s14 + $0x858] sm:$0xff] }
  0x58   : > { %923 = vst [vmem:[%s8861_s15 + $0x240] sm:$0xff] %v922_v8  ;;  %v1050_v8 = vld [vmem:[%s8856_s14 + $0x880] sm:$0xff] }
  0x59   : > { %925 = vst [vmem:[%s8861_s15 + $0x248] sm:$0xff] %v924_v9  ;;  %v1052_v9 = vld [vmem:[%s8856_s14 + $0x888] sm:$0xff] }
  0x5a   : > { %927 = vst [vmem:[%s8861_s15 + $0x250] sm:$0xff] %v926_v10  ;;  %v1054_v10 = vld [vmem:[%s8856_s14 + $0x890] sm:$0xff] }
  0x5b   : > { %929 = vst [vmem:[%s8861_s15 + $0x258] sm:$0xff] %v928_v11  ;;  %v1056_v11 = vld [vmem:[%s8856_s14 + $0x898] sm:$0xff] }
  0x5c   : > { %931 = vst [vmem:[%s8861_s15 + $0x260] sm:$0xff] %v930_v12  ;;  %v1058_v12 = vld [vmem:[%s8856_s14 + $0x8c0] sm:$0xff] }
  0x5d   : > { %933 = vst [vmem:[%s8861_s15 + $0x268] sm:$0xff] %v932_v13  ;;  %v1060_v13 = vld [vmem:[%s8856_s14 + $0x8c8] sm:$0xff] }
  0x5e   : > { %935 = vst [vmem:[%s8861_s15 + $0x270] sm:$0xff] %v934_v14  ;;  %v1062_v14 = vld [vmem:[%s8856_s14 + $0x8d0] sm:$0xff] }
  0x5f   : > { %937 = vst [vmem:[%s8861_s15 + $0x278] sm:$0xff] %v936_v15  ;;  %v1064_v15 = vld [vmem:[%s8856_s14 + $0x8d8] sm:$0xff] }
  0x60   : > { %939 = vst [vmem:[%s8861_s15 + $0x280] sm:$0xff] %v938_v16  ;;  %v1066_v16 = vld [vmem:[%s8856_s14 + $0x900] sm:$0xff] }
  0x61   : > { %941 = vst [vmem:[%s8861_s15 + $0x288] sm:$0xff] %v940_v17  ;;  %v1068_v17 = vld [vmem:[%s8856_s14 + $0x908] sm:$0xff] }
  0x62   : > { %943 = vst [vmem:[%s8861_s15 + $0x290] sm:$0xff] %v942_v18  ;;  %v1070_v18 = vld [vmem:[%s8856_s14 + $0x910] sm:$0xff] }
  0x63   : > { %945 = vst [vmem:[%s8861_s15 + $0x298] sm:$0xff] %v944_v19  ;;  %v1072_v19 = vld [vmem:[%s8856_s14 + $0x918] sm:$0xff] }
  0x64   : > { %947 = vst [vmem:[%s8861_s15 + $0x2a0] sm:$0xff] %v946_v20  ;;  %v1074_v20 = vld [vmem:[%s8856_s14 + $0x940] sm:$0xff] }
  0x65   : > { %949 = vst [vmem:[%s8861_s15 + $0x2a8] sm:$0xff] %v948_v21  ;;  %v1076_v21 = vld [vmem:[%s8856_s14 + $0x948] sm:$0xff] }
  0x66   : > { %951 = vst [vmem:[%s8861_s15 + $0x2b0] sm:$0xff] %v950_v22  ;;  %v1078_v22 = vld [vmem:[%s8856_s14 + $0x950] sm:$0xff] }
  0x67   : > { %953 = vst [vmem:[%s8861_s15 + $0x2b8] sm:$0xff] %v952_v23  ;;  %v1080_v23 = vld [vmem:[%s8856_s14 + $0x958] sm:$0xff] }
  0x68   : > { %955 = vst [vmem:[%s8861_s15 + $0x2c0] sm:$0xff] %v954_v24  ;;  %v1082_v24 = vld [vmem:[%s8856_s14 + $0x980] sm:$0xff] }
  0x69   : > { %957 = vst [vmem:[%s8861_s15 + $0x2c8] sm:$0xff] %v956_v25  ;;  %v1084_v25 = vld [vmem:[%s8856_s14 + $0x988] sm:$0xff] }
  0x6a   : > { %959 = vst [vmem:[%s8861_s15 + $0x2d0] sm:$0xff] %v958_v26  ;;  %v1086_v26 = vld [vmem:[%s8856_s14 + $0x990] sm:$0xff] }
  0x6b   : > { %961 = vst [vmem:[%s8861_s15 + $0x2d8] sm:$0xff] %v960_v27  ;;  %v1088_v27 = vld [vmem:[%s8856_s14 + $0x998] sm:$0xff] }
  0x6c   : > { %963 = vst [vmem:[%s8861_s15 + $0x2e0] sm:$0xff] %v962_v28  ;;  %v1090_v28 = vld [vmem:[%s8856_s14 + $0x9c0] sm:$0xff] }
  0x6d   : > { %965 = vst [vmem:[%s8861_s15 + $0x2e8] sm:$0xff] %v964_v29  ;;  %v1092_v29 = vld [vmem:[%s8856_s14 + $0x9c8] sm:$0xff] }
  0x6e   : > { %967 = vst [vmem:[%s8861_s15 + $0x2f0] sm:$0xff] %v966_v30  ;;  %v1094_v30 = vld [vmem:[%s8856_s14 + $0x9d0] sm:$0xff] }
  0x6f   : > { %969 = vst [vmem:[%s8861_s15 + $0x2f8] sm:$0xff] %v968_v31  ;;  %v1096_v31 = vld [vmem:[%s8856_s14 + $0x9d8] sm:$0xff] }
  0x70   : > { %971 = vst [vmem:[%s8861_s15 + $0x300] sm:$0xff] %v970_v32  ;;  %v1098_v32 = vld [vmem:[%s8856_s14 + $0xa00] sm:$0xff] }
  0x71   : > { %973 = vst [vmem:[%s8861_s15 + $0x308] sm:$0xff] %v972_v33  ;;  %v1100_v33 = vld [vmem:[%s8856_s14 + $0xa08] sm:$0xff] }
  0x72   : > { %975 = vst [vmem:[%s8861_s15 + $0x310] sm:$0xff] %v974_v34  ;;  %v1102_v34 = vld [vmem:[%s8856_s14 + $0xa10] sm:$0xff] }
  0x73   : > { %977 = vst [vmem:[%s8861_s15 + $0x318] sm:$0xff] %v976_v35  ;;  %v1104_v35 = vld [vmem:[%s8856_s14 + $0xa18] sm:$0xff] }
  0x74   : > { %979 = vst [vmem:[%s8861_s15 + $0x320] sm:$0xff] %v978_v36  ;;  %v1106_v36 = vld [vmem:[%s8856_s14 + $0xa40] sm:$0xff] }
  0x75   : > { %981 = vst [vmem:[%s8861_s15 + $0x328] sm:$0xff] %v980_v37  ;;  %v1108_v37 = vld [vmem:[%s8856_s14 + $0xa48] sm:$0xff] }
  0x76   : > { %983 = vst [vmem:[%s8861_s15 + $0x330] sm:$0xff] %v982_v38  ;;  %v1110_v38 = vld [vmem:[%s8856_s14 + $0xa50] sm:$0xff] }
  0x77   : > { %985 = vst [vmem:[%s8861_s15 + $0x338] sm:$0xff] %v984_v39  ;;  %v1112_v39 = vld [vmem:[%s8856_s14 + $0xa58] sm:$0xff] }
  0x78   : > { %987 = vst [vmem:[%s8861_s15 + $0x340] sm:$0xff] %v986_v40  ;;  %v1114_v40 = vld [vmem:[%s8856_s14 + $0xa80] sm:$0xff] }
  0x79   : > { %989 = vst [vmem:[%s8861_s15 + $0x348] sm:$0xff] %v988_v41  ;;  %v1116_v41 = vld [vmem:[%s8856_s14 + $0xa88] sm:$0xff] }
  0x7a   : > { %991 = vst [vmem:[%s8861_s15 + $0x350] sm:$0xff] %v990_v42  ;;  %v1118_v42 = vld [vmem:[%s8856_s14 + $0xa90] sm:$0xff] }
  0x7b   : > { %993 = vst [vmem:[%s8861_s15 + $0x358] sm:$0xff] %v992_v43  ;;  %v1120_v43 = vld [vmem:[%s8856_s14 + $0xa98] sm:$0xff] }
  0x7c   : > { %995 = vst [vmem:[%s8861_s15 + $0x360] sm:$0xff] %v994_v44  ;;  %v1122_v44 = vld [vmem:[%s8856_s14 + $0xac0] sm:$0xff] }
  0x7d   : > { %997 = vst [vmem:[%s8861_s15 + $0x368] sm:$0xff] %v996_v45  ;;  %v1124_v45 = vld [vmem:[%s8856_s14 + $0xac8] sm:$0xff] }
  0x7e   : > { %999 = vst [vmem:[%s8861_s15 + $0x370] sm:$0xff] %v998_v46  ;;  %v1126_v46 = vld [vmem:[%s8856_s14 + $0xad0] sm:$0xff] }
  0x7f   : > { %1001 = vst [vmem:[%s8861_s15 + $0x378] sm:$0xff] %v1000_v47  ;;  %v1128_v47 = vld [vmem:[%s8856_s14 + $0xad8] sm:$0xff] }
  0x80   : > { %1003 = vst [vmem:[%s8861_s15 + $0x380] sm:$0xff] %v1002_v48  ;;  %v1130_v48 = vld [vmem:[%s8856_s14 + $0xb00] sm:$0xff] }
  0x81   : > { %1005 = vst [vmem:[%s8861_s15 + $0x388] sm:$0xff] %v1004_v49  ;;  %v1132_v49 = vld [vmem:[%s8856_s14 + $0xb08] sm:$0xff] }
  0x82   : > { %1007 = vst [vmem:[%s8861_s15 + $0x390] sm:$0xff] %v1006_v50  ;;  %v1134_v50 = vld [vmem:[%s8856_s14 + $0xb10] sm:$0xff] }
  0x83   : > { %1009 = vst [vmem:[%s8861_s15 + $0x398] sm:$0xff] %v1008_v51  ;;  %v1136_v51 = vld [vmem:[%s8856_s14 + $0xb18] sm:$0xff] }
  0x84   : > { %1011 = vst [vmem:[%s8861_s15 + $0x3a0] sm:$0xff] %v1010_v52  ;;  %v1138_v52 = vld [vmem:[%s8856_s14 + $0xb40] sm:$0xff] }
  0x85   : > { %1013 = vst [vmem:[%s8861_s15 + $0x3a8] sm:$0xff] %v1012_v53  ;;  %v1140_v53 = vld [vmem:[%s8856_s14 + $0xb48] sm:$0xff] }
  0x86   : > { %1015 = vst [vmem:[%s8861_s15 + $0x3b0] sm:$0xff] %v1014_v54  ;;  %v1142_v54 = vld [vmem:[%s8856_s14 + $0xb50] sm:$0xff] }
  0x87   : > { %1017 = vst [vmem:[%s8861_s15 + $0x3b8] sm:$0xff] %v1016_v55  ;;  %v1144_v55 = vld [vmem:[%s8856_s14 + $0xb58] sm:$0xff] }
  0x88   : > { %1019 = vst [vmem:[%s8861_s15 + $0x3c0] sm:$0xff] %v1018_v56  ;;  %v1146_v56 = vld [vmem:[%s8856_s14 + $0xb80] sm:$0xff] }
  0x89   : > { %1021 = vst [vmem:[%s8861_s15 + $0x3c8] sm:$0xff] %v1020_v57  ;;  %v1148_v57 = vld [vmem:[%s8856_s14 + $0xb88] sm:$0xff] }
  0x8a   : > { %1023 = vst [vmem:[%s8861_s15 + $0x3d0] sm:$0xff] %v1022_v58  ;;  %v1150_v58 = vld [vmem:[%s8856_s14 + $0xb90] sm:$0xff] }
  0x8b   : > { %1025 = vst [vmem:[%s8861_s15 + $0x3d8] sm:$0xff] %v1024_v59  ;;  %v1152_v59 = vld [vmem:[%s8856_s14 + $0xb98] sm:$0xff] }
  0x8c   : > { %1027 = vst [vmem:[%s8861_s15 + $0x3e0] sm:$0xff] %v1026_v60  ;;  %v1154_v60 = vld [vmem:[%s8856_s14 + $0xbc0] sm:$0xff] }
  0x8d   : > { %1029 = vst [vmem:[%s8861_s15 + $0x3e8] sm:$0xff] %v1028_v61  ;;  %v1156_v61 = vld [vmem:[%s8856_s14 + $0xbc8] sm:$0xff] }
  0x8e   : > { %1031 = vst [vmem:[%s8861_s15 + $0x3f0] sm:$0xff] %v1030_v62  ;;  %v1158_v62 = vld [vmem:[%s8856_s14 + $0xbd0] sm:$0xff] }
  0x8f   : > { %1033 = vst [vmem:[%s8861_s15 + $0x3f8] sm:$0xff] %v1032_v63  ;;  %v1160_v63 = vld [vmem:[%s8856_s14 + $0xbd8] sm:$0xff] }
  0x90   : > { %1035 = vst [vmem:[%s8861_s15 + $0x400] sm:$0xff] %v1034_v0  ;;  %v1162_v0 = vld [vmem:[%s8856_s14 + $0xc00] sm:$0xff] }
  0x91   : > { %1037 = vst [vmem:[%s8861_s15 + $0x408] sm:$0xff] %v1036_v1  ;;  %v1164_v1 = vld [vmem:[%s8856_s14 + $0xc08] sm:$0xff] }
  0x92   : > { %1039 = vst [vmem:[%s8861_s15 + $0x410] sm:$0xff] %v1038_v2  ;;  %v1166_v2 = vld [vmem:[%s8856_s14 + $0xc10] sm:$0xff] }
  0x93   : > { %1041 = vst [vmem:[%s8861_s15 + $0x418] sm:$0xff] %v1040_v3  ;;  %v1168_v3 = vld [vmem:[%s8856_s14 + $0xc18] sm:$0xff] }
  0x94   : > { %1043 = vst [vmem:[%s8861_s15 + $0x420] sm:$0xff] %v1042_v4  ;;  %v1170_v4 = vld [vmem:[%s8856_s14 + $0xc40] sm:$0xff] }
  0x95   : > { %1045 = vst [vmem:[%s8861_s15 + $0x428] sm:$0xff] %v1044_v5  ;;  %v1172_v5 = vld [vmem:[%s8856_s14 + $0xc48] sm:$0xff] }
  0x96   : > { %1047 = vst [vmem:[%s8861_s15 + $0x430] sm:$0xff] %v1046_v6  ;;  %v1174_v6 = vld [vmem:[%s8856_s14 + $0xc50] sm:$0xff] }
  0x97   : > { %1049 = vst [vmem:[%s8861_s15 + $0x438] sm:$0xff] %v1048_v7  ;;  %v1176_v7 = vld [vmem:[%s8856_s14 + $0xc58] sm:$0xff] }
  0x98   : > { %1051 = vst [vmem:[%s8861_s15 + $0x440] sm:$0xff] %v1050_v8  ;;  %v1178_v8 = vld [vmem:[%s8856_s14 + $0xc80] sm:$0xff] }
  0x99   : > { %1053 = vst [vmem:[%s8861_s15 + $0x448] sm:$0xff] %v1052_v9  ;;  %v1180_v9 = vld [vmem:[%s8856_s14 + $0xc88] sm:$0xff] }
  0x9a   : > { %1055 = vst [vmem:[%s8861_s15 + $0x450] sm:$0xff] %v1054_v10  ;;  %v1182_v10 = vld [vmem:[%s8856_s14 + $0xc90] sm:$0xff] }
  0x9b   : > { %1057 = vst [vmem:[%s8861_s15 + $0x458] sm:$0xff] %v1056_v11  ;;  %v1184_v11 = vld [vmem:[%s8856_s14 + $0xc98] sm:$0xff] }
  0x9c   : > { %1059 = vst [vmem:[%s8861_s15 + $0x460] sm:$0xff] %v1058_v12  ;;  %v1186_v12 = vld [vmem:[%s8856_s14 + $0xcc0] sm:$0xff] }
  0x9d   : > { %1061 = vst [vmem:[%s8861_s15 + $0x468] sm:$0xff] %v1060_v13  ;;  %v1188_v13 = vld [vmem:[%s8856_s14 + $0xcc8] sm:$0xff] }
  0x9e   : > { %1063 = vst [vmem:[%s8861_s15 + $0x470] sm:$0xff] %v1062_v14  ;;  %v1190_v14 = vld [vmem:[%s8856_s14 + $0xcd0] sm:$0xff] }
  0x9f   : > { %1065 = vst [vmem:[%s8861_s15 + $0x478] sm:$0xff] %v1064_v15  ;;  %v1192_v15 = vld [vmem:[%s8856_s14 + $0xcd8] sm:$0xff] }
  0xa0   : > { %1067 = vst [vmem:[%s8861_s15 + $0x480] sm:$0xff] %v1066_v16  ;;  %v1194_v16 = vld [vmem:[%s8856_s14 + $0xd00] sm:$0xff] }
  0xa1   : > { %1069 = vst [vmem:[%s8861_s15 + $0x488] sm:$0xff] %v1068_v17  ;;  %v1196_v17 = vld [vmem:[%s8856_s14 + $0xd08] sm:$0xff] }
  0xa2   : > { %1071 = vst [vmem:[%s8861_s15 + $0x490] sm:$0xff] %v1070_v18  ;;  %v1198_v18 = vld [vmem:[%s8856_s14 + $0xd10] sm:$0xff] }
  0xa3   : > { %1073 = vst [vmem:[%s8861_s15 + $0x498] sm:$0xff] %v1072_v19  ;;  %v1200_v19 = vld [vmem:[%s8856_s14 + $0xd18] sm:$0xff] }
  0xa4   : > { %1075 = vst [vmem:[%s8861_s15 + $0x4a0] sm:$0xff] %v1074_v20  ;;  %v1202_v20 = vld [vmem:[%s8856_s14 + $0xd40] sm:$0xff] }
  0xa5   : > { %1077 = vst [vmem:[%s8861_s15 + $0x4a8] sm:$0xff] %v1076_v21  ;;  %v1204_v21 = vld [vmem:[%s8856_s14 + $0xd48] sm:$0xff] }
  0xa6   : > { %1079 = vst [vmem:[%s8861_s15 + $0x4b0] sm:$0xff] %v1078_v22  ;;  %v1206_v22 = vld [vmem:[%s8856_s14 + $0xd50] sm:$0xff] }
  0xa7   : > { %1081 = vst [vmem:[%s8861_s15 + $0x4b8] sm:$0xff] %v1080_v23  ;;  %v1208_v23 = vld [vmem:[%s8856_s14 + $0xd58] sm:$0xff] }
  0xa8   : > { %1083 = vst [vmem:[%s8861_s15 + $0x4c0] sm:$0xff] %v1082_v24  ;;  %v1210_v24 = vld [vmem:[%s8856_s14 + $0xd80] sm:$0xff] }
  0xa9   : > { %1085 = vst [vmem:[%s8861_s15 + $0x4c8] sm:$0xff] %v1084_v25  ;;  %v1212_v25 = vld [vmem:[%s8856_s14 + $0xd88] sm:$0xff] }
  0xaa   : > { %1087 = vst [vmem:[%s8861_s15 + $0x4d0] sm:$0xff] %v1086_v26  ;;  %v1214_v26 = vld [vmem:[%s8856_s14 + $0xd90] sm:$0xff] }
  0xab   : > { %1089 = vst [vmem:[%s8861_s15 + $0x4d8] sm:$0xff] %v1088_v27  ;;  %v1216_v27 = vld [vmem:[%s8856_s14 + $0xd98] sm:$0xff] }
  0xac   : > { %1091 = vst [vmem:[%s8861_s15 + $0x4e0] sm:$0xff] %v1090_v28  ;;  %v1218_v28 = vld [vmem:[%s8856_s14 + $0xdc0] sm:$0xff] }
  0xad   : > { %1093 = vst [vmem:[%s8861_s15 + $0x4e8] sm:$0xff] %v1092_v29  ;;  %v1220_v29 = vld [vmem:[%s8856_s14 + $0xdc8] sm:$0xff] }
  0xae   : > { %1095 = vst [vmem:[%s8861_s15 + $0x4f0] sm:$0xff] %v1094_v30  ;;  %v1222_v30 = vld [vmem:[%s8856_s14 + $0xdd0] sm:$0xff] }
  0xaf   : > { %1097 = vst [vmem:[%s8861_s15 + $0x4f8] sm:$0xff] %v1096_v31  ;;  %v1224_v31 = vld [vmem:[%s8856_s14 + $0xdd8] sm:$0xff] }
  0xb0   : > { %1099 = vst [vmem:[%s8861_s15 + $0x500] sm:$0xff] %v1098_v32  ;;  %v1226_v32 = vld [vmem:[%s8856_s14 + $0xe00] sm:$0xff] }
  0xb1   : > { %1101 = vst [vmem:[%s8861_s15 + $0x508] sm:$0xff] %v1100_v33  ;;  %v1228_v33 = vld [vmem:[%s8856_s14 + $0xe08] sm:$0xff] }
  0xb2   : > { %1103 = vst [vmem:[%s8861_s15 + $0x510] sm:$0xff] %v1102_v34  ;;  %v1230_v34 = vld [vmem:[%s8856_s14 + $0xe10] sm:$0xff] }
  0xb3   : > { %1105 = vst [vmem:[%s8861_s15 + $0x518] sm:$0xff] %v1104_v35  ;;  %v1232_v35 = vld [vmem:[%s8856_s14 + $0xe18] sm:$0xff] }
  0xb4   : > { %1107 = vst [vmem:[%s8861_s15 + $0x520] sm:$0xff] %v1106_v36  ;;  %v1234_v36 = vld [vmem:[%s8856_s14 + $0xe40] sm:$0xff] }
  0xb5   : > { %1109 = vst [vmem:[%s8861_s15 + $0x528] sm:$0xff] %v1108_v37  ;;  %v1236_v37 = vld [vmem:[%s8856_s14 + $0xe48] sm:$0xff] }
  0xb6   : > { %1111 = vst [vmem:[%s8861_s15 + $0x530] sm:$0xff] %v1110_v38  ;;  %v1238_v38 = vld [vmem:[%s8856_s14 + $0xe50] sm:$0xff] }
  0xb7   : > { %1113 = vst [vmem:[%s8861_s15 + $0x538] sm:$0xff] %v1112_v39  ;;  %v1240_v39 = vld [vmem:[%s8856_s14 + $0xe58] sm:$0xff] }
  0xb8   : > { %1115 = vst [vmem:[%s8861_s15 + $0x540] sm:$0xff] %v1114_v40  ;;  %v1242_v40 = vld [vmem:[%s8856_s14 + $0xe80] sm:$0xff] }
  0xb9   : > { %1117 = vst [vmem:[%s8861_s15 + $0x548] sm:$0xff] %v1116_v41  ;;  %v1244_v41 = vld [vmem:[%s8856_s14 + $0xe88] sm:$0xff] }
  0xba   : > { %1119 = vst [vmem:[%s8861_s15 + $0x550] sm:$0xff] %v1118_v42  ;;  %v1246_v42 = vld [vmem:[%s8856_s14 + $0xe90] sm:$0xff] }
  0xbb   : > { %1121 = vst [vmem:[%s8861_s15 + $0x558] sm:$0xff] %v1120_v43  ;;  %v1248_v43 = vld [vmem:[%s8856_s14 + $0xe98] sm:$0xff] }
  0xbc   : > { %1123 = vst [vmem:[%s8861_s15 + $0x560] sm:$0xff] %v1122_v44  ;;  %v1250_v44 = vld [vmem:[%s8856_s14 + $0xec0] sm:$0xff] }
  0xbd   : > { %1125 = vst [vmem:[%s8861_s15 + $0x568] sm:$0xff] %v1124_v45  ;;  %v1252_v45 = vld [vmem:[%s8856_s14 + $0xec8] sm:$0xff] }
  0xbe   : > { %1127 = vst [vmem:[%s8861_s15 + $0x570] sm:$0xff] %v1126_v46  ;;  %v1254_v46 = vld [vmem:[%s8856_s14 + $0xed0] sm:$0xff] }
  0xbf   : > { %1129 = vst [vmem:[%s8861_s15 + $0x578] sm:$0xff] %v1128_v47  ;;  %v1256_v47 = vld [vmem:[%s8856_s14 + $0xed8] sm:$0xff] }
  0xc0   : > { %1131 = vst [vmem:[%s8861_s15 + $0x580] sm:$0xff] %v1130_v48  ;;  %v1258_v48 = vld [vmem:[%s8856_s14 + $0xf00] sm:$0xff] }
  0xc1   : > { %1133 = vst [vmem:[%s8861_s15 + $0x588] sm:$0xff] %v1132_v49  ;;  %v1260_v49 = vld [vmem:[%s8856_s14 + $0xf08] sm:$0xff] }
  0xc2   : > { %1135 = vst [vmem:[%s8861_s15 + $0x590] sm:$0xff] %v1134_v50  ;;  %v1262_v50 = vld [vmem:[%s8856_s14 + $0xf10] sm:$0xff] }
  0xc3   : > { %1137 = vst [vmem:[%s8861_s15 + $0x598] sm:$0xff] %v1136_v51  ;;  %v1264_v51 = vld [vmem:[%s8856_s14 + $0xf18] sm:$0xff] }
  0xc4   : > { %1139 = vst [vmem:[%s8861_s15 + $0x5a0] sm:$0xff] %v1138_v52  ;;  %v1266_v52 = vld [vmem:[%s8856_s14 + $0xf40] sm:$0xff] }
  0xc5   : > { %1141 = vst [vmem:[%s8861_s15 + $0x5a8] sm:$0xff] %v1140_v53  ;;  %v1268_v53 = vld [vmem:[%s8856_s14 + $0xf48] sm:$0xff] }
  0xc6   : > { %1143 = vst [vmem:[%s8861_s15 + $0x5b0] sm:$0xff] %v1142_v54  ;;  %v1270_v54 = vld [vmem:[%s8856_s14 + $0xf50] sm:$0xff] }
  0xc7   : > { %1145 = vst [vmem:[%s8861_s15 + $0x5b8] sm:$0xff] %v1144_v55  ;;  %v1272_v55 = vld [vmem:[%s8856_s14 + $0xf58] sm:$0xff] }
  0xc8   : > { %1147 = vst [vmem:[%s8861_s15 + $0x5c0] sm:$0xff] %v1146_v56  ;;  %v1274_v56 = vld [vmem:[%s8856_s14 + $0xf80] sm:$0xff] }
  0xc9   : > { %1149 = vst [vmem:[%s8861_s15 + $0x5c8] sm:$0xff] %v1148_v57  ;;  %v1276_v57 = vld [vmem:[%s8856_s14 + $0xf88] sm:$0xff] }
  0xca   : > { %1151 = vst [vmem:[%s8861_s15 + $0x5d0] sm:$0xff] %v1150_v58  ;;  %v1278_v58 = vld [vmem:[%s8856_s14 + $0xf90] sm:$0xff] }
  0xcb   : > { %1153 = vst [vmem:[%s8861_s15 + $0x5d8] sm:$0xff] %v1152_v59  ;;  %v1280_v59 = vld [vmem:[%s8856_s14 + $0xf98] sm:$0xff] }
  0xcc   : > { %1155 = vst [vmem:[%s8861_s15 + $0x5e0] sm:$0xff] %v1154_v60  ;;  %v1282_v60 = vld [vmem:[%s8856_s14 + $0xfc0] sm:$0xff] }
  0xcd   : > { %1157 = vst [vmem:[%s8861_s15 + $0x5e8] sm:$0xff] %v1156_v61  ;;  %v1284_v61 = vld [vmem:[%s8856_s14 + $0xfc8] sm:$0xff] }
  0xce   : > { %1159 = vst [vmem:[%s8861_s15 + $0x5f0] sm:$0xff] %v1158_v62  ;;  %v1286_v62 = vld [vmem:[%s8856_s14 + $0xfd0] sm:$0xff] }
  0xcf   : > { %1161 = vst [vmem:[%s8861_s15 + $0x5f8] sm:$0xff] %v1160_v63  ;;  %v1288_v63 = vld [vmem:[%s8856_s14 + $0xfd8] sm:$0xff] }
  0xd0   : > { %1163 = vst [vmem:[%s8861_s15 + $0x600] sm:$0xff] %v1162_v0 }
  0xd1   : > { %1165 = vst [vmem:[%s8861_s15 + $0x608] sm:$0xff] %v1164_v1 }
  0xd2   : > { %1167 = vst [vmem:[%s8861_s15 + $0x610] sm:$0xff] %v1166_v2 }
  0xd3   : > { %1169 = vst [vmem:[%s8861_s15 + $0x618] sm:$0xff] %v1168_v3 }
  0xd4   : > { %1171 = vst [vmem:[%s8861_s15 + $0x620] sm:$0xff] %v1170_v4 }
  0xd5   : > { %1173 = vst [vmem:[%s8861_s15 + $0x628] sm:$0xff] %v1172_v5 }
  0xd6   : > { %1175 = vst [vmem:[%s8861_s15 + $0x630] sm:$0xff] %v1174_v6 }
  0xd7   : > { %1177 = vst [vmem:[%s8861_s15 + $0x638] sm:$0xff] %v1176_v7 }
  0xd8   : > { %1179 = vst [vmem:[%s8861_s15 + $0x640] sm:$0xff] %v1178_v8 }
  0xd9   : > { %1181 = vst [vmem:[%s8861_s15 + $0x648] sm:$0xff] %v1180_v9 }
  0xda   : > { %1183 = vst [vmem:[%s8861_s15 + $0x650] sm:$0xff] %v1182_v10 }
  0xdb   : > { %1185 = vst [vmem:[%s8861_s15 + $0x658] sm:$0xff] %v1184_v11 }
  0xdc   : > { %1187 = vst [vmem:[%s8861_s15 + $0x660] sm:$0xff] %v1186_v12 }
  0xdd   : > { %1189 = vst [vmem:[%s8861_s15 + $0x668] sm:$0xff] %v1188_v13 }
  0xde   : > { %1191 = vst [vmem:[%s8861_s15 + $0x670] sm:$0xff] %v1190_v14 }
  0xdf   : > { %1193 = vst [vmem:[%s8861_s15 + $0x678] sm:$0xff] %v1192_v15 }
  0xe0   : > { %1195 = vst [vmem:[%s8861_s15 + $0x680] sm:$0xff] %v1194_v16 }
  0xe1   : > { %1197 = vst [vmem:[%s8861_s15 + $0x688] sm:$0xff] %v1196_v17 }
  0xe2   : > { %1199 = vst [vmem:[%s8861_s15 + $0x690] sm:$0xff] %v1198_v18 }
  0xe3   : > { %1201 = vst [vmem:[%s8861_s15 + $0x698] sm:$0xff] %v1200_v19 }
  0xe4   : > { %1203 = vst [vmem:[%s8861_s15 + $0x6a0] sm:$0xff] %v1202_v20 }
  0xe5   : > { %1205 = vst [vmem:[%s8861_s15 + $0x6a8] sm:$0xff] %v1204_v21 }
  0xe6   : > { %1207 = vst [vmem:[%s8861_s15 + $0x6b0] sm:$0xff] %v1206_v22 }
  0xe7   : > { %1209 = vst [vmem:[%s8861_s15 + $0x6b8] sm:$0xff] %v1208_v23 }
  0xe8   : > { %1211 = vst [vmem:[%s8861_s15 + $0x6c0] sm:$0xff] %v1210_v24 }
  0xe9   : > { %1213 = vst [vmem:[%s8861_s15 + $0x6c8] sm:$0xff] %v1212_v25 }
  0xea   : > { %1215 = vst [vmem:[%s8861_s15 + $0x6d0] sm:$0xff] %v1214_v26 }
  0xeb   : > { %1217 = vst [vmem:[%s8861_s15 + $0x6d8] sm:$0xff] %v1216_v27 }
  0xec   : > { %1219 = vst [vmem:[%s8861_s15 + $0x6e0] sm:$0xff] %v1218_v28 }
  0xed   : > { %1221 = vst [vmem:[%s8861_s15 + $0x6e8] sm:$0xff] %v1220_v29 }
  0xee   : > { %1223 = vst [vmem:[%s8861_s15 + $0x6f0] sm:$0xff] %v1222_v30 }
  0xef   : > { %1225 = vst [vmem:[%s8861_s15 + $0x6f8] sm:$0xff] %v1224_v31 }
  0xf0   : > { %1227 = vst [vmem:[%s8861_s15 + $0x700] sm:$0xff] %v1226_v32 }
  0xf1   : > { %1229 = vst [vmem:[%s8861_s15 + $0x708] sm:$0xff] %v1228_v33 }
  0xf2   : > { %1231 = vst [vmem:[%s8861_s15 + $0x710] sm:$0xff] %v1230_v34 }
  0xf3   : > { %1233 = vst [vmem:[%s8861_s15 + $0x718] sm:$0xff] %v1232_v35 }
  0xf4   : > { %1235 = vst [vmem:[%s8861_s15 + $0x720] sm:$0xff] %v1234_v36 }
  0xf5   : > { %1237 = vst [vmem:[%s8861_s15 + $0x728] sm:$0xff] %v1236_v37 }
  0xf6   : > { %1239 = vst [vmem:[%s8861_s15 + $0x730] sm:$0xff] %v1238_v38 }
  0xf7   : > { %1241 = vst [vmem:[%s8861_s15 + $0x738] sm:$0xff] %v1240_v39 }
  0xf8   : > { %1243 = vst [vmem:[%s8861_s15 + $0x740] sm:$0xff] %v1242_v40 }
  0xf9   : > { %1245 = vst [vmem:[%s8861_s15 + $0x748] sm:$0xff] %v1244_v41 }
  0xfa   : > { %1247 = vst [vmem:[%s8861_s15 + $0x750] sm:$0xff] %v1246_v42 }
  0xfb   : > { %1249 = vst [vmem:[%s8861_s15 + $0x758] sm:$0xff] %v1248_v43 }
  0xfc   : > { %1251 = vst [vmem:[%s8861_s15 + $0x760] sm:$0xff] %v1250_v44 }
  0xfd   : > { %1253 = vst [vmem:[%s8861_s15 + $0x768] sm:$0xff] %v1252_v45 }
  0xfe   : > { %1255 = vst [vmem:[%s8861_s15 + $0x770] sm:$0xff] %v1254_v46 }
  0xff   : > { %1257 = vst [vmem:[%s8861_s15 + $0x778] sm:$0xff] %v1256_v47 }
 0x100   : > { %1259 = vst [vmem:[%s8861_s15 + $0x780] sm:$0xff] %v1258_v48 }
 0x101   : > { %1261 = vst [vmem:[%s8861_s15 + $0x788] sm:$0xff] %v1260_v49 }
 0x102   : > { %1263 = vst [vmem:[%s8861_s15 + $0x790] sm:$0xff] %v1262_v50 }
 0x103   : > { %1265 = vst [vmem:[%s8861_s15 + $0x798] sm:$0xff] %v1264_v51 }
 0x104   : > { %1267 = vst [vmem:[%s8861_s15 + $0x7a0] sm:$0xff] %v1266_v52 }
 0x105   : > { %1269 = vst [vmem:[%s8861_s15 + $0x7a8] sm:$0xff] %v1268_v53 }
 0x106   : > { %1271 = vst [vmem:[%s8861_s15 + $0x7b0] sm:$0xff] %v1270_v54 }
 0x107   : > { %1273 = vst [vmem:[%s8861_s15 + $0x7b8] sm:$0xff] %v1272_v55 }
 0x108   : > { %1275 = vst [vmem:[%s8861_s15 + $0x7c0] sm:$0xff] %v1274_v56 }
 0x109   : > { %1277 = vst [vmem:[%s8861_s15 + $0x7c8] sm:$0xff] %v1276_v57 }
 0x10a   : > { %1279 = vst [vmem:[%s8861_s15 + $0x7d0] sm:$0xff] %v1278_v58 }
 0x10b   : > { %1281 = vst [vmem:[%s8861_s15 + $0x7d8] sm:$0xff] %v1280_v59 }
 0x10c   : > { %1283 = vst [vmem:[%s8861_s15 + $0x7e0] sm:$0xff] %v1282_v60 }
 0x10d   : > { %1285 = vst [vmem:[%s8861_s15 + $0x7e8] sm:$0xff] %v1284_v61 }
 0x10e   : > { %1287 = vst [vmem:[%s8861_s15 + $0x7f0] sm:$0xff] %v1286_v62 }
 0x10f   : > { %1289 = vst [vmem:[%s8861_s15 + $0x7f8] sm:$0xff] %v1288_v63 }
 0x110 PF: > { %p7042_p5 = scmp.ge.s32.totalorder %s8780_s26, 1  ;;  %p2353_p6 = scmp.lt.s32.totalorder %s8780_s26, 3 }
 0x112   : > { %p2354_p7 = pnand %p7042_p5, %p2353_p6 }
 0x114   : > { %2357 = sbr.rel (%p2354_p7) target bundleno = 2022 (0x7e6), region = 96 }
 0x119   : > { %v8684_v0 = vld [vmem:[%s11232_s1 + $0x38] sm:$0xff]  ;;  %vm4319_vm0 = vcmask 1044480   ;;  %v8683_v4 = vld [vmem:[%s11232_s1 + $0x30] sm:$0xff]  ;;  %v8682_v7 = vld [vmem:[%s11232_s1 + $0x28] sm:$0xff]  ;;  %s2360_s21 = sand.u32 1, %s8772_s24   ;;  %vm3934_vm1 = vcmask 998400  }
 0x11a   : > { %v8132_v1 = vld [vmem:[%s11232_s1 + $0x78] sm:$0xf]  ;;  %v8692_v2 = vld [vmem:[%s11232_s1 + $0x78] sm:$0x10]  ;;  %4323 = vmatpush.bf16.msra.mxu0 %v8684_v0  ;;  %8712 = vmatpush.bf16.msra.mxu3 %v8684_v0  ;;  %v8691_v6 = vld [vmem:[%s11232_s1 + $0x70] sm:$0xff]  ;;  %s7043_s29 = sshll.u32 %s2360_s21, 11 }
 0x11b   : > { %v8133_v3 = vor.u32 %v8692_v2, %v8132_v1  ;;  %v8690_v8 = vld [vmem:[%s11232_s1 + $0x68] sm:$0xff]  ;;  %v8681_v9 = vld [vmem:[%s11232_s1 + $0x20] sm:$0xff]  ;;  %v8680_v11 = vld [vmem:[%s11232_s1 + $0x18] sm:$0xff]  ;;  %s9423_s15 = scalar_lea.vmem [#allocation2], %s7043_s29  ;;  %vm6042_vm2 = vcmask 1041408   ;;  %vm6035_vm3 = vcmask 162816  }
 0x11c   : > { %v8689_v10 = vld [vmem:[%s11232_s1 + $0x60] sm:$0xff]  ;;  %v8688_v12 = vld [vmem:[%s11232_s1 + $0x58] sm:$0xff]  ;;  %v8679_v13 = vld [vmem:[%s11232_s1 + $0x10] sm:$0xff]  ;;  %vm6935_vm4 = vcmask 1040384   ;;  %vm6928_vm5 = vcmask 408576   ;;  %s7044_s24 = sshll.u32 %s7034_s27, 2 }
 0x11d   : > { %v4321_v5 = vsel %vm4319_vm0, %v8133_v3, 0  ;;  %v8687_v14 = vld [vmem:[%s11232_s1 + $0x50] sm:$0xff]  ;;  %v8678_v15 = vld [vmem:[%s11232_s1 + $0x8] sm:$0xff]  ;;  %v8677_v17 = vld [vmem:[%s11232_s1] sm:$0xff]  ;;  %p2393_p8 = scmp.lt.s32.totalorder %s7044_s24, 7  ;;  %vm6958_vm6 = vcmask 80896  }
 0x11e   : > { %4972 = vmatpush.bf16.msra.mxu1 %v4321_v5  ;;  %8720 = vmatpush.bf16.msra.mxu2 %v4321_v5  ;;  %v8686_v16 = vld [vmem:[%s11232_s1 + $0x48] sm:$0xff]  ;;  %v7048_v18 = vld [vmem:[%s9423_s15] sm:$0xf]  ;;  %v7632_v20 = vld [vmem:[%s9423_s15 + $0x490] sm:$0xf] }
 0x11f   : > { %4324 = vmatpush.bf16.msra.mxu0 %v8683_v4  ;;  %8713 = vmatpush.bf16.msra.mxu3 %v8683_v4  ;;  %v8422_v19 = vld [vmem:[%s9423_s15 + $0x4] sm:$0xf0]  ;;  %v8568_v21 = vld [vmem:[%s9423_s15 + $0x494] sm:$0xf0]  ;;  %v8685_v22 = vld [vmem:[%s11232_s1 + $0x40] sm:$0xff]  ;;  %s11290_s24 = smov (!%p2393_p8, %s7044_s24), 7 }
 0x120   : > { %v8421_v23 = vld [vmem:[%s9423_s15 + $0x4] sm:$0xf]  ;;  %v7050_v24 = vld [vmem:[%s9423_s15 + $0x8] sm:$0xf0]  ;;  %v8567_v25 = vld [vmem:[%s9423_s15 + $0x494] sm:$0xf]  ;;  %v7049_v27 = vor.u32 %v8422_v19, %v7048_v18  ;;  %v7633_v28 = vor.u32 %v8568_v21, %v7632_v20 }
 0x121   : > { %v7634_v26 = vld [vmem:[%s9423_s15 + $0x498] sm:$0xf0]  ;;  %v7053_v29 = vor.u32 %v8421_v23, %v7050_v24  ;;  %v7056_v31 = vld [vmem:[%s9423_s15 + $0x10] sm:$0xf]  ;;  %v8424_v32 = vld [vmem:[%s9423_s15 + $0x14] sm:$0xf0] }
 0x122   : > { %4973 = vmatpush.bf16.msra.mxu1 %v8691_v6  ;;  %8721 = vmatpush.bf16.msra.mxu2 %v8691_v6  ;;  %v7637_v30 = vor.u32 %v8567_v25, %v7634_v26  ;;  %v7640_v33 = vld [vmem:[%s9423_s15 + $0x4a0] sm:$0xf]  ;;  %v8570_v34 = vld [vmem:[%s9423_s15 + $0x4a4] sm:$0xf0]  ;;  %v8423_v35 = vld [vmem:[%s9423_s15 + $0x14] sm:$0xf]  ;;  %v7057_v39 = vor.u32 %v8424_v32, %v7056_v31 }
 0x123   : > { %4325 = vmatpush.bf16.msra.mxu0 %v8682_v7  ;;  %8714 = vmatpush.bf16.msra.mxu3 %v8682_v7  ;;  %v7058_v36 = vld [vmem:[%s9423_s15 + $0x18] sm:$0xf0]  ;;  %v8569_v37 = vld [vmem:[%s9423_s15 + $0x4a4] sm:$0xf]  ;;  %v7642_v38 = vld [vmem:[%s9423_s15 + $0x4a8] sm:$0xf0]  ;;  %v7641_v40 = vor.u32 %v8570_v34, %v7640_v33 }
 0x124   : > { %v7061_v41 = vor.u32 %v8423_v35, %v7058_v36  ;;  %v7645_v42 = vor.u32 %v8569_v37, %v7642_v38  ;;  %v7064_v43 = vld [vmem:[%s9423_s15 + $0x20] sm:$0xf]  ;;  %v8426_v44 = vld [vmem:[%s9423_s15 + $0x24] sm:$0xf0]  ;;  %v7648_v45 = vld [vmem:[%s9423_s15 + $0x4b0] sm:$0xf] }
 0x125   : > { %v8572_v46 = vld [vmem:[%s9423_s15 + $0x4b4] sm:$0xf0]  ;;  %v8425_v47 = vld [vmem:[%s9423_s15 + $0x24] sm:$0xf]  ;;  %v7066_v48 = vld [vmem:[%s9423_s15 + $0x28] sm:$0xf0]  ;;  %v7065_v51 = vor.u32 %v8426_v44, %v7064_v43 }
 0x126   : > { %4974 = vmatpush.bf16.msra.mxu1 %v8690_v8  ;;  %8722 = vmatpush.bf16.msra.mxu2 %v8690_v8  ;;  %v8571_v49 = vld [vmem:[%s9423_s15 + $0x4b4] sm:$0xf]  ;;  %v7650_v50 = vld [vmem:[%s9423_s15 + $0x4b8] sm:$0xf0]  ;;  %v7649_v52 = vor.u32 %v8572_v46, %v7648_v45  ;;  %v7069_v53 = vor.u32 %v8425_v47, %v7066_v48  ;;  %v7072_v55 = vld [vmem:[%s9423_s15 + $0x30] sm:$0xf] }
 0x127   : > { %4326 = vmatpush.bf16.msra.mxu0 %v8681_v9  ;;  %8715 = vmatpush.bf16.msra.mxu3 %v8681_v9  ;;  %v7653_v54 = vor.u32 %v8571_v49, %v7650_v50  ;;  %v8428_v56 = vld [vmem:[%s9423_s15 + $0x34] sm:$0xf0]  ;;  %v7656_v57 = vld [vmem:[%s9423_s15 + $0x4c0] sm:$0xf]  ;;  %v8574_v58 = vld [vmem:[%s9423_s15 + $0x4c4] sm:$0xf0] }
 0x128   : > { %v8427_v59 = vld [vmem:[%s9423_s15 + $0x34] sm:$0xf]  ;;  %v7074_v60 = vld [vmem:[%s9423_s15 + $0x38] sm:$0xf0]  ;;  %v8573_v61 = vld [vmem:[%s9423_s15 + $0x4c4] sm:$0xf]  ;;  %v7073_v63 = vor.u32 %v8428_v56, %v7072_v55  ;;  %v7657_v0 = vor.u32 %v8574_v58, %v7656_v57 }
 0x129   : > { %v7658_v62 = vld [vmem:[%s9423_s15 + $0x4c8] sm:$0xf0]  ;;  %v7077_v1 = vor.u32 %v8427_v59, %v7074_v60  ;;  %v7080_v3 = vld [vmem:[%s9423_s15 + $0x40] sm:$0xf]  ;;  %v8430_v4 = vld [vmem:[%s9423_s15 + $0x44] sm:$0xf0] }
 0x12a   : > { %4975 = vmatpush.bf16.msra.mxu1 %v8689_v10  ;;  %8723 = vmatpush.bf16.msra.mxu2 %v8689_v10  ;;  %v7661_v2 = vor.u32 %v8573_v61, %v7658_v62  ;;  %v7664_v5 = vld [vmem:[%s9423_s15 + $0x4d0] sm:$0xf]  ;;  %v8576_v6 = vld [vmem:[%s9423_s15 + $0x4d4] sm:$0xf0]  ;;  %v8429_v7 = vld [vmem:[%s9423_s15 + $0x44] sm:$0xf] }
 0x12b   : > { %4327 = vmatpush.bf16.msra.mxu0 %v8680_v11  ;;  %8716 = vmatpush.bf16.msra.mxu3 %v8680_v11  ;;  %v7082_v8 = vld [vmem:[%s9423_s15 + $0x48] sm:$0xf0]  ;;  %v8575_v9 = vld [vmem:[%s9423_s15 + $0x4d4] sm:$0xf]  ;;  %v7666_v10 = vld [vmem:[%s9423_s15 + $0x4d8] sm:$0xf0]  ;;  %v7081_v11 = vor.u32 %v8430_v4, %v7080_v3 }
 0x12c   : > { %v8578_v18 = vld [vmem:[%s9423_s15 + $0x4e4] sm:$0xf0]  ;;  %v8431_v19 = vld [vmem:[%s9423_s15 + $0x54] sm:$0xf]  ;;  %v7090_v20 = vld [vmem:[%s9423_s15 + $0x58] sm:$0xf0] }
 0x12d   : > { %v8577_v21 = vld [vmem:[%s9423_s15 + $0x4e4] sm:$0xf]  ;;  %v7093_v25 = vor.u32 %v8431_v19, %v7090_v20  ;;  %v7098_v32 = vld [vmem:[%s9423_s15 + $0x68] sm:$0xf0]  ;;  %v8579_v33 = vld [vmem:[%s9423_s15 + $0x4f4] sm:$0xf] }
 0x12e   : > { %4976 = vmatpush.bf16.msra.mxu1 %v8688_v12  ;;  %8724 = vmatpush.bf16.msra.mxu2 %v8688_v12  ;;  %v7665_v12 = vor.u32 %v8576_v6, %v7664_v5  ;;  %v8433_v31 = vld [vmem:[%s9423_s15 + $0x64] sm:$0xf]  ;;  %v7682_v34 = vld [vmem:[%s9423_s15 + $0x4f8] sm:$0xf0]  ;;  %v8435_v43 = vld [vmem:[%s9423_s15 + $0x74] sm:$0xf] }
 0x12f   : > { %4328 = vmatpush.bf16.msra.mxu0 %v8679_v13  ;;  %8717 = vmatpush.bf16.msra.mxu3 %v8679_v13  ;;  %v7085_v13 = vor.u32 %v8429_v7, %v7082_v8  ;;  %v7101_v37 = vor.u32 %v8433_v31, %v7098_v32  ;;  %v7685_v38 = vor.u32 %v8579_v33, %v7682_v34  ;;  %v7106_v44 = vld [vmem:[%s9423_s15 + $0x78] sm:$0xf0]  ;;  %v8581_v45 = vld [vmem:[%s9423_s15 + $0x504] sm:$0xf]  ;;  %v7690_v46 = vld [vmem:[%s9423_s15 + $0x508] sm:$0xf0] }
 0x130   : > { %v7109_v49 = vor.u32 %v8435_v43, %v7106_v44  ;;  %v7693_v50 = vor.u32 %v8581_v45, %v7690_v46  ;;  %v8437_v55 = vld [vmem:[%s9423_s15 + $0x84] sm:$0xf]  ;;  %v7114_v56 = vld [vmem:[%s9423_s15 + $0x88] sm:$0xf0]  ;;  %v8583_v57 = vld [vmem:[%s9423_s15 + $0x514] sm:$0xf] }
 0x131   : > { %v7698_v58 = vld [vmem:[%s9423_s15 + $0x518] sm:$0xf0]  ;;  %v7117_v62 = vor.u32 %v8437_v55, %v7114_v56  ;;  %v7120_v8 = vld [vmem:[%s9423_s15 + $0x90] sm:$0xf]  ;;  %v7128_v32 = vld [vmem:[%s9423_s15 + $0xa0] sm:$0xf] }
 0x132   : > { %4977 = vmatpush.bf16.msra.mxu1 %v8687_v14  ;;  %8725 = vmatpush.bf16.msra.mxu2 %v8687_v14  ;;  %v7669_v14 = vor.u32 %v8575_v9, %v7666_v10  ;;  %v8440_v9 = vld [vmem:[%s9423_s15 + $0x94] sm:$0xf0]  ;;  %v7704_v10 = vld [vmem:[%s9423_s15 + $0x520] sm:$0xf]  ;;  %v8442_v33 = vld [vmem:[%s9423_s15 + $0xa4] sm:$0xf0] }
 0x133   : > { %4329 = vmatpush.bf16.msra.mxu0 %v8678_v15  ;;  %8718 = vmatpush.bf16.msra.mxu3 %v8678_v15  ;;  %v7088_v15 = vld [vmem:[%s9423_s15 + $0x50] sm:$0xf]  ;;  %s7045_s12 = sshll.u32 %s11290_s24, 3 }
 0x134   : > { %v7712_v34 = vld [vmem:[%s9423_s15 + $0x530] sm:$0xf]  ;;  %s2396_s18 = scalar_lea.vmem %s11238_s7, %s7045_s12 }
 0x136   : > { %4978 = vmatpush.bf16.msra.mxu1 %v8686_v16  ;;  %8726 = vmatpush.bf16.msra.mxu2 %v8686_v16  ;;  %v8432_v16 = vld [vmem:[%s9423_s15 + $0x54] sm:$0xf0] }
 0x137   : > { %4330 = vmatpush.bf16.msra.mxu0 %v8677_v17  ;;  %8719 = vmatpush.bf16.msra.mxu3 %v8677_v17  ;;  %v7672_v17 = vld [vmem:[%s9423_s15 + $0x4e0] sm:$0xf]  ;;  %v7089_v23 = vor.u32 %v8432_v16, %v7088_v15  ;;  %v8585_v15 = vld [vmem:[%s9423_s15 + $0x524] sm:$0xf]  ;;  %v7706_v16 = vld [vmem:[%s9423_s15 + $0x528] sm:$0xf0] }
 0x138   : > { %v7673_v24 = vor.u32 %v8578_v18, %v7672_v17  ;;  %v7121_v17 = vor.u32 %v8440_v9, %v7120_v8 }
 0x13a   : > { %4979 = vmatpush.bf16.msra.mxu1 %v8685_v22  ;;  %8727 = vmatpush.bf16.msra.mxu2 %v8685_v22  ;;  %v7674_v22 = vld [vmem:[%s9423_s15 + $0x4e8] sm:$0xf0] }
 0x13b   : > { %4331 = vmatmul.bf16.vlgmr.msra.gmra.mxu0 %v7049_v27  ;;  %4696 = vmatmul.bf16.vlgmr.msra.gmra.mxu3 %v7633_v28  ;;  %v7677_v26 = vor.u32 %v8577_v21, %v7674_v22  ;;  %v7096_v27 = vld [vmem:[%s9423_s15 + $0x60] sm:$0xf]  ;;  %v8434_v28 = vld [vmem:[%s9423_s15 + $0x64] sm:$0xf0] }
 0x13c   : > { %v7097_v35 = vor.u32 %v8434_v28, %v7096_v27 }
 0x13d   : > { %8134 = vmatmul.msk.bf16.vlgmr.msra.gmra.mxu1 %vm3934_vm1, %v7053_v29  ;;  %8207 = vmatmul.msk.bf16.vlgmr.msra.gmra.mxu2 %vm3934_vm1, %v7637_v30  ;;  %v7680_v29 = vld [vmem:[%s9423_s15 + $0x4f0] sm:$0xf]  ;;  %v8580_v30 = vld [vmem:[%s9423_s15 + $0x4f4] sm:$0xf0] }
 0x13e   : > { %v7681_v36 = vor.u32 %v8580_v30, %v7680_v29 }
 0x14b   : > { %4336 = vmatmul.bf16.gmra.mxu0 %v7057_v39  ;;  %4701 = vmatmul.bf16.gmra.mxu3 %v7641_v40  ;;  %v7104_v39 = vld [vmem:[%s9423_s15 + $0x70] sm:$0xf]  ;;  %v8436_v40 = vld [vmem:[%s9423_s15 + $0x74] sm:$0xf0] }
 0x14c   : > { %v7105_v47 = vor.u32 %v8436_v40, %v7104_v39  ;;  %v8587_v39 = vld [vmem:[%s9423_s15 + $0x534] sm:$0xf]  ;;  %v7714_v40 = vld [vmem:[%s9423_s15 + $0x538] sm:$0xf0] }
 0x14d   : > { %8135 = vmatmul.msk.bf16.gmra.mxu1 %vm3934_vm1, %v7061_v41  ;;  %8208 = vmatmul.msk.bf16.gmra.mxu2 %vm3934_vm1, %v7645_v42  ;;  %v7688_v41 = vld [vmem:[%s9423_s15 + $0x500] sm:$0xf]  ;;  %v8582_v42 = vld [vmem:[%s9423_s15 + $0x504] sm:$0xf0] }
 0x14e   : > { %v7689_v48 = vor.u32 %v8582_v42, %v7688_v41  ;;  %v7129_v41 = vor.u32 %v8442_v33, %v7128_v32  ;;  %v8445_v33 = vld [vmem:[%s9423_s15 + $0xc4] sm:$0xf] }
 0x15b   : > { %4341 = vmatmul.bf16.gmra.mxu0 %v7065_v51  ;;  %4706 = vmatmul.bf16.gmra.mxu3 %v7649_v52  ;;  %v7112_v51 = vld [vmem:[%s9423_s15 + $0x80] sm:$0xf]  ;;  %v8438_v52 = vld [vmem:[%s9423_s15 + $0x84] sm:$0xf0] }
 0x15c   : > { %v7113_v59 = vor.u32 %v8438_v52, %v7112_v51 }
 0x15d   : > { %8136 = vmatmul.msk.bf16.gmra.mxu1 %vm3934_vm1, %v7069_v53  ;;  %8209 = vmatmul.msk.bf16.gmra.mxu2 %vm3934_vm1, %v7653_v54  ;;  %v7696_v53 = vld [vmem:[%s9423_s15 + $0x510] sm:$0xf]  ;;  %v8584_v54 = vld [vmem:[%s9423_s15 + $0x514] sm:$0xf0] }
 0x15e   : > { %v7697_v60 = vor.u32 %v8584_v54, %v7696_v53 }
 0x16b   : > { %4346 = vmatmul.bf16.gmra.mxu0 %v7073_v63  ;;  %4711 = vmatmul.bf16.gmra.mxu3 %v7657_v0  ;;  %v7701_v63 = vor.u32 %v8583_v57, %v7698_v58  ;;  %v7136_v58 = vld [vmem:[%s9423_s15 + $0xb0] sm:$0xf] }
 0x16d   : > { %8137 = vmatmul.msk.bf16.gmra.mxu1 %vm3934_vm1, %v7077_v1  ;;  %8210 = vmatmul.msk.bf16.gmra.mxu2 %vm3934_vm1, %v7661_v2 }
 0x17b   : > { %4351 = vmatmul.bf16.gmra.mxu0 %v7081_v11  ;;  %4716 = vmatmul.bf16.gmra.mxu3 %v7665_v12  ;;  %v8586_v11 = vld [vmem:[%s9423_s15 + $0x524] sm:$0xf0]  ;;  %v8439_v12 = vld [vmem:[%s9423_s15 + $0x94] sm:$0xf] }
 0x17c   : > { %v7705_v18 = vor.u32 %v8586_v11, %v7704_v10 }
 0x17d   : > { %8138 = vmatmul.msk.bf16.gmra.mxu1 %vm3934_vm1, %v7085_v13  ;;  %8211 = vmatmul.msk.bf16.gmra.mxu2 %vm3934_vm1, %v7669_v14  ;;  %v7122_v14 = vld [vmem:[%s9423_s15 + $0x98] sm:$0xf0] }
 0x17e   : > { %v7125_v22 = vor.u32 %v8439_v12, %v7122_v14 }
 0x18b   : > { %4356 = vmatmul.bf16.gmra.mxu0 %v7089_v23  ;;  %4721 = vmatmul.bf16.gmra.mxu3 %v7673_v24  ;;  %v7709_v23 = vor.u32 %v8585_v15, %v7706_v16 }
 0x18d   : > { %8139 = vmatmul.msk.bf16.gmra.mxu1 %vm3934_vm1, %v7093_v25  ;;  %8212 = vmatmul.msk.bf16.gmra.mxu2 %vm3934_vm1, %v7677_v26 }
 0x19b   : > { %4361 = vmatmul.bf16.gmra.mxu0 %v7097_v35  ;;  %4726 = vmatmul.bf16.gmra.mxu3 %v7681_v36  ;;  %v8588_v35 = vld [vmem:[%s9423_s15 + $0x534] sm:$0xf0]  ;;  %v8441_v36 = vld [vmem:[%s9423_s15 + $0xa4] sm:$0xf] }
 0x19c   : > { %v7713_v42 = vor.u32 %v8588_v35, %v7712_v34  ;;  %v7146_v35 = vld [vmem:[%s9423_s15 + $0xc8] sm:$0xf0] }
 0x19d   : > { %8140 = vmatmul.msk.bf16.gmra.mxu1 %vm3934_vm1, %v7101_v37  ;;  %8213 = vmatmul.msk.bf16.gmra.mxu2 %vm3934_vm1, %v7685_v38  ;;  %v7130_v38 = vld [vmem:[%s9423_s15 + $0xa8] sm:$0xf0] }
 0x19e   : > { %v7133_v46 = vor.u32 %v8441_v36, %v7130_v38  ;;  %v8591_v36 = vld [vmem:[%s9423_s15 + $0x554] sm:$0xf] }
 0x1ab   : > { %4366 = vmatmul.bf16.gmra.mxu0 %v7105_v47  ;;  %4731 = vmatmul.bf16.gmra.mxu3 %v7689_v48  ;;  %v7717_v47 = vor.u32 %v8587_v39, %v7714_v40 }
 0x1ad   : > { %8141 = vmatmul.msk.bf16.gmra.mxu1 %vm3934_vm1, %v7109_v49  ;;  %8214 = vmatmul.msk.bf16.gmra.mxu2 %vm3934_vm1, %v7693_v50 }
 0x1b8   : > { %v4332_v61 = vpop.f32.mrf.mxu0 }
 0x1ba   : > { %v4981_v0 = vpop.f32.mrf.mxu1 }
 0x1bb   : > { %v9516_v1 = vadd.f32 %v4981_v0, %v4332_v61  ;;  %4371 = vmatmul.bf16.gmra.mxu0 %v7113_v59  ;;  %4736 = vmatmul.bf16.gmra.mxu3 %v7697_v60  ;;  %v8444_v59 = vld [vmem:[%s9423_s15 + $0xb4] sm:$0xf0]  ;;  %v7720_v60 = vld [vmem:[%s9423_s15 + $0x540] sm:$0xf]  ;;  %v8590_v61 = vld [vmem:[%s9423_s15 + $0x544] sm:$0xf0] }
 0x1bc   : > { %v7721_v8 = vor.u32 %v8590_v61, %v7720_v60  ;;  %v8448_v60 = vld [vmem:[%s9423_s15 + $0xd4] sm:$0xf0]  ;;  %v7736_v61 = vld [vmem:[%s9423_s15 + $0x560] sm:$0xf] }
 0x1bd   : > { %8142 = vmatmul.msk.bf16.gmra.mxu1 %vm3934_vm1, %v7117_v62  ;;  %8215 = vmatmul.msk.bf16.gmra.mxu2 %vm3934_vm1, %v7701_v63  ;;  %v8443_v63 = vld [vmem:[%s9423_s15 + $0xb4] sm:$0xf] }
 0x1be   : > { %v4697_v2 = vpop.f32.mrf.mxu3 }
 0x1c0   : > { %v5346_v3 = vpop.f32.mrf.mxu2  ;;  %v4334_v4 = vpop.f32.mrf.mxu0 }
 0x1c1   : > { %v9520_v5 = vadd.f32 %v5346_v3, %v4697_v2  ;;  %v7138_v2 = vld [vmem:[%s9423_s15 + $0xb8] sm:$0xf0]  ;;  %v8589_v3 = vld [vmem:[%s9423_s15 + $0x544] sm:$0xf] }
 0x1c2   : > { %v4983_v6 = vpop.f32.mrf.mxu1  ;;  %v7141_v12 = vor.u32 %v8443_v63, %v7138_v2  ;;  %v8594_v63 = vld [vmem:[%s9423_s15 + $0x564] sm:$0xf0] }
 0x1c3   : > { %v9522_v7 = vadd.f32 %v4983_v6, %v4334_v4  ;;  %v7722_v4 = vld [vmem:[%s9423_s15 + $0x548] sm:$0xf0]  ;;  %v7137_v6 = vor.u32 %v8444_v59, %v7136_v58  ;;  %v7152_v59 = vld [vmem:[%s9423_s15 + $0xd0] sm:$0xf] }
 0x1c6   : > { %v4699_v13 = vpop.f32.mrf.mxu3 }
 0x1c8   : > { %v5348_v19 = vpop.f32.mrf.mxu2  ;;  %v4337_v20 = vpop.f32.mrf.mxu0 }
 0x1c9   : > { %v9532_v21 = vadd.f32 %v5348_v19, %v4699_v13  ;;  %v7725_v13 = vor.u32 %v8589_v3, %v7722_v4  ;;  %v7154_v3 = vld [vmem:[%s9423_s15 + $0xd8] sm:$0xf0]  ;;  %v8593_v4 = vld [vmem:[%s9423_s15 + $0x564] sm:$0xf] }
 0x1ca   : > { %v4986_v24 = vpop.f32.mrf.mxu1 }
 0x1cb   : > { %v9534_v25 = vadd.f32 %v4986_v24, %v4337_v20  ;;  %4376 = vmatmul.bf16.gmra.mxu0 %v7121_v17  ;;  %4741 = vmatmul.bf16.gmra.mxu3 %v7705_v18 }
 0x1cd   : > { %8143 = vmatmul.msk.bf16.gmra.mxu1 %vm3934_vm1, %v7125_v22  ;;  %8216 = vmatmul.msk.bf16.gmra.mxu2 %vm3934_vm1, %v7709_v23 }
 0x1ce   : > { %v4702_v26 = vpop.f32.mrf.mxu3 }
 0x1d0   : > { %v5351_v27 = vpop.f32.mrf.mxu2  ;;  %v4339_v28 = vpop.f32.mrf.mxu0 }
 0x1d1   : > { %v9538_v29 = vadd.f32 %v5351_v27, %v4702_v26  ;;  %v7144_v26 = vld [vmem:[%s9423_s15 + $0xc0] sm:$0xf]  ;;  %v8446_v27 = vld [vmem:[%s9423_s15 + $0xc4] sm:$0xf0] }
 0x1d2   : > { %v4988_v30 = vpop.f32.mrf.mxu1  ;;  %v7145_v38 = vor.u32 %v8446_v27, %v7144_v26 }
 0x1d3   : > { %v9540_v31 = vadd.f32 %v4988_v30, %v4339_v28  ;;  %v7728_v28 = vld [vmem:[%s9423_s15 + $0x550] sm:$0xf]  ;;  %v8592_v30 = vld [vmem:[%s9423_s15 + $0x554] sm:$0xf0] }
 0x1d4   : > { %v7729_v39 = vor.u32 %v8592_v30, %v7728_v28 }
 0x1d6   : > { %v4704_v37 = vpop.f32.mrf.mxu3 }
 0x1d8   : > { %v5353_v43 = vpop.f32.mrf.mxu2  ;;  %v4342_v44 = vpop.f32.mrf.mxu0 }
 0x1d9   : > { %v9550_v45 = vadd.f32 %v5353_v43, %v4704_v37  ;;  %v7730_v37 = vld [vmem:[%s9423_s15 + $0x558] sm:$0xf0]  ;;  %v7149_v43 = vor.u32 %v8445_v33, %v7146_v35  ;;  %v7160_v35 = vld [vmem:[%s9423_s15 + $0xe0] sm:$0xf] }
 0x1da   : > { %v4991_v48 = vpop.f32.mrf.mxu1 }
 0x1db   : > { %v9552_v49 = vadd.f32 %v4991_v48, %v4342_v44  ;;  %4381 = vmatmul.bf16.gmra.mxu0 %v7129_v41  ;;  %4746 = vmatmul.bf16.gmra.mxu3 %v7713_v42  ;;  %v7733_v44 = vor.u32 %v8591_v36, %v7730_v37  ;;  %v8450_v36 = vld [vmem:[%s9423_s15 + $0xe4] sm:$0xf0]  ;;  %v7744_v37 = vld [vmem:[%s9423_s15 + $0x570] sm:$0xf] }
 0x1dd   : > { %v5621_v50 = vmax.f32 %v9516_v1, %v9552_v49  ;;  %8144 = vmatmul.msk.bf16.gmra.mxu1 %vm3934_vm1, %v7133_v46  ;;  %8217 = vmatmul.msk.bf16.gmra.mxu2 %vm3934_vm1, %v7717_v47  ;;  %v7168_v1 = vld [vmem:[%s9423_s15 + $0xf0] sm:$0xf]  ;;  %v8452_v49 = vld [vmem:[%s9423_s15 + $0xf4] sm:$0xf0] }
 0x1de   : > { %v4707_v51 = vpop.f32.mrf.mxu3 }
 0x1e0   : > { %v5356_v52 = vpop.f32.mrf.mxu2  ;;  %v4344_v53 = vpop.f32.mrf.mxu0 }
 0x1e1   : > { %v9558_v54 = vadd.f32 %v5356_v52, %v4707_v51 }
 0x1e2   : > { %v4993_v55 = vpop.f32.mrf.mxu1 }
 0x1e3   : > { %v5659_v56 = vmax.f32 %v9520_v5, %v9558_v54  ;;  %v9562_v57 = vadd.f32 %v4993_v55, %v4344_v53 }
 0x1e5   : > { %v5622_v62 = vmax.f32 %v9522_v7, %v9562_v57 }
 0x1e6   : > { %v4709_v0 = vpop.f32.mrf.mxu3 }
 0x1e8   : > { %v5358_v9 = vpop.f32.mrf.mxu2  ;;  %v4347_v10 = vpop.f32.mrf.mxu0 }
 0x1e9   : > { %v9574_v11 = vadd.f32 %v5358_v9, %v4709_v0  ;;  %v8447_v0 = vld [vmem:[%s9423_s15 + $0xd4] sm:$0xf]  ;;  %v7737_v9 = vor.u32 %v8594_v63, %v7736_v61 }
 0x1ea   : > { %v4996_v14 = vpop.f32.mrf.mxu1 }
 0x1eb   : > { %v5660_v15 = vmax.f32 %v9532_v21, %v9574_v11  ;;  %v9578_v16 = vadd.f32 %v4996_v14, %v4347_v10  ;;  %4386 = vmatmul.bf16.gmra.mxu0 %v7137_v6  ;;  %4751 = vmatmul.bf16.gmra.mxu3 %v7721_v8  ;;  %v7738_v6 = vld [vmem:[%s9423_s15 + $0x568] sm:$0xf0]  ;;  %v7153_v8 = vor.u32 %v8448_v60, %v7152_v59 }
 0x1ec   : > { %v7157_v14 = vor.u32 %v8447_v0, %v7154_v3 }
 0x1ed   : > { %v5623_v17 = vmax.f32 %v9534_v25, %v9578_v16  ;;  %8145 = vmatmul.msk.bf16.gmra.mxu1 %vm3934_vm1, %v7141_v12  ;;  %8218 = vmatmul.msk.bf16.gmra.mxu2 %vm3934_vm1, %v7725_v13  ;;  %v8453_v16 = vld [vmem:[%s9423_s15 + $0x104] sm:$0xf] }
 0x1ee   : > { %v4712_v18 = vpop.f32.mrf.mxu3 }
 0x1f0   : > { %v5361_v19 = vpop.f32.mrf.mxu2  ;;  %v4349_v20 = vpop.f32.mrf.mxu0 }
 0x1f1   : > { %v9584_v22 = vadd.f32 %v5361_v19, %v4712_v18  ;;  %v7741_v18 = vor.u32 %v8593_v4, %v7738_v6  ;;  %v9649_v6 = vld [vmem:[%s11233_s2] ss:$0 sm:$0xff] }
 0x1f2   : > { %v4998_v23 = vpop.f32.mrf.mxu1 }
 0x1f3   : > { %v9586_v24 = vadd.f32 %v4998_v23, %v4349_v20 }
 0x1f5   : > { %v5624_v32 = vmax.f32 %v9540_v31, %v9586_v24 }
 0x1f6   : > { %v4714_v34 = vpop.f32.mrf.mxu3 }
 0x1f8   : > { %v5363_v40 = vpop.f32.mrf.mxu2  ;;  %v4352_v41 = vpop.f32.mrf.mxu0 }
 0x1f9   : > { %v9598_v42 = vadd.f32 %v5363_v40, %v4714_v34 }
 0x1fa   : > { %v5001_v46 = vpop.f32.mrf.mxu1 }
 0x1fb   : > { %v9600_v47 = vadd.f32 %v5001_v46, %v4352_v41  ;;  %4391 = vmatmul.bf16.gmra.mxu0 %v7145_v38  ;;  %4756 = vmatmul.bf16.gmra.mxu3 %v7729_v39  ;;  %v8596_v38 = vld [vmem:[%s9423_s15 + $0x574] sm:$0xf0]  ;;  %v8449_v39 = vld [vmem:[%s9423_s15 + $0xe4] sm:$0xf]  ;;  %v7162_v41 = vld [vmem:[%s9423_s15 + $0xe8] sm:$0xf0]  ;;  %v7161_v46 = vor.u32 %v8450_v36, %v7160_v35 }
 0x1fc   : > { %v7165_v59 = vor.u32 %v8449_v39, %v7162_v41  ;;  %v7170_v35 = vld [vmem:[%s9423_s15 + $0xf8] sm:$0xf0]  ;;  %v8597_v36 = vld [vmem:[%s9423_s15 + $0x584] sm:$0xf]  ;;  %v7169_v39 = vor.u32 %v8452_v49, %v7168_v1 }
 0x1fd   : > { %8146 = vmatmul.msk.bf16.gmra.mxu1 %vm3934_vm1, %v7149_v43  ;;  %8219 = vmatmul.msk.bf16.gmra.mxu2 %vm3934_vm1, %v7733_v44  ;;  %v8595_v43 = vld [vmem:[%s9423_s15 + $0x574] sm:$0xf]  ;;  %v7746_v44 = vld [vmem:[%s9423_s15 + $0x578] sm:$0xf0] }
 0x1fe   : > { %v4717_v48 = vpop.f32.mrf.mxu3  ;;  %v7749_v60 = vor.u32 %v8595_v43, %v7746_v44 }
 0x200   : > { %v5366_v51 = vpop.f32.mrf.mxu2  ;;  %v4354_v52 = vpop.f32.mrf.mxu0 }
 0x201   : > { %v9604_v53 = vadd.f32 %v5366_v51, %v4717_v48  ;;  %v7745_v48 = vor.u32 %v8596_v38, %v7744_v37  ;;  %v7754_v37 = vld [vmem:[%s9423_s15 + $0x588] sm:$0xf0] }
 0x202   : > { %v5003_v55 = vpop.f32.mrf.mxu1  ;;  %v7757_v44 = vor.u32 %v8597_v36, %v7754_v37 }
 0x203   : > { %v9606_v58 = vadd.f32 %v5003_v55, %v4354_v52 }
 0x206   : > { %v4719_v2 = vpop.f32.mrf.mxu3 }
 0x208   : > { %v5368_v10 = vpop.f32.mrf.mxu2  ;;  %v4357_v12 = vpop.f32.mrf.mxu0 }
 0x209   : > { %v9616_v13 = vadd.f32 %v5368_v10, %v4719_v2 }
 0x20a   : > { %v5006_v19 = vpop.f32.mrf.mxu1 }
 0x20b   : > { %v9618_v20 = vadd.f32 %v5006_v19, %v4357_v12  ;;  %4396 = vmatmul.bf16.gmra.mxu0 %v7153_v8  ;;  %4761 = vmatmul.bf16.gmra.mxu3 %v7737_v9  ;;  %v8598_v19 = vld [vmem:[%s9423_s15 + $0x584] sm:$0xf0] }
 0x20d   : > { %8147 = vmatmul.msk.bf16.gmra.mxu1 %vm3934_vm1, %v7157_v14  ;;  %8220 = vmatmul.msk.bf16.gmra.mxu2 %vm3934_vm1, %v7741_v18 }
 0x20e   : > { %v4722_v23 = vpop.f32.mrf.mxu3 }
 0x210   : > { %v5371_v26 = vpop.f32.mrf.mxu2  ;;  %v4359_v27 = vpop.f32.mrf.mxu0 }
 0x211   : > { %v9622_v28 = vadd.f32 %v5371_v26, %v4722_v23 }
 0x212   : > { %v5008_v30 = vpop.f32.mrf.mxu1 }
 0x213   : > { %v9626_v34 = vadd.f32 %v5008_v30, %v4359_v27  ;;  %v8451_v27 = vld [vmem:[%s9423_s15 + $0xf4] sm:$0xf] }
 0x216   : > { %v4724_v40 = vpop.f32.mrf.mxu3 }
 0x218   : > { %v5373_v51 = vpop.f32.mrf.mxu2  ;;  %v4362_v52 = vpop.f32.mrf.mxu0 }
 0x219   : > { %v9636_v55 = vadd.f32 %v5373_v51, %v4724_v40 }
 0x21a   : > { %v5011_v61 = vpop.f32.mrf.mxu1 }
 0x21b   : > { %11240 = vst [vmem:[#allocation3_spill] sm:$0xff] %v9636_v55  ;;  %v5012_v0 = vadd.f32 %v5011_v61, %v4362_v52  ;;  %4401 = vmatmul.bf16.gmra.mxu0 %v7161_v46  ;;  %4766 = vmatmul.bf16.gmra.mxu3 %v7745_v48 }
 0x21d   : > { %v5685_v2 = vmax.f32 %v9600_v47, %v5012_v0  ;;  %8148 = vmatmul.msk.bf16.gmra.mxu1 %vm3934_vm1, %v7165_v59  ;;  %8221 = vmatmul.msk.bf16.gmra.mxu2 %vm3934_vm1, %v7749_v60 }
 0x21e   : > { %v4727_v3 = vpop.f32.mrf.mxu3 }
 0x21f   : > { %v5749_v4 = vmax.f32 %v5621_v50, %v5685_v2  ;;  %v7752_v50 = vld [vmem:[%s9423_s15 + $0x580] sm:$0xf] }
 0x220   : > { %v5376_v8 = vpop.f32.mrf.mxu2  ;;  %v4364_v47 = vpop.f32.mrf.mxu0  ;;  %v7753_v40 = vor.u32 %v8598_v19, %v7752_v50 }
 0x221   : > { %v5377_v9 = vadd.f32 %v5376_v8, %v4727_v3  ;;  %v5817_v12 = vadd.f32 %v9649_v6, %v5749_v4  ;;  %v7176_v4 = vld [vmem:[%s9423_s15 + $0x100] sm:$0xf]  ;;  %v8454_v8 = vld [vmem:[%s9423_s15 + $0x104] sm:$0xf0] }
 0x222   : > { %v5013_v10 = vpop.f32.mrf.mxu1  ;;  %v7177_v49 = vor.u32 %v8454_v8, %v7176_v4 }
 0x223   : > { %v5723_v14 = vmax.f32 %v9604_v53, %v5377_v9  ;;  %v5014_v18 = vadd.f32 %v5013_v10, %v4364_v47  ;;  %v5881_v38 = vmax.f32 %v5817_v12, 0.0  ;;  %v7760_v47 = vld [vmem:[%s9423_s15 + $0x590] sm:$0xf]  ;;  %v8600_v9 = vld [vmem:[%s9423_s15 + $0x594] sm:$0xf0] }
 0x224   : > { %v7178_v10 = vld [vmem:[%s9423_s15 + $0x108] sm:$0xf0]  ;;  %v8599_v12 = vld [vmem:[%s9423_s15 + $0x594] sm:$0xf]  ;;  %v7761_v50 = vor.u32 %v8600_v9, %v7760_v47 }
 0x225   : > { %v9660_v23 = vmax.f32 %v5659_v56, %v5723_v14  ;;  %v5686_v26 = vmax.f32 %v9606_v58, %v5014_v18  ;;  %v7173_v56 = vor.u32 %v8451_v27, %v7170_v35  ;;  %v5945_v46 = vpack.c.bf16 %v5881_v38, %v5881_v38  ;;  %v7762_v14 = vld [vmem:[%s9423_s15 + $0x598] sm:$0xf0] }
 0x226   : > { %v4729_v30 = vpop.f32.mrf.mxu3  ;;  %v7181_v35 = vor.u32 %v8453_v16, %v7178_v10 }
 0x227   : > { %v5750_v53 = vmax.f32 %v5622_v62, %v5686_v26 }
 0x228   : > { %v5378_v41 = vpop.f32.mrf.mxu2  ;;  %v4367_v43 = vpop.f32.mrf.mxu0 }
 0x229   : > { %v5818_v5 = vadd.f32 %v9649_v6, %v5750_v53  ;;  %v5379_v54 = vadd.f32 %v5378_v41, %v4729_v30 }
 0x22a   : > { %v5016_v58 = vpop.f32.mrf.mxu1 }
 0x22b   : > { %v5882_v48 = vmax.f32 %v5818_v5, 0.0  ;;  %v5724_v51 = vmax.f32 %v9616_v13, %v5379_v54  ;;  %v5017_v52 = vadd.f32 %v5016_v58, %v4367_v43  ;;  %4406 = vmatmul.bf16.gmra.mxu0 %v7169_v39  ;;  %4771 = vmatmul.bf16.gmra.mxu3 %v7753_v40  ;;  %v6069_v13 = vunpack.c.l.b16 %v5945_v46  ;;  %v8264_v58 = vld [vmem:[%s11234_s3 + $0x14] sm:$0x3]  ;;  %v8456_v46 = vld [vmem:[%s9423_s15 + $0x114] sm:$0xf0] }
 0x22d   : > { %v5946_v59 = vpack.c.bf16 %v5882_v48, %v5882_v48  ;;  %v9675_v7 = vmax.f32 %v5660_v15, %v5724_v51  ;;  %v5687_v57 = vmax.f32 %v9618_v20, %v5017_v52  ;;  %8149 = vmatmul.msk.bf16.gmra.mxu1 %vm3934_vm1, %v7173_v56  ;;  %8222 = vmatmul.msk.bf16.gmra.mxu2 %vm3934_vm1, %v7757_v44  ;;  %v7184_v44 = vld [vmem:[%s9423_s15 + $0x110] sm:$0xf]  ;;  %v7768_v48 = vld [vmem:[%s9423_s15 + $0x5a0] sm:$0xf]  ;;  %v8602_v51 = vld [vmem:[%s9423_s15 + $0x5a4] sm:$0xf0]  ;;  %v6031_v52 = vunpack.c.l.b16 %v8264_v58 }
 0x22e   : > { %v4732_v62 = vpop.f32.mrf.mxu3 }
 0x22f   : > { %v6070_v60 = vunpack.c.l.b16 %v5946_v59  ;;  %v5751_v21 = vmax.f32 %v5623_v17, %v5687_v57  ;;  %v8455_v59 = vld [vmem:[%s9423_s15 + $0x114] sm:$0xf]  ;;  %v6011_v57 = vld [vmem:[%s11234_s3 + $0x8] sm:$0x3] }
 0x230   : > { %v5381_v11 = vpop.f32.mrf.mxu2  ;;  %v4369_v15 = vpop.f32.mrf.mxu0 }
 0x231   : > { %v9683_v20 = vpack.c.b16 %v6070_v60, %v6069_v13  ;;  %v9685_v61 = vadd.f32 %v5381_v11, %v4732_v62  ;;  %v5819_v2 = vadd.f32 %v9649_v6, %v5751_v21  ;;  %v7186_v13 = vld [vmem:[%s9423_s15 + $0x118] sm:$0xf0]  ;;  %v8601_v60 = vld [vmem:[%s9423_s15 + $0x5a4] sm:$0xf]  ;;  %v7770_v21 = vld [vmem:[%s9423_s15 + $0x5a8] sm:$0xf0]  ;;  %v6033_v11 = vpack.c.b16 %v6031_v52, %v6031_v52 }
 0x232   : > { %v5018_v0 = vpop.f32.mrf.mxu1  ;;  %v7773_v16 = vor.u32 %v8601_v60, %v7770_v21 }
 0x233   : > { %v5019_v3 = vadd.f32 %v5018_v0, %v4369_v15  ;;  %v5883_v18 = vmax.f32 %v5819_v2, 0.0  ;;  %v6080_v15 = vunpack.c.l.b16 %v6011_v57  ;;  %v7185_v0 = vor.u32 %v8456_v46, %v7184_v44 }
 0x234   : > { %v7769_v2 = vor.u32 %v8602_v51, %v7768_v48  ;;  %v6044_v8 = vsel %vm6042_vm2, %v6033_v11, 0 }
 0x235   : > { %v5688_v25 = vmax.f32 %v9626_v34, %v5019_v3  ;;  %v7765_v34 = vor.u32 %v8599_v12, %v7762_v14  ;;  %v5947_v37 = vpack.c.bf16 %v5883_v18, %v5883_v18  ;;  %v6082_v47 = vpack.c.b16 %v6080_v15, %v6080_v15  ;;  %6052 = vmatpush.bf16.msrb.mxu2 %v6044_v8 }
 0x236   : > { %v4734_v17 = vpop.f32.mrf.mxu3 }
 0x237   : > { %v5752_v1 = vmax.f32 %v5624_v32, %v5688_v25  ;;  %v6071_v32 = vunpack.c.l.b16 %v5947_v37  ;;  %v7189_v25 = vor.u32 %v8455_v59, %v7186_v13  ;;  %v6091_v10 = vsel %vm6042_vm2, %v6082_v47, 0  ;;  %v8457_v37 = vld [vmem:[%s9423_s15 + $0x124] sm:$0xf]  ;;  %v8459_v47 = vld [vmem:[%s9423_s15 + $0x134] sm:$0xf] }
 0x238   : > { %v5383_v19 = vpop.f32.mrf.mxu2  ;;  %v4372_v26 = vpop.f32.mrf.mxu0  ;;  %6099 = vmatpush.bf16.msrb.mxu3 %v6091_v10  ;;  %v7786_v10 = vld [vmem:[%s9423_s15 + $0x5c8] sm:$0xf0] }
 0x239   : > { %v5820_v27 = vadd.f32 %v9649_v6, %v5752_v1  ;;  %v9701_v30 = vadd.f32 %v5383_v19, %v4734_v17 }
 0x23a   : > { %v5021_v36 = vpop.f32.mrf.mxu1 }
 0x23b   : > { %v5884_v38 = vmax.f32 %v5820_v27, 0.0  ;;  %v9703_v53 = vadd.f32 %v5021_v36, %v4372_v26  ;;  %4411 = vmatmul.bf16.gmra.mxu0 %v7177_v49  ;;  %4776 = vmatmul.bf16.gmra.mxu3 %v7761_v50  ;;  %v7192_v27 = vld [vmem:[%s9423_s15 + $0x120] sm:$0xf]  ;;  %v8604_v36 = vld [vmem:[%s9423_s15 + $0x5b4] sm:$0xf0] }
 0x23d   : > { %v5948_v31 = vpack.c.bf16 %v5884_v38, %v5884_v38  ;;  %8150 = vmatmul.msk.bf16.gmra.mxu1 %vm3934_vm1, %v7181_v35  ;;  %8223 = vmatmul.msk.bf16.gmra.mxu2 %vm3934_vm1, %v7765_v34  ;;  %v8458_v35 = vld [vmem:[%s9423_s15 + $0x124] sm:$0xf0]  ;;  %v7776_v34 = vld [vmem:[%s9423_s15 + $0x5b0] sm:$0xf] }
 0x23e   : > { %v4737_v24 = vpop.f32.mrf.mxu3 }
 0x23f   : > { %v6072_v39 = vunpack.c.l.b16 %v5948_v31  ;;  %v7194_v31 = vld [vmem:[%s9423_s15 + $0x128] sm:$0xf0] }
 0x240   : > { %v5386_v40 = vpop.f32.mrf.mxu2  ;;  %v4374_v41 = vpop.f32.mrf.mxu0  ;;  %v7197_v58 = vor.u32 %v8457_v37, %v7194_v31 }
 0x241   : > { %v9707_v43 = vadd.f32 %v5386_v40, %v4737_v24  ;;  %v9709_v5 = vpack.c.b16 %v6072_v39, %v6071_v32  ;;  %v8603_v24 = vld [vmem:[%s9423_s15 + $0x5b4] sm:$0xf]  ;;  %v7778_v32 = vld [vmem:[%s9423_s15 + $0x5b8] sm:$0xf0]  ;;  %v7193_v39 = vor.u32 %v8458_v35, %v7192_v27  ;;  %v7777_v40 = vor.u32 %v8604_v36, %v7776_v34 }
 0x242   : > { %v5023_v54 = vpop.f32.mrf.mxu1  ;;  %v7781_v46 = vor.u32 %v8603_v24, %v7778_v32 }
 0x243   : > { %v9711_v56 = vadd.f32 %v5023_v54, %v4374_v41 }
 0x246   : > { %v4739_v62 = vpop.f32.mrf.mxu3 }
 0x248   : > { %v5388_v3 = vpop.f32.mrf.mxu2  ;;  %v4377_v4 = vpop.f32.mrf.mxu0 }
 0x249   : > { %v9728_v9 = vadd.f32 %v5388_v3, %v4739_v62  ;;  %v7784_v3 = vld [vmem:[%s9423_s15 + $0x5c0] sm:$0xf] }
 0x24a   : > { %v5026_v17 = vpop.f32.mrf.mxu1 }
 0x24b   : > { %v9731_v12 = vadd.f32 %v5026_v17, %v4377_v4  ;;  %4416 = vmatmul.bf16.gmra.mxu0 %v7185_v0  ;;  %4781 = vmatmul.bf16.gmra.mxu3 %v7769_v2  ;;  %v7200_v0 = vld [vmem:[%s9423_s15 + $0x130] sm:$0xf]  ;;  %v8460_v2 = vld [vmem:[%s9423_s15 + $0x134] sm:$0xf0]  ;;  %v8606_v4 = vld [vmem:[%s9423_s15 + $0x5c4] sm:$0xf0] }
 0x24c   : > { %v8605_v17 = vld [vmem:[%s9423_s15 + $0x5c4] sm:$0xf] }
 0x24d   : > { %8151 = vmatmul.msk.bf16.gmra.mxu1 %vm3934_vm1, %v7189_v25  ;;  %8224 = vmatmul.msk.bf16.gmra.mxu2 %vm3934_vm1, %v7773_v16  ;;  %v7202_v16 = vld [vmem:[%s9423_s15 + $0x138] sm:$0xf0]  ;;  %v7789_v34 = vor.u32 %v8605_v17, %v7786_v10 }
 0x24e   : > { %v4742_v14 = vpop.f32.mrf.mxu3  ;;  %v7205_v35 = vor.u32 %v8459_v47, %v7202_v16 }
 0x250   : > { %v5391_v18 = vpop.f32.mrf.mxu2  ;;  %v4379_v1 = vpop.f32.mrf.mxu0 }
 0x251   : > { %v9735_v49 = vadd.f32 %v5391_v18, %v4742_v14  ;;  %v7201_v14 = vor.u32 %v8460_v2, %v7200_v0  ;;  %v7785_v18 = vor.u32 %v8606_v4, %v7784_v3  ;;  %v7210_v0 = vld [vmem:[%s9423_s15 + $0x148] sm:$0xf0]  ;;  %v8607_v2 = vld [vmem:[%s9423_s15 + $0x5d4] sm:$0xf]  ;;  %v7794_v3 = vld [vmem:[%s9423_s15 + $0x5d8] sm:$0xf0] }
 0x252   : > { %v5028_v50 = vpop.f32.mrf.mxu1 }
 0x253   : > { %v5661_v19 = vmax.f32 %v9685_v61, %v9735_v49  ;;  %v9739_v26 = vadd.f32 %v5028_v50, %v4379_v1 }
 0x256   : > { %v4744_v38 = vpop.f32.mrf.mxu3 }
 0x258   : > { %v5393_v41 = vpop.f32.mrf.mxu2  ;;  %v4382_v54 = vpop.f32.mrf.mxu0 }
 0x259   : > { %v9749_v44 = vadd.f32 %v5393_v41, %v4744_v38 }
 0x25a   : > { %v5031_v48 = vpop.f32.mrf.mxu1 }
 0x25b   : > { %v5662_v51 = vmax.f32 %v9701_v30, %v9749_v44  ;;  %v9753_v52 = vadd.f32 %v5031_v48, %v4382_v54  ;;  %4421 = vmatmul.bf16.gmra.mxu0 %v7193_v39  ;;  %4786 = vmatmul.bf16.gmra.mxu3 %v7777_v40  ;;  %v7792_v48 = vld [vmem:[%s9423_s15 + $0x5d0] sm:$0xf] }
 0x25d   : > { %v5625_v59 = vmax.f32 %v9703_v53, %v9753_v52  ;;  %8152 = vmatmul.msk.bf16.gmra.mxu1 %vm3934_vm1, %v7197_v58  ;;  %8225 = vmatmul.msk.bf16.gmra.mxu2 %vm3934_vm1, %v7781_v46  ;;  %v7208_v58 = vld [vmem:[%s9423_s15 + $0x140] sm:$0xf]  ;;  %v8462_v46 = vld [vmem:[%s9423_s15 + $0x144] sm:$0xf0] }
 0x25e   : > { %v4747_v57 = vpop.f32.mrf.mxu3  ;;  %v7209_v4 = vor.u32 %v8462_v46, %v7208_v58  ;;  %v7800_v58 = vld [vmem:[%s9423_s15 + $0x5e0] sm:$0xf]  ;;  %v8610_v46 = vld [vmem:[%s9423_s15 + $0x5e4] sm:$0xf0] }
 0x25f   : > { %v7816_v53 = vld [vmem:[%s9423_s15 + $0x600] sm:$0xf]  ;;  %v8614_v52 = vld [vmem:[%s9423_s15 + $0x604] sm:$0xf0] }
 0x260   : > { %v5396_v62 = vpop.f32.mrf.mxu2  ;;  %v4384_v13 = vpop.f32.mrf.mxu0 }
 0x261   : > { %v9759_v60 = vadd.f32 %v5396_v62, %v4747_v57  ;;  %v8608_v57 = vld [vmem:[%s9423_s15 + $0x5d4] sm:$0xf0] }
 0x262   : > { %v5033_v21 = vpop.f32.mrf.mxu1  ;;  %v7793_v47 = vor.u32 %v8608_v57, %v7792_v48  ;;  %v8463_v48 = vld [vmem:[%s9423_s15 + $0x154] sm:$0xf] }
 0x263   : > { %v5663_v11 = vmax.f32 %v9707_v43, %v9759_v60  ;;  %v9763_v15 = vadd.f32 %v5033_v21, %v4384_v13  ;;  %v8461_v13 = vld [vmem:[%s9423_s15 + $0x144] sm:$0xf] }
 0x264   : > { %v7213_v10 = vor.u32 %v8461_v13, %v7210_v0  ;;  %v7218_v13 = vld [vmem:[%s9423_s15 + $0x158] sm:$0xf0]  ;;  %v7802_v0 = vld [vmem:[%s9423_s15 + $0x5e8] sm:$0xf0] }
 0x265   : > { %v5626_v8 = vmax.f32 %v9711_v56, %v9763_v15 }
 0x266   : > { %v4749_v25 = vpop.f32.mrf.mxu3 }
 0x268   : > { %v5398_v1 = vpop.f32.mrf.mxu2  ;;  %v4387_v50 = vpop.f32.mrf.mxu0 }
 0x269   : > { %v9775_v27 = vadd.f32 %v5398_v1, %v4749_v25 }
 0x26a   : > { %v5036_v36 = vpop.f32.mrf.mxu1 }
 0x26b   : > { %v5664_v37 = vmax.f32 %v9728_v9, %v9775_v27  ;;  %v9779_v38 = vadd.f32 %v5036_v36, %v4387_v50  ;;  %4426 = vmatmul.bf16.gmra.mxu0 %v7201_v14  ;;  %4791 = vmatmul.bf16.gmra.mxu3 %v7785_v18  ;;  %v7797_v14 = vor.u32 %v8607_v2, %v7794_v3 }
 0x26c   : > { %v7801_v3 = vor.u32 %v8610_v46, %v7800_v58  ;;  %v7224_v46 = vld [vmem:[%s9423_s15 + $0x160] sm:$0xf] }
 0x26d   : > { %v5627_v31 = vmax.f32 %v9731_v12, %v9779_v38  ;;  %8153 = vmatmul.msk.bf16.gmra.mxu1 %vm3934_vm1, %v7205_v35  ;;  %8226 = vmatmul.msk.bf16.gmra.mxu2 %vm3934_vm1, %v7789_v34  ;;  %v8469_v38 = vld [vmem:[%s9423_s15 + $0x184] sm:$0xf] }
 0x26e   : > { %v4752_v24 = vpop.f32.mrf.mxu3 }
 0x270   : > { %v5401_v32 = vpop.f32.mrf.mxu2  ;;  %v4389_v39 = vpop.f32.mrf.mxu0 }
 0x271   : > { %v9785_v40 = vadd.f32 %v5401_v32, %v4752_v24 }
 0x272   : > { %v5038_v41 = vpop.f32.mrf.mxu1 }
 0x273   : > { %v9787_v54 = vadd.f32 %v5038_v41, %v4389_v39  ;;  %v7216_v39 = vld [vmem:[%s9423_s15 + $0x150] sm:$0xf]  ;;  %v8464_v41 = vld [vmem:[%s9423_s15 + $0x154] sm:$0xf0] }
 0x274   : > { %v7217_v2 = vor.u32 %v8464_v41, %v7216_v39 }
 0x275   : > { %v5628_v62 = vmax.f32 %v9739_v26, %v9787_v54 }
 0x276   : > { %v4754_v21 = vpop.f32.mrf.mxu3 }
 0x278   : > { %v5403_v25 = vpop.f32.mrf.mxu2  ;;  %v4392_v16 = vpop.f32.mrf.mxu0 }
 0x279   : > { %v9799_v17 = vadd.f32 %v5403_v25, %v4754_v21  ;;  %v8609_v21 = vld [vmem:[%s9423_s15 + $0x5e4] sm:$0xf] }
 0x27a   : > { %v5041_v18 = vpop.f32.mrf.mxu1 }
 0x27b   : > { %v9801_v1 = vadd.f32 %v5041_v18, %v4392_v16  ;;  %4431 = vmatmul.bf16.gmra.mxu0 %v7209_v4  ;;  %4796 = vmatmul.bf16.gmra.mxu3 %v7793_v47  ;;  %v7221_v16 = vor.u32 %v8463_v48, %v7218_v13  ;;  %v8466_v48 = vld [vmem:[%s9423_s15 + $0x164] sm:$0xf0]  ;;  %v8612_v13 = vld [vmem:[%s9423_s15 + $0x5f4] sm:$0xf0] }
 0x27d   : > { %8154 = vmatmul.msk.bf16.gmra.mxu1 %vm3934_vm1, %v7213_v10  ;;  %8227 = vmatmul.msk.bf16.gmra.mxu2 %vm3934_vm1, %v7797_v14  ;;  %v7805_v10 = vor.u32 %v8609_v21, %v7802_v0  ;;  %v8465_v0 = vld [vmem:[%s9423_s15 + $0x164] sm:$0xf] }
 0x27e   : > { %v4757_v50 = vpop.f32.mrf.mxu3 }
 0x280   : > { %v5406_v35 = vpop.f32.mrf.mxu2  ;;  %v4394_v34 = vpop.f32.mrf.mxu0 }
 0x281   : > { %v9805_v36 = vadd.f32 %v5406_v35, %v4757_v50 }
 0x282   : > { %v5043_v24 = vpop.f32.mrf.mxu1 }
 0x283   : > { %v9807_v32 = vadd.f32 %v5043_v24, %v4394_v34 }
 0x286   : > { %v4759_v57 = vpop.f32.mrf.mxu3 }
 0x288   : > { %v5408_v4 = vpop.f32.mrf.mxu2  ;;  %v4397_v47 = vpop.f32.mrf.mxu0 }
 0x289   : > { %v9817_v25 = vadd.f32 %v5408_v4, %v4759_v57  ;;  %v7808_v57 = vld [vmem:[%s9423_s15 + $0x5f0] sm:$0xf]  ;;  %v8611_v4 = vld [vmem:[%s9423_s15 + $0x5f4] sm:$0xf] }
 0x28a   : > { %v5046_v14 = vpop.f32.mrf.mxu1 }
 0x28b   : > { %v9819_v18 = vadd.f32 %v5046_v14, %v4397_v47  ;;  %4436 = vmatmul.bf16.gmra.mxu0 %v7217_v2  ;;  %4801 = vmatmul.bf16.gmra.mxu3 %v7801_v3  ;;  %v7226_v3 = vld [vmem:[%s9423_s15 + $0x168] sm:$0xf0]  ;;  %v7810_v47 = vld [vmem:[%s9423_s15 + $0x5f8] sm:$0xf0]  ;;  %v7809_v14 = vor.u32 %v8612_v13, %v7808_v57 }
 0x28d   : > { %8155 = vmatmul.msk.bf16.gmra.mxu1 %vm3934_vm1, %v7221_v16  ;;  %8228 = vmatmul.msk.bf16.gmra.mxu2 %vm3934_vm1, %v7805_v10  ;;  %v7225_v10 = vor.u32 %v8466_v48, %v7224_v46 }
 0x28e   : > { %v4762_v50 = vpop.f32.mrf.mxu3 }
 0x290   : > { %v5411_v35 = vpop.f32.mrf.mxu2  ;;  %v4399_v34 = vpop.f32.mrf.mxu0 }
 0x291   : > { %v5412_v24 = vadd.f32 %v5411_v35, %v4762_v50 }
 0x292   : > { %v5048_v39 = vpop.f32.mrf.mxu1 }
 0x293   : > { %v5725_v41 = vmax.f32 %v9785_v40, %v5412_v24  ;;  %v9824_v58 = vadd.f32 %v5048_v39, %v4399_v34  ;;  %v7229_v34 = vor.u32 %v8465_v0, %v7226_v3  ;;  %v7813_v24 = vor.u32 %v8611_v4, %v7810_v47  ;;  %v8468_v3 = vld [vmem:[%s9423_s15 + $0x174] sm:$0xf0] }
 0x295   : > { %v5789_v21 = vmax.f32 %v5661_v19, %v5725_v41 }
 0x296   : > { %v4764_v2 = vpop.f32.mrf.mxu3 }
 0x297   : > { %v5857_v16 = vadd.f32 %v9649_v6, %v5789_v21 }
 0x298   : > { %v5413_v40 = vpop.f32.mrf.mxu2  ;;  %v4402_v50 = vpop.f32.mrf.mxu0 }
 0x299   : > { %v5414_v35 = vadd.f32 %v5413_v40, %v4764_v2  ;;  %v5921_v39 = vmax.f32 %v5857_v16, 0.0  ;;  %v7232_v2 = vld [vmem:[%s9423_s15 + $0x170] sm:$0xf]  ;;  %v8467_v16 = vld [vmem:[%s9423_s15 + $0x174] sm:$0xf] }
 0x29a   : > { %v5051_v63 = vpop.f32.mrf.mxu1  ;;  %v7234_v40 = vld [vmem:[%s9423_s15 + $0x178] sm:$0xf0] }
 0x29b   : > { %v5726_v33 = vmax.f32 %v9799_v17, %v5414_v35  ;;  %v5052_v61 = vadd.f32 %v5051_v63, %v4402_v50  ;;  %4441 = vmatmul.bf16.gmra.mxu0 %v7225_v10  ;;  %4806 = vmatmul.bf16.gmra.mxu3 %v7809_v14  ;;  %v5985_v41 = vpack.c.bf16 %v5921_v39, %v5921_v39  ;;  %v8613_v50 = vld [vmem:[%s9423_s15 + $0x604] sm:$0xf]  ;;  %v7818_v35 = vld [vmem:[%s9423_s15 + $0x608] sm:$0xf0] }
 0x29c   : > { %v7233_v14 = vor.u32 %v8468_v3, %v7232_v2  ;;  %v7817_v39 = vor.u32 %v8614_v52, %v7816_v53  ;;  %v7242_v2 = vld [vmem:[%s9423_s15 + $0x188] sm:$0xf0]  ;;  %v8615_v3 = vld [vmem:[%s9423_s15 + $0x614] sm:$0xf]  ;;  %v7826_v53 = vld [vmem:[%s9423_s15 + $0x618] sm:$0xf0] }
 0x29d   : > { %v5790_v49 = vmax.f32 %v5662_v51, %v5726_v33  ;;  %v5689_v19 = vmax.f32 %v9801_v1, %v5052_v61  ;;  %8156 = vmatmul.msk.bf16.gmra.mxu1 %vm3934_vm1, %v7229_v34  ;;  %8229 = vmatmul.msk.bf16.gmra.mxu2 %vm3934_vm1, %v7813_v24  ;;  %v6560_v1 = vunpack.c.l.b16 %v5985_v41 }
 0x29e   : > { %v4767_v46 = vpop.f32.mrf.mxu3 }
 0x29f   : > { %v5858_v63 = vadd.f32 %v9649_v6, %v5790_v49  ;;  %v5753_v17 = vmax.f32 %v5625_v59, %v5689_v19  ;;  %v7821_v49 = vor.u32 %v8613_v50, %v7818_v35  ;;  %v7245_v35 = vor.u32 %v8469_v38, %v7242_v2 }
 0x2a0   : > { %v5416_v30 = vpop.f32.mrf.mxu2  ;;  %v4404_v33 = vpop.f32.mrf.mxu0 }
 0x2a1   : > { %v5922_v44 = vmax.f32 %v5858_v63, 0.0  ;;  %v5417_v51 = vadd.f32 %v5416_v30, %v4767_v46  ;;  %v5821_v13 = vadd.f32 %v9649_v6, %v5753_v17 }
 0x2a2   : > { %v5053_v48 = vpop.f32.mrf.mxu1 }
 0x2a3   : > { %v5986_v57 = vpack.c.bf16 %v5922_v44, %v5922_v44  ;;  %v5727_v21 = vmax.f32 %v9805_v36, %v5417_v51  ;;  %v5054_v0 = vadd.f32 %v5053_v48, %v4404_v33  ;;  %v5885_v34 = vmax.f32 %v5821_v13, 0.0  ;;  %v8470_v13 = vld [vmem:[%s9423_s15 + $0x184] sm:$0xf0] }
 0x2a5   : > { %v6561_v59 = vunpack.c.l.b16 %v5986_v57  ;;  %v9858_v4 = vmax.f32 %v5663_v11, %v5727_v21  ;;  %v5690_v47 = vmax.f32 %v9807_v32, %v5054_v0  ;;  %v7237_v32 = vor.u32 %v8467_v16, %v7234_v40  ;;  %v7240_v57 = vld [vmem:[%s9423_s15 + $0x180] sm:$0xf]  ;;  %v7824_v21 = vld [vmem:[%s9423_s15 + $0x610] sm:$0xf]  ;;  %v8616_v0 = vld [vmem:[%s9423_s15 + $0x614] sm:$0xf0] }
 0x2a6   : > { %v4769_v10 = vpop.f32.mrf.mxu3  ;;  %v5949_v41 = vpack.c.bf16 %v5885_v34, %v5885_v34  ;;  %v7825_v16 = vor.u32 %v8616_v0, %v7824_v21 }
 0x2a7   : > { %v9865_v36 = vpack.c.b16 %v6561_v59, %v6560_v1  ;;  %v5754_v24 = vmax.f32 %v5626_v8, %v5690_v47  ;;  %v7241_v47 = vor.u32 %v8470_v13, %v7240_v57 }
 0x2a8   : > { %v5418_v61 = vpop.f32.mrf.mxu2  ;;  %v4407_v43 = vpop.f32.mrf.mxu0 }
 0x2a9   : > { %11241 = vst [vmem:[#allocation4_spill] sm:$0xff] %v9865_v36  ;;  %v5822_v60 = vadd.f32 %v9649_v6, %v5754_v24  ;;  %v5419_v11 = vadd.f32 %v5418_v61, %v4769_v10 }
 0x2aa   : > { %v5056_v19 = vpop.f32.mrf.mxu1 }
 0x2ab   : > { %v5886_v46 = vmax.f32 %v5822_v60, 0.0  ;;  %v5728_v63 = vmax.f32 %v9817_v25, %v5419_v11  ;;  %v5057_v17 = vadd.f32 %v5056_v19, %v4407_v43  ;;  %4446 = vmatmul.bf16.gmra.mxu0 %v7233_v14  ;;  %4811 = vmatmul.bf16.gmra.mxu3 %v7817_v39  ;;  %v6020_v25 = vunpack.c.l.b16 %v5949_v41 }
 0x2ac   : > { %v5855_v41 = vadd.f32 %v9649_v6, %v9660_v23 }
 0x2ad   : > { %v5950_v30 = vpack.c.bf16 %v5886_v46, %v5886_v46  ;;  %v9875_v56 = vmax.f32 %v5664_v37, %v5728_v63  ;;  %v5691_v15 = vmax.f32 %v9819_v18, %v5057_v17  ;;  %8157 = vmatmul.msk.bf16.gmra.mxu1 %vm3934_vm1, %v7237_v32  ;;  %8230 = vmatmul.msk.bf16.gmra.mxu2 %vm3934_vm1, %v7821_v49  ;;  %v7248_v17 = vld [vmem:[%s9423_s15 + $0x190] sm:$0xf] }
 0x2ae   : > { %v4772_v8 = vpop.f32.mrf.mxu3  ;;  %v5856_v46 = vadd.f32 %v9649_v6, %v9675_v7 }
 0x2af   : > { %v6021_v33 = vunpack.c.l.b16 %v5950_v30  ;;  %v5755_v9 = vmax.f32 %v5627_v31, %v5691_v15  ;;  %v8472_v30 = vld [vmem:[%s9423_s15 + $0x194] sm:$0xf0]  ;;  %v7832_v15 = vld [vmem:[%s9423_s15 + $0x620] sm:$0xf] }
 0x2b0   : > { %v5421_v27 = vpop.f32.mrf.mxu2  ;;  %v4409_v37 = vpop.f32.mrf.mxu0 }
 0x2b1   : > { %v9883_v18 = vpack.c.b16 %v6021_v33, %v6020_v25  ;;  %v9885_v44 = vadd.f32 %v5421_v27, %v4772_v8  ;;  %v5823_v1 = vadd.f32 %v9649_v6, %v5755_v9  ;;  %v8618_v8 = vld [vmem:[%s9423_s15 + $0x624] sm:$0xf0]  ;;  %v8471_v25 = vld [vmem:[%s9423_s15 + $0x194] sm:$0xf]  ;;  %v7250_v9 = vld [vmem:[%s9423_s15 + $0x198] sm:$0xf0] }
 0x2b2   : > { %v5058_v51 = vpop.f32.mrf.mxu1  ;;  %v8617_v27 = vld [vmem:[%s9423_s15 + $0x624] sm:$0xf]  ;;  %v7833_v57 = vor.u32 %v8618_v8, %v7832_v15 }
 0x2b3   : > { %v5059_v48 = vadd.f32 %v5058_v51, %v4409_v37  ;;  %v5887_v52 = vmax.f32 %v5823_v1, 0.0  ;;  %v7834_v37 = vld [vmem:[%s9423_s15 + $0x628] sm:$0xf0]  ;;  %v5919_v51 = vmax.f32 %v5855_v41, 0.0  ;;  %v5920_v1 = vmax.f32 %v5856_v46, 0.0 }
 0x2b4   : > { %v7837_v7 = vor.u32 %v8617_v27, %v7834_v37 }
 0x2b5   : > { %v5692_v12 = vmax.f32 %v9824_v58, %v5059_v48  ;;  %v7829_v58 = vor.u32 %v8615_v3, %v7826_v53  ;;  %v5951_v24 = vpack.c.bf16 %v5887_v52, %v5887_v52  ;;  %v7249_v48 = vor.u32 %v8472_v30, %v7248_v17 }
 0x2b6   : > { %v4774_v31 = vpop.f32.mrf.mxu3  ;;  %v5984_v38 = vpack.c.bf16 %v5920_v1, %v5920_v1 }
 0x2b7   : > { %v5756_v59 = vmax.f32 %v5628_v62, %v5692_v12  ;;  %v6022_v62 = vunpack.c.l.b16 %v5951_v24  ;;  %v5983_v12 = vpack.c.bf16 %v5919_v51, %v5919_v51  ;;  %v8620_v24 = vld [vmem:[%s9423_s15 + $0x634] sm:$0xf0] }
 0x2b8   : > { %v5423_v10 = vpop.f32.mrf.mxu2  ;;  %v4412_v14 = vpop.f32.mrf.mxu0  ;;  %v6508_v53 = vunpack.c.l.b16 %v5984_v38 }
 0x2b9   : > { %v5824_v40 = vadd.f32 %v9649_v6, %v5756_v59  ;;  %v9901_v50 = vadd.f32 %v5423_v10, %v4774_v31  ;;  %v7253_v6 = vor.u32 %v8471_v25, %v7250_v9  ;;  %v6507_v3 = vunpack.c.l.b16 %v5983_v12  ;;  %v8475_v12 = vld [vmem:[%s9423_s15 + $0x1b4] sm:$0xf] }
 0x2ba   : > { %v5061_v34 = vpop.f32.mrf.mxu1 }
 0x2bb   : > { %v5888_v39 = vmax.f32 %v5824_v40, 0.0  ;;  %v9903_v61 = vadd.f32 %v5061_v34, %v4412_v14  ;;  %4451 = vmatmul.bf16.gmra.mxu0 %v7241_v47  ;;  %4816 = vmatmul.bf16.gmra.mxu3 %v7825_v16  ;;  %v7256_v40 = vld [vmem:[%s9423_s15 + $0x1a0] sm:$0xf]  ;;  %v7840_v34 = vld [vmem:[%s9423_s15 + $0x630] sm:$0xf] }
 0x2bd   : > { %v5952_v26 = vpack.c.bf16 %v5888_v39, %v5888_v39  ;;  %8158 = vmatmul.msk.bf16.gmra.mxu1 %vm3934_vm1, %v7245_v35  ;;  %8231 = vmatmul.msk.bf16.gmra.mxu2 %vm3934_vm1, %v7829_v58  ;;  %v9938_v35 = vpack.c.b16 %v6508_v53, %v6507_v3  ;;  %v8474_v58 = vld [vmem:[%s9423_s15 + $0x1a4] sm:$0xf0]  ;;  %v8473_v39 = vld [vmem:[%s9423_s15 + $0x1a4] sm:$0xf]  ;;  %v7850_v53 = vld [vmem:[%s9423_s15 + $0x648] sm:$0xf0] }
 0x2be   : > { %v4777_v54 = vpop.f32.mrf.mxu3  ;;  %v8621_v3 = vld [vmem:[%s9423_s15 + $0x644] sm:$0xf] }
 0x2bf   : > { %v6023_v43 = vunpack.c.l.b16 %v5952_v26  ;;  %11242 = vst [vmem:[#allocation5_spill] sm:$0xff] %v9938_v35 }
 0x2c0   : > { %v5426_v60 = vpop.f32.mrf.mxu2  ;;  %v4414_v11 = vpop.f32.mrf.mxu0 }
 0x2c1   : > { %v9907_v32 = vadd.f32 %v5426_v60, %v4777_v54  ;;  %v9909_v49 = vpack.c.b16 %v6023_v43, %v6022_v62  ;;  %v7258_v54 = vld [vmem:[%s9423_s15 + $0x1a8] sm:$0xf0]  ;;  %v8619_v62 = vld [vmem:[%s9423_s15 + $0x634] sm:$0xf]  ;;  %v7842_v43 = vld [vmem:[%s9423_s15 + $0x638] sm:$0xf0]  ;;  %v7257_v60 = vor.u32 %v8474_v58, %v7256_v40 }
 0x2c2   : > { %v5063_v19 = vpop.f32.mrf.mxu1  ;;  %v7261_v17 = vor.u32 %v8473_v39, %v7258_v54  ;;  %v7845_v30 = vor.u32 %v8619_v62, %v7842_v43 }
 0x2c3   : > { %v9915_v63 = vadd.f32 %v5063_v19, %v4414_v11  ;;  %v7841_v11 = vor.u32 %v8620_v24, %v7840_v34  ;;  %v7853_v24 = vor.u32 %v8621_v3, %v7850_v53 }
 0x2c6   : > { %v4779_v33 = vpop.f32.mrf.mxu3 }
 0x2c8   : > { %v5428_v13 = vpop.f32.mrf.mxu2  ;;  %v4417_v23 = vpop.f32.mrf.mxu0 }
 0x2c9   : > { %v9925_v21 = vadd.f32 %v5428_v13, %v4779_v33  ;;  %v7264_v13 = vld [vmem:[%s9423_s15 + $0x1b0] sm:$0xf] }
 0x2ca   : > { %v5066_v0 = vpop.f32.mrf.mxu1 }
 0x2cb   : > { %v9927_v31 = vadd.f32 %v5066_v0, %v4417_v23  ;;  %4456 = vmatmul.bf16.gmra.mxu0 %v7249_v48  ;;  %4821 = vmatmul.bf16.gmra.mxu3 %v7833_v57  ;;  %v8476_v23 = vld [vmem:[%s9423_s15 + $0x1b4] sm:$0xf0] }
 0x2cd   : > { %8159 = vmatmul.msk.bf16.gmra.mxu1 %vm3934_vm1, %v7253_v6  ;;  %8232 = vmatmul.msk.bf16.gmra.mxu2 %vm3934_vm1, %v7837_v7  ;;  %v7848_v6 = vld [vmem:[%s9423_s15 + $0x640] sm:$0xf]  ;;  %v8622_v7 = vld [vmem:[%s9423_s15 + $0x644] sm:$0xf0] }
 0x2ce   : > { %v4782_v2 = vpop.f32.mrf.mxu3 }
 0x2d0   : > { %v5431_v52 = vpop.f32.mrf.mxu2  ;;  %v4419_v59 = vpop.f32.mrf.mxu0 }
 0x2d1   : > { %v9931_v47 = vadd.f32 %v5431_v52, %v4782_v2  ;;  %v7266_v2 = vld [vmem:[%s9423_s15 + $0x1b8] sm:$0xf0]  ;;  %v7265_v52 = vor.u32 %v8476_v23, %v7264_v13  ;;  %v7274_v23 = vld [vmem:[%s9423_s15 + $0x1c8] sm:$0xf0] }
 0x2d2   : > { %v5068_v16 = vpop.f32.mrf.mxu1  ;;  %v7269_v34 = vor.u32 %v8475_v12, %v7266_v2 }
 0x2d3   : > { %v5665_v10 = vmax.f32 %v9885_v44, %v9931_v47  ;;  %v9935_v14 = vadd.f32 %v5068_v16, %v4419_v59  ;;  %v7849_v59 = vor.u32 %v8622_v7, %v7848_v6  ;;  %v8623_v6 = vld [vmem:[%s9423_s15 + $0x654] sm:$0xf]  ;;  %v7858_v7 = vld [vmem:[%s9423_s15 + $0x658] sm:$0xf0] }
 0x2d6   : > { %v4784_v26 = vpop.f32.mrf.mxu3 }
 0x2d8   : > { %v5433_v19 = vpop.f32.mrf.mxu2  ;;  %v4422_v41 = vpop.f32.mrf.mxu0 }
 0x2d9   : > { %v9947_v46 = vadd.f32 %v5433_v19, %v4784_v26 }
 0x2da   : > { %v5071_v15 = vpop.f32.mrf.mxu1 }
 0x2db   : > { %v5666_v8 = vmax.f32 %v9901_v50, %v9947_v46  ;;  %v9951_v25 = vadd.f32 %v5071_v15, %v4422_v41  ;;  %4461 = vmatmul.bf16.gmra.mxu0 %v7257_v60  ;;  %4826 = vmatmul.bf16.gmra.mxu3 %v7841_v11  ;;  %v8478_v15 = vld [vmem:[%s9423_s15 + $0x1c4] sm:$0xf0] }
 0x2dd   : > { %v5629_v33 = vmax.f32 %v9903_v61, %v9951_v25  ;;  %8160 = vmatmul.msk.bf16.gmra.mxu1 %vm3934_vm1, %v7261_v17  ;;  %8233 = vmatmul.msk.bf16.gmra.mxu2 %vm3934_vm1, %v7845_v30  ;;  %v7272_v30 = vld [vmem:[%s9423_s15 + $0x1c0] sm:$0xf]  ;;  %v8630_v25 = vld [vmem:[%s9423_s15 + $0x684] sm:$0xf0] }
 0x2de   : > { %v4787_v9 = vpop.f32.mrf.mxu3  ;;  %v7273_v12 = vor.u32 %v8478_v15, %v7272_v30  ;;  %v8480_v30 = vld [vmem:[%s9423_s15 + $0x1d4] sm:$0xf0]  ;;  %v7864_v15 = vld [vmem:[%s9423_s15 + $0x660] sm:$0xf] }
 0x2df   : > { %v7880_v61 = vld [vmem:[%s9423_s15 + $0x680] sm:$0xf] }
 0x2e0   : > { %v5436_v27 = vpop.f32.mrf.mxu2  ;;  %v4424_v37 = vpop.f32.mrf.mxu0 }
 0x2e1   : > { %v9957_v51 = vadd.f32 %v5436_v27, %v4787_v9  ;;  %v7856_v9 = vld [vmem:[%s9423_s15 + $0x650] sm:$0xf]  ;;  %v8624_v27 = vld [vmem:[%s9423_s15 + $0x654] sm:$0xf0] }
 0x2e2   : > { %v5073_v1 = vpop.f32.mrf.mxu1 }
 0x2e3   : > { %v5667_v48 = vmax.f32 %v9907_v32, %v9957_v51  ;;  %v9961_v57 = vadd.f32 %v5073_v1, %v4424_v37  ;;  %v8477_v1 = vld [vmem:[%s9423_s15 + $0x1c4] sm:$0xf] }
 0x2e5   : > { %v5630_v0 = vmax.f32 %v9915_v63, %v9961_v57 }
 0x2e6   : > { %v4789_v38 = vpop.f32.mrf.mxu3 }
 0x2e8   : > { %v5438_v16 = vpop.f32.mrf.mxu2  ;;  %v4427_v40 = vpop.f32.mrf.mxu0 }
 0x2e9   : > { %v9973_v58 = vadd.f32 %v5438_v16, %v4789_v38  ;;  %v7857_v38 = vor.u32 %v8624_v27, %v7856_v9  ;;  %v8626_v9 = vld [vmem:[%s9423_s15 + $0x664] sm:$0xf0]  ;;  %v8479_v27 = vld [vmem:[%s9423_s15 + $0x1d4] sm:$0xf] }
 0x2ea   : > { %v5076_v39 = vpop.f32.mrf.mxu1 }
 0x2eb   : > { %v5668_v26 = vmax.f32 %v9925_v21, %v9973_v58  ;;  %v9977_v54 = vadd.f32 %v5076_v39, %v4427_v40  ;;  %4466 = vmatmul.bf16.gmra.mxu0 %v7265_v52  ;;  %4831 = vmatmul.bf16.gmra.mxu3 %v7849_v59  ;;  %v7277_v52 = vor.u32 %v8477_v1, %v7274_v23  ;;  %v8625_v23 = vld [vmem:[%s9423_s15 + $0x664] sm:$0xf] }
 0x2ec   : > { %v7861_v59 = vor.u32 %v8623_v6, %v7858_v7  ;;  %v7866_v6 = vld [vmem:[%s9423_s15 + $0x668] sm:$0xf0] }
 0x2ed   : > { %8161 = vmatmul.msk.bf16.gmra.mxu1 %vm3934_vm1, %v7269_v34  ;;  %8234 = vmatmul.msk.bf16.gmra.mxu2 %vm3934_vm1, %v7853_v24 }
 0x2ee   : > { %v4792_v43 = vpop.f32.mrf.mxu3 }
 0x2f0   : > { %v5441_v60 = vpop.f32.mrf.mxu2  ;;  %v4429_v11 = vpop.f32.mrf.mxu0 }
 0x2f1   : > { %v9983_v19 = vadd.f32 %v5441_v60, %v4792_v43 }
 0x2f2   : > { %v5078_v41 = vpop.f32.mrf.mxu1 }
 0x2f3   : > { %v9985_v17 = vadd.f32 %v5078_v41, %v4429_v11  ;;  %v7280_v41 = vld [vmem:[%s9423_s15 + $0x1d0] sm:$0xf] }
 0x2f4   : > { %v7281_v7 = vor.u32 %v8480_v30, %v7280_v41 }
 0x2f6   : > { %v4794_v13 = vpop.f32.mrf.mxu3 }
 0x2f8   : > { %v5443_v2 = vpop.f32.mrf.mxu2  ;;  %v4432_v3 = vpop.f32.mrf.mxu0 }
 0x2f9   : > { %v9997_v53 = vadd.f32 %v5443_v2, %v4794_v13  ;;  %v7282_v13 = vld [vmem:[%s9423_s15 + $0x1d8] sm:$0xf0] }
 0x2fa   : > { %v5081_v16 = vpop.f32.mrf.mxu1 }
 0x2fb   : > { %v9999_v40 = vadd.f32 %v5081_v16, %v4432_v3  ;;  %4471 = vmatmul.bf16.gmra.mxu0 %v7273_v12  ;;  %4836 = vmatmul.bf16.gmra.mxu3 %v7857_v38  ;;  %v7865_v12 = vor.u32 %v8626_v9, %v7864_v15 }
 0x2fd   : > { %8162 = vmatmul.msk.bf16.gmra.mxu1 %vm3934_vm1, %v7277_v52  ;;  %8235 = vmatmul.msk.bf16.gmra.mxu2 %vm3934_vm1, %v7861_v59  ;;  %v7285_v52 = vor.u32 %v8479_v27, %v7282_v13  ;;  %v7869_v59 = vor.u32 %v8625_v23, %v7866_v6  ;;  %v7288_v27 = vld [vmem:[%s9423_s15 + $0x1e0] sm:$0xf]  ;;  %v7872_v13 = vld [vmem:[%s9423_s15 + $0x670] sm:$0xf]  ;;  %v8628_v23 = vld [vmem:[%s9423_s15 + $0x674] sm:$0xf0] }
 0x2fe   : > { %v4797_v34 = vpop.f32.mrf.mxu3 }
 0x300   : > { %v5446_v24 = vpop.f32.mrf.mxu2  ;;  %v4434_v39 = vpop.f32.mrf.mxu0 }
 0x301   : > { %v10003_v43 = vadd.f32 %v5446_v24, %v4797_v34 }
 0x302   : > { %v5083_v60 = vpop.f32.mrf.mxu1 }
 0x303   : > { %v10005_v11 = vadd.f32 %v5083_v60, %v4434_v39 }
 0x306   : > { %v4799_v1 = vpop.f32.mrf.mxu3 }
 0x308   : > { %v5448_v38 = vpop.f32.mrf.mxu2  ;;  %v4437_v2 = vpop.f32.mrf.mxu0 }
 0x309   : > { %v10015_v3 = vadd.f32 %v5448_v38, %v4799_v1  ;;  %v8482_v1 = vld [vmem:[%s9423_s15 + $0x1e4] sm:$0xf0]  ;;  %v7290_v38 = vld [vmem:[%s9423_s15 + $0x1e8] sm:$0xf0] }
 0x30a   : > { %v5086_v16 = vpop.f32.mrf.mxu1 }
 0x30b   : > { %v10017_v34 = vadd.f32 %v5086_v16, %v4437_v2  ;;  %4476 = vmatmul.bf16.gmra.mxu0 %v7281_v7  ;;  %4841 = vmatmul.bf16.gmra.mxu3 %v7865_v12  ;;  %v8481_v7 = vld [vmem:[%s9423_s15 + $0x1e4] sm:$0xf]  ;;  %v8627_v2 = vld [vmem:[%s9423_s15 + $0x674] sm:$0xf]  ;;  %v7289_v16 = vor.u32 %v8482_v1, %v7288_v27 }
 0x30d   : > { %8163 = vmatmul.msk.bf16.gmra.mxu1 %vm3934_vm1, %v7285_v52  ;;  %8236 = vmatmul.msk.bf16.gmra.mxu2 %vm3934_vm1, %v7869_v59  ;;  %v7874_v52 = vld [vmem:[%s9423_s15 + $0x678] sm:$0xf0]  ;;  %v10038_v59 = vld [vmem:[%s11233_s2] ss:$0 sm:$0xff] }
 0x30e   : > { %v4802_v24 = vpop.f32.mrf.mxu3  ;;  %v7877_v44 = vor.u32 %v8627_v2, %v7874_v52  ;;  %v7296_v2 = vld [vmem:[%s9423_s15 + $0x1f0] sm:$0xf]  ;;  %v8484_v52 = vld [vmem:[%s9423_s15 + $0x1f4] sm:$0xf0] }
 0x310   : > { %v5451_v39 = vpop.f32.mrf.mxu2  ;;  %v4439_v60 = vpop.f32.mrf.mxu0 }
 0x311   : > { %v5452_v41 = vadd.f32 %v5451_v39, %v4802_v24  ;;  %v7873_v24 = vor.u32 %v8628_v23, %v7872_v13 }
 0x312   : > { %v5088_v30 = vpop.f32.mrf.mxu1 }
 0x313   : > { %v5729_v15 = vmax.f32 %v9983_v19, %v5452_v41  ;;  %v10022_v9 = vadd.f32 %v5088_v30, %v4439_v60  ;;  %v7293_v30 = vor.u32 %v8481_v7, %v7290_v38 }
 0x315   : > { %v5793_v6 = vmax.f32 %v5665_v10, %v5729_v15 }
 0x316   : > { %v4804_v12 = vpop.f32.mrf.mxu3 }
 0x317   : > { %v5861_v19 = vadd.f32 %v10038_v59, %v5793_v6 }
 0x318   : > { %v5453_v39 = vpop.f32.mrf.mxu2  ;;  %v4442_v60 = vpop.f32.mrf.mxu0 }
 0x319   : > { %v5454_v41 = vadd.f32 %v5453_v39, %v4804_v12  ;;  %v5925_v47 = vmax.f32 %v5861_v19, 0.0 }
 0x31a   : > { %v5091_v10 = vpop.f32.mrf.mxu1 }
 0x31b   : > { %v5730_v15 = vmax.f32 %v9997_v53, %v5454_v41  ;;  %v5092_v37 = vadd.f32 %v5091_v10, %v4442_v60  ;;  %4481 = vmatmul.bf16.gmra.mxu0 %v7289_v16  ;;  %4846 = vmatmul.bf16.gmra.mxu3 %v7873_v24  ;;  %v5989_v27 = vpack.c.bf16 %v5925_v47, %v5925_v47  ;;  %v8483_v24 = vld [vmem:[%s9423_s15 + $0x1f4] sm:$0xf]  ;;  %v7298_v41 = vld [vmem:[%s9423_s15 + $0x1f8] sm:$0xf0] }
 0x31c   : > { %v7297_v60 = vor.u32 %v8484_v52, %v7296_v2  ;;  %v8486_v2 = vld [vmem:[%s9423_s15 + $0x204] sm:$0xf0]  ;;  %v7888_v52 = vld [vmem:[%s9423_s15 + $0x690] sm:$0xf] }
 0x31d   : > { %v5794_v62 = vmax.f32 %v5666_v8, %v5730_v15  ;;  %v5693_v6 = vmax.f32 %v9999_v40, %v5092_v37  ;;  %8164 = vmatmul.msk.bf16.gmra.mxu1 %vm3934_vm1, %v7293_v30  ;;  %8237 = vmatmul.msk.bf16.gmra.mxu2 %vm3934_vm1, %v7877_v44  ;;  %v6615_v40 = vunpack.c.l.b16 %v5989_v27  ;;  %v8629_v30 = vld [vmem:[%s9423_s15 + $0x684] sm:$0xf]  ;;  %v7882_v44 = vld [vmem:[%s9423_s15 + $0x688] sm:$0xf0]  ;;  %v7881_v15 = vor.u32 %v8630_v25, %v7880_v61  ;;  %v8632_v61 = vld [vmem:[%s9423_s15 + $0x694] sm:$0xf0] }
 0x31e   : > { %v4807_v1 = vpop.f32.mrf.mxu3  ;;  %v7885_v27 = vor.u32 %v8629_v30, %v7882_v44  ;;  %v7889_v44 = vor.u32 %v8632_v61, %v7888_v52 }
 0x31f   : > { %v5862_v53 = vadd.f32 %v10038_v59, %v5794_v62  ;;  %v5757_v13 = vmax.f32 %v5629_v33, %v5693_v6 }
 0x320   : > { %v5456_v50 = vpop.f32.mrf.mxu2  ;;  %v4444_v46 = vpop.f32.mrf.mxu0 }
 0x321   : > { %v5926_v8 = vmax.f32 %v5862_v53, 0.0  ;;  %v5457_v37 = vadd.f32 %v5456_v50, %v4807_v1  ;;  %v5825_v12 = vadd.f32 %v10038_v59, %v5757_v13 }
 0x322   : > { %v5093_v23 = vpop.f32.mrf.mxu1 }
 0x323   : > { %v5990_v7 = vpack.c.bf16 %v5926_v8, %v5926_v8  ;;  %v5731_v38 = vmax.f32 %v10003_v43, %v5457_v37  ;;  %v5094_v62 = vadd.f32 %v5093_v23, %v4444_v46  ;;  %v5889_v47 = vmax.f32 %v5825_v12, 0.0 }
 0x325   : > { %v6616_v33 = vunpack.c.l.b16 %v5990_v7  ;;  %v10061_v19 = vmax.f32 %v5667_v48, %v5731_v38  ;;  %v5694_v16 = vmax.f32 %v10005_v11, %v5094_v62  ;;  %v7301_v11 = vor.u32 %v8483_v24, %v7298_v41  ;;  %v7304_v62 = vld [vmem:[%s9423_s15 + $0x200] sm:$0xf]  ;;  %v7890_v24 = vld [vmem:[%s9423_s15 + $0x698] sm:$0xf0] }
 0x326   : > { %v4809_v39 = vpop.f32.mrf.mxu3  ;;  %v5953_v53 = vpack.c.bf16 %v5889_v47, %v5889_v47  ;;  %v7305_v30 = vor.u32 %v8486_v2, %v7304_v62  ;;  %v8633_v62 = vld [vmem:[%s9423_s15 + $0x6a4] sm:$0xf]  ;;  %v7898_v2 = vld [vmem:[%s9423_s15 + $0x6a8] sm:$0xf0] }
 0x327   : > { %v10068_v43 = vpack.c.b16 %v6616_v33, %v6615_v40  ;;  %v5758_v10 = vmax.f32 %v5630_v0, %v5694_v16  ;;  %v11244_v40 = vmax.f32 %v9927_v31, %v9977_v54  ;;  %v8485_v54 = vld [vmem:[%s9423_s15 + $0x204] sm:$0xf]  ;;  %v7306_v33 = vld [vmem:[%s9423_s15 + $0x208] sm:$0xf0]  ;;  %v8631_v16 = vld [vmem:[%s9423_s15 + $0x694] sm:$0xf] }
 0x328   : > { %v5458_v6 = vpop.f32.mrf.mxu2  ;;  %v4447_v32 = vpop.f32.mrf.mxu0 }
 0x329   : > { %11243 = vst [vmem:[#allocation6_spill] sm:$0xff] %v10068_v43  ;;  %v5826_v51 = vadd.f32 %v10038_v59, %v5758_v10  ;;  %v5459_v48 = vadd.f32 %v5458_v6, %v4809_v39 }
 0x32a   : > { %v5096_v1 = vpop.f32.mrf.mxu1 }
 0x32b   : > { %v5890_v13 = vmax.f32 %v5826_v51, 0.0  ;;  %v5732_v50 = vmax.f32 %v10015_v3, %v5459_v48  ;;  %v5097_v46 = vadd.f32 %v5096_v1, %v4447_v32  ;;  %4486 = vmatmul.bf16.gmra.mxu0 %v7297_v60  ;;  %4851 = vmatmul.bf16.gmra.mxu3 %v7881_v15  ;;  %v6120_v3 = vunpack.c.l.b16 %v5953_v53 }
 0x32c   : > { %v11245_v60 = vmax.f32 %v9935_v14, %v9985_v17  ;;  %v7309_v32 = vor.u32 %v8485_v54, %v7306_v33 }
 0x32d   : > { %v5954_v8 = vpack.c.bf16 %v5890_v13, %v5890_v13  ;;  %v10078_v63 = vmax.f32 %v5668_v26, %v5732_v50  ;;  %v5695_v57 = vmax.f32 %v10017_v34, %v5097_v46  ;;  %8165 = vmatmul.msk.bf16.gmra.mxu1 %vm3934_vm1, %v7301_v11  ;;  %8238 = vmatmul.msk.bf16.gmra.mxu2 %vm3934_vm1, %v7885_v27 }
 0x32e   : > { %v4812_v0 = vpop.f32.mrf.mxu3 }
 0x32f   : > { %v6121_v37 = vunpack.c.l.b16 %v5954_v8  ;;  %v5759_v21 = vmax.f32 %v11244_v40, %v5695_v57  ;;  %v7312_v40 = vld [vmem:[%s9423_s15 + $0x210] sm:$0xf] }
 0x330   : > { %v5461_v58 = vpop.f32.mrf.mxu2  ;;  %v4449_v26 = vpop.f32.mrf.mxu0 }
 0x331   : > { %v10086_v34 = vpack.c.b16 %v6121_v37, %v6120_v3  ;;  %v10088_v23 = vadd.f32 %v5461_v58, %v4812_v0  ;;  %v5827_v12 = vadd.f32 %v10038_v59, %v5759_v21  ;;  %v5859_v0 = vadd.f32 %v10038_v59, %v9858_v4  ;;  %v8488_v21 = vld [vmem:[%s9423_s15 + $0x214] sm:$0xf0]  ;;  %v7896_v58 = vld [vmem:[%s9423_s15 + $0x6a0] sm:$0xf] }
 0x332   : > { %v5098_v7 = vpop.f32.mrf.mxu1  ;;  %v5860_v3 = vadd.f32 %v10038_v59, %v9875_v56 }
 0x333   : > { %v5099_v38 = vadd.f32 %v5098_v7, %v4449_v26  ;;  %v5891_v39 = vmax.f32 %v5827_v12, 0.0  ;;  %v8634_v26 = vld [vmem:[%s9423_s15 + $0x6a4] sm:$0xf0]  ;;  %v8487_v7 = vld [vmem:[%s9423_s15 + $0x214] sm:$0xf]  ;;  %v5923_v52 = vmax.f32 %v5859_v0, 0.0 }
 0x334   : > { %v5924_v61 = vmax.f32 %v5860_v3, 0.0  ;;  %v7897_v54 = vor.u32 %v8634_v26, %v7896_v58  ;;  %v8635_v0 = vld [vmem:[%s9423_s15 + $0x6b4] sm:$0xf]  ;;  %v7906_v3 = vld [vmem:[%s9423_s15 + $0x6b8] sm:$0xf0] }
 0x335   : > { %v5696_v31 = vmax.f32 %v10022_v9, %v5099_v38  ;;  %v7893_v9 = vor.u32 %v8631_v16, %v7890_v24  ;;  %v5955_v48 = vpack.c.bf16 %v5891_v39, %v5891_v39  ;;  %v7314_v38 = vld [vmem:[%s9423_s15 + $0x218] sm:$0xf0]  ;;  %v7901_v16 = vor.u32 %v8633_v62, %v7898_v2 }
 0x336   : > { %v4814_v25 = vpop.f32.mrf.mxu3  ;;  %v7317_v56 = vor.u32 %v8487_v7, %v7314_v38  ;;  %v5987_v39 = vpack.c.bf16 %v5923_v52, %v5923_v52  ;;  %v7909_v38 = vor.u32 %v8635_v0, %v7906_v3 }
 0x337   : > { %v5760_v41 = vmax.f32 %v11245_v60, %v5696_v31  ;;  %v6122_v1 = vunpack.c.l.b16 %v5955_v48  ;;  %v7313_v31 = vor.u32 %v8488_v21, %v7312_v40  ;;  %v5988_v60 = vpack.c.bf16 %v5924_v61, %v5924_v61 }
 0x338   : > { %v5463_v47 = vpop.f32.mrf.mxu2  ;;  %v4452_v10 = vpop.f32.mrf.mxu0 }
 0x339   : > { %v5828_v15 = vadd.f32 %v10038_v59, %v5760_v41  ;;  %v10104_v6 = vadd.f32 %v5463_v47, %v4814_v25  ;;  %v6563_v47 = vunpack.c.l.b16 %v5988_v60  ;;  %v8492_v60 = vld [vmem:[%s9423_s15 + $0x234] sm:$0xf0] }
 0x33a   : > { %v5101_v51 = vpop.f32.mrf.mxu1 }
 0x33b   : > { %v5892_v11 = vmax.f32 %v5828_v15, 0.0  ;;  %v10106_v27 = vadd.f32 %v5101_v51, %v4452_v10  ;;  %4491 = vmatmul.bf16.gmra.mxu0 %v7305_v30  ;;  %4856 = vmatmul.bf16.gmra.mxu3 %v7889_v44  ;;  %v6562_v44 = vunpack.c.l.b16 %v5987_v39  ;;  %v7328_v39 = vld [vmem:[%s9423_s15 + $0x230] sm:$0xf] }
 0x33d   : > { %v5956_v14 = vpack.c.bf16 %v5892_v11, %v5892_v11  ;;  %8166 = vmatmul.msk.bf16.gmra.mxu1 %vm3934_vm1, %v7309_v32  ;;  %8239 = vmatmul.msk.bf16.gmra.mxu2 %vm3934_vm1, %v7893_v9  ;;  %v7320_v11 = vld [vmem:[%s9423_s15 + $0x220] sm:$0xf] }
 0x33e   : > { %v4817_v17 = vpop.f32.mrf.mxu3 }
 0x33f   : > { %v6123_v53 = vunpack.c.l.b16 %v5956_v14  ;;  %v10141_v14 = vpack.c.b16 %v6563_v47, %v6562_v44  ;;  %v8638_v44 = vld [vmem:[%s9423_s15 + $0x6c4] sm:$0xf0] }
 0x340   : > { %v5466_v13 = vpop.f32.mrf.mxu2  ;;  %v4454_v50 = vpop.f32.mrf.mxu0 }
 0x341   : > { %v10110_v46 = vadd.f32 %v5466_v13, %v4817_v17  ;;  %v10112_v8 = vpack.c.b16 %v6123_v53, %v6122_v1  ;;  %11246 = vst [vmem:[#allocation7_spill] sm:$0xff] %v10141_v14  ;;  %v8490_v17 = vld [vmem:[%s9423_s15 + $0x224] sm:$0xf0]  ;;  %v7904_v1 = vld [vmem:[%s9423_s15 + $0x6b0] sm:$0xf] }
 0x342   : > { %v5103_v57 = vpop.f32.mrf.mxu1  ;;  %v8636_v53 = vld [vmem:[%s9423_s15 + $0x6b4] sm:$0xf0]  ;;  %v8489_v13 = vld [vmem:[%s9423_s15 + $0x224] sm:$0xf]  ;;  %v7321_v40 = vor.u32 %v8490_v17, %v7320_v11  ;;  %v7914_v17 = vld [vmem:[%s9423_s15 + $0x6c8] sm:$0xf0] }
 0x343   : > { %v10118_v37 = vadd.f32 %v5103_v57, %v4454_v50  ;;  %v7322_v57 = vld [vmem:[%s9423_s15 + $0x228] sm:$0xf0]  ;;  %v7905_v21 = vor.u32 %v8636_v53, %v7904_v1  ;;  %v8637_v11 = vld [vmem:[%s9423_s15 + $0x6c4] sm:$0xf]  ;;  %v7329_v1 = vor.u32 %v8492_v60, %v7328_v39  ;;  %v8494_v39 = vld [vmem:[%s9423_s15 + $0x244] sm:$0xf0] }
 0x344   : > { %v7917_v3 = vor.u32 %v8637_v11, %v7914_v17  ;;  %v7920_v60 = vld [vmem:[%s9423_s15 + $0x6d0] sm:$0xf]  ;;  %v8639_v11 = vld [vmem:[%s9423_s15 + $0x6d4] sm:$0xf]  ;;  %v7922_v17 = vld [vmem:[%s9423_s15 + $0x6d8] sm:$0xf0] }
 0x346   : > { %v4819_v12 = vpop.f32.mrf.mxu3 }
 0x348   : > { %v5468_v25 = vpop.f32.mrf.mxu2  ;;  %v4457_v4 = vpop.f32.mrf.mxu0 }
 0x349   : > { %v10128_v33 = vadd.f32 %v5468_v25, %v4819_v12  ;;  %v7325_v12 = vor.u32 %v8489_v13, %v7322_v57 }
 0x34a   : > { %v5106_v24 = vpop.f32.mrf.mxu1 }
 0x34b   : > { %v10130_v41 = vadd.f32 %v5106_v24, %v4457_v4  ;;  %4496 = vmatmul.bf16.gmra.mxu0 %v7313_v31  ;;  %4861 = vmatmul.bf16.gmra.mxu3 %v7897_v54 }
 0x34d   : > { %8167 = vmatmul.msk.bf16.gmra.mxu1 %vm3934_vm1, %v7317_v56  ;;  %8240 = vmatmul.msk.bf16.gmra.mxu2 %vm3934_vm1, %v7901_v16 }
 0x34e   : > { %v4822_v30 = vpop.f32.mrf.mxu3 }
 0x350   : > { %v5471_v10 = vpop.f32.mrf.mxu2  ;;  %v4459_v15 = vpop.f32.mrf.mxu0 }
 0x351   : > { %v10134_v32 = vadd.f32 %v5471_v10, %v4822_v30  ;;  %v7912_v30 = vld [vmem:[%s9423_s15 + $0x6c0] sm:$0xf]  ;;  %v8491_v10 = vld [vmem:[%s9423_s15 + $0x234] sm:$0xf] }
 0x352   : > { %v5108_v9 = vpop.f32.mrf.mxu1  ;;  %v7913_v53 = vor.u32 %v8638_v44, %v7912_v30  ;;  %v8640_v30 = vld [vmem:[%s9423_s15 + $0x6d4] sm:$0xf0] }
 0x353   : > { %v5669_v51 = vmax.f32 %v10088_v23, %v10134_v32  ;;  %v10138_v48 = vadd.f32 %v5108_v9, %v4459_v15  ;;  %v7330_v9 = vld [vmem:[%s9423_s15 + $0x238] sm:$0xf0] }
 0x354   : > { %v7333_v0 = vor.u32 %v8491_v10, %v7330_v9  ;;  %v8493_v10 = vld [vmem:[%s9423_s15 + $0x244] sm:$0xf]  ;;  %v7338_v9 = vld [vmem:[%s9423_s15 + $0x248] sm:$0xf0] }
 0x356   : > { %v4824_v50 = vpop.f32.mrf.mxu3 }
 0x358   : > { %v5473_v58 = vpop.f32.mrf.mxu2  ;;  %v4462_v26 = vpop.f32.mrf.mxu0 }
 0x359   : > { %v10150_v7 = vadd.f32 %v5473_v58, %v4824_v50 }
 0x35a   : > { %v5111_v62 = vpop.f32.mrf.mxu1 }
 0x35b   : > { %v10154_v52 = vadd.f32 %v5111_v62, %v4462_v26  ;;  %4501 = vmatmul.bf16.gmra.mxu0 %v7321_v40  ;;  %4866 = vmatmul.bf16.gmra.mxu3 %v7905_v21  ;;  %v7938_v21 = vld [vmem:[%s9423_s15 + $0x6f8] sm:$0xf0]  ;;  %v11247_v32 = vmax.f32 %v10104_v6, %v10150_v7 }
 0x35d   : > { %8168 = vmatmul.msk.bf16.gmra.mxu1 %vm3934_vm1, %v7325_v12  ;;  %8241 = vmatmul.msk.bf16.gmra.mxu2 %vm3934_vm1, %v7909_v38 }
 0x35e   : > { %v4827_v31 = vpop.f32.mrf.mxu3 }
 0x360   : > { %v5476_v54 = vpop.f32.mrf.mxu2  ;;  %v4464_v25 = vpop.f32.mrf.mxu0 }
 0x361   : > { %v10160_v4 = vadd.f32 %v5476_v54, %v4827_v31 }
 0x362   : > { %v5113_v56 = vpop.f32.mrf.mxu1 }
 0x363   : > { %v10164_v24 = vadd.f32 %v5113_v56, %v4464_v25  ;;  %v7336_v56 = vld [vmem:[%s9423_s15 + $0x240] sm:$0xf] }
 0x366   : > { %v4829_v15 = vpop.f32.mrf.mxu3 }
 0x368   : > { %v5478_v13 = vpop.f32.mrf.mxu2  ;;  %v4467_v50 = vpop.f32.mrf.mxu0 }
 0x369   : > { %v10176_v57 = vadd.f32 %v5478_v13, %v4829_v15 }
 0x36a   : > { %v5116_v40 = vpop.f32.mrf.mxu1 }
 0x36b   : > { %v10180_v58 = vadd.f32 %v5116_v40, %v4467_v50  ;;  %4506 = vmatmul.bf16.gmra.mxu0 %v7329_v1  ;;  %4871 = vmatmul.bf16.gmra.mxu3 %v7913_v53  ;;  %v7337_v1 = vor.u32 %v8494_v39, %v7336_v56  ;;  %v7921_v53 = vor.u32 %v8640_v30, %v7920_v60 }
 0x36c   : > { %v7925_v40 = vor.u32 %v8639_v11, %v7922_v17  ;;  %v8642_v11 = vld [vmem:[%s9423_s15 + $0x6e4] sm:$0xf0]  ;;  %v8495_v17 = vld [vmem:[%s9423_s15 + $0x254] sm:$0xf] }
 0x36d   : > { %8169 = vmatmul.msk.bf16.gmra.mxu1 %vm3934_vm1, %v7333_v0  ;;  %8242 = vmatmul.msk.bf16.gmra.mxu2 %vm3934_vm1, %v7917_v3  ;;  %v7341_v3 = vor.u32 %v8493_v10, %v7338_v9  ;;  %v7344_v10 = vld [vmem:[%s9423_s15 + $0x250] sm:$0xf]  ;;  %v7928_v9 = vld [vmem:[%s9423_s15 + $0x6e0] sm:$0xf] }
 0x36e   : > { %v4832_v12 = vpop.f32.mrf.mxu3 }
 0x370   : > { %v5481_v38 = vpop.f32.mrf.mxu2  ;;  %v4469_v62 = vpop.f32.mrf.mxu0 }
 0x371   : > { %v10186_v31 = vadd.f32 %v5481_v38, %v4832_v12 }
 0x372   : > { %v5118_v54 = vpop.f32.mrf.mxu1 }
 0x373   : > { %v10188_v25 = vadd.f32 %v5118_v54, %v4469_v62 }
 0x376   : > { %v4834_v15 = vpop.f32.mrf.mxu3 }
 0x378   : > { %v5483_v13 = vpop.f32.mrf.mxu2  ;;  %v4472_v50 = vpop.f32.mrf.mxu0 }
 0x379   : > { %v10200_v0 = vadd.f32 %v5483_v13, %v4834_v15  ;;  %v8496_v15 = vld [vmem:[%s9423_s15 + $0x254] sm:$0xf0]  ;;  %v8641_v13 = vld [vmem:[%s9423_s15 + $0x6e4] sm:$0xf] }
 0x37a   : > { %v5121_v12 = vpop.f32.mrf.mxu1 }
 0x37b   : > { %v10202_v38 = vadd.f32 %v5121_v12, %v4472_v50  ;;  %4511 = vmatmul.bf16.gmra.mxu0 %v7337_v1  ;;  %4876 = vmatmul.bf16.gmra.mxu3 %v7921_v53  ;;  %v7346_v53 = vld [vmem:[%s9423_s15 + $0x258] sm:$0xf0]  ;;  %v7930_v50 = vld [vmem:[%s9423_s15 + $0x6e8] sm:$0xf0]  ;;  %v7929_v12 = vor.u32 %v8642_v11, %v7928_v9 }
 0x37d   : > { %8170 = vmatmul.msk.bf16.gmra.mxu1 %vm3934_vm1, %v7341_v3  ;;  %8243 = vmatmul.msk.bf16.gmra.mxu2 %vm3934_vm1, %v7925_v40  ;;  %v7345_v3 = vor.u32 %v8496_v15, %v7344_v10 }
 0x37e   : > { %v4837_v62 = vpop.f32.mrf.mxu3 }
 0x380   : > { %v5486_v54 = vpop.f32.mrf.mxu2  ;;  %v4474_v56 = vpop.f32.mrf.mxu0 }
 0x381   : > { %v10206_v39 = vadd.f32 %v5486_v54, %v4837_v62  ;;  %v7349_v62 = vor.u32 %v8495_v17, %v7346_v53  ;;  %v7933_v54 = vor.u32 %v8641_v13, %v7930_v50  ;;  %v8498_v13 = vld [vmem:[%s9423_s15 + $0x264] sm:$0xf0]  ;;  %v7936_v50 = vld [vmem:[%s9423_s15 + $0x6f0] sm:$0xf] }
 0x382   : > { %v5123_v60 = vpop.f32.mrf.mxu1 }
 0x383   : > { %v10208_v30 = vadd.f32 %v5123_v60, %v4474_v56 }
 0x386   : > { %v4839_v1 = vpop.f32.mrf.mxu3 }
 0x388   : > { %v5488_v40 = vpop.f32.mrf.mxu2  ;;  %v4477_v44 = vpop.f32.mrf.mxu0 }
 0x389   : > { %v10218_v26 = vadd.f32 %v5488_v40, %v4839_v1  ;;  %v8497_v40 = vld [vmem:[%s9423_s15 + $0x264] sm:$0xf] }
 0x38a   : > { %v5126_v56 = vpop.f32.mrf.mxu1 }
 0x38b   : > { %v10220_v60 = vadd.f32 %v5126_v56, %v4477_v44  ;;  %4516 = vmatmul.bf16.gmra.mxu0 %v7345_v3  ;;  %4881 = vmatmul.bf16.gmra.mxu3 %v7929_v12  ;;  %v7352_v44 = vld [vmem:[%s9423_s15 + $0x260] sm:$0xf]  ;;  %v8644_v3 = vld [vmem:[%s9423_s15 + $0x6f4] sm:$0xf0]  ;;  %v8643_v56 = vld [vmem:[%s9423_s15 + $0x6f4] sm:$0xf] }
 0x38c   : > { %v7937_v47 = vor.u32 %v8644_v3, %v7936_v50  ;;  %v7941_v16 = vor.u32 %v8643_v56, %v7938_v21  ;;  %v11249_v56 = vmax.f32 %v10110_v46, %v10160_v4 }
 0x38d   : > { %8171 = vmatmul.msk.bf16.gmra.mxu1 %vm3934_vm1, %v7349_v62  ;;  %8244 = vmatmul.msk.bf16.gmra.mxu2 %vm3934_vm1, %v7933_v54  ;;  %v7354_v54 = vld [vmem:[%s9423_s15 + $0x268] sm:$0xf0] }
 0x38e   : > { %v4842_v10 = vpop.f32.mrf.mxu3 }
 0x390   : > { %v5491_v15 = vpop.f32.mrf.mxu2  ;;  %v4479_v9 = vpop.f32.mrf.mxu0 }
 0x391   : > { %v5492_v11 = vadd.f32 %v5491_v15, %v4842_v10  ;;  %v7353_v15 = vor.u32 %v8498_v13, %v7352_v44 }
 0x392   : > { %v5128_v17 = vpop.f32.mrf.mxu1 }
 0x393   : > { %v5733_v1 = vmax.f32 %v10186_v31, %v5492_v11  ;;  %v10225_v53 = vadd.f32 %v5128_v17, %v4479_v9  ;;  %v7357_v17 = vor.u32 %v8497_v40, %v7354_v54  ;;  %v7360_v40 = vld [vmem:[%s9423_s15 + $0x270] sm:$0xf] }
 0x395   : > { %v5797_v12 = vmax.f32 %v5669_v51, %v5733_v1 }
 0x396   : > { %v4844_v62 = vpop.f32.mrf.mxu3 }
 0x397   : > { %v5865_v10 = vadd.f32 %v10038_v59, %v5797_v12 }
 0x398   : > { %v5493_v31 = vpop.f32.mrf.mxu2  ;;  %v4482_v9 = vpop.f32.mrf.mxu0 }
 0x399   : > { %v5494_v11 = vadd.f32 %v5493_v31, %v4844_v62  ;;  %v5929_v61 = vmax.f32 %v5865_v10, 0.0  ;;  %v8500_v62 = vld [vmem:[%s9423_s15 + $0x274] sm:$0xf0]  ;;  %v8499_v31 = vld [vmem:[%s9423_s15 + $0x274] sm:$0xf] }
 0x39a   : > { %v5131_v2 = vpop.f32.mrf.mxu1 }
 0x39b   : > { %v5734_v43 = vmax.f32 %v10200_v0, %v5494_v11  ;;  %v5132_v23 = vadd.f32 %v5131_v2, %v4482_v9  ;;  %4521 = vmatmul.bf16.gmra.mxu0 %v7353_v15  ;;  %4886 = vmatmul.bf16.gmra.mxu3 %v7937_v47  ;;  %v5993_v21 = vpack.c.bf16 %v5929_v61, %v5929_v61 }
 0x39c   : > { %v11248_v47 = vmax.f32 %v10106_v27, %v10154_v52  ;;  %v7944_v27 = vld [vmem:[%s9423_s15 + $0x700] sm:$0xf]  ;;  %v8646_v52 = vld [vmem:[%s9423_s15 + $0x704] sm:$0xf0]  ;;  %v7361_v11 = vor.u32 %v8500_v62, %v7360_v40 }
 0x39d   : > { %v5798_v51 = vmax.f32 %v11247_v32, %v5734_v43  ;;  %v5697_v1 = vmax.f32 %v10202_v38, %v5132_v23  ;;  %8172 = vmatmul.msk.bf16.gmra.mxu1 %vm3934_vm1, %v7357_v17  ;;  %8245 = vmatmul.msk.bf16.gmra.mxu2 %vm3934_vm1, %v7941_v16  ;;  %v6670_v13 = vunpack.c.l.b16 %v5993_v21  ;;  %v7362_v17 = vld [vmem:[%s9423_s15 + $0x278] sm:$0xf0]  ;;  %v8645_v23 = vld [vmem:[%s9423_s15 + $0x704] sm:$0xf]  ;;  %v7946_v32 = vld [vmem:[%s9423_s15 + $0x708] sm:$0xf0] }
 0x39e   : > { %v4847_v44 = vpop.f32.mrf.mxu3 }
 0x39f   : > { %v5866_v2 = vadd.f32 %v10038_v59, %v5798_v51  ;;  %v5761_v0 = vmax.f32 %v11248_v47, %v5697_v1  ;;  %v11251_v1 = vmax.f32 %v10118_v37, %v10164_v24  ;;  %v11252_v37 = vmax.f32 %v10128_v33, %v10176_v57 }
 0x3a0   : > { %v5496_v6 = vpop.f32.mrf.mxu2  ;;  %v4484_v43 = vpop.f32.mrf.mxu0 }
 0x3a1   : > { %v5930_v7 = vmax.f32 %v5866_v2, 0.0  ;;  %v5497_v38 = vadd.f32 %v5496_v6, %v4847_v44  ;;  %v5829_v61 = vadd.f32 %v10038_v59, %v5761_v0  ;;  %v7945_v44 = vor.u32 %v8646_v52, %v7944_v27 }
 0x3a2   : > { %v5133_v50 = vpop.f32.mrf.mxu1  ;;  %v7949_v0 = vor.u32 %v8645_v23, %v7946_v32  ;;  %v8647_v23 = vld [vmem:[%s9423_s15 + $0x714] sm:$0xf]  ;;  %v7954_v32 = vld [vmem:[%s9423_s15 + $0x718] sm:$0xf0] }
 0x3a3   : > { %v5994_v16 = vpack.c.bf16 %v5930_v7, %v5930_v7  ;;  %v5735_v3 = vmax.f32 %v10206_v39, %v5497_v38  ;;  %v5134_v12 = vadd.f32 %v5133_v50, %v4484_v43  ;;  %v5893_v51 = vmax.f32 %v5829_v61, 0.0 }
 0x3a5   : > { %v6671_v54 = vunpack.c.l.b16 %v5994_v16  ;;  %v10259_v10 = vmax.f32 %v11249_v56, %v5735_v3  ;;  %v5698_v15 = vmax.f32 %v10208_v30, %v5134_v12  ;;  %v7365_v30 = vor.u32 %v8499_v31, %v7362_v17  ;;  %v7368_v56 = vld [vmem:[%s9423_s15 + $0x280] sm:$0xf]  ;;  %v7952_v31 = vld [vmem:[%s9423_s15 + $0x710] sm:$0xf]  ;;  %v7370_v17 = vld [vmem:[%s9423_s15 + $0x288] sm:$0xf0] }
 0x3a6   : > { %v4849_v9 = vpop.f32.mrf.mxu3  ;;  %v5957_v43 = vpack.c.bf16 %v5893_v51, %v5893_v51  ;;  %v11253_v12 = vmax.f32 %v10130_v41, %v10180_v58  ;;  %v8501_v58 = vld [vmem:[%s9423_s15 + $0x284] sm:$0xf] }
 0x3a7   : > { %v10266_v39 = vpack.c.b16 %v6671_v54, %v6670_v13  ;;  %v5762_v21 = vmax.f32 %v11251_v1, %v5698_v15  ;;  %v8502_v15 = vld [vmem:[%s9423_s15 + $0x284] sm:$0xf0]  ;;  %v11254_v1 = vmax.f32 %v10138_v48, %v10188_v25 }
 0x3a8   : > { %v5498_v2 = vpop.f32.mrf.mxu2  ;;  %v4487_v46 = vpop.f32.mrf.mxu0  ;;  %v6175_v61 = vunpack.c.l.b16 %v5957_v43 }
 0x3a9   : > { %11250 = vst [vmem:[#allocation8_spill] sm:$0xff] %v10266_v39  ;;  %v5830_v4 = vadd.f32 %v10038_v59, %v5762_v21  ;;  %v5499_v47 = vadd.f32 %v5498_v2, %v4849_v9  ;;  %v8648_v9 = vld [vmem:[%s9423_s15 + $0x714] sm:$0xf0] }
 0x3aa   : > { %v5136_v6 = vpop.f32.mrf.mxu1  ;;  %v7953_v2 = vor.u32 %v8648_v9, %v7952_v31  ;;  %v7378_v31 = vld [vmem:[%s9423_s15 + $0x298] sm:$0xf0]  ;;  %v8649_v9 = vld [vmem:[%s9423_s15 + $0x724] sm:$0xf] }
 0x3ab   : > { %v5894_v7 = vmax.f32 %v5830_v4, 0.0  ;;  %v5736_v38 = vmax.f32 %v10218_v26, %v5499_v47  ;;  %v5137_v13 = vadd.f32 %v5136_v6, %v4487_v46  ;;  %4526 = vmatmul.bf16.gmra.mxu0 %v7361_v11  ;;  %4891 = vmatmul.bf16.gmra.mxu3 %v7945_v44  ;;  %v7369_v44 = vor.u32 %v8502_v15, %v7368_v56  ;;  %v8503_v56 = vld [vmem:[%s9423_s15 + $0x294] sm:$0xf] }
 0x3ad   : > { %v5958_v50 = vpack.c.bf16 %v5894_v7, %v5894_v7  ;;  %v10276_v24 = vmax.f32 %v11252_v37, %v5736_v38  ;;  %v5699_v16 = vmax.f32 %v10220_v60, %v5137_v13  ;;  %8173 = vmatmul.msk.bf16.gmra.mxu1 %vm3934_vm1, %v7365_v30  ;;  %8246 = vmatmul.msk.bf16.gmra.mxu2 %vm3934_vm1, %v7949_v0 }
 0x3ae   : > { %v4852_v26 = vpop.f32.mrf.mxu3  ;;  %v7373_v0 = vor.u32 %v8501_v58, %v7370_v17 }
 0x3af   : > { %v6176_v3 = vunpack.c.l.b16 %v5958_v50  ;;  %v5763_v33 = vmax.f32 %v11253_v12, %v5699_v16  ;;  %v5863_v12 = vadd.f32 %v10038_v59, %v10061_v19 }
 0x3b0   : > { %v5501_v57 = vpop.f32.mrf.mxu2  ;;  %v4489_v40 = vpop.f32.mrf.mxu0 }
 0x3b1   : > { %v10284_v60 = vpack.c.b16 %v6176_v3, %v6175_v61  ;;  %v10286_v62 = vadd.f32 %v5501_v57, %v4852_v26  ;;  %v5831_v52 = vadd.f32 %v10038_v59, %v5763_v33  ;;  %v5864_v33 = vadd.f32 %v10038_v59, %v10078_v63 }
 0x3b2   : > { %v5138_v27 = vpop.f32.mrf.mxu1  ;;  %v5927_v58 = vmax.f32 %v5863_v12, 0.0 }
 0x3b3   : > { %v5139_v54 = vadd.f32 %v5138_v27, %v4489_v40  ;;  %v5895_v51 = vmax.f32 %v5831_v52, 0.0  ;;  %v7376_v40 = vld [vmem:[%s9423_s15 + $0x290] sm:$0xf]  ;;  %v8504_v27 = vld [vmem:[%s9423_s15 + $0x294] sm:$0xf0] }
 0x3b4   : > { %v7960_v52 = vld [vmem:[%s9423_s15 + $0x720] sm:$0xf]  ;;  %v7377_v17 = vor.u32 %v8504_v27, %v7376_v40  ;;  %v8651_v40 = vld [vmem:[%s9423_s15 + $0x734] sm:$0xf]  ;;  %v7970_v27 = vld [vmem:[%s9423_s15 + $0x738] sm:$0xf0] }
 0x3b5   : > { %v5700_v41 = vmax.f32 %v10225_v53, %v5139_v54  ;;  %v7957_v53 = vor.u32 %v8647_v23, %v7954_v32  ;;  %v5959_v43 = vpack.c.bf16 %v5895_v51, %v5895_v51  ;;  %v8650_v54 = vld [vmem:[%s9423_s15 + $0x724] sm:$0xf0] }
 0x3b6   : > { %v4854_v11 = vpop.f32.mrf.mxu3  ;;  %v7961_v23 = vor.u32 %v8650_v54, %v7960_v52 }
 0x3b7   : > { %v5764_v21 = vmax.f32 %v11254_v1, %v5700_v41  ;;  %v6177_v13 = vunpack.c.l.b16 %v5959_v43  ;;  %v7962_v41 = vld [vmem:[%s9423_s15 + $0x728] sm:$0xf0] }
 0x3b8   : > { %v5503_v46 = vpop.f32.mrf.mxu2  ;;  %v4492_v4 = vpop.f32.mrf.mxu0  ;;  %v7965_v63 = vor.u32 %v8649_v9, %v7962_v41  ;;  %v7973_v41 = vor.u32 %v8651_v40, %v7970_v27 }
 0x3b9   : > { %v5832_v47 = vadd.f32 %v10038_v59, %v5764_v21  ;;  %v10302_v30 = vadd.f32 %v5503_v46, %v4854_v11  ;;  %v5928_v11 = vmax.f32 %v5864_v33, 0.0  ;;  %v7381_v59 = vor.u32 %v8503_v56, %v7378_v31  ;;  %v7386_v33 = vld [vmem:[%s9423_s15 + $0x2a8] sm:$0xf0] }
 0x3ba   : > { %v5141_v6 = vpop.f32.mrf.mxu1  ;;  %v5991_v21 = vpack.c.bf16 %v5927_v58, %v5927_v58 }
 0x3bb   : > { %v5896_v7 = vmax.f32 %v5832_v47, 0.0  ;;  %v10304_v38 = vadd.f32 %v5141_v6, %v4492_v4  ;;  %4531 = vmatmul.bf16.gmra.mxu0 %v7369_v44  ;;  %4896 = vmatmul.bf16.gmra.mxu3 %v7953_v2  ;;  %v5992_v44 = vpack.c.bf16 %v5928_v11, %v5928_v11 }
 0x3bc   : > { %v6617_v4 = vunpack.c.l.b16 %v5991_v21  ;;  %v8002_v21 = vld [vmem:[%s9423_s15 + $0x778] sm:$0xf0] }
 0x3bd   : > { %v5960_v48 = vpack.c.bf16 %v5896_v7, %v5896_v7  ;;  %8174 = vmatmul.msk.bf16.gmra.mxu1 %vm3934_vm1, %v7373_v0  ;;  %8247 = vmatmul.msk.bf16.gmra.mxu2 %vm3934_vm1, %v7957_v53  ;;  %v6618_v47 = vunpack.c.l.b16 %v5992_v44 }
 0x3be   : > { %v4857_v25 = vpop.f32.mrf.mxu3 }
 0x3bf   : > { %v6178_v50 = vunpack.c.l.b16 %v5960_v48 }
 0x3c0   : > { %v5506_v37 = vpop.f32.mrf.mxu2  ;;  %v4494_v16 = vpop.f32.mrf.mxu0 }
 0x3c1   : > { %v10308_v26 = vadd.f32 %v5506_v37, %v4857_v25  ;;  %v10310_v61 = vpack.c.b16 %v6178_v50, %v6177_v13  ;;  %v7384_v25 = vld [vmem:[%s9423_s15 + $0x2a0] sm:$0xf]  ;;  %v10339_v13 = vpack.c.b16 %v6618_v47, %v6617_v4  ;;  %v8506_v50 = vld [vmem:[%s9423_s15 + $0x2a4] sm:$0xf0]  ;;  %v7968_v37 = vld [vmem:[%s9423_s15 + $0x730] sm:$0xf] }
 0x3c2   : > { %v5143_v3 = vpop.f32.mrf.mxu1  ;;  %v7385_v52 = vor.u32 %v8506_v50, %v7384_v25  ;;  %v8508_v4 = vld [vmem:[%s9423_s15 + $0x2b4] sm:$0xf0]  ;;  %v7976_v47 = vld [vmem:[%s9423_s15 + $0x740] sm:$0xf]  ;;  %v7394_v50 = vld [vmem:[%s9423_s15 + $0x2b8] sm:$0xf0] }
 0x3c3   : > { %v10316_v57 = vadd.f32 %v5143_v3, %v4494_v16  ;;  %11255 = vst [vmem:[#allocation9_spill] sm:$0xff] %v10339_v13  ;;  %v8652_v16 = vld [vmem:[%s9423_s15 + $0x734] sm:$0xf0]  ;;  %v8505_v3 = vld [vmem:[%s9423_s15 + $0x2a4] sm:$0xf] }
 0x3c4   : > { %v7969_v54 = vor.u32 %v8652_v16, %v7968_v37  ;;  %v7389_v9 = vor.u32 %v8505_v3, %v7386_v33  ;;  %v8653_v37 = vld [vmem:[%s9423_s15 + $0x744] sm:$0xf]  ;;  %v7978_v16 = vld [vmem:[%s9423_s15 + $0x748] sm:$0xf0] }
 0x3c6   : > { %v4859_v15 = vpop.f32.mrf.mxu3 }
 0x3c8   : > { %v5508_v32 = vpop.f32.mrf.mxu2  ;;  %v4497_v19 = vpop.f32.mrf.mxu0 }
 0x3c9   : > { %v10326_v51 = vadd.f32 %v5508_v32, %v4859_v15 }
 0x3ca   : > { %v5146_v1 = vpop.f32.mrf.mxu1 }
 0x3cb   : > { %v10328_v2 = vadd.f32 %v5146_v1, %v4497_v19  ;;  %4536 = vmatmul.bf16.gmra.mxu0 %v7377_v17  ;;  %4901 = vmatmul.bf16.gmra.mxu3 %v7961_v23 }
 0x3cd   : > { %8175 = vmatmul.msk.bf16.gmra.mxu1 %vm3934_vm1, %v7381_v59  ;;  %8248 = vmatmul.msk.bf16.gmra.mxu2 %vm3934_vm1, %v7965_v63 }
 0x3ce   : > { %v4862_v46 = vpop.f32.mrf.mxu3 }
 0x3d0   : > { %v5511_v0 = vpop.f32.mrf.mxu2  ;;  %v4499_v53 = vpop.f32.mrf.mxu0 }
 0x3d1   : > { %v10332_v6 = vadd.f32 %v5511_v0, %v4862_v46  ;;  %v7392_v46 = vld [vmem:[%s9423_s15 + $0x2b0] sm:$0xf]  ;;  %v8654_v0 = vld [vmem:[%s9423_s15 + $0x744] sm:$0xf0] }
 0x3d2   : > { %v5148_v43 = vpop.f32.mrf.mxu1  ;;  %v7393_v3 = vor.u32 %v8508_v4, %v7392_v46  ;;  %v7400_v4 = vld [vmem:[%s9423_s15 + $0x2c0] sm:$0xf] }
 0x3d3   : > { %v5673_v7 = vmax.f32 %v10286_v62, %v10332_v6  ;;  %v10336_v48 = vadd.f32 %v5148_v43, %v4499_v53  ;;  %v8507_v43 = vld [vmem:[%s9423_s15 + $0x2b4] sm:$0xf] }
 0x3d6   : > { %v4864_v12 = vpop.f32.mrf.mxu3 }
 0x3d8   : > { %v5513_v56 = vpop.f32.mrf.mxu2  ;;  %v4502_v15 = vpop.f32.mrf.mxu0 }
 0x3d9   : > { %v10348_v31 = vadd.f32 %v5513_v56, %v4864_v12  ;;  %v7977_v12 = vor.u32 %v8654_v0, %v7976_v47  ;;  %v8510_v47 = vld [vmem:[%s9423_s15 + $0x2c4] sm:$0xf0]  ;;  %v7984_v0 = vld [vmem:[%s9423_s15 + $0x750] sm:$0xf] }
 0x3da   : > { %v5151_v58 = vpop.f32.mrf.mxu1 }
 0x3db   : > { %v10352_v17 = vadd.f32 %v5151_v58, %v4502_v15  ;;  %4541 = vmatmul.bf16.gmra.mxu0 %v7385_v52  ;;  %4906 = vmatmul.bf16.gmra.mxu3 %v7969_v54  ;;  %v7397_v52 = vor.u32 %v8507_v43, %v7394_v50  ;;  %v7981_v54 = vor.u32 %v8653_v37, %v7978_v16  ;;  %v8656_v43 = vld [vmem:[%s9423_s15 + $0x754] sm:$0xf0]  ;;  %v8509_v50 = vld [vmem:[%s9423_s15 + $0x2c4] sm:$0xf]  ;;  %v7402_v16 = vld [vmem:[%s9423_s15 + $0x2c8] sm:$0xf0] }
 0x3dc   : > { %v11256_v39 = vmax.f32 %v10302_v30, %v10348_v31 }
 0x3dd   : > { %8176 = vmatmul.msk.bf16.gmra.mxu1 %vm3934_vm1, %v7389_v9  ;;  %8249 = vmatmul.msk.bf16.gmra.mxu2 %vm3934_vm1, %v7973_v41 }
 0x3de   : > { %v4867_v32 = vpop.f32.mrf.mxu3 }
 0x3e0   : > { %v5516_v19 = vpop.f32.mrf.mxu2  ;;  %v4504_v59 = vpop.f32.mrf.mxu0 }
 0x3e1   : > { %v10358_v63 = vadd.f32 %v5516_v19, %v4867_v32 }
 0x3e2   : > { %v5153_v1 = vpop.f32.mrf.mxu1 }
 0x3e3   : > { %v10362_v44 = vadd.f32 %v5153_v1, %v4504_v59 }
 0x3e6   : > { %v4869_v25 = vpop.f32.mrf.mxu3 }
 0x3e8   : > { %v5518_v33 = vpop.f32.mrf.mxu2  ;;  %v4507_v40 = vpop.f32.mrf.mxu0 }
 0x3e9   : > { %v10374_v27 = vadd.f32 %v5518_v33, %v4869_v25  ;;  %v7401_v33 = vor.u32 %v8510_v47, %v7400_v4 }
 0x3ea   : > { %v5156_v56 = vpop.f32.mrf.mxu1 }
 0x3eb   : > { %v10378_v9 = vadd.f32 %v5156_v56, %v4507_v40  ;;  %4546 = vmatmul.bf16.gmra.mxu0 %v7393_v3  ;;  %4911 = vmatmul.bf16.gmra.mxu3 %v7977_v12  ;;  %v8655_v3 = vld [vmem:[%s9423_s15 + $0x754] sm:$0xf]  ;;  %v7986_v12 = vld [vmem:[%s9423_s15 + $0x758] sm:$0xf0]  ;;  %v7985_v40 = vor.u32 %v8656_v43, %v7984_v0 }
 0x3ed   : > { %8177 = vmatmul.msk.bf16.gmra.mxu1 %vm3934_vm1, %v7397_v52  ;;  %8250 = vmatmul.msk.bf16.gmra.mxu2 %vm3934_vm1, %v7981_v54 }
 0x3ee   : > { %v4872_v58 = vpop.f32.mrf.mxu3 }
 0x3f0   : > { %v5521_v32 = vpop.f32.mrf.mxu2  ;;  %v4509_v19 = vpop.f32.mrf.mxu0 }
 0x3f1   : > { %v10384_v59 = vadd.f32 %v5521_v32, %v4872_v58  ;;  %v7405_v58 = vor.u32 %v8509_v50, %v7402_v16  ;;  %v7989_v32 = vor.u32 %v8655_v3, %v7986_v12  ;;  %v7408_v16 = vld [vmem:[%s9423_s15 + $0x2d0] sm:$0xf]  ;;  %v8512_v3 = vld [vmem:[%s9423_s15 + $0x2d4] sm:$0xf0]  ;;  %v7992_v12 = vld [vmem:[%s9423_s15 + $0x760] sm:$0xf] }
 0x3f2   : > { %v5158_v1 = vpop.f32.mrf.mxu1  ;;  %v7409_v25 = vor.u32 %v8512_v3, %v7408_v16 }
 0x3f3   : > { %v10386_v46 = vadd.f32 %v5158_v1, %v4509_v19 }
 0x3f6   : > { %v4874_v37 = vpop.f32.mrf.mxu3 }
 0x3f8   : > { %v5523_v52 = vpop.f32.mrf.mxu2  ;;  %v4512_v54 = vpop.f32.mrf.mxu0 }
 0x3f9   : > { %v10398_v56 = vadd.f32 %v5523_v52, %v4874_v37  ;;  %v8511_v52 = vld [vmem:[%s9423_s15 + $0x2d4] sm:$0xf] }
 0x3fa   : > { %v5161_v19 = vpop.f32.mrf.mxu1 }
 0x3fb   : > { %v10400_v1 = vadd.f32 %v5161_v19, %v4512_v54  ;;  %4551 = vmatmul.bf16.gmra.mxu0 %v7401_v33  ;;  %4916 = vmatmul.bf16.gmra.mxu3 %v7985_v40  ;;  %v8658_v33 = vld [vmem:[%s9423_s15 + $0x764] sm:$0xf0]  ;;  %v7410_v54 = vld [vmem:[%s9423_s15 + $0x2d8] sm:$0xf0]  ;;  %v8657_v19 = vld [vmem:[%s9423_s15 + $0x764] sm:$0xf] }
 0x3fc   : > { %v7993_v41 = vor.u32 %v8658_v33, %v7992_v12  ;;  %v7413_v15 = vor.u32 %v8511_v52, %v7410_v54 }
 0x3fd   : > { %8178 = vmatmul.msk.bf16.gmra.mxu1 %vm3934_vm1, %v7405_v58  ;;  %8251 = vmatmul.msk.bf16.gmra.mxu2 %vm3934_vm1, %v7989_v32  ;;  %v7994_v58 = vld [vmem:[%s9423_s15 + $0x768] sm:$0xf0] }
 0x3fe   : > { %v4877_v4 = vpop.f32.mrf.mxu3  ;;  %v8694_v32 = vld [vmem:[%s11234_s3 + $0xc] sm:$0xff]  ;;  %v7997_v53 = vor.u32 %v8657_v19, %v7994_v58 }
 0x3ff   : > { %6053 = vmatpush.bf16.msrb.mxu2 %v8694_v32  ;;  %v7416_v32 = vld [vmem:[%s9423_s15 + $0x2e0] sm:$0xf] }
 0x400   : > { %v5526_v47 = vpop.f32.mrf.mxu2  ;;  %v4514_v0 = vpop.f32.mrf.mxu0 }
 0x401   : > { %v10404_v43 = vadd.f32 %v5526_v47, %v4877_v4  ;;  %v8693_v4 = vld [vmem:[%s11234_s3] sm:$0xff] }
 0x402   : > { %v5163_v50 = vpop.f32.mrf.mxu1  ;;  %6100 = vmatpush.bf16.msrb.mxu3 %v8693_v4  ;;  %v8000_v4 = vld [vmem:[%s9423_s15 + $0x770] sm:$0xf] }
 0x403   : > { %v10406_v37 = vadd.f32 %v5163_v50, %v4514_v0 }
 0x406   : > { %v4879_v40 = vpop.f32.mrf.mxu3 }
 0x408   : > { %v5528_v47 = vpop.f32.mrf.mxu2  ;;  %v4517_v0 = vpop.f32.mrf.mxu0 }
 0x409   : > { %v10422_v50 = vadd.f32 %v5528_v47, %v4879_v40 }
 0x40a   : > { %v5166_v16 = vpop.f32.mrf.mxu1 }
 0x40b   : > { %v10424_v3 = vadd.f32 %v5166_v16, %v4517_v0  ;;  %4556 = vmatmul.bf16.gmra.mxu0 %v7409_v25  ;;  %4921 = vmatmul.bf16.gmra.mxu3 %v7993_v41  ;;  %v8514_v25 = vld [vmem:[%s9423_s15 + $0x2e4] sm:$0xf0]  ;;  %v8660_v41 = vld [vmem:[%s9423_s15 + $0x774] sm:$0xf0]  ;;  %v7418_v0 = vld [vmem:[%s9423_s15 + $0x2e8] sm:$0xf0] }
 0x40c   : > { %v8659_v16 = vld [vmem:[%s9423_s15 + $0x774] sm:$0xf] }
 0x40d   : > { %8179 = vmatmul.msk.bf16.gmra.mxu1 %vm3934_vm1, %v7413_v15  ;;  %8252 = vmatmul.msk.bf16.gmra.mxu2 %vm3934_vm1, %v7997_v53  ;;  %v8513_v53 = vld [vmem:[%s9423_s15 + $0x2e4] sm:$0xf]  ;;  %v8005_v62 = vor.u32 %v8659_v16, %v8002_v21 }
 0x40e   : > { %v4882_v12 = vpop.f32.mrf.mxu3  ;;  %v7421_v11 = vor.u32 %v8513_v53, %v7418_v0  ;;  %v8516_v0 = vld [vmem:[%s9423_s15 + $0x2f4] sm:$0xf0] }
 0x410   : > { %v5531_v33 = vpop.f32.mrf.mxu2  ;;  %v4519_v52 = vpop.f32.mrf.mxu0 }
 0x411   : > { %v5532_v40 = vadd.f32 %v5531_v33, %v4882_v12  ;;  %v10445_v12 = vld [vmem:[%s11233_s2] ss:$0 sm:$0xff]  ;;  %v7417_v33 = vor.u32 %v8514_v25, %v7416_v32 }
 0x412   : > { %v5168_v54 = vpop.f32.mrf.mxu1 }
 0x413   : > { %v5737_v19 = vmax.f32 %v10384_v59, %v5532_v40  ;;  %v10429_v58 = vadd.f32 %v5168_v54, %v4519_v52  ;;  %v8001_v52 = vor.u32 %v8660_v41, %v8000_v4 }
 0x415   : > { %v5801_v15 = vmax.f32 %v5673_v7, %v5737_v19 }
 0x416   : > { %v4884_v47 = vpop.f32.mrf.mxu3 }
 0x417   : > { %v5869_v59 = vadd.f32 %v10445_v12, %v5801_v15 }
 0x418   : > { %v5533_v40 = vpop.f32.mrf.mxu2  ;;  %v4522_v54 = vpop.f32.mrf.mxu0 }
 0x419   : > { %v5534_v23 = vadd.f32 %v5533_v40, %v4884_v47  ;;  %v5933_v6 = vmax.f32 %v5869_v59, 0.0  ;;  %v7424_v47 = vld [vmem:[%s9423_s15 + $0x2f0] sm:$0xf]  ;;  %v11258_v59 = vmax.f32 %v10308_v26, %v10358_v63  ;;  %v8515_v40 = vld [vmem:[%s9423_s15 + $0x2f4] sm:$0xf] }
 0x41a   : > { %v5171_v7 = vpop.f32.mrf.mxu1 }
 0x41b   : > { %v5738_v19 = vmax.f32 %v10398_v56, %v5534_v23  ;;  %v5172_v13 = vadd.f32 %v5171_v7, %v4522_v54  ;;  %4561 = vmatmul.bf16.gmra.mxu0 %v7417_v33  ;;  %4926 = vmatmul.bf16.gmra.mxu3 %v8001_v52  ;;  %v5997_v21 = vpack.c.bf16 %v5933_v6, %v5933_v6  ;;  %v7426_v6 = vld [vmem:[%s9423_s15 + $0x2f8] sm:$0xf0]  ;;  %v8661_v7 = vld [vmem:[%s9423_s15 + $0x784] sm:$0xf] }
 0x41c   : > { %v11257_v56 = vmax.f32 %v10304_v38, %v10352_v17  ;;  %v8008_v38 = vld [vmem:[%s9423_s15 + $0x780] sm:$0xf]  ;;  %v8662_v17 = vld [vmem:[%s9423_s15 + $0x784] sm:$0xf0] }
 0x41d   : > { %v5802_v14 = vmax.f32 %v11256_v39, %v5738_v19  ;;  %v5701_v15 = vmax.f32 %v10400_v1, %v5172_v13  ;;  %8180 = vmatmul.msk.bf16.gmra.mxu1 %vm3934_vm1, %v7421_v11  ;;  %8253 = vmatmul.msk.bf16.gmra.mxu2 %vm3934_vm1, %v8005_v62  ;;  %v6725_v11 = vunpack.c.l.b16 %v5997_v21  ;;  %v7425_v62 = vor.u32 %v8516_v0, %v7424_v47  ;;  %v8010_v19 = vld [vmem:[%s9423_s15 + $0x788] sm:$0xf0] }
 0x41e   : > { %v4887_v32 = vpop.f32.mrf.mxu3  ;;  %v11260_v21 = vmax.f32 %v10316_v57, %v10362_v44  ;;  %v11261_v57 = vmax.f32 %v10326_v51, %v10374_v27  ;;  %v11262_v47 = vmax.f32 %v10328_v2, %v10378_v9  ;;  %v8517_v9 = vld [vmem:[%s9423_s15 + $0x304] sm:$0xf] }
 0x41f   : > { %v5870_v23 = vadd.f32 %v10445_v12, %v5802_v14  ;;  %v5765_v25 = vmax.f32 %v11257_v56, %v5701_v15 }
 0x420   : > { %v5536_v30 = vpop.f32.mrf.mxu2  ;;  %v4524_v39 = vpop.f32.mrf.mxu0 }
 0x421   : > { %v5934_v13 = vmax.f32 %v5870_v23, 0.0  ;;  %v5537_v31 = vadd.f32 %v5536_v30, %v4887_v32  ;;  %v5833_v41 = vadd.f32 %v10445_v12, %v5765_v25  ;;  %v8009_v23 = vor.u32 %v8662_v17, %v8008_v38 }
 0x422   : > { %v5173_v1 = vpop.f32.mrf.mxu1  ;;  %v8013_v30 = vor.u32 %v8661_v7, %v8010_v19  ;;  %v7434_v7 = vld [vmem:[%s9423_s15 + $0x308] sm:$0xf0]  ;;  %v8663_v19 = vld [vmem:[%s9423_s15 + $0x794] sm:$0xf] }
 0x423   : > { %v5998_v4 = vpack.c.bf16 %v5934_v13, %v5934_v13  ;;  %v5739_v53 = vmax.f32 %v10404_v43, %v5537_v31  ;;  %v5174_v14 = vadd.f32 %v5173_v1, %v4524_v39  ;;  %v5897_v15 = vmax.f32 %v5833_v41, 0.0 }
 0x425   : > { %v6726_v16 = vunpack.c.l.b16 %v5998_v4  ;;  %v10468_v33 = vmax.f32 %v11258_v59, %v5739_v53  ;;  %v5702_v52 = vmax.f32 %v10406_v37, %v5174_v14  ;;  %v7429_v37 = vor.u32 %v8515_v40, %v7426_v6  ;;  %v8518_v40 = vld [vmem:[%s9423_s15 + $0x304] sm:$0xf0] }
 0x426   : > { %v4889_v54 = vpop.f32.mrf.mxu3  ;;  %v5961_v13 = vpack.c.bf16 %v5897_v15, %v5897_v15  ;;  %v8018_v15 = vld [vmem:[%s9423_s15 + $0x798] sm:$0xf0] }
 0x427   : > { %v10475_v43 = vpack.c.b16 %v6726_v16, %v6725_v11  ;;  %v5766_v32 = vmax.f32 %v11260_v21, %v5702_v52  ;;  %v7432_v52 = vld [vmem:[%s9423_s15 + $0x300] sm:$0xf] }
 0x428   : > { %v5538_v56 = vpop.f32.mrf.mxu2  ;;  %v4527_v26 = vpop.f32.mrf.mxu0  ;;  %v6230_v53 = vunpack.c.l.b16 %v5961_v13 }
 0x429   : > { %11259 = vst [vmem:[#allocation10_spill] sm:$0xff] %v10475_v43  ;;  %v5834_v63 = vadd.f32 %v10445_v12, %v5766_v32  ;;  %v5539_v25 = vadd.f32 %v5538_v56, %v4889_v54  ;;  %v8016_v54 = vld [vmem:[%s9423_s15 + $0x790] sm:$0xf]  ;;  %v11263_v32 = vmax.f32 %v10336_v48, %v10386_v46  ;;  %v7433_v56 = vor.u32 %v8518_v40, %v7432_v52  ;;  %v8666_v52 = vld [vmem:[%s9423_s15 + $0x7a4] sm:$0xf0] }
 0x42a   : > { %v5176_v39 = vpop.f32.mrf.mxu1  ;;  %v8519_v40 = vld [vmem:[%s9423_s15 + $0x314] sm:$0xf] }
 0x42b   : > { %v5898_v31 = vmax.f32 %v5834_v63, 0.0  ;;  %v5740_v1 = vmax.f32 %v10422_v50, %v5539_v25  ;;  %v5177_v11 = vadd.f32 %v5176_v39, %v4527_v26  ;;  %4566 = vmatmul.bf16.gmra.mxu0 %v7425_v62  ;;  %4931 = vmatmul.bf16.gmra.mxu3 %v8009_v23  ;;  %v8664_v62 = vld [vmem:[%s9423_s15 + $0x794] sm:$0xf0]  ;;  %v7437_v39 = vor.u32 %v8517_v9, %v7434_v7  ;;  %v8026_v9 = vld [vmem:[%s9423_s15 + $0x7a8] sm:$0xf0] }
 0x42c   : > { %v8017_v26 = vor.u32 %v8664_v62, %v8016_v54  ;;  %v7442_v62 = vld [vmem:[%s9423_s15 + $0x318] sm:$0xf0] }
 0x42d   : > { %v5962_v4 = vpack.c.bf16 %v5898_v31, %v5898_v31  ;;  %v10485_v44 = vmax.f32 %v11261_v57, %v5740_v1  ;;  %v5703_v41 = vmax.f32 %v10424_v3, %v5177_v11  ;;  %8181 = vmatmul.msk.bf16.gmra.mxu1 %vm3934_vm1, %v7429_v37  ;;  %8254 = vmatmul.msk.bf16.gmra.mxu2 %vm3934_vm1, %v8013_v30 }
 0x42e   : > { %v4892_v50 = vpop.f32.mrf.mxu3 }
 0x42f   : > { %v6231_v14 = vunpack.c.l.b16 %v5962_v4  ;;  %v5767_v51 = vmax.f32 %v11262_v47, %v5703_v41 }
 0x430   : > { %v5541_v27 = vpop.f32.mrf.mxu2  ;;  %v4529_v0 = vpop.f32.mrf.mxu0 }
 0x431   : > { %v10493_v3 = vpack.c.b16 %v6231_v14, %v6230_v53  ;;  %v10495_v38 = vadd.f32 %v5541_v27, %v4892_v50  ;;  %v5835_v16 = vadd.f32 %v10445_v12, %v5767_v51  ;;  %v5867_v51 = vadd.f32 %v10445_v12, %v10259_v10 }
 0x432   : > { %v5178_v17 = vpop.f32.mrf.mxu1  ;;  %v5868_v27 = vadd.f32 %v10445_v12, %v10276_v24  ;;  %v7445_v24 = vor.u32 %v8519_v40, %v7442_v62 }
 0x433   : > { %v5179_v59 = vadd.f32 %v5178_v17, %v4529_v0  ;;  %v5899_v21 = vmax.f32 %v5835_v16, 0.0  ;;  %v7440_v17 = vld [vmem:[%s9423_s15 + $0x310] sm:$0xf]  ;;  %v8520_v16 = vld [vmem:[%s9423_s15 + $0x314] sm:$0xf0] }
 0x434   : > { %v5932_v7 = vmax.f32 %v5868_v27, 0.0  ;;  %v8521_v27 = vld [vmem:[%s9423_s15 + $0x324] sm:$0xf] }
 0x435   : > { %v5704_v2 = vmax.f32 %v10429_v58, %v5179_v59  ;;  %v8021_v58 = vor.u32 %v8663_v19, %v8018_v15  ;;  %v5963_v31 = vpack.c.bf16 %v5899_v21, %v5899_v21  ;;  %v8024_v59 = vld [vmem:[%s9423_s15 + $0x7a0] sm:$0xf]  ;;  %v7441_v19 = vor.u32 %v8520_v16, %v7440_v17  ;;  %v7450_v16 = vld [vmem:[%s9423_s15 + $0x328] sm:$0xf0] }
 0x436   : > { %v4894_v6 = vpop.f32.mrf.mxu3  ;;  %v8025_v15 = vor.u32 %v8666_v52, %v8024_v59  ;;  %v8667_v59 = vld [vmem:[%s9423_s15 + $0x7b4] sm:$0xf]  ;;  %v8034_v52 = vld [vmem:[%s9423_s15 + $0x7b8] sm:$0xf0] }
 0x437   : > { %v5768_v23 = vmax.f32 %v11263_v32, %v5704_v2  ;;  %v6232_v4 = vunpack.c.l.b16 %v5963_v31  ;;  %v8665_v2 = vld [vmem:[%s9423_s15 + $0x7a4] sm:$0xf] }
 0x438   : > { %v5543_v63 = vpop.f32.mrf.mxu2  ;;  %v4532_v25 = vpop.f32.mrf.mxu0 }
 0x439   : > { %v5836_v37 = vadd.f32 %v10445_v12, %v5768_v23  ;;  %v10511_v30 = vadd.f32 %v5543_v63, %v4894_v6  ;;  %v5931_v6 = vmax.f32 %v5867_v51, 0.0  ;;  %v8029_v23 = vor.u32 %v8665_v2, %v8026_v9  ;;  %v8668_v51 = vld [vmem:[%s9423_s15 + $0x7b4] sm:$0xf0] }
 0x43a   : > { %v5181_v13 = vpop.f32.mrf.mxu1  ;;  %v5996_v63 = vpack.c.bf16 %v5932_v7, %v5932_v7  ;;  %v8037_v7 = vor.u32 %v8667_v59, %v8034_v52 }
 0x43b   : > { %v5900_v1 = vmax.f32 %v5836_v37, 0.0  ;;  %v10513_v11 = vadd.f32 %v5181_v13, %v4532_v25  ;;  %4571 = vmatmul.bf16.gmra.mxu0 %v7433_v56  ;;  %4936 = vmatmul.bf16.gmra.mxu3 %v8017_v26  ;;  %v5995_v26 = vpack.c.bf16 %v5931_v6, %v5931_v6  ;;  %v7453_v6 = vor.u32 %v8521_v27, %v7450_v16  ;;  %v8669_v27 = vld [vmem:[%s9423_s15 + $0x7c4] sm:$0xf] }
 0x43d   : > { %v5964_v48 = vpack.c.bf16 %v5900_v1, %v5900_v1  ;;  %8182 = vmatmul.msk.bf16.gmra.mxu1 %vm3934_vm1, %v7437_v39  ;;  %8255 = vmatmul.msk.bf16.gmra.mxu2 %vm3934_vm1, %v8021_v58  ;;  %v6672_v39 = vunpack.c.l.b16 %v5995_v26  ;;  %v6673_v58 = vunpack.c.l.b16 %v5996_v63 }
 0x43e   : > { %v4897_v46 = vpop.f32.mrf.mxu3 }
 0x43f   : > { %v6233_v57 = vunpack.c.l.b16 %v5964_v48 }
 0x440   : > { %v5546_v41 = vpop.f32.mrf.mxu2  ;;  %v4534_v50 = vpop.f32.mrf.mxu0 }
 0x441   : > { %v10517_v53 = vadd.f32 %v5546_v41, %v4897_v46  ;;  %v10519_v14 = vpack.c.b16 %v6233_v57, %v6232_v4  ;;  %v7448_v57 = vld [vmem:[%s9423_s15 + $0x320] sm:$0xf]  ;;  %v10548_v41 = vpack.c.b16 %v6673_v58, %v6672_v39  ;;  %v7456_v58 = vld [vmem:[%s9423_s15 + $0x330] sm:$0xf] }
 0x442   : > { %v5183_v47 = vpop.f32.mrf.mxu1 }
 0x443   : > { %v10525_v0 = vadd.f32 %v5183_v47, %v4534_v50  ;;  %11264 = vst [vmem:[#allocation11_spill] sm:$0xff] %v10548_v41  ;;  %v8522_v50 = vld [vmem:[%s9423_s15 + $0x324] sm:$0xf0]  ;;  %v8032_v47 = vld [vmem:[%s9423_s15 + $0x7b0] sm:$0xf] }
 0x444   : > { %v7449_v40 = vor.u32 %v8522_v50, %v7448_v57  ;;  %v8523_v50 = vld [vmem:[%s9423_s15 + $0x334] sm:$0xf] }
 0x446   : > { %v4899_v54 = vpop.f32.mrf.mxu3 }
 0x448   : > { %v5548_v21 = vpop.f32.mrf.mxu2  ;;  %v4537_v10 = vpop.f32.mrf.mxu0 }
 0x449   : > { %v10535_v32 = vadd.f32 %v5548_v21, %v4899_v54  ;;  %v8033_v54 = vor.u32 %v8668_v51, %v8032_v47  ;;  %v7458_v51 = vld [vmem:[%s9423_s15 + $0x338] sm:$0xf0] }
 0x44a   : > { %v5186_v56 = vpop.f32.mrf.mxu1 }
 0x44b   : > { %v10537_v25 = vadd.f32 %v5186_v56, %v4537_v10  ;;  %4576 = vmatmul.bf16.gmra.mxu0 %v7441_v19  ;;  %4941 = vmatmul.bf16.gmra.mxu3 %v8025_v15  ;;  %v8066_v15 = vld [vmem:[%s9423_s15 + $0x7f8] sm:$0xf0] }
 0x44d   : > { %8183 = vmatmul.msk.bf16.gmra.mxu1 %vm3934_vm1, %v7445_v24  ;;  %8256 = vmatmul.msk.bf16.gmra.mxu2 %vm3934_vm1, %v8029_v23 }
 0x44e   : > { %v4902_v37 = vpop.f32.mrf.mxu3 }
 0x450   : > { %v5551_v13 = vpop.f32.mrf.mxu2  ;;  %v4539_v31 = vpop.f32.mrf.mxu0 }
 0x451   : > { %v10541_v1 = vadd.f32 %v5551_v13, %v4902_v37  ;;  %v8524_v13 = vld [vmem:[%s9423_s15 + $0x334] sm:$0xf0] }
 0x452   : > { %v5188_v48 = vpop.f32.mrf.mxu1  ;;  %v7457_v16 = vor.u32 %v8524_v13, %v7456_v58 }
 0x453   : > { %v5677_v46 = vmax.f32 %v10495_v38, %v10541_v1  ;;  %v10545_v4 = vadd.f32 %v5188_v48, %v4539_v31  ;;  %v8040_v31 = vld [vmem:[%s9423_s15 + $0x7c0] sm:$0xf]  ;;  %v8670_v48 = vld [vmem:[%s9423_s15 + $0x7c4] sm:$0xf0] }
 0x454   : > { %v8041_v59 = vor.u32 %v8670_v48, %v8040_v31  ;;  %v7464_v48 = vld [vmem:[%s9423_s15 + $0x340] sm:$0xf] }
 0x456   : > { %v4904_v17 = vpop.f32.mrf.mxu3 }
 0x458   : > { %v5553_v62 = vpop.f32.mrf.mxu2  ;;  %v4542_v2 = vpop.f32.mrf.mxu0 }
 0x459   : > { %v10557_v9 = vadd.f32 %v5553_v62, %v4904_v17  ;;  %v8042_v17 = vld [vmem:[%s9423_s15 + $0x7c8] sm:$0xf0]  ;;  %v7461_v62 = vor.u32 %v8523_v50, %v7458_v51  ;;  %v8526_v50 = vld [vmem:[%s9423_s15 + $0x344] sm:$0xf0]  ;;  %v8672_v51 = vld [vmem:[%s9423_s15 + $0x7d4] sm:$0xf0] }
 0x45a   : > { %v5191_v19 = vpop.f32.mrf.mxu1 }
 0x45b   : > { %v10561_v21 = vadd.f32 %v5191_v19, %v4542_v2  ;;  %4581 = vmatmul.bf16.gmra.mxu0 %v7449_v40  ;;  %4946 = vmatmul.bf16.gmra.mxu3 %v8033_v54  ;;  %v8045_v2 = vor.u32 %v8669_v27, %v8042_v17  ;;  %v8525_v17 = vld [vmem:[%s9423_s15 + $0x344] sm:$0xf]  ;;  %v11265_v1 = vmax.f32 %v10511_v30, %v10557_v9 }
 0x45d   : > { %8184 = vmatmul.msk.bf16.gmra.mxu1 %vm3934_vm1, %v7453_v6  ;;  %8257 = vmatmul.msk.bf16.gmra.mxu2 %vm3934_vm1, %v8037_v7 }
 0x45e   : > { %v4907_v24 = vpop.f32.mrf.mxu3 }
 0x460   : > { %v5556_v23 = vpop.f32.mrf.mxu2  ;;  %v4544_v56 = vpop.f32.mrf.mxu0 }
 0x461   : > { %v10567_v26 = vadd.f32 %v5556_v23, %v4907_v24 }
 0x462   : > { %v5193_v63 = vpop.f32.mrf.mxu1 }
 0x463   : > { %v10571_v39 = vadd.f32 %v5193_v63, %v4544_v56 }
 0x466   : > { %v4909_v47 = vpop.f32.mrf.mxu3 }
 0x468   : > { %v5558_v52 = vpop.f32.mrf.mxu2  ;;  %v4547_v40 = vpop.f32.mrf.mxu0 }
 0x469   : > { %v10583_v54 = vadd.f32 %v5558_v52, %v4909_v47  ;;  %v8048_v47 = vld [vmem:[%s9423_s15 + $0x7d0] sm:$0xf]  ;;  %v8671_v52 = vld [vmem:[%s9423_s15 + $0x7d4] sm:$0xf] }
 0x46a   : > { %v5196_v6 = vpop.f32.mrf.mxu1 }
 0x46b   : > { %v10587_v19 = vadd.f32 %v5196_v6, %v4547_v40  ;;  %4586 = vmatmul.bf16.gmra.mxu0 %v7457_v16  ;;  %4951 = vmatmul.bf16.gmra.mxu3 %v8041_v59  ;;  %v7466_v59 = vld [vmem:[%s9423_s15 + $0x348] sm:$0xf0]  ;;  %v8050_v40 = vld [vmem:[%s9423_s15 + $0x7d8] sm:$0xf0] }
 0x46d   : > { %8185 = vmatmul.msk.bf16.gmra.mxu1 %vm3934_vm1, %v7461_v62  ;;  %8258 = vmatmul.msk.bf16.gmra.mxu2 %vm3934_vm1, %v8045_v2  ;;  %v7465_v62 = vor.u32 %v8526_v50, %v7464_v48  ;;  %v8049_v2 = vor.u32 %v8672_v51, %v8048_v47 }
 0x46e   : > { %v4912_v23 = vpop.f32.mrf.mxu3 }
 0x470   : > { %v5561_v56 = vpop.f32.mrf.mxu2  ;;  %v4549_v63 = vpop.f32.mrf.mxu0 }
 0x471   : > { %v10593_v58 = vadd.f32 %v5561_v56, %v4912_v23 }
 0x472   : > { %v5198_v13 = vpop.f32.mrf.mxu1 }
 0x473   : > { %v10595_v31 = vadd.f32 %v5198_v13, %v4549_v63  ;;  %v7469_v63 = vor.u32 %v8525_v17, %v7466_v59  ;;  %v8053_v13 = vor.u32 %v8671_v52, %v8050_v40  ;;  %v7472_v59 = vld [vmem:[%s9423_s15 + $0x350] sm:$0xf]  ;;  %v8056_v52 = vld [vmem:[%s9423_s15 + $0x7e0] sm:$0xf]  ;;  %v8674_v40 = vld [vmem:[%s9423_s15 + $0x7e4] sm:$0xf0] }
 0x474   : > { %v8057_v57 = vor.u32 %v8674_v40, %v8056_v52 }
 0x476   : > { %v4914_v16 = vpop.f32.mrf.mxu3 }
 0x478   : > { %v5563_v6 = vpop.f32.mrf.mxu2  ;;  %v4552_v23 = vpop.f32.mrf.mxu0 }
 0x479   : > { %v10607_v56 = vadd.f32 %v5563_v6, %v4914_v16  ;;  %v7474_v6 = vld [vmem:[%s9423_s15 + $0x358] sm:$0xf0] }
 0x47a   : > { %v5201_v24 = vpop.f32.mrf.mxu1 }
 0x47b   : > { %v10609_v27 = vadd.f32 %v5201_v24, %v4552_v23  ;;  %4591 = vmatmul.bf16.gmra.mxu0 %v7465_v62  ;;  %4956 = vmatmul.bf16.gmra.mxu3 %v8049_v2  ;;  %v8528_v24 = vld [vmem:[%s9423_s15 + $0x354] sm:$0xf0]  ;;  %v8527_v62 = vld [vmem:[%s9423_s15 + $0x354] sm:$0xf]  ;;  %v8673_v23 = vld [vmem:[%s9423_s15 + $0x7e4] sm:$0xf] }
 0x47c   : > { %v7473_v7 = vor.u32 %v8528_v24, %v7472_v59 }
 0x47d   : > { %8186 = vmatmul.msk.bf16.gmra.mxu1 %vm3934_vm1, %v7469_v63  ;;  %8259 = vmatmul.msk.bf16.gmra.mxu2 %vm3934_vm1, %v8053_v13  ;;  %v8058_v63 = vld [vmem:[%s9423_s15 + $0x7e8] sm:$0xf0] }
 0x47e   : > { %v4917_v48 = vpop.f32.mrf.mxu3 }
 0x480   : > { %v5566_v50 = vpop.f32.mrf.mxu2  ;;  %v4554_v47 = vpop.f32.mrf.mxu0 }
 0x481   : > { %v10613_v51 = vadd.f32 %v5566_v50, %v4917_v48  ;;  %v7477_v48 = vor.u32 %v8527_v62, %v7474_v6  ;;  %v8061_v50 = vor.u32 %v8673_v23, %v8058_v63  ;;  %v8064_v23 = vld [vmem:[%s9423_s15 + $0x7f0] sm:$0xf] }
 0x482   : > { %v5203_v17 = vpop.f32.mrf.mxu1 }
 0x483   : > { %v10615_v16 = vadd.f32 %v5203_v17, %v4554_v47 }
 0x486   : > { %v4919_v2 = vpop.f32.mrf.mxu3 }
 0x488   : > { %v5568_v13 = vpop.f32.mrf.mxu2  ;;  %v4557_v37 = vpop.f32.mrf.mxu0 }
 0x489   : > { %v10625_v10 = vadd.f32 %v5568_v13, %v4919_v2  ;;  %v8529_v13 = vld [vmem:[%s9423_s15 + $0x364] sm:$0xf] }
 0x48a   : > { %v5206_v47 = vpop.f32.mrf.mxu1 }
 0x48b   : > { %v10627_v17 = vadd.f32 %v5206_v47, %v4557_v37  ;;  %4596 = vmatmul.bf16.gmra.mxu0 %v7473_v7  ;;  %4961 = vmatmul.bf16.gmra.mxu3 %v8057_v57  ;;  %v7480_v37 = vld [vmem:[%s9423_s15 + $0x360] sm:$0xf]  ;;  %v8530_v7 = vld [vmem:[%s9423_s15 + $0x364] sm:$0xf0]  ;;  %v8676_v57 = vld [vmem:[%s9423_s15 + $0x7f4] sm:$0xf0] }
 0x48c   : > { %v8675_v47 = vld [vmem:[%s9423_s15 + $0x7f4] sm:$0xf]  ;;  %v8065_v43 = vor.u32 %v8676_v57, %v8064_v23 }
 0x48d   : > { %8187 = vmatmul.msk.bf16.gmra.mxu1 %vm3934_vm1, %v7477_v48  ;;  %8260 = vmatmul.msk.bf16.gmra.mxu2 %vm3934_vm1, %v8061_v50  ;;  %v7482_v50 = vld [vmem:[%s9423_s15 + $0x368] sm:$0xf0]  ;;  %v8069_v41 = vor.u32 %v8675_v47, %v8066_v15  ;;  %v7488_v47 = vld [vmem:[%s9423_s15 + $0x370] sm:$0xf] }
 0x48e   : > { %v4922_v59 = vpop.f32.mrf.mxu3  ;;  %v8288_v15 = vld [vmem:[%s11234_s3 + $0x2c] sm:$0x3] }
 0x490   : > { %v5571_v24 = vpop.f32.mrf.mxu2  ;;  %v4559_v52 = vpop.f32.mrf.mxu0 }
 0x491   : > { %v5572_v40 = vadd.f32 %v5571_v24, %v4922_v59  ;;  %v7481_v24 = vor.u32 %v8530_v7, %v7480_v37 }
 0x492   : > { %v5208_v62 = vpop.f32.mrf.mxu1 }
 0x493   : > { %v5741_v2 = vmax.f32 %v10593_v58, %v5572_v40  ;;  %v10632_v6 = vadd.f32 %v5208_v62, %v4559_v52  ;;  %v7485_v62 = vor.u32 %v8529_v13, %v7482_v50 }
 0x495   : > { %v5805_v63 = vmax.f32 %v5677_v46, %v5741_v2 }
 0x496   : > { %v4924_v48 = vpop.f32.mrf.mxu3 }
 0x497   : > { %v5873_v59 = vadd.f32 %v10445_v12, %v5805_v63 }
 0x498   : > { %v5573_v58 = vpop.f32.mrf.mxu2  ;;  %v4562_v52 = vpop.f32.mrf.mxu0 }
 0x499   : > { %v5574_v40 = vadd.f32 %v5573_v58, %v4924_v48  ;;  %v5937_v35 = vmax.f32 %v5873_v59, 0.0  ;;  %v8532_v59 = vld [vmem:[%s9423_s15 + $0x374] sm:$0xf0] }
 0x49a   : > { %v5211_v36 = vpop.f32.mrf.mxu1 }
 0x49b   : > { %v5742_v55 = vmax.f32 %v10607_v56, %v5574_v40  ;;  %v5212_v38 = vadd.f32 %v5211_v36, %v4562_v52  ;;  %4601 = vmatmul.bf16.gmra.mxu0 %v7481_v24  ;;  %4966 = vmatmul.bf16.gmra.mxu3 %v8065_v43  ;;  %v6001_v37 = vpack.c.bf16 %v5937_v35, %v5937_v35  ;;  %v8279_v35 = vld [vmem:[%s11234_s3 + $0x20] sm:$0x3] }
 0x49c   : > { %v11266_v43 = vmax.f32 %v10513_v11, %v10561_v21  ;;  %v6131_v13 = vunpack.c.l.b16 %v8279_v35  ;;  %v11267_v40 = vmax.f32 %v10517_v53, %v10567_v26  ;;  %v11268_v53 = vmax.f32 %v10525_v0, %v10571_v39 }
 0x49d   : > { %v5806_v46 = vmax.f32 %v11265_v1, %v5742_v55  ;;  %v5705_v2 = vmax.f32 %v10609_v27, %v5212_v38  ;;  %8188 = vmatmul.msk.bf16.gmra.mxu1 %vm3934_vm1, %v7485_v62  ;;  %8261 = vmatmul.msk.bf16.gmra.mxu2 %vm3934_vm1, %v8069_v41  ;;  %v6186_v55 = vunpack.c.l.b16 %v8288_v15  ;;  %v6780_v57 = vunpack.c.l.b16 %v6001_v37  ;;  %v8696_v37 = vld [vmem:[%s11234_s3 + $0x24] sm:$0xff] }
 0x49e   : > { %v4927_v7 = vpop.f32.mrf.mxu3  ;;  %v6133_v58 = vpack.c.b16 %v6131_v13, %v6131_v13 }
 0x49f   : > { %v5874_v36 = vadd.f32 %v10445_v12, %v5806_v46  ;;  %v5769_v30 = vmax.f32 %v11266_v43, %v5705_v2  ;;  %v6188_v23 = vpack.c.b16 %v6186_v55, %v6186_v55  ;;  %v8531_v46 = vld [vmem:[%s9423_s15 + $0x374] sm:$0xf]  ;;  %v7490_v2 = vld [vmem:[%s9423_s15 + $0x378] sm:$0xf0] }
 0x4a0   : > { %v5576_v9 = vpop.f32.mrf.mxu2  ;;  %v4564_v27 = vpop.f32.mrf.mxu0 }
 0x4a1   : > { %v5938_v41 = vmax.f32 %v5874_v36, 0.0  ;;  %v5577_v56 = vadd.f32 %v5576_v9, %v4927_v7  ;;  %v5837_v11 = vadd.f32 %v10445_v12, %v5769_v30  ;;  %v6197_v24 = vsel %vm6042_vm2, %v6188_v23, 0  ;;  %v8695_v30 = vld [vmem:[%s11234_s3 + $0x18] sm:$0xff] }
 0x4a2   : > { %v5213_v63 = vpop.f32.mrf.mxu1  ;;  %6205 = vmatpush.bf16.msra.mxu3 %v6197_v24  ;;  %v7489_v36 = vor.u32 %v8532_v59, %v7488_v47 }
 0x4a3   : > { %v6002_v48 = vpack.c.bf16 %v5938_v41, %v5938_v41  ;;  %v5743_v21 = vmax.f32 %v10613_v51, %v5577_v56  ;;  %v5214_v50 = vadd.f32 %v5213_v63, %v4564_v27  ;;  %v6142_v51 = vsel %vm6042_vm2, %v6133_v58, 0  ;;  %v8534_v58 = vld [vmem:[%s9423_s15 + $0x384] sm:$0xf0] }
 0x4a4   : > { %v5901_v15 = vmax.f32 %v5837_v11, 0.0  ;;  %6150 = vmatpush.bf16.msra.mxu2 %v6142_v51  ;;  %v7493_v27 = vor.u32 %v8531_v46, %v7490_v2  ;;  %v11270_v11 = vmax.f32 %v10537_v25, %v10587_v19  ;;  %v11271_v25 = vmax.f32 %v10545_v4, %v10595_v31  ;;  %v8306_v31 = vld [vmem:[%s11234_s3 + $0x44] sm:$0x3] }
 0x4a5   : > { %v6781_v52 = vunpack.c.l.b16 %v6002_v48  ;;  %v10671_v62 = vmax.f32 %v11267_v40, %v5743_v21  ;;  %v5706_v38 = vmax.f32 %v10615_v16, %v5214_v50 }
 0x4a6   : > { %v4929_v1 = vpop.f32.mrf.mxu3  ;;  %6206 = vmatpush.bf16.msra.mxu3 %v8696_v37  ;;  %v5965_v41 = vpack.c.bf16 %v5901_v15, %v5901_v15 }
 0x4a7   : > { %v10680_v7 = vpack.c.b16 %v6781_v52, %v6780_v57  ;;  %v5770_v26 = vmax.f32 %v11268_v53, %v5706_v38  ;;  %v11269_v57 = vmax.f32 %v10535_v32, %v10583_v54  ;;  %v8533_v38 = vld [vmem:[%s9423_s15 + $0x384] sm:$0xf] }
 0x4a8   : > { %v5578_v16 = vpop.f32.mrf.mxu2  ;;  %v4567_v43 = vpop.f32.mrf.mxu0  ;;  %6151 = vmatpush.bf16.msra.mxu2 %v8695_v30 }
 0x4a9   : > { %v5838_v55 = vadd.f32 %v10445_v12, %v5770_v26  ;;  %v5579_v9 = vadd.f32 %v5578_v16, %v4929_v1  ;;  %v7498_v1 = vld [vmem:[%s9423_s15 + $0x388] sm:$0xf0] }
 0x4aa   : > { %v5216_v35 = vpop.f32.mrf.mxu1  ;;  %v7501_v26 = vor.u32 %v8533_v38, %v7498_v1 }
 0x4ab   : > { %v5902_v56 = vmax.f32 %v5838_v55, 0.0  ;;  %v5744_v0 = vmax.f32 %v10625_v10, %v5579_v9  ;;  %v5217_v39 = vadd.f32 %v5216_v35, %v4567_v43  ;;  %4606 = vmatmul.bf16.gmra.mxu0 %v7489_v36  ;;  %8275 = vmatmul.msk.bf16.vlgmr.msrb.gmra.mxu3 %vm6035_vm3, %v9683_v20  ;;  %v6285_v20 = vunpack.c.l.b16 %v5965_v41 }
 0x4ad   : > { %v5966_v23 = vpack.c.bf16 %v5902_v56, %v5902_v56  ;;  %v10695_v63 = vmax.f32 %v11269_v57, %v5744_v0  ;;  %v5707_v13 = vmax.f32 %v10627_v17, %v5217_v39  ;;  %8189 = vmatmul.msk.bf16.gmra.mxu1 %vm3934_vm1, %v7493_v27  ;;  %8269 = vmatmul.msk.bf16.vlgmr.msrb.gmra.mxu2 %vm6035_vm3, %v9883_v18  ;;  %v7496_v18 = vld [vmem:[%s9423_s15 + $0x380] sm:$0xf]  ;;  %v6296_v27 = vunpack.c.l.b16 %v8306_v31  ;;  %v8538_v31 = vld [vmem:[%s9423_s15 + $0x3a4] sm:$0xf0] }
 0x4ae   : > { %v4932_v10 = vpop.f32.mrf.mxu3  ;;  %v7497_v2 = vor.u32 %v8534_v58, %v7496_v18 }
 0x4af   : > { %v6286_v48 = vunpack.c.l.b16 %v5966_v23  ;;  %v5771_v32 = vmax.f32 %v11270_v11, %v5707_v13  ;;  %v5871_v23 = vadd.f32 %v10445_v12, %v10468_v33  ;;  %v5872_v13 = vadd.f32 %v10445_v12, %v10485_v44  ;;  %v7504_v11 = vld [vmem:[%s9423_s15 + $0x390] sm:$0xf]  ;;  %v8698_v33 = vld [vmem:[%s11234_s3 + $0x3c] sm:$0xff] }
 0x4b0   : > { %v5581_v54 = vpop.f32.mrf.mxu2  ;;  %v4569_v21 = vpop.f32.mrf.mxu0 }
 0x4b1   : > { %v10704_v50 = vpack.c.b16 %v6286_v48, %v6285_v20  ;;  %v10706_v47 = vadd.f32 %v5581_v54, %v4932_v10  ;;  %v5839_v59 = vadd.f32 %v10445_v12, %v5771_v32  ;;  %v8536_v32 = vld [vmem:[%s9423_s15 + $0x394] sm:$0xf0] }
 0x4b2   : > { %v5218_v17 = vpop.f32.mrf.mxu1  ;;  %v7505_v44 = vor.u32 %v8536_v32, %v7504_v11 }
 0x4b3   : > { %v5219_v24 = vadd.f32 %v5218_v17, %v4569_v21  ;;  %v5903_v46 = vmax.f32 %v5839_v59, 0.0  ;;  %v8535_v17 = vld [vmem:[%s9423_s15 + $0x394] sm:$0xf]  ;;  %v7506_v59 = vld [vmem:[%s9423_s15 + $0x398] sm:$0xf0] }
 0x4b4   : > { %v7509_v38 = vor.u32 %v8535_v17, %v7506_v59 }
 0x4b5   : > { %v5708_v52 = vmax.f32 %v10632_v6, %v5219_v24  ;;  %v5967_v16 = vpack.c.bf16 %v5903_v46, %v5903_v46  ;;  %v5935_v24 = vmax.f32 %v5871_v23, 0.0 }
 0x4b6   : > { %v4934_v40 = vpop.f32.mrf.mxu3 }
 0x4b7   : > { %v5772_v19 = vmax.f32 %v11271_v25, %v5708_v52  ;;  %v6287_v55 = vunpack.c.l.b16 %v5967_v16  ;;  %v8697_v52 = vld [vmem:[%s11234_s3 + $0x30] sm:$0xff]  ;;  %v5999_v46 = vpack.c.bf16 %v5935_v24, %v5935_v24 }
 0x4b8   : > { %v5583_v51 = vpop.f32.mrf.mxu2  ;;  %v4572_v37 = vpop.f32.mrf.mxu0 }
 0x4b9   : > { %v5840_v15 = vadd.f32 %v10445_v12, %v5772_v19  ;;  %v10718_v53 = vadd.f32 %v5583_v51, %v4934_v40  ;;  %v5936_v12 = vmax.f32 %v5872_v13, 0.0  ;;  %v6727_v51 = vunpack.c.l.b16 %v5999_v46 }
 0x4ba   : > { %v5221_v36 = vpop.f32.mrf.mxu1 }
 0x4bb   : > { %v5904_v43 = vmax.f32 %v5840_v15, 0.0  ;;  %v10720_v6 = vadd.f32 %v5221_v36, %v4572_v37  ;;  %4611 = vmatmul.bf16.gmra.mxu0 %v7497_v2  ;;  %8276 = vmatmul.msk.bf16.gmra.mxu3 %vm6035_vm3, %v9709_v5  ;;  %v8297_v5 = vld [vmem:[%s11234_s3 + $0x38] sm:$0x3]  ;;  %v6000_v25 = vpack.c.bf16 %v5936_v12, %v5936_v12 }
 0x4bc   : > { %v6241_v0 = vunpack.c.l.b16 %v8297_v5 }
 0x4bd   : > { %v5968_v30 = vpack.c.bf16 %v5904_v43, %v5904_v43  ;;  %8190 = vmatmul.msk.bf16.gmra.mxu1 %vm3934_vm1, %v7501_v26  ;;  %8270 = vmatmul.msk.bf16.gmra.mxu2 %vm6035_vm3, %v9909_v49  ;;  %v6298_v49 = vpack.c.b16 %v6296_v27, %v6296_v27  ;;  %v6728_v37 = vunpack.c.l.b16 %v6000_v25 }
 0x4be   : > { %v4937_v4 = vpop.f32.mrf.mxu3  ;;  %v6243_v48 = vpack.c.b16 %v6241_v0, %v6241_v0 }
 0x4bf   : > { %v6288_v9 = vunpack.c.l.b16 %v5968_v30  ;;  %v6307_v20 = vsel %vm6042_vm2, %v6298_v49, 0 }
 0x4c0   : > { %v5586_v35 = vpop.f32.mrf.mxu2  ;;  %v4574_v41 = vpop.f32.mrf.mxu0  ;;  %6315 = vmatpush.bf16.msrb.mxu3 %v6307_v20  ;;  %v6252_v54 = vsel %vm6042_vm2, %v6243_v48, 0 }
 0x4c1   : > { %v10733_v56 = vadd.f32 %v5586_v35, %v4937_v4  ;;  %v10735_v39 = vpack.c.b16 %v6288_v9, %v6287_v55  ;;  %6260 = vmatpush.bf16.msrb.mxu2 %v6252_v54  ;;  %v7512_v4 = vld [vmem:[%s9423_s15 + $0x3a0] sm:$0xf]  ;;  %v7514_v9 = vld [vmem:[%s9423_s15 + $0x3a8] sm:$0xf0] }
 0x4c2   : > { %v5223_v57 = vpop.f32.mrf.mxu1  ;;  %v7513_v27 = vor.u32 %v8538_v31, %v7512_v4  ;;  %v8541_v4 = vld [vmem:[%s9423_s15 + $0x3c4] sm:$0xf]  ;;  %v7530_v31 = vld [vmem:[%s9423_s15 + $0x3c8] sm:$0xf0] }
 0x4c3   : > { %v10741_v10 = vadd.f32 %v5223_v57, %v4574_v41 }
 0x4c4   : > { %6316 = vmatpush.bf16.msrb.mxu3 %v8698_v33  ;;  %v8539_v33 = vld [vmem:[%s9423_s15 + $0x3b4] sm:$0xf] }
 0x4c5   : > { %6261 = vmatpush.bf16.msrb.mxu2 %v8697_v52 }
 0x4c6   : > { %v4939_v21 = vpop.f32.mrf.mxu3 }
 0x4c8   : > { %v5588_v18 = vpop.f32.mrf.mxu2  ;;  %v4577_v58 = vpop.f32.mrf.mxu0 }
 0x4c9   : > { %v10755_v40 = vadd.f32 %v5588_v18, %v4939_v21  ;;  %v8540_v21 = vld [vmem:[%s9423_s15 + $0x3b4] sm:$0xf0] }
 0x4ca   : > { %v5226_v1 = vpop.f32.mrf.mxu1 }
 0x4cb   : > { %v10757_v19 = vadd.f32 %v5226_v1, %v4577_v58  ;;  %4616 = vmatmul.bf16.gmra.mxu0 %v7505_v44  ;;  %8293 = vmatmul.msk.bf16.vlgmr.msra.gmra.mxu3 %vm6035_vm3, %v10284_v60  ;;  %v10770_v60 = vpack.c.b16 %v6728_v37, %v6727_v51 }
 0x4cd   : > { %8191 = vmatmul.msk.bf16.gmra.mxu1 %vm3934_vm1, %v7509_v38  ;;  %8284 = vmatmul.msk.bf16.vlgmr.msra.gmra.mxu2 %vm6035_vm3, %v10086_v34  ;;  %v8537_v34 = vld [vmem:[%s9423_s15 + $0x3a4] sm:$0xf] }
 0x4ce   : > { %v4942_v2 = vpop.f32.mrf.mxu3  ;;  %v7517_v5 = vor.u32 %v8537_v34, %v7514_v9 }
 0x4d0   : > { %v5591_v15 = vpop.f32.mrf.mxu2  ;;  %v4579_v26 = vpop.f32.mrf.mxu0 }
 0x4d1   : > { %v10764_v36 = vadd.f32 %v5591_v15, %v4942_v2  ;;  %v7528_v15 = vld [vmem:[%s9423_s15 + $0x3c0] sm:$0xf] }
 0x4d2   : > { %v5228_v16 = vpop.f32.mrf.mxu1 }
 0x4d3   : > { %v5681_v43 = vmax.f32 %v10706_v47, %v10764_v36  ;;  %v10768_v30 = vadd.f32 %v5228_v16, %v4579_v26  ;;  %v8542_v26 = vld [vmem:[%s9423_s15 + $0x3c4] sm:$0xf0] }
 0x4d4   : > { %v7529_v34 = vor.u32 %v8542_v26, %v7528_v15  ;;  %v8699_v15 = vld [vmem:[%s11234_s3 + $0x48] sm:$0xff] }
 0x4d6   : > { %v10774_v55 = vpop.f32.mrf.mxu3 }
 0x4d8   : > { %v10778_v35 = vpop.f32.mrf.mxu2  ;;  %v4582_v41 = vpop.f32.mrf.mxu0 }
 0x4da   : > { %v5231_v49 = vpop.f32.mrf.mxu1 }
 0x4db   : > { %v10780_v0 = vadd.f32 %v5231_v49, %v4582_v41  ;;  %4621 = vmatmul.bf16.gmra.mxu0 %v7513_v27  ;;  %8294 = vmatmul.msk.bf16.gmra.mxu3 %vm6035_vm3, %v10310_v61  ;;  %v7520_v61 = vld [vmem:[%s9423_s15 + $0x3b0] sm:$0xf]  ;;  %v7533_v27 = vor.u32 %v8541_v4, %v7530_v31 }
 0x4dc   : > { %v7521_v24 = vor.u32 %v8540_v21, %v7520_v61  ;;  %v8544_v61 = vld [vmem:[%s9423_s15 + $0x3d4] sm:$0xf0] }
 0x4dd   : > { %v5645_v23 = vmax.f32 %v10720_v6, %v10780_v0  ;;  %8192 = vmatmul.msk.bf16.gmra.mxu1 %vm3934_vm1, %v7517_v5  ;;  %8285 = vmatmul.msk.bf16.gmra.mxu2 %vm6035_vm3, %v10112_v8  ;;  %v7522_v8 = vld [vmem:[%s9423_s15 + $0x3b8] sm:$0xf0] }
 0x4de   : > { %v4947_v57 = vpop.f32.mrf.mxu3  ;;  %v7525_v18 = vor.u32 %v8539_v33, %v7522_v8  ;;  %v8543_v33 = vld [vmem:[%s9423_s15 + $0x3d4] sm:$0xf]  ;;  %v7538_v8 = vld [vmem:[%s9423_s15 + $0x3d8] sm:$0xf0] }
 0x4e0   : > { %v5596_v13 = vpop.f32.mrf.mxu2  ;;  %v4584_v20 = vpop.f32.mrf.mxu0 }
 0x4e1   : > { %v10789_v48 = vadd.f32 %v5596_v13, %v4947_v57 }
 0x4e2   : > { %v5233_v11 = vpop.f32.mrf.mxu1 }
 0x4e3   : > { %v5683_v32 = vmax.f32 %v10733_v56, %v10789_v48  ;;  %v10793_v54 = vadd.f32 %v5233_v11, %v4584_v20  ;;  %v7536_v11 = vld [vmem:[%s9423_s15 + $0x3d0] sm:$0xf] }
 0x4e5   : > { %v5646_v17 = vmax.f32 %v10741_v10, %v10793_v54 }
 0x4e6   : > { %v10799_v59 = vpop.f32.mrf.mxu3 }
 0x4e8   : > { %v10803_v12 = vpop.f32.mrf.mxu2  ;;  %v4587_v44 = vpop.f32.mrf.mxu0 }
 0x4ea   : > { %v5236_v58 = vpop.f32.mrf.mxu1 }
 0x4eb   : > { %v10805_v52 = vadd.f32 %v5236_v58, %v4587_v44  ;;  %4626 = vmatmul.bf16.gmra.mxu0 %v7521_v24  ;;  %8311 = vmatmul.msk.bf16.vlgmr.msrb.gmra.mxu3 %vm6035_vm3, %v10704_v50  ;;  %v7537_v24 = vor.u32 %v8544_v61, %v7536_v11  ;;  %v7541_v58 = vor.u32 %v8543_v33, %v7538_v8  ;;  %v8545_v8 = vld [vmem:[%s9423_s15 + $0x3e4] sm:$0xf] }
 0x4ec   : > { %v5594_v11 = vadd.f32 %v10778_v35, %v10774_v55 }
 0x4ed   : > { %v5647_v38 = vmax.f32 %v10757_v19, %v10805_v52  ;;  %8193 = vmatmul.msk.bf16.gmra.mxu1 %vm3934_vm1, %v7525_v18  ;;  %8302 = vmatmul.msk.bf16.vlgmr.msrb.gmra.mxu2 %vm6035_vm3, %v10493_v3  ;;  %v8549_v19 = vld [vmem:[%s9423_s15 + $0x404] sm:$0xf]  ;;  %v7562_v52 = vld [vmem:[%s9423_s15 + $0x408] sm:$0xf0] }
 0x4ee   : > { %v4952_v1 = vpop.f32.mrf.mxu3  ;;  %v5682_v55 = vmax.f32 %v10718_v53, %v5594_v11 }
 0x4f0   : > { %v5601_v46 = vpop.f32.mrf.mxu2  ;;  %v4589_v25 = vpop.f32.mrf.mxu0 }
 0x4f1   : > { %v5602_v2 = vadd.f32 %v5601_v46, %v4952_v1 }
 0x4f2   : > { %v5238_v51 = vpop.f32.mrf.mxu1 }
 0x4f3   : > { %v10814_v37 = vadd.f32 %v5238_v51, %v4589_v25 }
 0x4f5   : > { %v5648_v50 = vmax.f32 %v10768_v30, %v10814_v37 }
 0x4f6   : > { %v4954_v16 = vpop.f32.mrf.mxu3 }
 0x4f8   : > { %v5603_v9 = vpop.f32.mrf.mxu2  ;;  %v4592_v3 = vpop.f32.mrf.mxu0 }
 0x4fa   : > { %v5241_v41 = vpop.f32.mrf.mxu1 }
 0x4fb   : > { %4631 = vmatmul.bf16.gmra.mxu0 %v7529_v34  ;;  %8312 = vmatmul.msk.bf16.gmra.mxu3 %vm6035_vm3, %v10735_v39  ;;  %v8315_v39 = vld [vmem:[%s11234_s3 + $0x50] sm:$0x3] }
 0x4fc   : > { %v6351_v44 = vunpack.c.l.b16 %v8315_v39  ;;  %v7546_v39 = vld [vmem:[%s9423_s15 + $0x3e8] sm:$0xf0] }
 0x4fd   : > { %8194 = vmatmul.msk.bf16.gmra.mxu1 %vm3934_vm1, %v7533_v27  ;;  %8303 = vmatmul.msk.bf16.gmra.mxu2 %vm6035_vm3, %v10519_v14 }
 0x4fe   : > { %v4957_v5 = vpop.f32.mrf.mxu3  ;;  %v6353_v1 = vpack.c.b16 %v6351_v44, %v6351_v44  ;;  %v10865_v44 = vld [vmem:[%s11233_s2] ss:$0 sm:$0xff] }
 0x500   : > { %v5606_v49 = vpop.f32.mrf.mxu2  ;;  %v4594_v57 = vpop.f32.mrf.mxu0  ;;  %v6362_v25 = vsel %vm6042_vm2, %v6353_v1, 0 }
 0x501   : > { %v10827_v13 = vadd.f32 %v5606_v49, %v4957_v5  ;;  %6370 = vmatpush.bf16.msra.mxu2 %v6362_v25  ;;  %v7544_v5 = vld [vmem:[%s9423_s15 + $0x3e0] sm:$0xf]  ;;  %v8546_v49 = vld [vmem:[%s9423_s15 + $0x3e4] sm:$0xf0] }
 0x502   : > { %v5243_v20 = vpop.f32.mrf.mxu1 }
 0x505   : > { %6371 = vmatpush.bf16.msra.mxu2 %v8699_v15 }
 0x506   : > { %v10831_v21 = vpop.f32.mrf.mxu3 }
 0x508   : > { %v10838_v18 = vpop.f32.mrf.mxu2  ;;  %v10840_v14 = vpop.f32.mrf.mxu0 }
 0x50a   : > { %v10842_v46 = vpop.f32.mrf.mxu1 }
 0x50b   : > { %4636 = vmatmul.bf16.gmra.mxu0 %v7537_v24  ;;  %v5604_v24 = vadd.f32 %v5603_v9, %v4954_v16 }
 0x50d   : > { %8195 = vmatmul.msk.bf16.gmra.mxu1 %vm3934_vm1, %v7541_v58  ;;  %v7545_v58 = vor.u32 %v8546_v49, %v7544_v5 }
 0x50e   : > { %v4962_v51 = vpop.f32.mrf.mxu3 }
 0x510   : > { %v5611_v26 = vpop.f32.mrf.mxu2  ;;  %v10849_v4 = vpop.f32.mrf.mxu0 }
 0x511   : > { %v5612_v31 = vadd.f32 %v5611_v26, %v4962_v51  ;;  %v7549_v51 = vor.u32 %v8545_v8, %v7546_v39 }
 0x512   : > { %v10851_v34 = vpop.f32.mrf.mxu1 }
 0x513   : > { %v5745_v27 = vmax.f32 %v5602_v2, %v5612_v31 }
 0x515   : > { %v5809_v61 = vmax.f32 %v5681_v43, %v5745_v27  ;;  %v5242_v43 = vadd.f32 %v5241_v41, %v4592_v3 }
 0x516   : > { %v4964_v33 = vpop.f32.mrf.mxu3 }
 0x517   : > { %v5877_v2 = vadd.f32 %v10865_v44, %v5809_v61  ;;  %v5244_v61 = vadd.f32 %v5243_v20, %v4594_v57  ;;  %v8547_v57 = vld [vmem:[%s9423_s15 + $0x3f4] sm:$0xf]  ;;  %v7554_v20 = vld [vmem:[%s9423_s15 + $0x3f8] sm:$0xf0] }
 0x518   : > { %v5613_v1 = vpop.f32.mrf.mxu2  ;;  %v4602_v25 = vpop.f32.mrf.mxu0  ;;  %v7557_v48 = vor.u32 %v8547_v57, %v7554_v20 }
 0x519   : > { %v5614_v35 = vadd.f32 %v5613_v1, %v4964_v33  ;;  %v5941_v47 = vmax.f32 %v5877_v2, 0.0  ;;  %v7552_v1 = vld [vmem:[%s9423_s15 + $0x3f0] sm:$0xf] }
 0x51a   : > { %v5251_v36 = vpop.f32.mrf.mxu1 }
 0x51b   : > { %v5746_v15 = vmax.f32 %v5604_v24, %v5614_v35  ;;  %v5252_v26 = vadd.f32 %v5251_v36, %v4602_v25  ;;  %4641 = vmatmul.bf16.gmra.mxu0 %v7545_v58  ;;  %v6005_v31 = vpack.c.bf16 %v5941_v47, %v5941_v47  ;;  %v8548_v25 = vld [vmem:[%s9423_s15 + $0x3f4] sm:$0xf0] }
 0x51c   : > { %v7553_v47 = vor.u32 %v8548_v25, %v7552_v1  ;;  %v7565_v25 = vor.u32 %v8549_v19, %v7562_v52 }
 0x51d   : > { %v5810_v16 = vmax.f32 %v5682_v55, %v5746_v15  ;;  %v5709_v9 = vmax.f32 %v5242_v43, %v5252_v26  ;;  %8196 = vmatmul.msk.bf16.gmra.mxu1 %vm3934_vm1, %v7549_v51  ;;  %v6835_v33 = vunpack.c.l.b16 %v6005_v31  ;;  %v5247_v15 = vadd.f32 %v10842_v46, %v10840_v14 }
 0x51e   : > { %v4967_v27 = vpop.f32.mrf.mxu3 }
 0x51f   : > { %v5878_v5 = vadd.f32 %v10865_v44, %v5810_v16  ;;  %v5773_v53 = vmax.f32 %v5645_v23, %v5709_v9 }
 0x520   : > { %v5616_v49 = vpop.f32.mrf.mxu2  ;;  %v4604_v11 = vpop.f32.mrf.mxu0 }
 0x521   : > { %v5942_v3 = vmax.f32 %v5878_v5, 0.0  ;;  %v5617_v41 = vadd.f32 %v5616_v49, %v4967_v27  ;;  %v5841_v24 = vadd.f32 %v10865_v44, %v5773_v53 }
 0x522   : > { %v5253_v8 = vpop.f32.mrf.mxu1 }
 0x523   : > { %v6006_v39 = vpack.c.bf16 %v5942_v3, %v5942_v3  ;;  %v5747_v2 = vmax.f32 %v10827_v13, %v5617_v41  ;;  %v5254_v58 = vadd.f32 %v5253_v8, %v4604_v11  ;;  %v5905_v51 = vmax.f32 %v5841_v24, 0.0  ;;  %v8550_v8 = vld [vmem:[%s9423_s15 + $0x404] sm:$0xf0] }
 0x524   : > { %v5249_v3 = vadd.f32 %v10851_v34, %v10849_v4 }
 0x525   : > { %v6836_v55 = vunpack.c.l.b16 %v6006_v39  ;;  %v10881_v6 = vmax.f32 %v5683_v32, %v5747_v2  ;;  %v5710_v0 = vmax.f32 %v5244_v61, %v5254_v58  ;;  %v5969_v26 = vpack.c.bf16 %v5905_v51, %v5905_v51 }
 0x526   : > { %v10883_v23 = vpop.f32.mrf.mxu3 }
 0x527   : > { %v10887_v35 = vpack.c.b16 %v6836_v55, %v6835_v33  ;;  %v5774_v13 = vmax.f32 %v5646_v17, %v5710_v0  ;;  %v6340_v54 = vunpack.c.l.b16 %v5969_v26  ;;  %v7560_v33 = vld [vmem:[%s9423_s15 + $0x400] sm:$0xf] }
 0x528   : > { %v10892_v36 = vpop.f32.mrf.mxu2  ;;  %v4607_v43 = vpop.f32.mrf.mxu0  ;;  %v7561_v58 = vor.u32 %v8550_v8, %v7560_v33 }
 0x529   : > { %v5842_v56 = vadd.f32 %v10865_v44, %v5774_v13 }
 0x52a   : > { %v5256_v32 = vpop.f32.mrf.mxu1 }
 0x52b   : > { %v5906_v16 = vmax.f32 %v5842_v56, 0.0  ;;  %v5257_v9 = vadd.f32 %v5256_v32, %v4607_v43  ;;  %4646 = vmatmul.bf16.gmra.mxu0 %v7553_v47  ;;  %v5875_v32 = vadd.f32 %v10865_v44, %v10671_v62 }
 0x52d   : > { %v5970_v31 = vpack.c.bf16 %v5906_v16, %v5906_v16  ;;  %v5711_v27 = vmax.f32 %v5247_v15, %v5257_v9  ;;  %8197 = vmatmul.msk.bf16.gmra.mxu1 %vm3934_vm1, %v7557_v48  ;;  %v5876_v15 = vadd.f32 %v10865_v44, %v10695_v63  ;;  %v7568_v16 = vld [vmem:[%s9423_s15 + $0x410] sm:$0xf]  ;;  %v8552_v9 = vld [vmem:[%s9423_s15 + $0x414] sm:$0xf0] }
 0x52e   : > { %v6102_v10 = vpop.f32.mrf.mxu3 }
 0x52f   : > { %v6341_v17 = vunpack.c.l.b16 %v5970_v31  ;;  %v5775_v5 = vmax.f32 %v5647_v38, %v5711_v27  ;;  %v8551_v27 = vld [vmem:[%s9423_s15 + $0x414] sm:$0xf] }
 0x530   : > { %v6055_v14 = vpop.f32.mrf.mxu2  ;;  %v4609_v46 = vpop.f32.mrf.mxu0 }
 0x531   : > { %v6344_v53 = vpack.c.b16 %v6341_v17, %v6340_v54  ;;  %v6103_v49 = vadd.f32 %v6102_v10, %v6055_v14  ;;  %v5843_v41 = vadd.f32 %v10865_v44, %v5775_v5  ;;  %v7570_v10 = vld [vmem:[%s9423_s15 + $0x418] sm:$0xf0]  ;;  %v5939_v54 = vmax.f32 %v5875_v32, 0.0 }
 0x532   : > { %v5258_v11 = vpop.f32.mrf.mxu1  ;;  %v5940_v17 = vmax.f32 %v5876_v15, 0.0  ;;  %v7569_v5 = vor.u32 %v8552_v9, %v7568_v16  ;;  %v7573_v62 = vor.u32 %v8551_v27, %v7570_v10  ;;  %v7584_v27 = vld [vmem:[%s9423_s15 + $0x430] sm:$0xf]  ;;  %v8556_v10 = vld [vmem:[%s9423_s15 + $0x434] sm:$0xf0] }
 0x533   : > { %v5259_v61 = vadd.f32 %v5258_v11, %v4609_v46  ;;  %8320 = vmatmul.msk.bf16.vlgmr.msra.gmra.mxu2 %vm6035_vm3, %v6344_v53  ;;  %v5907_v38 = vmax.f32 %v5843_v41, 0.0  ;;  %v6003_v63 = vpack.c.bf16 %v5939_v54, %v5939_v54  ;;  %v8563_v54 = vld [vmem:[%s9423_s15 + $0x474] sm:$0xf] }
 0x534   : > { %v6004_v11 = vpack.c.bf16 %v5940_v17, %v5940_v17 }
 0x535   : > { %v5712_v39 = vmax.f32 %v5249_v3, %v5259_v61  ;;  %v5971_v0 = vpack.c.bf16 %v5907_v38, %v5907_v38  ;;  %v6782_v61 = vunpack.c.l.b16 %v6003_v63 }
 0x536   : > { %v10907_v24 = vpop.f32.mrf.mxu3  ;;  %v6783_v33 = vunpack.c.l.b16 %v6004_v11 }
 0x537   : > { %v5776_v2 = vmax.f32 %v5648_v50, %v5712_v39  ;;  %v6342_v37 = vunpack.c.l.b16 %v5971_v0  ;;  %v7578_v0 = vld [vmem:[%s9423_s15 + $0x428] sm:$0xf0] }
 0x538   : > { %v10914_v1 = vpop.f32.mrf.mxu2  ;;  %v4612_v4 = vpop.f32.mrf.mxu0 }
 0x539   : > { %v5844_v34 = vadd.f32 %v10865_v44, %v5776_v2 }
 0x53a   : > { %v5261_v55 = vpop.f32.mrf.mxu1 }
 0x53b   : > { %v5908_v57 = vmax.f32 %v5844_v34, 0.0  ;;  %v10917_v20 = vadd.f32 %v5261_v55, %v4612_v4  ;;  %4651 = vmatmul.bf16.gmra.mxu0 %v7561_v58  ;;  %v10940_v58 = vpack.c.b16 %v6783_v33, %v6782_v61  ;;  %v7576_v4 = vld [vmem:[%s9423_s15 + $0x420] sm:$0xf]  ;;  %v8554_v34 = vld [vmem:[%s9423_s15 + $0x424] sm:$0xf0] }
 0x53c   : > { %v8553_v55 = vld [vmem:[%s9423_s15 + $0x424] sm:$0xf] }
 0x53d   : > { %v5972_v51 = vpack.c.bf16 %v5908_v57, %v5908_v57  ;;  %8198 = vmatmul.msk.bf16.gmra.mxu1 %vm3934_vm1, %v7565_v25  ;;  %v7577_v57 = vor.u32 %v8554_v34, %v7576_v4 }
 0x53e   : > { %v6107_v30 = vpop.f32.mrf.mxu3 }
 0x53f   : > { %v6343_v50 = vunpack.c.l.b16 %v5972_v51 }
 0x540   : > { %v6060_v13 = vpop.f32.mrf.mxu2  ;;  %v4614_v47 = vpop.f32.mrf.mxu0 }
 0x541   : > { %v6108_v43 = vadd.f32 %v6107_v30, %v6060_v13  ;;  %v6345_v56 = vpack.c.b16 %v6343_v50, %v6342_v37  ;;  %v7581_v37 = vor.u32 %v8553_v55, %v7578_v0  ;;  %v7592_v55 = vld [vmem:[%s9423_s15 + $0x440] sm:$0xf]  ;;  %v8558_v0 = vld [vmem:[%s9423_s15 + $0x444] sm:$0xf0] }
 0x542   : > { %v5263_v48 = vpop.f32.mrf.mxu1 }
 0x543   : > { %v10924_v26 = vadd.f32 %v5263_v48, %v4614_v47  ;;  %8321 = vmatmul.msk.bf16.gmra.mxu2 %vm6035_vm3, %v6345_v56 }
 0x546   : > { %v10929_v31 = vpop.f32.mrf.mxu3 }
 0x548   : > { %v10933_v14 = vpop.f32.mrf.mxu2  ;;  %v4617_v46 = vpop.f32.mrf.mxu0 }
 0x54a   : > { %v5266_v53 = vpop.f32.mrf.mxu1 }
 0x54b   : > { %v10935_v3 = vadd.f32 %v5266_v53, %v4617_v46  ;;  %4656 = vmatmul.bf16.gmra.mxu0 %v7569_v5  ;;  %v8555_v5 = vld [vmem:[%s9423_s15 + $0x434] sm:$0xf]  ;;  %v7586_v46 = vld [vmem:[%s9423_s15 + $0x438] sm:$0xf0] }
 0x54d   : > { %8199 = vmatmul.msk.bf16.gmra.mxu1 %vm3934_vm1, %v7573_v62  ;;  %v7585_v62 = vor.u32 %v8556_v10, %v7584_v27 }
 0x54e   : > { %v6208_v41 = vpop.f32.mrf.mxu3 }
 0x550   : > { %v6153_v8 = vpop.f32.mrf.mxu2  ;;  %v4619_v39 = vpop.f32.mrf.mxu0 }
 0x551   : > { %v6163_v19 = vadd.f32 %v6153_v8, %v6103_v49 }
 0x552   : > { %v5268_v52 = vpop.f32.mrf.mxu1 }
 0x553   : > { %v10938_v38 = vadd.f32 %v5268_v52, %v4619_v39  ;;  %v6218_v2 = vadd.f32 %v6208_v41, %v6163_v19 }
 0x556   : > { %v10944_v25 = vpop.f32.mrf.mxu3 }
 0x558   : > { %v10948_v51 = vpop.f32.mrf.mxu2  ;;  %v4622_v30 = vpop.f32.mrf.mxu0 }
 0x55a   : > { %v5271_v49 = vpop.f32.mrf.mxu1 }
 0x55b   : > { %v10950_v50 = vadd.f32 %v5271_v49, %v4622_v30  ;;  %4661 = vmatmul.bf16.gmra.mxu0 %v7577_v57  ;;  %v8557_v30 = vld [vmem:[%s9423_s15 + $0x444] sm:$0xf] }
 0x55d   : > { %v5649_v13 = vmax.f32 %v10917_v20, %v10950_v50  ;;  %8200 = vmatmul.msk.bf16.gmra.mxu1 %vm3934_vm1, %v7581_v37  ;;  %v7594_v37 = vld [vmem:[%s9423_s15 + $0x448] sm:$0xf0] }
 0x55e   : > { %v6213_v47 = vpop.f32.mrf.mxu3 }
 0x560   : > { %v6158_v56 = vpop.f32.mrf.mxu2  ;;  %v4624_v48 = vpop.f32.mrf.mxu0 }
 0x561   : > { %v6165_v32 = vadd.f32 %v6158_v56, %v6108_v43  ;;  %v7589_v43 = vor.u32 %v8555_v5, %v7586_v46 }
 0x562   : > { %v5273_v15 = vpop.f32.mrf.mxu1 }
 0x563   : > { %v10955_v16 = vadd.f32 %v5273_v15, %v4624_v48  ;;  %v6220_v9 = vadd.f32 %v6213_v47, %v6165_v32  ;;  %v7593_v47 = vor.u32 %v8558_v0, %v7592_v55  ;;  %v7597_v48 = vor.u32 %v8557_v30, %v7594_v37  ;;  %v8700_v37 = vld [vmem:[%s11234_s3 + $0x54] sm:$0xff] }
 0x566   : > { %v10961_v17 = vpop.f32.mrf.mxu3 }
 0x568   : > { %v10965_v53 = vpop.f32.mrf.mxu2  ;;  %v4627_v63 = vpop.f32.mrf.mxu0 }
 0x56a   : > { %v5276_v11 = vpop.f32.mrf.mxu1 }
 0x56b   : > { %v10967_v41 = vadd.f32 %v5276_v11, %v4627_v63  ;;  %4666 = vmatmul.bf16.gmra.mxu0 %v7585_v62  ;;  %v7600_v63 = vld [vmem:[%s9423_s15 + $0x450] sm:$0xf]  ;;  %v8559_v11 = vld [vmem:[%s9423_s15 + $0x454] sm:$0xf] }
 0x56d   : > { %8201 = vmatmul.msk.bf16.gmra.mxu1 %vm3934_vm1, %v7589_v43  ;;  %v8560_v43 = vld [vmem:[%s9423_s15 + $0x454] sm:$0xf0] }
 0x56e   : > { %v6318_v33 = vpop.f32.mrf.mxu3 }
 0x570   : > { %v6263_v8 = vpop.f32.mrf.mxu2  ;;  %v4629_v39 = vpop.f32.mrf.mxu0 }
 0x571   : > { %v6273_v19 = vadd.f32 %v6263_v8, %v6218_v2  ;;  %v8324_v8 = vld [vmem:[%s11234_s3 + $0x5c] sm:$0x3] }
 0x572   : > { %v5278_v52 = vpop.f32.mrf.mxu1 }
 0x573   : > { %v10972_v4 = vadd.f32 %v5278_v52, %v4629_v39  ;;  %v10974_v34 = vadd.f32 %v6318_v33, %v6273_v19  ;;  %v7602_v33 = vld [vmem:[%s9423_s15 + $0x458] sm:$0xf0]  ;;  %v7601_v39 = vor.u32 %v8560_v43, %v7600_v63  ;;  %v6406_v19 = vunpack.c.l.b16 %v8324_v8  ;;  %v7610_v63 = vld [vmem:[%s9423_s15 + $0x468] sm:$0xf0] }
 0x575   : > { %v6408_v55 = vpack.c.b16 %v6406_v19, %v6406_v19 }
 0x576   : > { %v10982_v49 = vpop.f32.mrf.mxu3 }
 0x577   : > { %v6417_v30 = vsel %vm6042_vm2, %v6408_v55, 0 }
 0x578   : > { %v10984_v2 = vpop.f32.mrf.mxu2  ;;  %v4632_v56 = vpop.f32.mrf.mxu0  ;;  %6425 = vmatpush.bf16.msra.mxu3 %v6417_v30 }
 0x57a   : > { %v5281_v32 = vpop.f32.mrf.mxu1 }
 0x57b   : > { %4671 = vmatmul.bf16.gmra.mxu0 %v7593_v47 }
 0x57c   : > { %6426 = vmatpush.bf16.msra.mxu3 %v8700_v37 }
 0x57d   : > { %8202 = vmatmul.msk.bf16.gmra.mxu1 %vm3934_vm1, %v7597_v48 }
 0x57e   : > { %v6323_v5 = vpop.f32.mrf.mxu3 }
 0x580   : > { %v6268_v15 = vpop.f32.mrf.mxu2  ;;  %v4634_v27 = vpop.f32.mrf.mxu0 }
 0x581   : > { %v6275_v10 = vadd.f32 %v6268_v15, %v6220_v9  ;;  %v7605_v9 = vor.u32 %v8559_v11, %v7602_v33  ;;  %v7608_v15 = vld [vmem:[%s9423_s15 + $0x460] sm:$0xf] }
 0x582   : > { %v5283_v46 = vpop.f32.mrf.mxu1 }
 0x583   : > { %v10987_v62 = vadd.f32 %v6323_v5, %v6275_v10  ;;  %v8562_v10 = vld [vmem:[%s9423_s15 + $0x464] sm:$0xf0]  ;;  %v8561_v5 = vld [vmem:[%s9423_s15 + $0x464] sm:$0xf]  ;;  %v5284_v57 = vadd.f32 %v5283_v46, %v4634_v27 }
 0x584   : > { %v7609_v43 = vor.u32 %v8562_v10, %v7608_v15  ;;  %v7613_v33 = vor.u32 %v8561_v5, %v7610_v63  ;;  %v7616_v5 = vld [vmem:[%s9423_s15 + $0x470] sm:$0xf]  ;;  %v8564_v63 = vld [vmem:[%s9423_s15 + $0x474] sm:$0xf0] }
 0x588   : > { %v4637_v52 = vpop.f32.mrf.mxu0 }
 0x58a   : > { %v5286_v0 = vpop.f32.mrf.mxu1 }
 0x58b   : > { %4676 = vmatmul.bf16.gmra.mxu0 %v7601_v39  ;;  %v5282_v39 = vadd.f32 %v5281_v32, %v4632_v56  ;;  %v7618_v56 = vld [vmem:[%s9423_s15 + $0x478] sm:$0xf0]  ;;  %v5287_v27 = vadd.f32 %v5286_v0, %v4637_v52  ;;  %v6105_v52 = vadd.f32 %v10907_v24, %v10914_v1  ;;  %v5609_v24 = vadd.f32 %v10838_v18, %v10831_v21 }
 0x58c   : > { %v7621_v50 = vor.u32 %v8563_v54, %v7618_v56  ;;  %v7624_v56 = vld [vmem:[%s9423_s15 + $0x480] sm:$0xf]  ;;  %v5619_v1 = vadd.f32 %v10892_v36, %v10883_v23 }
 0x58d   : > { %8203 = vmatmul.msk.bf16.gmra.mxu1 %vm3934_vm1, %v7605_v9 }
 0x590   : > { %v4639_v47 = vpop.f32.mrf.mxu0 }
 0x592   : > { %v5288_v48 = vpop.f32.mrf.mxu1 }
 0x598   : > { %v4642_v11 = vpop.f32.mrf.mxu0 }
 0x59a   : > { %v5291_v8 = vpop.f32.mrf.mxu1 }
 0x59b   : > { %v5292_v19 = vadd.f32 %v5291_v8, %v4642_v11  ;;  %4681 = vmatmul.bf16.gmra.mxu0 %v7609_v43  ;;  %v11272_v43 = vmax.f32 %v10924_v26, %v10955_v16 }
 0x59d   : > { %v5713_v9 = vmax.f32 %v5282_v39, %v5292_v19  ;;  %8204 = vmatmul.msk.bf16.gmra.mxu1 %vm3934_vm1, %v7613_v33  ;;  %v7617_v33 = vor.u32 %v8564_v63, %v7616_v5 }
 0x59f   : > { %v5777_v55 = vmax.f32 %v5649_v13, %v5713_v9 }
 0x5a0   : > { %v4644_v30 = vpop.f32.mrf.mxu0 }
 0x5a1   : > { %v5845_v15 = vadd.f32 %v10865_v44, %v5777_v55  ;;  %v11019_v55 = vpop.f32.mrf.mxu2 }
 0x5a2   : > { %v5293_v37 = vpop.f32.mrf.mxu1 }
 0x5a3   : > { %v5294_v10 = vadd.f32 %v5293_v37, %v4644_v30  ;;  %v5909_v32 = vmax.f32 %v5845_v15, 0.0  ;;  %v6164_v37 = vadd.f32 %v10948_v51, %v6105_v52 }
 0x5a5   : > { %v5714_v61 = vmax.f32 %v5284_v57, %v5294_v10  ;;  %v5973_v46 = vpack.c.bf16 %v5909_v32, %v5909_v32  ;;  %v5289_v10 = vadd.f32 %v5288_v48, %v4639_v47  ;;  %v8566_v32 = vld [vmem:[%s9423_s15 + $0x484] sm:$0xf0]  ;;  %v6219_v51 = vadd.f32 %v10944_v25, %v6164_v37  ;;  %v8565_v48 = vld [vmem:[%s9423_s15 + $0x484] sm:$0xf] }
 0x5a7   : > { %v5778_v11 = vmax.f32 %v11272_v43, %v5714_v61  ;;  %v6395_v26 = vunpack.c.l.b16 %v5973_v46  ;;  %v11273_v61 = vmax.f32 %v10935_v3, %v10967_v41  ;;  %v5599_v41 = vadd.f32 %v10803_v12, %v10799_v59  ;;  %v7626_v43 = vld [vmem:[%s9423_s15 + $0x488] sm:$0xf0] }
 0x5a8   : > { %v4647_v8 = vpop.f32.mrf.mxu0  ;;  %v7625_v59 = vor.u32 %v8566_v32, %v7624_v56  ;;  %v6274_v21 = vadd.f32 %v10984_v2, %v6219_v51  ;;  %v7629_v23 = vor.u32 %v8565_v48, %v7626_v43 }
 0x5a9   : > { %v5846_v20 = vadd.f32 %v10865_v44, %v5778_v11  ;;  %v5684_v36 = vmax.f32 %v10755_v40, %v5599_v41 }
 0x5aa   : > { %v5296_v13 = vpop.f32.mrf.mxu1 }
 0x5ab   : > { %v5910_v39 = vmax.f32 %v5846_v20, 0.0  ;;  %v5297_v19 = vadd.f32 %v5296_v13, %v4647_v8  ;;  %4686 = vmatmul.bf16.gmra.mxu0 %v7617_v33  ;;  %v11274_v33 = vmax.f32 %v10938_v38, %v10972_v4  ;;  %v6329_v4 = vadd.f32 %v10982_v49, %v6274_v21 }
 0x5ad   : > { %v5974_v9 = vpack.c.bf16 %v5910_v39, %v5910_v39  ;;  %v5715_v57 = vmax.f32 %v5287_v27, %v5297_v19  ;;  %8205 = vmatmul.msk.bf16.gmra.mxu1 %vm3934_vm1, %v7621_v50  ;;  %v5748_v50 = vmax.f32 %v5609_v24, %v5619_v1 }
 0x5af   : > { %v6396_v16 = vunpack.c.l.b16 %v5974_v9  ;;  %v5779_v54 = vmax.f32 %v11273_v61, %v5715_v57  ;;  %v5812_v39 = vmax.f32 %v5684_v36, %v5748_v50 }
 0x5b0   : > { %v4649_v0 = vpop.f32.mrf.mxu0 }
 0x5b1   : > { %v6399_v30 = vpack.c.b16 %v6396_v16, %v6395_v26  ;;  %v5847_v5 = vadd.f32 %v10865_v44, %v5779_v54  ;;  %v5879_v16 = vadd.f32 %v10865_v44, %v10881_v6  ;;  %v5880_v61 = vadd.f32 %v10865_v44, %v5812_v39 }
 0x5b2   : > { %v5298_v15 = vpop.f32.mrf.mxu1 }
 0x5b3   : > { %v5299_v63 = vadd.f32 %v5298_v15, %v4649_v0  ;;  %8329 = vmatmul.msk.bf16.vlgmr.msra.gmra.mxu3 %vm6035_vm3, %v6399_v30  ;;  %v5911_v11 = vmax.f32 %v5847_v5, 0.0  ;;  %v5943_v49 = vmax.f32 %v5879_v16, 0.0  ;;  %v5944_v0 = vmax.f32 %v5880_v61, 0.0 }
 0x5b5   : > { %v5716_v3 = vmax.f32 %v5289_v10, %v5299_v63  ;;  %v5975_v13 = vpack.c.bf16 %v5911_v11, %v5911_v11  ;;  %v6007_v10 = vpack.c.bf16 %v5943_v49, %v5943_v49  ;;  %v6008_v5 = vpack.c.bf16 %v5944_v0, %v5944_v0 }
 0x5b6   : > { %v6373_v47 = vpop.f32.mrf.mxu2 }
 0x5b7   : > { %v5780_v8 = vmax.f32 %v11274_v33, %v5716_v3  ;;  %v11044_v20 = vadd.f32 %v6373_v47, %v10974_v34  ;;  %v6397_v2 = vunpack.c.l.b16 %v5975_v13  ;;  %v6837_v56 = vunpack.c.l.b16 %v6007_v10 }
 0x5b8   : > { %v4652_v12 = vpop.f32.mrf.mxu0  ;;  %v6838_v6 = vunpack.c.l.b16 %v6008_v5 }
 0x5b9   : > { %v5848_v18 = vadd.f32 %v10865_v44, %v5780_v8 }
 0x5ba   : > { %v5301_v25 = vpop.f32.mrf.mxu1  ;;  %v11068_v24 = vpack.c.b16 %v6838_v6, %v6837_v56 }
 0x5bb   : > { %v5912_v27 = vmax.f32 %v5848_v18, 0.0  ;;  %v11049_v46 = vadd.f32 %v5301_v25, %v4652_v12  ;;  %4691 = vmatmul.bf16.gmra.mxu0 %v7625_v59 }
 0x5bd   : > { %v5976_v38 = vpack.c.bf16 %v5912_v27, %v5912_v27  ;;  %8206 = vmatmul.msk.bf16.gmra.mxu1 %vm3934_vm1, %v7629_v23 }
 0x5be   : > { %v6375_v34 = vpop.f32.mrf.mxu2 }
 0x5bf   : > { %v6398_v19 = vunpack.c.l.b16 %v5976_v38  ;;  %v11053_v9 = vadd.f32 %v6375_v34, %v6329_v4  ;;  %v8333_v38 = vld [vmem:[%s11234_s3 + $0x68] sm:$0x3] }
 0x5c0   : > { %v4654_v57 = vpop.f32.mrf.mxu0  ;;  %v6461_v4 = vunpack.c.l.b16 %v8333_v38  ;;  %v11094_v38 = vpop.f32.mrf.mxu3 }
 0x5c1   : > { %v6400_v40 = vpack.c.b16 %v6398_v19, %v6397_v2 }
 0x5c2   : > { %v5303_v26 = vpop.f32.mrf.mxu1  ;;  %v6463_v39 = vpack.c.b16 %v6461_v4, %v6461_v4  ;;  %v8703_v4 = vld [vmem:[%s11234_s3 + $0x78] sm:$0xff] }
 0x5c3   : > { %v11058_v54 = vadd.f32 %v5303_v26, %v4654_v57  ;;  %8330 = vmatmul.msk.bf16.gmra.mxu3 %vm6035_vm3, %v6400_v40  ;;  %v8701_v57 = vld [vmem:[%s11234_s3 + $0x60] sm:$0xff] }
 0x5c4   : > { %v6472_v19 = vsel %vm6042_vm2, %v6463_v39, 0 }
 0x5c5   : > { %6480 = vmatpush.bf16.msrb.mxu2 %v6472_v19 }
 0x5c6   : > { %v6378_v52 = vpop.f32.mrf.mxu2 }
 0x5c7   : > { %v11062_v30 = vadd.f32 %v6378_v52, %v10987_v62 }
 0x5c8   : > { %v4657_v37 = vpop.f32.mrf.mxu0 }
 0x5c9   : > { %6481 = vmatpush.bf16.msrb.mxu2 %v8701_v57 }
 0x5ca   : > { %v5306_v15 = vpop.f32.mrf.mxu1 }
 0x5cb   : > { %v11064_v63 = vadd.f32 %v5306_v15, %v4657_v37  ;;  %v8342_v37 = vld [vmem:[%s11234_s3 + $0x74] sm:$0x3] }
 0x5cc   : > { %v6516_v10 = vunpack.c.l.b16 %v8342_v37 }
 0x5d0   : > { %v4659_v32 = vpop.f32.mrf.mxu0 }
 0x5d2   : > { %v5308_v3 = vpop.f32.mrf.mxu1 }
 0x5d3   : > { %v11066_v41 = vadd.f32 %v5308_v3, %v4659_v32 }
 0x5d8   : > { %v4662_v1 = vpop.f32.mrf.mxu0 }
 0x5da   : > { %v5311_v51 = vpop.f32.mrf.mxu1 }
 0x5db   : > { %v5312_v47 = vadd.f32 %v5311_v51, %v4662_v1  ;;  %v8351_v51 = vld [vmem:[%s11234_s3 + $0x80] sm:$0x3] }
 0x5dd   : > { %v5653_v62 = vmax.f32 %v11049_v46, %v5312_v47 }
 0x5e0   : > { %v4664_v48 = vpop.f32.mrf.mxu0 }
 0x5e2   : > { %v5313_v43 = vpop.f32.mrf.mxu1 }
 0x5e3   : > { %v5314_v11 = vadd.f32 %v5313_v43, %v4664_v48  ;;  %v6571_v48 = vunpack.c.l.b16 %v8351_v51 }
 0x5e5   : > { %v5654_v33 = vmax.f32 %v11058_v54, %v5314_v11 }
 0x5e8   : > { %v4667_v8 = vpop.f32.mrf.mxu0 }
 0x5ea   : > { %v5316_v59 = vpop.f32.mrf.mxu1 }
 0x5eb   : > { %v5317_v12 = vadd.f32 %v5316_v59, %v4667_v8  ;;  %v6573_v8 = vpack.c.b16 %v6571_v48, %v6571_v48 }
 0x5ed   : > { %v5655_v21 = vmax.f32 %v11064_v63, %v5317_v12  ;;  %v6518_v63 = vpack.c.b16 %v6516_v10, %v6516_v10 }
 0x5ef   : > { %v6527_v3 = vsel %vm6042_vm2, %v6518_v63, 0 }
 0x5f0   : > { %v4669_v18 = vpop.f32.mrf.mxu0  ;;  %6535 = vmatpush.bf16.msrb.mxu3 %v6527_v3 }
 0x5f2   : > { %v5318_v23 = vpop.f32.mrf.mxu1 }
 0x5f3   : > { %v11073_v36 = vadd.f32 %v5318_v23, %v4669_v18 }
 0x5f5   : > { %v5656_v25 = vmax.f32 %v11066_v41, %v11073_v36 }
 0x5f8   : > { %v4672_v50 = vpop.f32.mrf.mxu0 }
 0x5fa   : > { %v5321_v13 = vpop.f32.mrf.mxu1 }
 0x5fb   : > { %v5322_v54 = vadd.f32 %v5321_v13, %v4672_v50  ;;  %v6582_v13 = vsel %vm6042_vm2, %v6573_v8, 0 }
 0x5fc   : > { %6590 = vmatpush.bf16.msra.mxu2 %v6582_v13  ;;  %v11276_v13 = vld [vmem:[#allocation3_spill] sm:$0xff] }
 0x600   : > { %v4674_v27 = vpop.f32.mrf.mxu0  ;;  %6591 = vmatpush.bf16.msra.mxu2 %v8703_v4 }
 0x602   : > { %v5323_v46 = vpop.f32.mrf.mxu1 }
 0x603   : > { %v5324_v56 = vadd.f32 %v5323_v46, %v4674_v27 }
 0x608   : > { %v4677_v34 = vpop.f32.mrf.mxu0 }
 0x60a   : > { %v5326_v2 = vpop.f32.mrf.mxu1 }
 0x60b   : > { %v5327_v59 = vadd.f32 %v5326_v2, %v4677_v34 }
 0x610   : > { %v4679_v40 = vpop.f32.mrf.mxu0 }
 0x612   : > { %v5328_v26 = vpop.f32.mrf.mxu1 }
 0x618   : > { %v4682_v16 = vpop.f32.mrf.mxu0 }
 0x61a   : > { %v5331_v61 = vpop.f32.mrf.mxu1 }
 0x61b   : > { %v5332_v52 = vadd.f32 %v5331_v61, %v4682_v16  ;;  %v5329_v61 = vadd.f32 %v5328_v26, %v4679_v40 }
 0x61d   : > { %v5717_v49 = vmax.f32 %v5322_v54, %v5332_v52 }
 0x61f   : > { %v5781_v0 = vmax.f32 %v5653_v62, %v5717_v49  ;;  %v8360_v49 = vld [vmem:[%s11234_s3 + $0x8c] sm:$0x3] }
 0x620   : > { %v4684_v15 = vpop.f32.mrf.mxu0 }
 0x621   : > { %v5849_v6 = vadd.f32 %v10865_v44, %v5781_v0  ;;  %v6626_v0 = vunpack.c.l.b16 %v8360_v49  ;;  %v11279_v49 = vld [vmem:[#allocation5_spill] sm:$0xff] }
 0x622   : > { %v5333_v5 = vpop.f32.mrf.mxu1 }
 0x623   : > { %v5334_v32 = vadd.f32 %v5333_v5, %v4684_v15  ;;  %v5913_v47 = vmax.f32 %v5849_v6, 0.0  ;;  %v6628_v10 = vpack.c.b16 %v6626_v0, %v6626_v0  ;;  %v11280_v0 = vld [vmem:[#allocation7_spill] sm:$0xff] }
 0x625   : > { %v5718_v1 = vmax.f32 %v5324_v56, %v5334_v32  ;;  %v5977_v18 = vpack.c.bf16 %v5913_v47, %v5913_v47  ;;  %v6637_v63 = vsel %vm6042_vm2, %v6628_v10, 0 }
 0x627   : > { %v5782_v62 = vmax.f32 %v5654_v33, %v5718_v1  ;;  %v8702_v33 = vld [vmem:[%s11234_s3 + $0x6c] sm:$0xff]  ;;  %v6450_v34 = vunpack.c.l.b16 %v5977_v18 }
 0x628   : > { %v4687_v43 = vpop.f32.mrf.mxu0  ;;  %6536 = vmatpush.bf16.msrb.mxu3 %v8702_v33 }
 0x629   : > { %v5850_v11 = vadd.f32 %v10865_v44, %v5782_v62 }
 0x62a   : > { %v5336_v12 = vpop.f32.mrf.mxu1 }
 0x62b   : > { %v5914_v23 = vmax.f32 %v5850_v11, 0.0  ;;  %v5337_v50 = vadd.f32 %v5336_v12, %v4687_v43 }
 0x62c   : > { %6645 = vmatpush.bf16.msra.mxu3 %v6637_v63  ;;  %v11281_v63 = vld [vmem:[#allocation6_spill] sm:$0xff] }
 0x62d   : > { %v5978_v27 = vpack.c.bf16 %v5914_v23, %v5914_v23  ;;  %v5719_v46 = vmax.f32 %v5327_v59, %v5337_v50 }
 0x62f   : > { %v6451_v39 = vunpack.c.l.b16 %v5978_v27  ;;  %v5783_v2 = vmax.f32 %v5655_v21, %v5719_v46  ;;  %v11277_v27 = vmax.f32 %v9598_v42, %v11276_v13  ;;  %v11278_v42 = vld [vmem:[#allocation4_spill] sm:$0xff] }
 0x630   : > { %v4689_v19 = vpop.f32.mrf.mxu0 }
 0x631   : > { %v6454_v57 = vpack.c.b16 %v6451_v39, %v6450_v34  ;;  %v5851_v54 = vadd.f32 %v10865_v44, %v5783_v2  ;;  %v8705_v39 = vld [vmem:[%s11234_s3 + $0x90] sm:$0xff] }
 0x632   : > { %v5338_v16 = vpop.f32.mrf.mxu1 }
 0x633   : > { %v5339_v52 = vadd.f32 %v5338_v16, %v4689_v19  ;;  %8338 = vmatmul.msk.bf16.vlgmr.msrb.gmra.mxu2 %vm6035_vm3, %v6454_v57  ;;  %v5915_v21 = vmax.f32 %v5851_v54, 0.0 }
 0x635   : > { %v5720_v37 = vmax.f32 %v5329_v61, %v5339_v52  ;;  %v5979_v32 = vpack.c.bf16 %v5915_v21, %v5915_v21 }
 0x636   : > { %v6428_v15 = vpop.f32.mrf.mxu3 }
 0x637   : > { %v5784_v5 = vmax.f32 %v5656_v25, %v5720_v37  ;;  %v11111_v40 = vadd.f32 %v6428_v15, %v11044_v20  ;;  %v6452_v48 = vunpack.c.l.b16 %v5979_v32  ;;  %v11275_v20 = vmax.f32 %v9584_v22, %v9622_v28  ;;  %v8369_v22 = vld [vmem:[%s11234_s3 + $0x98] sm:$0x3]  ;;  %v8706_v37 = vld [vmem:[%s11234_s3 + $0x9c] sm:$0xff]  ;;  %v8387_v15 = vld [vmem:[%s11234_s3 + $0xb0] sm:$0x3] }
 0x638   : > { %v4692_v26 = vpop.f32.mrf.mxu0  ;;  %v6681_v28 = vunpack.c.l.b16 %v8369_v22  ;;  %v6791_v10 = vunpack.c.l.b16 %v8387_v15 }
 0x639   : > { %v5852_v56 = vadd.f32 %v10865_v44, %v5784_v5 }
 0x63a   : > { %v5341_v6 = vpop.f32.mrf.mxu1  ;;  %v6683_v23 = vpack.c.b16 %v6681_v28, %v6681_v28  ;;  %v6793_v21 = vpack.c.b16 %v6791_v10, %v6791_v10 }
 0x63b   : > { %v5916_v3 = vmax.f32 %v5852_v56, 0.0  ;;  %v5342_v1 = vadd.f32 %v5341_v6, %v4692_v26  ;;  %v8707_v26 = vld [vmem:[%s11234_s3 + $0xa8] sm:$0xff]  ;;  %v8396_v6 = vld [vmem:[%s11234_s3 + $0xbc] sm:$0x3] }
 0x63c   : > { %v6692_v4 = vsel %vm6042_vm2, %v6683_v23, 0  ;;  %v6802_v5 = vsel %vm6042_vm2, %v6793_v21, 0  ;;  %v11282_v56 = vld [vmem:[#allocation8_spill] sm:$0xff]  ;;  %v6846_v32 = vunpack.c.l.b16 %v8396_v6 }
 0x63d   : > { %v5980_v51 = vpack.c.bf16 %v5916_v3, %v5916_v3  ;;  %v5657_v47 = vmax.f32 %v5342_v1, %v9538_v29  ;;  %v8704_v29 = vld [vmem:[%s11234_s3 + $0x84] sm:$0xff]  ;;  %6700 = vmatpush.bf16.msrb.mxu2 %v6692_v4 }
 0x63e   : > { %v6430_v62 = vpop.f32.mrf.mxu3  ;;  %6646 = vmatpush.bf16.msra.mxu3 %v8704_v29  ;;  %v6848_v3 = vpack.c.b16 %v6846_v32, %v6846_v32 }
 0x63f   : > { %v6453_v41 = vunpack.c.l.b16 %v5980_v51  ;;  %v5785_v36 = vmax.f32 %v5657_v47, %v11275_v20  ;;  %v11120_v25 = vadd.f32 %v6430_v62, %v11053_v9  ;;  %v11283_v51 = vld [vmem:[#allocation9_spill] sm:$0xff]  ;;  %v11284_v47 = vld [vmem:[#allocation11_spill] sm:$0xff] }
 0x640   : > { %v4694_v11 = vpop.f32.mrf.mxu0  ;;  %v6857_v1 = vsel %vm6042_vm2, %v6848_v3, 0  ;;  %v8708_v62 = vld [vmem:[%s11234_s3 + $0xb4] sm:$0xff] }
 0x641   : > { %v6455_v43 = vpack.c.b16 %v6453_v41, %v6452_v48  ;;  %v5853_v59 = vadd.f32 %v10865_v44, %v5785_v36  ;;  %6701 = vmatpush.bf16.msrb.mxu2 %v8705_v39  ;;  %v11285_v48 = vld [vmem:[#allocation10_spill] sm:$0xff]  ;;  %v6380_v41 = vpop.f32.mrf.mxu2 }
 0x642   : > { %v5343_v8 = vpop.f32.mrf.mxu1 }
 0x643   : > { %v5344_v12 = vadd.f32 %v5343_v8, %v4694_v11  ;;  %8339 = vmatmul.msk.bf16.gmra.mxu2 %vm6035_vm3, %v6455_v43  ;;  %v5917_v50 = vmax.f32 %v5853_v59, 0.0 }
 0x645   : > { %v5658_v9 = vmax.f32 %v5344_v12, %v9550_v45  ;;  %v5981_v45 = vpack.c.bf16 %v5917_v50, %v5917_v50 }
 0x646   : > { %v6433_v18 = vpop.f32.mrf.mxu3 }
 0x647   : > { %v5786_v46 = vmax.f32 %v5658_v9, %v11277_v27  ;;  %v6440_v33 = vadd.f32 %v6433_v18, %v11062_v30  ;;  %v6505_v57 = vunpack.c.l.b16 %v5981_v45 }
 0x649   : > { %v5854_v34 = vadd.f32 %v10865_v44, %v5786_v46  ;;  %v8378_v44 = vld [vmem:[%s11234_s3 + $0xa4] sm:$0x3] }
 0x64a   : > { %v6736_v30 = vunpack.c.l.b16 %v8378_v44 }
 0x64b   : > { %v5918_v2 = vmax.f32 %v5854_v34, 0.0 }
 0x64c   : > { %v6738_v54 = vpack.c.b16 %v6736_v30, %v6736_v30  ;;  %v8711_v30 = vld [vmem:[%s11236_s5 + $0x10] sm:$0xff] }
 0x64d   : > { %v5982_v19 = vpack.c.bf16 %v5918_v2, %v5918_v2 }
 0x64e   : > { %v6747_v52 = vsel %vm6042_vm2, %v6738_v54, 0  ;;  %v6435_v59 = vpop.f32.mrf.mxu3 }
 0x64f   : > { %v6506_v16 = vunpack.c.l.b16 %v5982_v19 }
 0x651   : > { %v6509_v61 = vpack.c.b16 %v6506_v16, %v6505_v57 }
 0x653   : > { %8347 = vmatmul.msk.bf16.vlgmr.msrb.gmra.mxu3 %vm6035_vm3, %v6509_v61  ;;  %8356 = vmatmul.msk.bf16.vlgmr.msra.gmra.mxu2 %vm6035_vm3, %v11278_v42 }
 0x654   : > { %6755 = vmatpush.bf16.msrb.mxu3 %v6747_v52  ;;  %6810 = vmatpush.bf16.msra.mxu2 %v6802_v5 }
 0x658   : > { %6756 = vmatpush.bf16.msrb.mxu3 %v8706_v37  ;;  %6811 = vmatpush.bf16.msra.mxu2 %v8707_v26  ;;  %v8709_v37 = vld [vmem:[%s11236_s5] sm:$0xff] }
 0x663   : > { %8348 = vmatmul.msk.bf16.gmra.mxu3 %vm6035_vm3, %v11279_v49  ;;  %8357 = vmatmul.msk.bf16.gmra.mxu2 %vm6035_vm3, %v11280_v0  ;;  %v8710_v49 = vld [vmem:[%s11236_s5 + $0x8] sm:$0xff] }
 0x673   : > { %8365 = vmatmul.msk.bf16.vlgmr.msra.gmra.mxu3 %vm6035_vm3, %v11281_v63  ;;  %8374 = vmatmul.msk.bf16.vlgmr.msrb.gmra.mxu2 %vm6035_vm3, %v11282_v56 }
 0x674   : > { %6865 = vmatpush.bf16.msra.mxu3 %v6857_v1 }
 0x678   : > { %6866 = vmatpush.bf16.msra.mxu3 %v8708_v62 }
 0x683   : > { %8366 = vmatmul.msk.bf16.gmra.mxu3 %vm6035_vm3, %v11283_v51  ;;  %8375 = vmatmul.msk.bf16.gmra.mxu2 %vm6035_vm3, %v11284_v47 }
 0x693   : > { %8383 = vmatmul.msk.bf16.vlgmr.msrb.gmra.mxu3 %vm6035_vm3, %v11285_v48  ;;  %8392 = vmatmul.msk.bf16.vlgmr.msra.gmra.mxu2 %vm6035_vm3, %v10680_v7  ;;  %v8753_v48 = vld [vmem:[%s11235_s4] ss:$0 sm:$0xff] }
 0x6a3   : > { %8384 = vmatmul.msk.bf16.gmra.mxu3 %vm6035_vm3, %v10770_v60  ;;  %8393 = vmatmul.msk.bf16.gmra.mxu2 %vm6035_vm3, %v10940_v58 }
 0x6b3   : > { %8401 = vmatmul.msk.bf16.vlgmr.msra.gmra.mxu3 %vm6035_vm3, %v10887_v35  ;;  %v6110_v35 = vadd.f32 %v10929_v31, %v10933_v14 }
 0x6b5   : > { %v6166_v28 = vadd.f32 %v10965_v53, %v6110_v35 }
 0x6b6   : > { %v6483_v20 = vpop.f32.mrf.mxu2 }
 0x6b7   : > { %v6493_v36 = vadd.f32 %v6483_v20, %v11111_v40 }
 0x6be   : > { %v6485_v43 = vpop.f32.mrf.mxu2 }
 0x6bf   : > { %v6494_v11 = vadd.f32 %v6485_v43, %v11120_v25  ;;  %v6221_v25 = vadd.f32 %v10961_v17, %v6166_v28 }
 0x6c3   : > { %8402 = vmatmul.msk.bf16.gmra.mxu3 %vm6035_vm3, %v11068_v24  ;;  %v6276_v24 = vadd.f32 %v11019_v55, %v6221_v25  ;;  %v6902_v55 = vld [vmem:[%s11236_s5 + $0x18] sm:$0x1] }
 0x6c5   : > { %v6331_v50 = vadd.f32 %v11094_v38, %v6276_v24  ;;  %v6920_v38 = vunpack.c.l.b16 %v6902_v55 }
 0x6c6   : > { %v6488_v7 = vpop.f32.mrf.mxu2 }
 0x6c7   : > { %v6495_v8 = vadd.f32 %v6488_v7, %v6440_v33  ;;  %v6386_v46 = vadd.f32 %v6380_v41, %v6331_v50  ;;  %v6924_v16 = vpack.c.b16 %v6920_v38, %v6920_v38 }
 0x6c9   : > { %v6441_v4 = vadd.f32 %v6435_v59, %v6386_v46  ;;  %v6937_v42 = vsel %vm6935_vm4, %v6924_v16, 0 }
 0x6ca   : > { %6943 = vmatpush.bf16.msrb.mxu2 %v6937_v42 }
 0x6ce   : > { %v6490_v60 = vpop.f32.mrf.mxu2  ;;  %6944 = vmatpush.bf16.msrb.mxu2 %v8711_v30 }
 0x6cf   : > { %v6496_v34 = vadd.f32 %v6490_v60, %v6441_v4 }
 0x6d2   : > { %6945 = vmatpush.bf16.msrb.mxu2 %v8710_v49 }
 0x6d6   : > { %v6538_v12 = vpop.f32.mrf.mxu3  ;;  %v6593_v29 = vpop.f32.mrf.mxu2  ;;  %6946 = vmatpush.bf16.msrb.mxu2 %v8709_v37 }
 0x6d7   : > { %v6548_v58 = vadd.f32 %v6538_v12, %v6493_v36 }
 0x6d9   : > { %v6603_v22 = vadd.f32 %v6593_v29, %v6548_v58 }
 0x6de   : > { %v6540_v40 = vpop.f32.mrf.mxu3  ;;  %v6595_v9 = vpop.f32.mrf.mxu2 }
 0x6df   : > { %v6549_v18 = vadd.f32 %v6540_v40, %v6494_v11 }
 0x6e1   : > { %v6604_v26 = vadd.f32 %v6595_v9, %v6549_v18 }
 0x6e6   : > { %v6543_v23 = vpop.f32.mrf.mxu3  ;;  %v6598_v27 = vpop.f32.mrf.mxu2 }
 0x6e7   : > { %v6550_v13 = vadd.f32 %v6543_v23, %v6495_v8 }
 0x6e9   : > { %v6605_v33 = vadd.f32 %v6598_v27, %v6550_v13 }
 0x6ee   : > { %v6545_v39 = vpop.f32.mrf.mxu3  ;;  %v6600_v45 = vpop.f32.mrf.mxu2 }
 0x6ef   : > { %v6551_v31 = vadd.f32 %v6545_v39, %v6496_v34  ;;  %v8754_v34 = vld [vmem:[%s11237_s6] ss:$0 sm:$0xff] }
 0x6f1   : > { %v6606_v11 = vadd.f32 %v6600_v45, %v6551_v31 }
 0x6f6   : > { %v6648_v14 = vpop.f32.mrf.mxu3  ;;  %v6703_v19 = vpop.f32.mrf.mxu2 }
 0x6f7   : > { %v6658_v53 = vadd.f32 %v6648_v14, %v6603_v22 }
 0x6f9   : > { %v6713_v63 = vadd.f32 %v6703_v19, %v6658_v53 }
 0x6fe   : > { %v6650_v2 = vpop.f32.mrf.mxu3  ;;  %v6705_v44 = vpop.f32.mrf.mxu2 }
 0x6ff   : > { %v6659_v56 = vadd.f32 %v6650_v2, %v6604_v26 }
 0x701   : > { %v6714_v3 = vadd.f32 %v6705_v44, %v6659_v56 }
 0x706   : > { %v6653_v57 = vpop.f32.mrf.mxu3  ;;  %v6708_v52 = vpop.f32.mrf.mxu2 }
 0x707   : > { %v6660_v17 = vadd.f32 %v6653_v57, %v6605_v33 }
 0x709   : > { %v6715_v59 = vadd.f32 %v6708_v52, %v6660_v17 }
 0x70e   : > { %v6655_v61 = vpop.f32.mrf.mxu3  ;;  %v6710_v15 = vpop.f32.mrf.mxu2 }
 0x70f   : > { %v6661_v60 = vadd.f32 %v6655_v61, %v6606_v11 }
 0x711   : > { %v6716_v28 = vadd.f32 %v6710_v15, %v6661_v60 }
 0x716   : > { %v6758_v54 = vpop.f32.mrf.mxu3  ;;  %v6813_v21 = vpop.f32.mrf.mxu2 }
 0x717   : > { %v6768_v6 = vadd.f32 %v6758_v54, %v6713_v63 }
 0x719   : > { %v6823_v51 = vadd.f32 %v6813_v21, %v6768_v6 }
 0x71e   : > { %v6760_v0 = vpop.f32.mrf.mxu3  ;;  %v6815_v1 = vpop.f32.mrf.mxu2 }
 0x71f   : > { %v6769_v47 = vadd.f32 %v6760_v0, %v6714_v3 }
 0x721   : > { %v6824_v41 = vadd.f32 %v6815_v1, %v6769_v47 }
 0x726   : > { %v6763_v10 = vpop.f32.mrf.mxu3  ;;  %v6818_v8 = vpop.f32.mrf.mxu2 }
 0x727   : > { %v6770_v58 = vadd.f32 %v6763_v10, %v6715_v59 }
 0x729   : > { %v6825_v40 = vadd.f32 %v6818_v8, %v6770_v58 }
 0x72e   : > { %v6765_v5 = vpop.f32.mrf.mxu3  ;;  %v6820_v25 = vpop.f32.mrf.mxu2 }
 0x72f   : > { %v6771_v9 = vadd.f32 %v6765_v5, %v6716_v28 }
 0x731   : > { %v6826_v24 = vadd.f32 %v6820_v25, %v6771_v9 }
 0x736   : > { %v6868_v32 = vpop.f32.mrf.mxu3 }
 0x737   : > { %v6878_v62 = vadd.f32 %v6868_v32, %v6823_v51 }
 0x739   : > { %v6886_v36 = vadd.f32 %v8753_v48, %v6878_v62 }
 0x73b   : > { %v6890_v12 = vmax.f32 %v6886_v36, 0.0 }
 0x73e   : > { %v6870_v20 = vpop.f32.mrf.mxu3 }
 0x73f   : > { %v6879_v43 = vadd.f32 %v6870_v20, %v6824_v41 }
 0x741   : > { %v6887_v7 = vadd.f32 %v8753_v48, %v6879_v43 }
 0x743   : > { %v6891_v29 = vmax.f32 %v6887_v7, 0.0 }
 0x745   : > { %v6894_v22 = vpack.c.bf16 %v6891_v29, %v6890_v12 }
 0x746   : > { %v6873_v35 = vpop.f32.mrf.mxu3 }
 0x747   : > { %8415 = vmatmul.msk.bf16.vlgmr.msrb.gmra.mxu2 %vm6928_vm5, %v6894_v22  ;;  %v6880_v18 = vadd.f32 %v6873_v35, %v6825_v40 }
 0x749   : > { %v6888_v50 = vadd.f32 %v8753_v48, %v6880_v18 }
 0x74b   : > { %v6892_v46 = vmax.f32 %v6888_v50, 0.0 }
 0x74e   : > { %v6875_v23 = vpop.f32.mrf.mxu3 }
 0x74f   : > { %v6881_v13 = vadd.f32 %v6875_v23, %v6826_v24 }
 0x751   : > { %v6889_v27 = vadd.f32 %v8753_v48, %v6881_v13 }
 0x753   : > { %v6893_v33 = vmax.f32 %v6889_v27, 0.0 }
 0x755   : > { %v6895_v4 = vpack.c.bf16 %v6893_v33, %v6892_v46 }
 0x757   : > { %8416 = vmatmul.msk.bf16.gmra.mxu2 %vm6928_vm5, %v6895_v4 }
 0x7ca   : > { %v6948_v39 = vpop.f32.mrf.mxu2 }
 0x7cb   : > { %v6949_v31 = vadd.f32 %v8754_v34, %v6948_v39 }
 0x7cd   : > { %6959 = vst.msk [vmem:[%s2396_s18] sm:$0xff] %vm6958_vm6, %v6949_v31 }
 0x7d2   : > { %v6950_v14 = vpop.f32.mrf.mxu2 }
 0x7d3   : > { %v6951_v53 = vadd.f32 %v8754_v34, %v6950_v14 }
 0x7d5   : > { %6960 = vst.msk [vmem:[%s2396_s18 + $0x8] sm:$0xff] %vm6958_vm6, %v6951_v53 }
 0x7da   : > { %v6953_v45 = vpop.f32.mrf.mxu2 }
 0x7db   : > { %v6954_v2 = vadd.f32 %v8754_v34, %v6953_v45 }
 0x7dd   : > { %6961 = vst.msk [vmem:[%s2396_s18 + $0x10] sm:$0xff] %vm6958_vm6, %v6954_v2 }
 0x7e2   : > { %v6955_v19 = vpop.f32.mrf.mxu2 }
 0x7e3   : > { %v6956_v57 = vadd.f32 %v8754_v34, %v6955_v19 }
 0x7e5   : > { %6962 = vst.msk [vmem:[%s2396_s18 + $0x18] sm:$0xff] %vm6958_vm6, %v6956_v57 }
 0x7e6 PF: > { %p14_p9 = scmp.ge.s32.totalorder %s8839_s28, 4   ;;  %s11286_s24 = smov %s8776_s25 }
 0x7e7   : > { %s11287_s25 = smov %s8848_s8  ;;  %s11288_s26 = smov %s8839_s28 }
 0x7e8   :  { %16 = sbr.rel (!%p14_p9) target bundleno = 2 (0x2), region = 156 }

</bundles_post_ra>
